<compile_context>
chip_gen: v5e
topology: v5e:2x2
jax: 0.10.0
libtpu: 0.0.40
codegen_flags: <defaults>
</compile_context>

<pallas_src>
import functools

import jax
import jax.numpy as jnp
from jax.experimental import pallas as pl
from jax.experimental.pallas import tpu as pltpu

GAIN = 0.2
LEAKINESS = 0.2
EPS = 1e-8


def _pick_row_tile(h_mid, up, row_tile):
    """Largest strip height <= row_tile that divides H_mid (even when up==2)."""
    divs = [d for d in range(1, h_mid + 1)
            if h_mid % d == 0 and (up == 1 or d % 2 == 0)]
    ok = [d for d in divs if d <= row_tile]
    if ok and max(ok) >= min(row_tile, h_mid) // 2:
        return max(ok)
    return h_mid  # fall back to a single strip


def _fused_block_kernel(xw_ref, w1_ref, w2_ref, b1_ref, b2_ref, o_ref, mid_ref,
                        *, up, K1, TH, WIN, H_mid, W_mid, Cin, Cout, leak, eps):
    """Fused [2x up (H)] + conv1 + lrelu + pxnorm + conv2 + lrelu + pxnorm.

    xw_ref : (1, H + T + B, W_up + 2*P1, Cin)  bf16  W-upsampled, pre-padded input
    w1_ref : (K1*K1*Cin, Cout)                 bf16  im2col-flattened, equal-LR scaled
    w2_ref : (9*Cout,   Cout)                  bf16
    b1_ref, b2_ref : (1, Cout)                 f32
    o_ref  : (1, TH, W_mid, Cout)              f32   one output row-strip
    mid_ref: (TH+2, W_mid+2, Cout)             bf16  stage-1 strip (+halo, +W pad)
    """
    s = pl.program_id(1)
    R1 = TH + 2                               # stage-1 rows incl. 1-row halo each side
    Wp1 = xw_ref.shape[2]

    # ---- gather the source-row window for this strip and upsample along H ----
    row0 = pl.multiple_of(s * (TH // up), TH // up)
    win = xw_ref[0, pl.ds(row0, WIN), :, :]                    # (WIN, Wp1, Cin) bf16
    if up == 2:
        # nearest-neighbor 2x along H: leading-dim broadcast + reshape (no relayout)
        u = jnp.broadcast_to(win[:, None, :, :], (WIN, 2, Wp1, Cin))
        u = u.reshape(WIN * 2, Wp1, Cin)                       # (TH+K1+1, Wp1, Cin)
    else:
        u = win                                                # (TH+K1+1, Wp1, Cin)

    # ---- stage 1: conv(K1xK1) as a single im2col matmul ----
    slabs = []
    for ky in range(K1):
        for kx in range(K1):
            slabs.append(u[ky:ky + R1, kx:kx + W_mid, :])
    xcat = jnp.concatenate(slabs, axis=-1)                     # (R1, W_mid, K1*K1*Cin)
    y1 = jax.lax.dot_general(xcat, w1_ref[...],
                             dimension_numbers=(((2,), (0,)), ((), ())),
                             preferred_element_type=jnp.float32)
    y1 = y1 + b1_ref[...][None, :, :]
    y1 = jnp.where(y1 >= 0, y1, leak * y1)
    y1 = y1 * jax.lax.rsqrt(jnp.mean(y1 * y1, axis=-1, keepdims=True) + eps)
    # halo rows outside the image are stage-2's zero padding, not conv results
    t = jax.lax.broadcasted_iota(jnp.int32, (R1, 1, 1), 0)
    g = s * TH - 1 + t
    y1 = jnp.where((g >= 0) & (g < H_mid), y1, 0.0)

    # stage-1 strip -> bf16 VMEM scratch, with one zero column of W padding per side
    zc = jnp.zeros((R1, 1, Cout), mid_ref.dtype)
    mid_ref[:, 0:1, :] = zc
    mid_ref[:, W_mid + 1:W_mid + 2, :] = zc
    mid_ref[:, 1:1 + W_mid, :] = y1.astype(mid_ref.dtype)

    # ---- stage 2: conv(3x3) as a single im2col matmul ----
    slabs2 = []
    for ky in range(3):
        for kx in range(3):
            slabs2.append(mid_ref[ky:ky + TH, kx:kx + W_mid, :])
    xcat2 = jnp.concatenate(slabs2, axis=-1)                   # (TH, W_mid, 9*Cout)
    y2 = jax.lax.dot_general(xcat2, w2_ref[...],
                             dimension_numbers=(((2,), (0,)), ((), ())),
                             preferred_element_type=jnp.float32)
    y2 = y2 + b2_ref[...][None, :, :]
    y2 = jnp.where(y2 >= 0, y2, leak * y2)
    y2 = y2 * jax.lax.rsqrt(jnp.mean(y2 * y2, axis=-1, keepdims=True) + eps)
    o_ref[0] = y2.astype(o_ref.dtype)


def upsample_block_forward(x_nchw, params, *, upsample=True, leakiness=LEAKINESS,
                           eps=EPS, gain=GAIN, row_tile=16):
    """Forward of UpsampleBlock.  NCHW in / NCHW out, like the PyTorch module."""
    N, Cin, H, W = x_nchw.shape
    Cout, _, K1, _ = params["w1"].shape
    if upsample:
        assert K1 == 3
        up, P1 = 2, 1
    else:
        assert K1 == 4
        up, P1 = 1, 3

    H_up, W_up = up * H, up * W
    H_mid = H_up + 2 * P1 - K1 + 1            # conv1 output height (== final height)
    W_mid = W_up + 2 * P1 - K1 + 1

    # NCHW -> NHWC, bf16.  W-direction 2x nearest + zero padding happen here (one
    # fused XLA producer); the H-direction 2x and all other padding are in-kernel.
    x = jnp.transpose(x_nchw, (0, 2, 3, 1)).astype(jnp.bfloat16)
    if up == 2:
        x = jnp.repeat(x, 2, axis=2)
    T = (P1 + up) // up                        # top zero rows (source resolution)
    B = (H_up + P1) // up - H + 1              # bottom zero rows
    xw = jnp.pad(x, ((0, 0), (T, B), (P1, P1), (0, 0)))

    # weights OIHW -> (K*K*Cin, Cout) im2col layout, equal-LR scale folded, bf16
    def prep_w(w, k):
        cin = w.shape[1]
        scale = (gain / (cin * k * k)) ** 0.5
        w = jnp.transpose(w.astype(jnp.float32) * scale, (2, 3, 1, 0))
        return w.reshape(k * k * cin, -1).astype(jnp.bfloat16)

    w1 = prep_w(params["w1"], K1)
    w2 = prep_w(params["w2"], 3)
    b1 = params["b1"].reshape(1, Cout).astype(jnp.float32)
    b2 = params["b2"].reshape(1, Cout).astype(jnp.float32)

    TH = _pick_row_tile(H_mid, up, row_tile)
    assert H_mid % TH == 0
    n_strips = H_mid // TH
    WIN = TH // 2 + 2 if up == 2 else TH + K1 + 1
    Hx, Wx = xw.shape[1], xw.shape[2]

    kernel = functools.partial(_fused_block_kernel, up=up, K1=K1, TH=TH, WIN=WIN,
                               H_mid=H_mid, W_mid=W_mid, Cin=Cin, Cout=Cout,
                               leak=leakiness, eps=eps)

    out_nhwc = pl.pallas_call(
        kernel,
        out_shape=jax.ShapeDtypeStruct((N, H_mid, W_mid, Cout), jnp.float32),
        grid_spec=pltpu.PrefetchScalarGridSpec(
            num_scalar_prefetch=0,
            grid=(N, n_strips),
            in_specs=[
                pl.BlockSpec((1, Hx, Wx, Cin), lambda n, s: (n, 0, 0, 0)),
                pl.BlockSpec((K1 * K1 * Cin, Cout), lambda n, s: (0, 0)),
                pl.BlockSpec((9 * Cout, Cout), lambda n, s: (0, 0)),
                pl.BlockSpec((1, Cout), lambda n, s: (0, 0)),
                pl.BlockSpec((1, Cout), lambda n, s: (0, 0)),
            ],
            out_specs=pl.BlockSpec((1, TH, W_mid, Cout), lambda n, s: (n, s, 0, 0)),
            scratch_shapes=[pltpu.VMEM((TH + 2, W_mid + 2, Cout), jnp.bfloat16)],
        ),
        compiler_params=pltpu.CompilerParams(
            dimension_semantics=("parallel", "parallel"),
            vmem_limit_bytes=64 * 1024 * 1024,
        ),
    )(xw, w1, w2, b1, b2)

    # NHWC -> NCHW to match the PyTorch module output convention.
    return jnp.transpose(out_nhwc, (0, 3, 1, 2))


def _reference_forward(x_nchw, params, *, upsample=True, leakiness=LEAKINESS):
    """Pure-JAX reference mirroring the PyTorch math, with the same bf16 MXU
    operand rounding and bf16 inter-stage activation the kernel uses."""
    def stage(x, w, b, k, pad):
        cin = w.shape[1]
        scale = (GAIN / (cin * k * k)) ** 0.5
        y = jax.lax.conv_general_dilated(
            x.astype(jnp.bfloat16), (w * scale).astype(jnp.bfloat16),
            window_strides=(1, 1), padding=[(pad, pad), (pad, pad)],
            dimension_numbers=("NCHW", "OIHW", "NCHW"),
            preferred_element_type=jnp.float32)
        y = y + b[None, :, None, None]
        y = jnp.where(y >= 0, y, leakiness * y)
        y = y * jax.lax.rsqrt(jnp.mean(y * y, axis=1, keepdims=True) + EPS)
        return y

    x = x_nchw.astype(jnp.float32)
    if upsample:
        x = jnp.repeat(jnp.repeat(x, 2, axis=2), 2, axis=3)
        k1, p1 = 3, 1
    else:
        k1, p1 = 4, 3
    h = stage(x, params["w1"], params["b1"], k1, p1)
    h = h.astype(jnp.bfloat16).astype(jnp.float32)   # inter-stage bf16, like the kernel
    return stage(h, params["w2"], params["b2"], 3, 1)


def init_params(key, in_channels, out_channels, upsample=True):
    k1 = 3 if upsample else 4
    kw1, kw2 = jax.random.split(key)
    # nn.init.normal_ -> standard normal weights; bias -> zeros.
    return {
        "w1": jax.random.normal(kw1, (out_channels, in_channels, k1, k1),
                                jnp.float32),
        "b1": jnp.zeros((out_channels,), jnp.float32),
        "w2": jax.random.normal(kw2, (out_channels, out_channels, 3, 3),
                                jnp.float32),
        "b2": jnp.zeros((out_channels,), jnp.float32),
    }


if __name__ == "__main__":
    key = jax.random.PRNGKey(0)
    k_x, k_p = jax.random.split(key)

    in_channels, out_channels = 4, 8
    N, H, W = 2, 16, 16

    x = jax.random.normal(k_x, (N, in_channels, H, W), jnp.float32)
    params = init_params(k_p, in_channels, out_channels, upsample=True)

    out = jax.block_until_ready(upsample_block_forward(x, params, upsample=True))
    ref = jax.block_until_ready(_reference_forward(x, params, upsample=True))

    assert out.shape == (N, out_channels, 2 * H, 2 * W), out.shape
    max_err = float(jnp.max(jnp.abs(out - ref)))
    assert jnp.allclose(out, ref, atol=1e-2, rtol=1e-2), max_err

    print("KERNEL_OK")
</pallas_src>

<mosaic_0001>
module attributes {stable_mosaic.version = 11 : i64} {
  func.func @_fused_block_kernel(%arg0: i32, %arg1: i32, %arg2: memref<1x18x34x4xbf16, #tpu.memory_space<vmem>>, %arg3: memref<36x8xbf16, #tpu.memory_space<vmem>>, %arg4: memref<72x8xbf16, #tpu.memory_space<vmem>>, %arg5: memref<1x8xf32, #tpu.memory_space<vmem>>, %arg6: memref<1x8xf32, #tpu.memory_space<vmem>>, %arg7: memref<1x16x32x8xf32, #tpu.memory_space<vmem>>, %arg8: memref<18x34x8xbf16, #tpu.memory_space<vmem>>) attributes {dimension_semantics = [#tpu.dimension_semantics<parallel>, #tpu.dimension_semantics<parallel>], iteration_bounds = array<i64: 2, 2>, scalar_prefetch = 0 : i64, scratch_operands = 1 : i64, tpu.core_type = #tpu.core_type<tc>, window_params = [{transform_indices = @transform_0, window_bounds = array<i64: 1, 18, 34, 4>}, {pipeline_mode = #tpu.pipeline_mode<synchronous>, transform_indices = @transform_1, window_bounds = array<i64: 36, 8>}, {pipeline_mode = #tpu.pipeline_mode<synchronous>, transform_indices = @transform_2, window_bounds = array<i64: 72, 8>}, {pipeline_mode = #tpu.pipeline_mode<synchronous>, transform_indices = @transform_3, window_bounds = array<i64: 1, 8>}, {pipeline_mode = #tpu.pipeline_mode<synchronous>, transform_indices = @transform_4, window_bounds = array<i64: 1, 8>}, {transform_indices = @transform_5, window_bounds = array<i64: 1, 16, 32, 8>}]} {
    %c8_i32 = arith.constant 8 : i32
    %0 = arith.muli %arg1, %c8_i32 : i32
    %1 = tpu.assume_multiple %0, 8 : i32
    %c0 = arith.constant 0 : index
    %2 = arith.index_cast %1 : i32 to index
    %c0_0 = arith.constant 0 : index
    %c0_1 = arith.constant 0 : index
    %3 = vector.load %arg2[%c0, %2, %c0_0, %c0_1] : memref<1x18x34x4xbf16, #tpu.memory_space<vmem>>, vector<1x10x34x4xbf16>
    %4 = vector.shape_cast %3 : vector<1x10x34x4xbf16> to vector<10x34x4xbf16>
    %5 = vector.shape_cast %4 : vector<10x34x4xbf16> to vector<10x1x34x4xbf16>
    %6 = vector.shape_cast %5 : vector<10x1x34x4xbf16> to vector<10x1x34x4xbf16>
    %7 = vector.broadcast %6 : vector<10x1x34x4xbf16> to vector<10x2x34x4xbf16>
    %8 = vector.shape_cast %7 : vector<10x2x34x4xbf16> to vector<20x34x4xbf16>
    %9 = vector.extract_strided_slice %8 {offsets = [0, 0, 0], sizes = [18, 32, 4], strides = [1, 1, 1]} : vector<20x34x4xbf16> to vector<18x32x4xbf16>
    %10 = vector.extract_strided_slice %8 {offsets = [0, 1, 0], sizes = [18, 32, 4], strides = [1, 1, 1]} : vector<20x34x4xbf16> to vector<18x32x4xbf16>
    %11 = vector.extract_strided_slice %8 {offsets = [0, 2, 0], sizes = [18, 32, 4], strides = [1, 1, 1]} : vector<20x34x4xbf16> to vector<18x32x4xbf16>
    %12 = vector.extract_strided_slice %8 {offsets = [1, 0, 0], sizes = [18, 32, 4], strides = [1, 1, 1]} : vector<20x34x4xbf16> to vector<18x32x4xbf16>
    %13 = vector.extract_strided_slice %8 {offsets = [1, 1, 0], sizes = [18, 32, 4], strides = [1, 1, 1]} : vector<20x34x4xbf16> to vector<18x32x4xbf16>
    %14 = vector.extract_strided_slice %8 {offsets = [1, 2, 0], sizes = [18, 32, 4], strides = [1, 1, 1]} : vector<20x34x4xbf16> to vector<18x32x4xbf16>
    %15 = vector.extract_strided_slice %8 {offsets = [2, 0, 0], sizes = [18, 32, 4], strides = [1, 1, 1]} : vector<20x34x4xbf16> to vector<18x32x4xbf16>
    %16 = vector.extract_strided_slice %8 {offsets = [2, 1, 0], sizes = [18, 32, 4], strides = [1, 1, 1]} : vector<20x34x4xbf16> to vector<18x32x4xbf16>
    %17 = vector.extract_strided_slice %8 {offsets = [2, 2, 0], sizes = [18, 32, 4], strides = [1, 1, 1]} : vector<20x34x4xbf16> to vector<18x32x4xbf16>
    %18 = tpu.concatenate %9, %10, %11, %12, %13, %14, %15, %16, %17 in 2 : vector<18x32x4xbf16>, vector<18x32x4xbf16>, vector<18x32x4xbf16>, vector<18x32x4xbf16>, vector<18x32x4xbf16>, vector<18x32x4xbf16>, vector<18x32x4xbf16>, vector<18x32x4xbf16>, vector<18x32x4xbf16> -> vector<18x32x36xbf16>
    %c0_2 = arith.constant 0 : index
    %c0_3 = arith.constant 0 : index
    %19 = vector.load %arg3[%c0_2, %c0_3] : memref<36x8xbf16, #tpu.memory_space<vmem>>, vector<36x8xbf16>
    %cst = arith.constant dense<0.000000e+00> : vector<18x32x8xf32>
    %20 = tpu.matmul %18, %19, %cst {dimension_numbers = #tpu.dot_dimension_numbers<[2], [0], [0, 1], [1], [0, 0, 0, 1, 1, 1], [], []>} : vector<18x32x36xbf16>, vector<36x8xbf16>, vector<18x32x8xf32> -> vector<18x32x8xf32>
    %c0_4 = arith.constant 0 : index
    %c0_5 = arith.constant 0 : index
    %21 = vector.load %arg5[%c0_4, %c0_5] : memref<1x8xf32, #tpu.memory_space<vmem>>, vector<1x8xf32>
    %22 = vector.shape_cast %21 : vector<1x8xf32> to vector<1x1x8xf32>
    %23 = vector.broadcast %22 : vector<1x1x8xf32> to vector<18x32x8xf32>
    %24 = arith.addf %20, %23 : vector<18x32x8xf32>
    %cst_6 = arith.constant 0.000000e+00 : f32
    %25 = vector.broadcast %cst_6 : f32 to vector<18x32x8xf32>
    %26 = arith.cmpf oge, %24, %25 : vector<18x32x8xf32>
    %cst_7 = arith.constant 2.000000e-01 : f32
    %27 = vector.broadcast %cst_7 : f32 to vector<18x32x8xf32>
    %28 = arith.mulf %27, %24 : vector<18x32x8xf32>
    %29 = arith.select %26, %24, %28 : vector<18x32x8xi1>, vector<18x32x8xf32>
    %30 = arith.mulf %29, %29 : vector<18x32x8xf32>
    %cst_8 = arith.constant dense<0.000000e+00> : vector<18x32xf32>
    %31 = vector.multi_reduction <add>, %30, %cst_8 [2] : vector<18x32x8xf32> to vector<18x32xf32>
    %32 = vector.shape_cast %31 : vector<18x32xf32> to vector<18x32x1xf32>
    %cst_9 = arith.constant 8.000000e+00 : f32
    %33 = vector.broadcast %cst_9 : f32 to vector<18x32x1xf32>
    %34 = arith.divf %32, %33 : vector<18x32x1xf32>
    %cst_10 = arith.constant 9.99999993E-9 : f32
    %35 = vector.broadcast %cst_10 : f32 to vector<18x32x1xf32>
    %36 = arith.addf %34, %35 : vector<18x32x1xf32>
    %37 = math.rsqrt %36 : vector<18x32x1xf32>
    %38 = vector.broadcast %37 : vector<18x32x1xf32> to vector<18x32x8xf32>
    %39 = arith.mulf %29, %38 : vector<18x32x8xf32>
    %40 = tpu.iota {dimensions = array<i32: 0>} : vector<18x1x1xi32>
    %c16_i32 = arith.constant 16 : i32
    %41 = arith.muli %arg1, %c16_i32 : i32
    %c1_i32 = arith.constant 1 : i32
    %42 = arith.subi %41, %c1_i32 : i32
    %43 = vector.broadcast %42 : i32 to vector<18x1x1xi32>
    %44 = arith.addi %43, %40 : vector<18x1x1xi32>
    %c0_i32 = arith.constant 0 : i32
    %45 = vector.broadcast %c0_i32 : i32 to vector<18x1x1xi32>
    %46 = arith.cmpi sge, %44, %45 : vector<18x1x1xi32>
    %c32_i32 = arith.constant 32 : i32
    %47 = vector.broadcast %c32_i32 : i32 to vector<18x1x1xi32>
    %48 = arith.cmpi slt, %44, %47 : vector<18x1x1xi32>
    %49 = arith.andi %46, %48 : vector<18x1x1xi1>
    %cst_11 = arith.constant 0.000000e+00 : f32
    %50 = vector.shape_cast %49 : vector<18x1x1xi1> to vector<18x1x1xi1>
    %51 = vector.broadcast %50 : vector<18x1x1xi1> to vector<18x32x8xi1>
    %52 = vector.broadcast %cst_11 : f32 to vector<18x32x8xf32>
    %53 = arith.select %51, %39, %52 : vector<18x32x8xi1>, vector<18x32x8xf32>
    %cst_12 = arith.constant 0.000000e+00 : bf16
    %54 = vector.broadcast %cst_12 : bf16 to vector<18x1x8xbf16>
    %c0_13 = arith.constant 0 : index
    %c0_14 = arith.constant 0 : index
    %c0_15 = arith.constant 0 : index
    %55 = vector.load %arg8[%c0_13, %c0_14, %c0_15] : memref<18x34x8xbf16, #tpu.memory_space<vmem>>, vector<18x1x8xbf16>
    tpu.vector_store %arg8[%c0_13, %c0_14, %c0_15], %54 {strides = array<i32>} : memref<18x34x8xbf16, #tpu.memory_space<vmem>>, vector<18x1x8xbf16>,
    %c0_16 = arith.constant 0 : index
    %c33 = arith.constant 33 : index
    %c0_17 = arith.constant 0 : index
    %56 = vector.load %arg8[%c0_16, %c33, %c0_17] : memref<18x34x8xbf16, #tpu.memory_space<vmem>>, vector<18x1x8xbf16>
    tpu.vector_store %arg8[%c0_16, %c33, %c0_17], %54 {strides = array<i32>} : memref<18x34x8xbf16, #tpu.memory_space<vmem>>, vector<18x1x8xbf16>,
    %57 = arith.truncf %53 : vector<18x32x8xf32> to vector<18x32x8xbf16>
    %c0_18 = arith.constant 0 : index
    %c1 = arith.constant 1 : index
    %c0_19 = arith.constant 0 : index
    %58 = vector.load %arg8[%c0_18, %c1, %c0_19] : memref<18x34x8xbf16, #tpu.memory_space<vmem>>, vector<18x32x8xbf16>
    tpu.vector_store %arg8[%c0_18, %c1, %c0_19], %57 {strides = array<i32>} : memref<18x34x8xbf16, #tpu.memory_space<vmem>>, vector<18x32x8xbf16>,
    %c0_20 = arith.constant 0 : index
    %c0_21 = arith.constant 0 : index
    %c0_22 = arith.constant 0 : index
    %59 = vector.load %arg8[%c0_20, %c0_21, %c0_22] : memref<18x34x8xbf16, #tpu.memory_space<vmem>>, vector<16x32x8xbf16>
    %c0_23 = arith.constant 0 : index
    %c1_24 = arith.constant 1 : index
    %c0_25 = arith.constant 0 : index
    %60 = vector.load %arg8[%c0_23, %c1_24, %c0_25] : memref<18x34x8xbf16, #tpu.memory_space<vmem>>, vector<16x32x8xbf16>
    %c0_26 = arith.constant 0 : index
    %c2 = arith.constant 2 : index
    %c0_27 = arith.constant 0 : index
    %61 = vector.load %arg8[%c0_26, %c2, %c0_27] : memref<18x34x8xbf16, #tpu.memory_space<vmem>>, vector<16x32x8xbf16>
    %c1_28 = arith.constant 1 : index
    %c0_29 = arith.constant 0 : index
    %c0_30 = arith.constant 0 : index
    %62 = vector.load %arg8[%c1_28, %c0_29, %c0_30] : memref<18x34x8xbf16, #tpu.memory_space<vmem>>, vector<16x32x8xbf16>
    %c1_31 = arith.constant 1 : index
    %c1_32 = arith.constant 1 : index
    %c0_33 = arith.constant 0 : index
    %63 = vector.load %arg8[%c1_31, %c1_32, %c0_33] : memref<18x34x8xbf16, #tpu.memory_space<vmem>>, vector<16x32x8xbf16>
    %c1_34 = arith.constant 1 : index
    %c2_35 = arith.constant 2 : index
    %c0_36 = arith.constant 0 : index
    %64 = vector.load %arg8[%c1_34, %c2_35, %c0_36] : memref<18x34x8xbf16, #tpu.memory_space<vmem>>, vector<16x32x8xbf16>
    %c2_37 = arith.constant 2 : index
    %c0_38 = arith.constant 0 : index
    %c0_39 = arith.constant 0 : index
    %65 = vector.load %arg8[%c2_37, %c0_38, %c0_39] : memref<18x34x8xbf16, #tpu.memory_space<vmem>>, vector<16x32x8xbf16>
    %c2_40 = arith.constant 2 : index
    %c1_41 = arith.constant 1 : index
    %c0_42 = arith.constant 0 : index
    %66 = vector.load %arg8[%c2_40, %c1_41, %c0_42] : memref<18x34x8xbf16, #tpu.memory_space<vmem>>, vector<16x32x8xbf16>
    %c2_43 = arith.constant 2 : index
    %c2_44 = arith.constant 2 : index
    %c0_45 = arith.constant 0 : index
    %67 = vector.load %arg8[%c2_43, %c2_44, %c0_45] : memref<18x34x8xbf16, #tpu.memory_space<vmem>>, vector<16x32x8xbf16>
    %68 = tpu.concatenate %59, %60, %61, %62, %63, %64, %65, %66, %67 in 2 : vector<16x32x8xbf16>, vector<16x32x8xbf16>, vector<16x32x8xbf16>, vector<16x32x8xbf16>, vector<16x32x8xbf16>, vector<16x32x8xbf16>, vector<16x32x8xbf16>, vector<16x32x8xbf16>, vector<16x32x8xbf16> -> vector<16x32x72xbf16>
    %c0_46 = arith.constant 0 : index
    %c0_47 = arith.constant 0 : index
    %69 = vector.load %arg4[%c0_46, %c0_47] : memref<72x8xbf16, #tpu.memory_space<vmem>>, vector<72x8xbf16>
    %cst_48 = arith.constant dense<0.000000e+00> : vector<16x32x8xf32>
    %70 = tpu.matmul %68, %69, %cst_48 {dimension_numbers = #tpu.dot_dimension_numbers<[2], [0], [0, 1], [1], [0, 0, 0, 1, 1, 1], [], []>} : vector<16x32x72xbf16>, vector<72x8xbf16>, vector<16x32x8xf32> -> vector<16x32x8xf32>
    %c0_49 = arith.constant 0 : index
    %c0_50 = arith.constant 0 : index
    %71 = vector.load %arg6[%c0_49, %c0_50] : memref<1x8xf32, #tpu.memory_space<vmem>>, vector<1x8xf32>
    %72 = vector.shape_cast %71 : vector<1x8xf32> to vector<1x1x8xf32>
    %73 = vector.broadcast %72 : vector<1x1x8xf32> to vector<16x32x8xf32>
    %74 = arith.addf %70, %73 : vector<16x32x8xf32>
    %cst_51 = arith.constant 0.000000e+00 : f32
    %75 = vector.broadcast %cst_51 : f32 to vector<16x32x8xf32>
    %76 = arith.cmpf oge, %74, %75 : vector<16x32x8xf32>
    %cst_52 = arith.constant 2.000000e-01 : f32
    %77 = vector.broadcast %cst_52 : f32 to vector<16x32x8xf32>
    %78 = arith.mulf %77, %74 : vector<16x32x8xf32>
    %79 = arith.select %76, %74, %78 : vector<16x32x8xi1>, vector<16x32x8xf32>
    %80 = arith.mulf %79, %79 : vector<16x32x8xf32>
    %cst_53 = arith.constant dense<0.000000e+00> : vector<16x32xf32>
    %81 = vector.multi_reduction <add>, %80, %cst_53 [2] : vector<16x32x8xf32> to vector<16x32xf32>
    %82 = vector.shape_cast %81 : vector<16x32xf32> to vector<16x32x1xf32>
    %cst_54 = arith.constant 8.000000e+00 : f32
    %83 = vector.broadcast %cst_54 : f32 to vector<16x32x1xf32>
    %84 = arith.divf %82, %83 : vector<16x32x1xf32>
    %cst_55 = arith.constant 9.99999993E-9 : f32
    %85 = vector.broadcast %cst_55 : f32 to vector<16x32x1xf32>
    %86 = arith.addf %84, %85 : vector<16x32x1xf32>
    %87 = math.rsqrt %86 : vector<16x32x1xf32>
    %88 = vector.broadcast %87 : vector<16x32x1xf32> to vector<16x32x8xf32>
    %89 = arith.mulf %79, %88 : vector<16x32x8xf32>
    %c0_56 = arith.constant 0 : index
    %c0_57 = arith.constant 0 : index
    %c0_58 = arith.constant 0 : index
    %c0_59 = arith.constant 0 : index
    %90 = vector.load %arg7[%c0_56, %c0_57, %c0_58, %c0_59] : memref<1x16x32x8xf32, #tpu.memory_space<vmem>>, vector<1x16x32x8xf32>
    %91 = vector.shape_cast %90 : vector<1x16x32x8xf32> to vector<16x32x8xf32>
    %92 = vector.shape_cast %89 : vector<16x32x8xf32> to vector<1x16x32x8xf32>
    tpu.vector_store %arg7[%c0_56, %c0_57, %c0_58, %c0_59], %92 {strides = array<i32>} : memref<1x16x32x8xf32, #tpu.memory_space<vmem>>, vector<1x16x32x8xf32>,
    return
  }
  func.func @transform_0(%arg0: i32, %arg1: i32) -> (i32, i32, i32, i32) {
    %c0_i32 = arith.constant 0 : i32
    %c0_i32_0 = arith.constant 0 : i32
    %c0_i32_1 = arith.constant 0 : i32
    %c0_i32_2 = arith.constant 0 : i32
    return %arg0, %c0_i32, %c0_i32_0, %c0_i32_1 : i32, i32, i32, i32
  }
  func.func @transform_1(%arg0: i32, %arg1: i32) -> (i32, i32) {
    %c0_i32 = arith.constant 0 : i32
    %c0_i32_0 = arith.constant 0 : i32
    %c0_i32_1 = arith.constant 0 : i32
    return %c0_i32, %c0_i32_0 : i32, i32
  }
  func.func @transform_2(%arg0: i32, %arg1: i32) -> (i32, i32) {
    %c0_i32 = arith.constant 0 : i32
    %c0_i32_0 = arith.constant 0 : i32
    %c0_i32_1 = arith.constant 0 : i32
    return %c0_i32, %c0_i32_0 : i32, i32
  }
  func.func @transform_3(%arg0: i32, %arg1: i32) -> (i32, i32) {
    %c0_i32 = arith.constant 0 : i32
    %c0_i32_0 = arith.constant 0 : i32
    %c0_i32_1 = arith.constant 0 : i32
    return %c0_i32, %c0_i32_0 : i32, i32
  }
  func.func @transform_4(%arg0: i32, %arg1: i32) -> (i32, i32) {
    %c0_i32 = arith.constant 0 : i32
    %c0_i32_0 = arith.constant 0 : i32
    %c0_i32_1 = arith.constant 0 : i32
    return %c0_i32, %c0_i32_0 : i32, i32
  }
  func.func @transform_5(%arg0: i32, %arg1: i32) -> (i32, i32, i32, i32) {
    %c0_i32 = arith.constant 0 : i32
    %c0_i32_0 = arith.constant 0 : i32
    %c0_i32_1 = arith.constant 0 : i32
    return %arg0, %arg1, %c0_i32, %c0_i32_0 : i32, i32, i32, i32
  }
}

</mosaic_0001>

<bundles_post_ra>
// kernel: tpu_custom_call.1
= control target key start
LH: loop header
LB: loop body
LE: loop exit
PB: predicated region body
PF: predicated region fallthrough
CT: control target
= control target key end

     0   :  { %s10587_s18 = smov 0   ;;  %s10589_s19 = smov 0   ;;  %s18179_s0 = inlined_call_operand.vmem [shape: bf16[2,18,34,4], index: 0, kind: input, shape index: {}]   ;;  %s18180_s1 = inlined_call_operand.vmem [shape: bf16[36,8], index: 1, kind: input, shape index: {}]   ;;  %s18181_s2 = inlined_call_operand.vmem [shape: bf16[72,8], index: 2, kind: input, shape index: {}]   ;;  %s18182_s3 = inlined_call_operand.vmem [shape: f32[1,8], index: 3, kind: input, shape index: {}]   ;;  %s18183_s4 = inlined_call_operand.vmem [shape: f32[1,8], index: 4, kind: input, shape index: {}]   ;;  %s18184_s5 = inlined_call_operand.vmem [shape: f32[2,32,32,8], index: 5, kind: output, shape index: {}]  }
   0x1   :  { %s10591_s20 = smov 0   ;;  %s10593_s21 = smov 0  }
   0x2   :  { %s10595_s22 = smov 0  }
   0x3 LB: > { %s24_s23 = sadd.s32 1, %s10534_s20  ;;  %s27_s24 = sadd.s32 1, %s10538_s21  ;;  %s10542_s22 = sphi %s10595_s22, %s15_s22   ;;  %s10538_s21 = sphi %s10593_s21, %s19132_s21   ;;  %s10534_s20 = sphi %s10591_s20, %s19131_s20   ;;  %s10530_s19 = sphi %s10589_s19, %s19130_s19   ;;  %s10526_s18 = sphi %s10587_s18, %s19129_s18  }
   0x4   : > { %p25_p0 = scmp.ge.s32.totalorder %s24_s23, 2  ;;  %p9392_p1 = scmp.ge.s32.totalorder %s10542_s22, 1 }
   0x5   : > { %p201_p2 = scmp.lt.s32.totalorder %s10542_s22, 5 }
   0x6   : > { %s19134_s23 = smov (%p25_p0, %s24_s23), 0  ;;  %s19136_s24 = smov (!%p25_p0, %s27_s24), %s10538_s21 }
   0x7   : > { %p202_p3 = pnand %p9392_p1, %p201_p2  ;;  %p29_p4 = scmp.ge.s32.totalorder %s19136_s24, 2 }
   0x9   : > { %s19138_s24 = smov (%p29_p4, %s19136_s24), 0  ;;  %205 = sbr.rel (%p202_p3) target bundleno = 2364 (0x93c), region = 40 }
   0xe   : > { %p234_p5 = scmp.lt.s32.totalorder %s10530_s19, 1  ;;  %s9769_s25 = smul.u32 160, %s10526_s18  ;;  %vm18258_vm0 = vsmask.f32 7424  ;;  %vm18245_vm1 = vcmask 1046528   ;;  %vm1494_vm2 = vcmask 1041408  }
   0xf   : > { %s10544_s6 = smov 4   ;;  %s10545_s7 = smov 8   ;;  %vm987_vm3 = vcmask 31744   ;;  %vm1024_vm4 = vcmask 64512   ;;  %vm18244_vm5 = vcmask 130048   ;;  %vm1061_vm6 = vcmask 97280  }
  0x10   : > { %s19140_s19 = smov (!%p234_p5, %s10530_s19), 1  ;;  %s10546_s8 = smov 12   ;;  %vm1175_vm7 = vcmask 162816   ;;  %vm18234_vm8 = vcmask 195584   ;;  %vm1287_vm9 = vcmask 228352   ;;  %vm1421_vm10 = vcmask 293888  }
  0x11   : > { %s10045_s26 = smul.u32 360, %s19140_s19  ;;  %s10547_s9 = smov 16   ;;  %vm18233_vm11 = vcmask 261120  }
  0x12   : > { %s10548_s10 = smov 20   ;;  %s10549_s11 = smov 24  }
  0x13   : > { %s238_s29 = scalar_lea.vmem %s18179_s0, %s10045_s26  ;;  %s10550_s12 = smov 28  }
  0x14   : > { %s10626_s30 = scalar_lea.vmem %s238_s29, %s9769_s25  ;;  %s10551_s13 = smov 32  }
  0x15   : > { %v10629_v0 = vld [vmem:[%s10626_s30 + $0x28] sm:$0xff]  ;;  %v10632_v1 = vld [vmem:[%s10626_s30 + $0x30] sm:$0xff]  ;;  %v10638_v3 = vld [vmem:[%s10626_s30 + $0x1c] sm:$0xff]  ;;  %s12279_s29 = sshll.u32 %s10526_s18, 4 }
  0x16   : > { %v10635_v2 = vld [vmem:[%s10626_s30 + $0x14] sm:$0xff]  ;;  %v10641_v4 = vld [vmem:[%s10626_s30] sm:$0xff]  ;;  %v10644_v5 = vld [vmem:[%s10626_s30 + $0x8] sm:$0xff]  ;;  %v464_v6 = vshrl.u32 %v10629_v0, 16  ;;  %v466_v7 = vshll.u32 %v10629_v0, 16  ;;  %v471_v8 = vshll.u32 %v10632_v1, 16 }
  0x17   : > { %v444_v9 = vshrl.u32 %v10635_v2, 16  ;;  %v269_v10 = vld [vmem:[%s10626_s30 + $0x38] sm:$0x1]  ;;  %v446_v11 = vshll.u32 %v10635_v2, 16  ;;  %v451_v12 = vshll.u32 %v10638_v3, 16  ;;  %v424_v13 = vshrl.u32 %v10641_v4, 16 }
  0x18   : > { %v426_v14 = vshll.u32 %v10641_v4, 16  ;;  %v264_v15 = vld [vmem:[%s10626_s30 + $0x24] sm:$0x1]  ;;  %v468_v16 = vrot.slane %v466_v7, 1  ;;  %v473_v17 = vrot.slane %v471_v8, 1  ;;  %v431_v18 = vshll.u32 %v10644_v5, 16 }
  0x19   : > { %v406_v19 = vunpack.c.l.b16 %v269_v10  ;;  %v448_v20 = vrot.slane %v446_v11, 1  ;;  %v453_v21 = vrot.slane %v451_v12, 1  ;;  %v475_v23 = vshrl.u32 %v10632_v1, 16  ;;  %v259_v24 = vld [vmem:[%s10626_s30 + $0x10] sm:$0x1]  ;;  %v10672_v37 = vld [vmem:[%s10626_s30 + $0x58] sm:$0xff] }
  0x1a   : > { %v428_v22 = vrot.slane %v426_v14, 1  ;;  %v469_v25 = vor.u32 %v468_v16, %v464_v6  ;;  %v433_v26 = vrot.slane %v431_v18, 1  ;;  %v405_v28 = vunpack.c.l.b16 %v264_v15  ;;  %v10663_v32 = vld [vmem:[%s10626_s30 + $0x50] sm:$0xff]  ;;  %v10675_v38 = vld [vmem:[%s10626_s30 + $0x44] sm:$0xff]  ;;  %v274_v39 = vld [vmem:[%s10626_s30 + $0x4c] sm:$0x1] }
  0x1b   : > { %v10659_v27 = vpack.c.b16 %v406_v19, %v406_v19  ;;  %v449_v29 = vor.u32 %v448_v20, %v444_v9  ;;  %v455_v31 = vshrl.u32 %v10638_v3, 16  ;;  %v404_v36 = vunpack.c.l.b16 %v259_v24  ;;  %v10696_v51 = vld [vmem:[%s10626_s30 + $0x3c] sm:$0xff]  ;;  %v284_v56 = vld [vmem:[%s10626_s30 + $0x74] sm:$0x1]  ;;  %v10709_v61 = vld [vmem:[%s10626_s30 + $0x6c] sm:$0xff]  ;;  %s9526_s18 = sadd.s32 4294967295, %s12279_s29 }
  0x1c   : > { %v429_v30 = vor.u32 %v428_v22, %v424_v13  ;;  %v10666_v33 = vsel %vm18258_vm0, %v469_v25, %v473_v17  ;;  %v10669_v35 = vpack.c.b16 %v405_v28, %v405_v28  ;;  %v477_v42 = vor.u32 %v475_v23, %v473_v17  ;;  %v10716_v8 = vld [vmem:[%s10626_s30 + $0x64] sm:$0xff]  ;;  %v279_v13 = vld [vmem:[%s10626_s30 + $0x60] sm:$0x1]  ;;  %p242_p6 = scmp.lt.s32.totalorder %s12279_s29, 31 }
  0x1d   : > { %v479_v34 = vshll.u32 %v10659_v27, 16  ;;  %611 = vrot.lane.b32.xlu2 %v10666_v33, %s10544_s6  ;;  %v10681_v40 = vsel %vm18258_vm0, %v449_v29, %v453_v21  ;;  %v435_v43 = vshrl.u32 %v10644_v5, 16  ;;  %v457_v45 = vor.u32 %v455_v31, %v453_v21  ;;  %v10741_v31 = vld [vmem:[%s10626_s30 + $0x8c] sm:$0xff] }
  0x1e   : > { %v10684_v41 = vsel %vm18258_vm0, %v429_v30, %v433_v26  ;;  %607 = vrot.lane.b32.xlu1 %v10681_v40, %s10544_s6  ;;  %v459_v46 = vshll.u32 %v10669_v35, 16  ;;  %v10692_v47 = vpack.c.b16 %v404_v36, %v404_v36  ;;  %v506_v49 = vshll.u32 %v10663_v32, 16  ;;  %s19142_s29 = smov (!%p242_p6, %s12279_s29), 31 }
  0x1f   : > { %603 = vrot.lane.b32.xlu0 %v10684_v41, %s10544_s6  ;;  %v481_v44 = vrot.slane %v479_v34, 1  ;;  %v437_v48 = vor.u32 %v435_v43, %v433_v26  ;;  %v407_v50 = vunpack.c.l.b16 %v274_v39  ;;  %v511_v54 = vshll.u32 %v10672_v37, 16  ;;  %v289_v26 = vld [vmem:[%s10626_s30 + $0x88] sm:$0x1]  ;;  %v10751_v43 = vld [vmem:[%s10626_s30 + $0x80] sm:$0xff] }
  0x20   : > { %v461_v52 = vrot.slane %v459_v46, 1  ;;  %v439_v53 = vshll.u32 %v10692_v47, 16  ;;  %v491_v55 = vshll.u32 %v10675_v38, 16  ;;  %v504_v58 = vshrl.u32 %v10663_v32, 16 }
  0x21   : > { %v10703_v57 = vsel %vm18258_vm0, %v477_v42, %v481_v44  ;;  %v508_v59 = vrot.slane %v506_v49, 1  ;;  %v10706_v60 = vpack.c.b16 %v407_v50, %v407_v50  ;;  %v495_v7 = vshrl.u32 %v10675_v38, 16  ;;  %v10759_v49 = vld [vmem:[%s10626_s30 + $0x78] sm:$0xff] }
  0x22   : > { %v10712_v62 = vsel %vm18258_vm0, %v457_v45, %v461_v52  ;;  %v441_v63 = vrot.slane %v439_v53, 1  ;;  %v493_v6 = vrot.slane %v491_v55, 1  ;;  %v484_v10 = vshrl.u32 %v10696_v51, 16  ;;  %v10764_v53 = vld [vmem:[%s10626_s30 + $0x94] sm:$0xff] }
  0x23   : > { %v499_v9 = vshll.u32 %v10706_v60, 16  ;;  %v486_v11 = vshll.u32 %v10696_v51, 16  ;;  %v409_v12 = vunpack.c.l.b16 %v284_v56  ;;  %v513_v15 = vrot.slane %v511_v54, 1 }
  0x24   : > { %v10723_v14 = vsel %vm18258_vm0, %v437_v48, %v441_v63  ;;  %v509_v16 = vor.u32 %v508_v59, %v504_v58  ;;  %v531_v19 = vshll.u32 %v10709_v61, 16  ;;  %v497_v20 = vor.u32 %v495_v7, %v493_v6  ;;  %v299_v7 = vld [vmem:[%s10626_s30 + $0xb0] sm:$0x1] }
  0x25   : > { %613 = vrot.lane.b32.xlu2 %v10703_v57, %s10544_s6  ;;  %v488_v17 = vrot.slane %v486_v11, 1  ;;  %v10727_v18 = vpack.c.b16 %v409_v12, %v409_v12  ;;  %v501_v21 = vrot.slane %v499_v9, 1  ;;  %v526_v22 = vshll.u32 %v10716_v8, 16 }
  0x26   : > { %609 = vrot.lane.b32.xlu1 %v10712_v62, %s10544_s6  ;;  %v408_v23 = vunpack.c.l.b16 %v279_v13  ;;  %v533_v28 = vrot.slane %v531_v19, 1  ;;  %v535_v29 = vshrl.u32 %v10709_v61, 16  ;;  %v10744_v34 = vsel %vm18258_vm0, %v509_v16, %v513_v15 }
  0x27   : > { %605 = vrot.lane.b32.xlu0 %v10723_v14, %s10544_s6  ;;  %v489_v24 = vor.u32 %v488_v17, %v484_v10  ;;  %v539_v30 = vshll.u32 %v10727_v18, 16  ;;  %v10747_v36 = vsel %vm18258_vm0, %v497_v20, %v501_v21  ;;  %v524_v39 = vshrl.u32 %v10716_v8, 16  ;;  %v294_v10 = vld [vmem:[%s10626_s30 + $0x9c] sm:$0x1]  ;;  %v10788_v20 = vld [vmem:[%s10626_s30 + $0xa8] sm:$0xff] }
  0x28   : > { %v10735_v25 = vpack.c.b16 %v408_v23, %v408_v23  ;;  %v528_v42 = vrot.slane %v526_v22, 1  ;;  %v515_v45 = vshrl.u32 %v10672_v37, 16  ;;  %v410_v48 = vunpack.c.l.b16 %v289_v26  ;;  %v10795_v26 = vld [vmem:[%s10626_s30 + $0xa0] sm:$0xff] }
  0x29   : > { %v10754_v44 = vsel %vm18258_vm0, %v489_v24, %v493_v6  ;;  %v537_v50 = vor.u32 %v535_v29, %v533_v28  ;;  %v541_v52 = vrot.slane %v539_v30, 1  ;;  %v566_v54 = vshll.u32 %v10741_v31, 16 }
  0x2a   : > { %v519_v46 = vshll.u32 %v10735_v25, 16  ;;  %v529_v55 = vor.u32 %v528_v42, %v524_v39  ;;  %v551_v56 = vshll.u32 %v10751_v43, 16  ;;  %v517_v58 = vor.u32 %v515_v45, %v513_v15 }
  0x2b   : > { %v10772_v63 = vpack.c.b16 %v410_v48, %v410_v48  ;;  %v546_v6 = vshll.u32 %v10759_v49, 16  ;;  %v564_v9 = vshrl.u32 %v10741_v31, 16  ;;  %v10779_v11 = vsel %vm18258_vm0, %v537_v50, %v541_v52 }
  0x2c   : > { %v521_v59 = vrot.slane %v519_v46, 1  ;;  %v568_v12 = vrot.slane %v566_v54, 1  ;;  %v571_v13 = vshll.u32 %v10764_v53, 16  ;;  %v555_v16 = vshrl.u32 %v10751_v43, 16 }
  0x2d   : > { %619 = vrot.lane.b32.xlu2 %v10744_v34, %s10544_s6  ;;  %v10784_v15 = vsel %vm18258_vm0, %v529_v55, %v533_v28  ;;  %v553_v17 = vrot.slane %v551_v56, 1  ;;  %v544_v19 = vshrl.u32 %v10759_v49, 16  ;;  %v412_v21 = vunpack.c.l.b16 %v299_v7 }
  0x2e   : > { %617 = vrot.lane.b32.xlu1 %v10747_v36, %s10544_s6  ;;  %v10791_v22 = vsel %vm18258_vm0, %v517_v58, %v521_v59  ;;  %v559_v23 = vshll.u32 %v10772_v63, 16  ;;  %v548_v24 = vrot.slane %v546_v6, 1  ;;  %v411_v29 = vunpack.c.l.b16 %v294_v10 }
  0x2f   : > { %615 = vrot.lane.b32.xlu0 %v10754_v44, %s10544_s6  ;;  %v569_v28 = vor.u32 %v568_v12, %v564_v9  ;;  %v573_v30 = vrot.slane %v571_v13, 1  ;;  %v557_v39 = vor.u32 %v555_v16, %v553_v17  ;;  %v10803_v42 = vpack.c.b16 %v412_v21, %v412_v21 }
  0x30   : > { %v591_v45 = vshll.u32 %v10788_v20, 16  ;;  %v561_v46 = vrot.slane %v559_v23, 1  ;;  %v549_v48 = vor.u32 %v548_v24, %v544_v19  ;;  %v586_v50 = vshll.u32 %v10795_v26, 16 }
  0x31   : > { %v10807_v52 = vpack.c.b16 %v411_v29, %v411_v29  ;;  %v10810_v54 = vsel %vm18258_vm0, %v569_v28, %v573_v30  ;;  %v595_v55 = vshrl.u32 %v10788_v20, 16  ;;  %v599_v58 = vshll.u32 %v10803_v42, 16 }
  0x32   : > { %v593_v56 = vrot.slane %v591_v45, 1  ;;  %v584_v59 = vshrl.u32 %v10795_v26, 16  ;;  %v575_v6 = vshrl.u32 %v10764_v53, 16  ;;  %v10817_v7 = vsel %vm18258_vm0, %v557_v39, %v561_v46 }
  0x33   : > { %v10820_v9 = vsel %vm18258_vm0, %v549_v48, %v553_v17  ;;  %v588_v10 = vrot.slane %v586_v50, 1  ;;  %v579_v12 = vshll.u32 %v10807_v52, 16  ;;  %v601_v16 = vrot.slane %v599_v58, 1 }
  0x34   : > { %v597_v13 = vor.u32 %v595_v55, %v593_v56  ;;  %v577_v21 = vor.u32 %v575_v6, %v573_v30  ;;  %v645_v28 = vrot.slane %v10635_v2, 1  ;;  %v646_v30 = vrot.slane %v10638_v3, 1 }
  0x35   : > { %625 = vrot.lane.b32.xlu2 %v10779_v11, %s10544_s6  ;;  %v589_v19 = vor.u32 %v588_v10, %v584_v59  ;;  %v581_v23 = vrot.slane %v579_v12, 1  ;;  %v641_v39 = vrot.slane %v10644_v5, 1  ;;  %v643_v45 = vrot.slane %v10692_v47, 1 }
  0x36   : > { %623 = vrot.lane.b32.xlu1 %v10784_v15, %s10544_s6  ;;  %v10830_v17 = vsel %vm18258_vm0, %v597_v13, %v601_v16  ;;  %v640_v46 = vrot.slane %v10641_v4, 1  ;;  %v10850_v48 = vsel %vm18245_vm1, %v645_v28, %v646_v30  ;;  %v651_v47 = vrot.slane %v10632_v1, 1 }
  0x37   : > { %621 = vrot.lane.b32.xlu0 %v10791_v22, %s10544_s6  ;;  %v10833_v24 = vsel %vm18258_vm0, %v589_v19, %v593_v56  ;;  %v10836_v29 = vsel %vm18258_vm0, %v577_v21, %v581_v23  ;;  %v10853_v50 = vsel %vm18245_vm1, %v641_v39, %v643_v45  ;;  %v653_v56 = vrot.slane %v10659_v27, 1 }
  0x38   : > { %18291 = vst [vmem:[#allocation3_spill] sm:$0xff] %v10836_v29  ;;  %v10856_v55 = vsel %vm18245_vm1, %v640_v46, %v641_v39  ;;  %v650_v58 = vrot.slane %v10629_v0, 1  ;;  %v648_v59 = vrot.slane %v10669_v35, 1  ;;  %v660_v27 = vrot.slane %v10663_v32, 1 }
  0x39   : > { %v10869_v6 = vsel %vm18245_vm1, %v651_v47, %v653_v56  ;;  %v661_v35 = vrot.slane %v10672_v37, 1  ;;  %v656_v13 = vrot.slane %v10675_v38, 1  ;;  %v658_v16 = vrot.slane %v10706_v60, 1 }
  0x3a   : > { %v10872_v10 = vsel %vm18245_vm1, %v650_v58, %v651_v47  ;;  %v10875_v12 = vsel %vm18245_vm1, %v646_v30, %v648_v59  ;;  %v655_v19 = vrot.slane %v10696_v51, 1  ;;  %v666_v60 = vrot.slane %v10709_v61, 1 }
  0x3b   : > { %v10889_v21 = vsel %vm18245_vm1, %v660_v27, %v661_v35  ;;  %v10892_v23 = vsel %vm18245_vm1, %v656_v13, %v658_v16  ;;  %v668_v30 = vrot.slane %v10727_v18, 1  ;;  %v665_v39 = vrot.slane %v10716_v8, 1 }
  0x3c   : > { %v10895_v28 = vsel %vm18245_vm1, %v655_v19, %v656_v13  ;;  %v663_v45 = vrot.slane %v10735_v25, 1  ;;  %v675_v18 = vrot.slane %v10741_v31, 1  ;;  %v676_v25 = vrot.slane %v10764_v53, 1 }
  0x3d   : > { %631 = vrot.lane.b32.xlu2 %v10810_v54, %s10544_s6  ;;  %v10908_v46 = vsel %vm18245_vm1, %v666_v60, %v668_v30  ;;  %v10911_v47 = vsel %vm18245_vm1, %v665_v39, %v666_v60  ;;  %v671_v58 = vrot.slane %v10751_v43, 1  ;;  %v673_v59 = vrot.slane %v10772_v63, 1 }
  0x3e   : > { %629 = vrot.lane.b32.xlu1 %v10817_v7, %s10544_s6  ;;  %v10914_v56 = vsel %vm18245_vm1, %v661_v35, %v663_v45  ;;  %v670_v27 = vrot.slane %v10759_v49, 1  ;;  %v10928_v35 = vsel %vm18245_vm1, %v675_v18, %v676_v25  ;;  %v681_v63 = vrot.slane %v10788_v20, 1 }
  0x3f   : > { %627 = vrot.lane.b32.xlu0 %v10820_v9, %s10544_s6  ;;  %v10931_v13 = vsel %vm18245_vm1, %v671_v58, %v673_v59  ;;  %v683_v19 = vrot.slane %v10803_v42, 1  ;;  %v680_v60 = vrot.slane %v10795_v26, 1  ;;  %v678_v30 = vrot.slane %v10807_v52, 1 }
  0x40   : > { %v10934_v16 = vsel %vm18245_vm1, %v670_v27, %v671_v58 }
  0x41   : > { %v10947_v39 = vsel %vm18245_vm1, %v681_v63, %v683_v19  ;;  %v10950_v45 = vsel %vm18245_vm1, %v680_v60, %v681_v63  ;;  %v10953_v18 = vsel %vm18245_vm1, %v676_v25, %v678_v30 }
  0x45   : > { %637 = vrot.lane.b32.xlu2 %v10830_v17, %s10544_s6 }
  0x46   : > { %635 = vrot.lane.b32.xlu1 %v10833_v24, %s10544_s6 }
  0x47   : > { %633 = vrot.lane.b32.xlu0 %v10836_v29, %s10544_s6 }
  0x4d   : > { %689 = vrot.lane.b32.xlu2 %v10850_v48, %s10545_s7 }
  0x4e   : > { %687 = vrot.lane.b32.xlu1 %v10853_v50, %s10545_s7 }
  0x4f   : > { %685 = vrot.lane.b32.xlu0 %v10856_v55, %s10545_s7 }
  0x55   : > { %695 = vrot.lane.b32.xlu2 %v10869_v6, %s10545_s7 }
  0x56   : > { %693 = vrot.lane.b32.xlu1 %v10872_v10, %s10545_s7 }
  0x57   : > { %691 = vrot.lane.b32.xlu0 %v10875_v12, %s10545_s7 }
  0x5d   : > { %701 = vrot.lane.b32.xlu2 %v10889_v21, %s10545_s7 }
  0x5e   : > { %699 = vrot.lane.b32.xlu1 %v10892_v23, %s10545_s7 }
  0x5f   : > { %697 = vrot.lane.b32.xlu0 %v10895_v28, %s10545_s7 }
  0x65   : > { %707 = vrot.lane.b32.xlu2 %v10908_v46, %s10545_s7 }
  0x66   : > { %705 = vrot.lane.b32.xlu1 %v10911_v47, %s10545_s7 }
  0x67   : > { %703 = vrot.lane.b32.xlu0 %v10914_v56, %s10545_s7 }
  0x6d   : > { %713 = vrot.lane.b32.xlu2 %v10928_v35, %s10545_s7 }
  0x6e   : > { %711 = vrot.lane.b32.xlu1 %v10931_v13, %s10545_s7 }
  0x6f   : > { %709 = vrot.lane.b32.xlu0 %v10934_v16, %s10545_s7 }
  0x75   : > { %719 = vrot.lane.b32.xlu2 %v10947_v39, %s10545_s7 }
  0x76   : > { %717 = vrot.lane.b32.xlu1 %v10950_v45, %s10545_s7 }
  0x77   : > { %715 = vrot.lane.b32.xlu0 %v10953_v18, %s10545_s7  ;;  %v10961_v42 = vpop.permute.xlu2 %611 }
  0x78   : > { %18292 = vst [vmem:[#allocation4_spill] sm:$0xff] %v10961_v42 }
  0x7d   : > { %735 = vrot.lane.b32.xlu2 %v10635_v2, %s10546_s8 }
  0x7e   : > { %733 = vrot.lane.b32.xlu1 %v10644_v5, %s10546_s8 }
  0x7f   : > { %731 = vrot.lane.b32.xlu0 %v10641_v4, %s10546_s8  ;;  %v10969_v52 = vpop.permute.xlu2 %613 }
  0x80   : > { %18293 = vst [vmem:[#allocation5_spill] sm:$0xff] %v10969_v52 }
  0x85   : > { %741 = vrot.lane.b32.xlu2 %v10632_v1, %s10546_s8 }
  0x86   : > { %739 = vrot.lane.b32.xlu1 %v10629_v0, %s10546_s8 }
  0x87   : > { %737 = vrot.lane.b32.xlu0 %v10638_v3, %s10546_s8  ;;  %v10977_v25 = vpop.permute.xlu2 %619 }
  0x88   : > { %18294 = vst [vmem:[#allocation6_spill] sm:$0xff] %v10977_v25 }
  0x8d   : > { %747 = vrot.lane.b32.xlu2 %v10663_v32, %s10546_s8 }
  0x8e   : > { %745 = vrot.lane.b32.xlu1 %v10675_v38, %s10546_s8 }
  0x8f   : > { %743 = vrot.lane.b32.xlu0 %v10696_v51, %s10546_s8  ;;  %v10985_v4 = vpop.permute.xlu2 %625 }
  0x90   : > { %18295 = vst [vmem:[#allocation7_spill] sm:$0xff] %v10985_v4  ;;  %v10987_v5 = vpop.permute.xlu1 %607  ;;  %v11028_v4 = vld [vmem:[%s10626_s30 + $0xbc] sm:$0xff] }
  0x91   : > { %18296 = vst [vmem:[#allocation8_spill] sm:$0xff] %v10987_v5  ;;  %v10989_v58 = vpop.permute.xlu0 %603 }
  0x92   : > { %18297 = vst [vmem:[#allocation9_spill] sm:$0xff] %v10989_v58  ;;  %v786_v58 = vshrl.u32 %v11028_v4, 16 }
  0x95   : > { %753 = vrot.lane.b32.xlu2 %v10709_v61, %s10546_s8 }
  0x96   : > { %751 = vrot.lane.b32.xlu1 %v10716_v8, %s10546_s8 }
  0x97   : > { %749 = vrot.lane.b32.xlu0 %v10672_v37, %s10546_s8  ;;  %v10997_v59 = vpop.permute.xlu2 %631 }
  0x98   : > { %18298 = vst [vmem:[#allocation10_spill] sm:$0xff] %v10997_v59  ;;  %v10999_v27 = vpop.permute.xlu1 %609 }
  0x99   : > { %18299 = vst [vmem:[#allocation11_spill] sm:$0xff] %v10999_v27  ;;  %v11001_v63 = vpop.permute.xlu0 %605 }
  0x9a   : > { %18300 = vst [vmem:[#allocation12_spill] sm:$0xff] %v11001_v63 }
  0x9d   : > { %759 = vrot.lane.b32.xlu2 %v10741_v31, %s10546_s8 }
  0x9e   : > { %757 = vrot.lane.b32.xlu1 %v10751_v43, %s10546_s8 }
  0x9f   : > { %755 = vrot.lane.b32.xlu0 %v10759_v49, %s10546_s8  ;;  %v11009_v19 = vpop.permute.xlu2 %637 }
  0xa0   : > { %18301 = vst [vmem:[#allocation13_spill] sm:$0xff] %v11009_v19  ;;  %v11011_v60 = vpop.permute.xlu1 %617 }
  0xa1   : > { %18302 = vst [vmem:[#allocation14_spill] sm:$0xff] %v11011_v60  ;;  %v11013_v30 = vpop.permute.xlu0 %615  ;;  %v11031_v60 = vld [vmem:[%s10626_s30 + $0xb4] sm:$0xff] }
  0xa2   : > { %18303 = vst [vmem:[#allocation15_spill] sm:$0xff] %v11013_v30 }
  0xa5   : > { %765 = vrot.lane.b32.xlu2 %v10788_v20, %s10546_s8 }
  0xa6   : > { %763 = vrot.lane.b32.xlu1 %v10795_v26, %s10546_s8 }
  0xa7   : > { %761 = vrot.lane.b32.xlu0 %v10764_v53, %s10546_s8  ;;  %v11021_v59 = vpop.permute.xlu2 %689 }
  0xa8   : > { %18304 = vst [vmem:[#allocation16_spill] sm:$0xff] %v11021_v59  ;;  %v11023_v52 = vpop.permute.xlu1 %623 }
  0xa9   : > { %18305 = vst [vmem:[#allocation17_spill] sm:$0xff] %v11023_v52  ;;  %v11025_v42 = vpop.permute.xlu0 %621 }
  0xaa   : > { %18306 = vst [vmem:[#allocation18_spill] sm:$0xff] %v11025_v42 }
  0xad   : > { %794 = vrot.lane.b32.xlu2 %v10684_v41, %s10547_s9 }
  0xae   : > { %769 = vrot.lane.b32.xlu1 %v11028_v4, %s10546_s8 }
  0xaf   : > { %767 = vrot.lane.b32.xlu0 %v11031_v60, %s10546_s8  ;;  %v11039_v30 = vpop.permute.xlu2 %695  ;;  %s9395_s8 = sshll.u32 %s19142_s29, 2 }
  0xb0   : > { %18307 = vst [vmem:[#allocation19_spill] sm:$0xff] %v11039_v30  ;;  %v11041_v27 = vpop.permute.xlu1 %629 }
  0xb1   : > { %18308 = vst [vmem:[#allocation20_spill] sm:$0xff] %v11041_v27  ;;  %v11043_v52 = vpop.permute.xlu0 %627 }
  0xb2   : > { %18309 = vst [vmem:[#allocation21_spill] sm:$0xff] %v11043_v52 }
  0xb5   : > { %800 = vrot.lane.b32.xlu2 %v10712_v62, %s10547_s9 }
  0xb6   : > { %798 = vrot.lane.b32.xlu1 %v10681_v40, %s10547_s9 }
  0xb7   : > { %796 = vrot.lane.b32.xlu0 %v10723_v14, %s10547_s9  ;;  %v11051_v41 = vpop.permute.xlu2 %701 }
  0xb8   : > { %18310 = vst [vmem:[#allocation22_spill] sm:$0xff] %v11051_v41  ;;  %v11053_v59 = vpop.permute.xlu1 %635 }
  0xb9   : > { %18311 = vst [vmem:[#allocation23_spill] sm:$0xff] %v11053_v59  ;;  %v11055_v5 = vpop.permute.xlu0 %633 }
  0xba   : > { %18312 = vst [vmem:[#allocation24_spill] sm:$0xff] %v11055_v5 }
  0xbd   : > { %806 = vrot.lane.b32.xlu2 %v10754_v44, %s10547_s9 }
  0xbe   : > { %804 = vrot.lane.b32.xlu1 %v10703_v57, %s10547_s9 }
  0xbf   : > { %802 = vrot.lane.b32.xlu0 %v10666_v33, %s10547_s9  ;;  %v11063_v27 = vpop.permute.xlu2 %707 }
  0xc0   : > { %18313 = vst [vmem:[#allocation25_spill] sm:$0xff] %v11063_v27  ;;  %v11065_v30 = vpop.permute.xlu1 %687  ;;  %v777_v27 = vshll.u32 %v11031_v60, 16 }
  0xc1   : > { %18314 = vst [vmem:[#allocation26_spill] sm:$0xff] %v11065_v30  ;;  %v11067_v14 = vpop.permute.xlu0 %685  ;;  %v782_v30 = vshll.u32 %v11028_v4, 16 }
  0xc2   : > { %18315 = vst [vmem:[#allocation27_spill] sm:$0xff] %v11067_v14  ;;  %v779_v42 = vrot.slane %v777_v27, 1 }
  0xc5   : > { %812 = vrot.lane.b32.xlu2 %v10791_v22, %s10547_s9 }
  0xc6   : > { %810 = vrot.lane.b32.xlu1 %v10744_v34, %s10547_s9 }
  0xc7   : > { %808 = vrot.lane.b32.xlu0 %v10747_v36, %s10547_s9  ;;  %v11075_v59 = vpop.permute.xlu2 %713 }
  0xc8   : > { %18316 = vst [vmem:[#allocation28_spill] sm:$0xff] %v11075_v59  ;;  %v11077_v5 = vpop.permute.xlu1 %693 }
  0xc9   : > { %18317 = vst [vmem:[#allocation29_spill] sm:$0xff] %v11077_v5  ;;  %v11079_v52 = vpop.permute.xlu0 %691  ;;  %v304_v5 = vld [vmem:[%s10626_s30 + $0xc4] sm:$0x1] }
  0xca   : > { %18318 = vst [vmem:[#allocation30_spill] sm:$0xff] %v11079_v52  ;;  %v775_v52 = vshrl.u32 %v11031_v60, 16  ;;  %v772_v63 = vunpack.c.l.b16 %v304_v5 }
  0xcd   : > { %818 = vrot.lane.b32.xlu2 %v10820_v9, %s10547_s9 }
  0xce   : > { %816 = vrot.lane.b32.xlu1 %v10779_v11, %s10547_s9 }
  0xcf   : > { %814 = vrot.lane.b32.xlu0 %v10784_v15, %s10547_s9  ;;  %v11088_v41 = vpop.permute.xlu2 %719 }
  0xd0   : > { %18319 = vst [vmem:[#allocation31_spill] sm:$0xff] %v11088_v41  ;;  %v11090_v25 = vpop.permute.xlu1 %699  ;;  %v780_v41 = vor.u32 %v779_v42, %v775_v52 }
  0xd1   : > { %18320 = vst [vmem:[#allocation32_spill] sm:$0xff] %v11090_v25  ;;  %v11092_v59 = vpop.permute.xlu0 %697  ;;  %v784_v25 = vrot.slane %v782_v30, 1 }
  0xd2   : > { %18321 = vst [vmem:[#allocation33_spill] sm:$0xff] %v11092_v59  ;;  %v773_v59 = vpack.c.b16 %v772_v63, %v772_v63 }
  0xd3   : > { %v11110_v5 = vsel %vm18258_vm0, %v780_v41, %v784_v25  ;;  %v788_v52 = vor.u32 %v786_v58, %v784_v25 }
  0xd5   : > { %824 = vrot.lane.b32.xlu2 %v10836_v29, %s10547_s9  ;;  %v790_v29 = vshll.u32 %v773_v59, 16 }
  0xd6   : > { %822 = vrot.lane.b32.xlu1 %v10810_v54, %s10547_s9 }
  0xd7   : > { %820 = vrot.lane.b32.xlu0 %v10817_v7, %s10547_s9  ;;  %v11103_v19 = vpop.permute.xlu2 %735  ;;  %v792_v63 = vrot.slane %v790_v29, 1 }
  0xd8   : > { %18322 = vst [vmem:[#allocation34_spill] sm:$0xff] %v11103_v19  ;;  %v11105_v14 = vpop.permute.xlu1 %705 }
  0xd9   : > { %18323 = vst [vmem:[#allocation35_spill] sm:$0xff] %v11105_v14  ;;  %v11107_v27 = vpop.permute.xlu0 %703  ;;  %v11126_v14 = vsel %vm18258_vm0, %v788_v52, %v792_v63 }
  0xdd   : > { %830 = vrot.lane.b32.xlu2 %v11110_v5, %s10547_s9 }
  0xde   : > { %828 = vrot.lane.b32.xlu1 %v10830_v17, %s10547_s9 }
  0xdf   : > { %826 = vrot.lane.b32.xlu0 %v10833_v24, %s10547_s9  ;;  %v11119_v42 = vpop.permute.xlu2 %741 }
  0xe0   : > { %18324 = vst [vmem:[#allocation36_spill] sm:$0xff] %v11119_v42  ;;  %v11121_v30 = vpop.permute.xlu1 %711 }
  0xe1   : > { %18325 = vst [vmem:[#allocation37_spill] sm:$0xff] %v11121_v30  ;;  %v11123_v41 = vpop.permute.xlu0 %709 }
  0xe2   : > { %18326 = vst [vmem:[#allocation38_spill] sm:$0xff] %v11123_v41 }
  0xe5   : > { %841 = vrot.lane.b32.xlu2 %v10853_v50, %s10548_s10 }
  0xe6   : > { %839 = vrot.lane.b32.xlu1 %v10856_v55, %s10548_s10 }
  0xe7   : > { %832 = vrot.lane.b32.xlu0 %v11126_v14, %s10547_s9  ;;  %v11134_v42 = vpop.permute.xlu2 %747 }
  0xe8   : > { %18327 = vst [vmem:[#allocation39_spill] sm:$0xff] %v11134_v42  ;;  %v11136_v29 = vpop.permute.xlu1 %717 }
  0xe9   : > { %18328 = vst [vmem:[#allocation40_spill] sm:$0xff] %v11136_v29  ;;  %v11138_v25 = vpop.permute.xlu0 %715 }
  0xea   : > { %18329 = vst [vmem:[#allocation41_spill] sm:$0xff] %v11138_v25 }
  0xed   : > { %847 = vrot.lane.b32.xlu2 %v10872_v10, %s10548_s10 }
  0xee   : > { %845 = vrot.lane.b32.xlu1 %v10875_v12, %s10548_s10 }
  0xef   : > { %843 = vrot.lane.b32.xlu0 %v10850_v48, %s10548_s10  ;;  %v11146_v50 = vpop.permute.xlu2 %753 }
  0xf0   : > { %18330 = vst [vmem:[#allocation42_spill] sm:$0xff] %v11146_v50  ;;  %v11148_v55 = vpop.permute.xlu1 %733  ;;  %v834_v50 = vrot.slane %v11031_v60, 1 }
  0xf1   : > { %v11150_v58 = vpop.permute.xlu0 %731 }
  0xf5   : > { %853 = vrot.lane.b32.xlu2 %v10892_v23, %s10548_s10 }
  0xf6   : > { %851 = vrot.lane.b32.xlu1 %v10895_v28, %s10548_s10 }
  0xf7   : > { %849 = vrot.lane.b32.xlu0 %v10869_v6, %s10548_s10  ;;  %v11158_v52 = vpop.permute.xlu2 %759 }
  0xf8   : > { %18331 = vst [vmem:[#allocation43_spill] sm:$0xff] %v11158_v52  ;;  %v11160_v63 = vpop.permute.xlu1 %739 }
  0xf9   : > { %18332 = vst [vmem:[#allocation44_spill] sm:$0xff] %v11160_v63  ;;  %v11162_v29 = vpop.permute.xlu0 %737 }
  0xfa   : > { %18333 = vst [vmem:[#allocation45_spill] sm:$0xff] %v11162_v29 }
  0xfd   : > { %859 = vrot.lane.b32.xlu2 %v10911_v47, %s10548_s10 }
  0xfe   : > { %857 = vrot.lane.b32.xlu1 %v10914_v56, %s10548_s10 }
  0xff   : > { %855 = vrot.lane.b32.xlu0 %v10889_v21, %s10548_s10  ;;  %v11170_v42 = vpop.permute.xlu2 %765 }
 0x100   : > { %18334 = vst [vmem:[#allocation46_spill] sm:$0xff] %v11170_v42  ;;  %v11172_v25 = vpop.permute.xlu1 %745  ;;  %v835_v42 = vrot.slane %v11028_v4, 1 }
 0x101   : > { %18335 = vst [vmem:[#allocation47_spill] sm:$0xff] %v11172_v25  ;;  %v11174_v30 = vpop.permute.xlu0 %743  ;;  %v837_v25 = vrot.slane %v773_v59, 1 }
 0x102   : > { %18336 = vst [vmem:[#allocation48_spill] sm:$0xff] %v11174_v30 }
 0x103   : > { %v11203_v19 = vsel %vm18245_vm1, %v835_v42, %v837_v25 }
 0x105   : > { %865 = vrot.lane.b32.xlu2 %v10931_v13, %s10548_s10 }
 0x106   : > { %863 = vrot.lane.b32.xlu1 %v10934_v16, %s10548_s10 }
 0x107   : > { %861 = vrot.lane.b32.xlu0 %v10908_v46, %s10548_s10  ;;  %v11182_v52 = vpop.permute.xlu2 %794 }
 0x108   : > { %v11184_v41 = vpop.permute.xlu1 %751 }
 0x109   : > { %18337 = vst [vmem:[#allocation49_spill] sm:$0xff] %v11184_v41  ;;  %v11186_v63 = vpop.permute.xlu0 %749 }
 0x10a   : > { %18338 = vst [vmem:[#allocation50_spill] sm:$0xff] %v11186_v63  ;;  %v11206_v63 = vsel %vm18245_vm1, %v834_v50, %v835_v42 }
 0x10d   : > { %871 = vrot.lane.b32.xlu2 %v10950_v45, %s10548_s10 }
 0x10e   : > { %869 = vrot.lane.b32.xlu1 %v10953_v18, %s10548_s10 }
 0x10f   : > { %867 = vrot.lane.b32.xlu0 %v10928_v35, %s10548_s10  ;;  %v11195_v30 = vpop.permute.xlu2 %800 }
 0x110   : > { %v11198_v29 = vpop.permute.xlu1 %757 }
 0x111   : > { %18339 = vst [vmem:[#allocation51_spill] sm:$0xff] %v11198_v29  ;;  %v11200_v41 = vpop.permute.xlu0 %755 }
 0x112   : > { %18340 = vst [vmem:[#allocation52_spill] sm:$0xff] %v11200_v41 }
 0x115   : > { %877 = vrot.lane.b32.xlu2 %v11203_v19, %s10548_s10 }
 0x116   : > { %875 = vrot.lane.b32.xlu1 %v11206_v63, %s10548_s10 }
 0x117   : > { %873 = vrot.lane.b32.xlu0 %v10947_v39, %s10548_s10  ;;  %v11214_v59 = vpop.permute.xlu2 %806  ;;  %s9396_s10 = sshll.u32 %s19140_s19, 7 }
 0x118   : > { %18341 = vst [vmem:[#allocation53_spill] sm:$0xff] %v11214_v59  ;;  %v11216_v29 = vpop.permute.xlu1 %763 }
 0x119   : > { %18342 = vst [vmem:[#allocation54_spill] sm:$0xff] %v11216_v29  ;;  %v11218_v41 = vpop.permute.xlu0 %761  ;;  %v1401_v29 = vld [vmem:[%s18180_s1 + $0x10] sm:$0x3] }
 0x11a   : > { %18343 = vst [vmem:[#allocation55_spill] sm:$0xff] %v11218_v41 }
 0x11d   : > { %883 = vrot.lane.b32.xlu2 %v10629_v0, %s10549_s11 }
 0x11e   : > { %881 = vrot.lane.b32.xlu1 %v10638_v3, %s10549_s11 }
 0x11f   : > { %879 = vrot.lane.b32.xlu0 %v10635_v2, %s10549_s11  ;;  %v11226_v42 = vpop.permute.xlu2 %812 }
 0x120   : > { %v11228_v25 = vpop.permute.xlu1 %769 }
 0x121   : > { %v11230_v50 = vpop.permute.xlu0 %767 }
 0x122   : > { %18344 = vst [vmem:[#allocation56_spill] sm:$0xff] %v11230_v50 }
 0x125   : > { %889 = vrot.lane.b32.xlu2 %v10675_v38, %s10549_s11 }
 0x126   : > { %887 = vrot.lane.b32.xlu1 %v10696_v51, %s10549_s11 }
 0x127   : > { %885 = vrot.lane.b32.xlu0 %v10632_v1, %s10549_s11  ;;  %v11238_v0 = vpop.permute.xlu2 %818 }
 0x128   : > { %v11240_v3 = vpop.permute.xlu1 %798 }
 0x129   : > { %v11242_v2 = vpop.permute.xlu0 %796 }
 0x12d   : > { %895 = vrot.lane.b32.xlu2 %v10716_v8, %s10549_s11 }
 0x12e   : > { %893 = vrot.lane.b32.xlu1 %v10672_v37, %s10549_s11 }
 0x12f   : > { %891 = vrot.lane.b32.xlu0 %v10663_v32, %s10549_s11  ;;  %v11250_v38 = vpop.permute.xlu2 %824 }
 0x130   : > { %18345 = vst [vmem:[#allocation57_spill] sm:$0xff] %v11250_v38  ;;  %v11252_v51 = vpop.permute.xlu1 %804 }
 0x131   : > { %v11254_v1 = vpop.permute.xlu0 %802 }
 0x135   : > { %901 = vrot.lane.b32.xlu2 %v10751_v43, %s10549_s11 }
 0x136   : > { %899 = vrot.lane.b32.xlu1 %v10759_v49, %s10549_s11 }
 0x137   : > { %897 = vrot.lane.b32.xlu0 %v10709_v61, %s10549_s11  ;;  %v11262_v8 = vpop.permute.xlu2 %830 }
 0x138   : > { %18346 = vst [vmem:[#allocation58_spill] sm:$0xff] %v11262_v8  ;;  %v11264_v37 = vpop.permute.xlu1 %810 }
 0x139   : > { %18347 = vst [vmem:[#allocation59_spill] sm:$0xff] %v11264_v37  ;;  %v11266_v32 = vpop.permute.xlu0 %808  ;;  %v1415_v37 = vunpack.c.l.b16 %v1401_v29 }
 0x13a   : > { %18348 = vst [vmem:[#allocation60_spill] sm:$0xff] %v11266_v32 }
 0x13d   : > { %907 = vrot.lane.b32.xlu2 %v10795_v26, %s10549_s11 }
 0x13e   : > { %905 = vrot.lane.b32.xlu1 %v10764_v53, %s10549_s11 }
 0x13f   : > { %903 = vrot.lane.b32.xlu0 %v10741_v31, %s10549_s11  ;;  %v11274_v43 = vpop.permute.xlu2 %841 }
 0x140   : > { %v11276_v49 = vpop.permute.xlu1 %816 }
 0x141   : > { %v11278_v61 = vpop.permute.xlu0 %814 }
 0x145   : > { %913 = vrot.lane.b32.xlu2 %v11028_v4, %s10549_s11 }
 0x146   : > { %911 = vrot.lane.b32.xlu1 %v11031_v60, %s10549_s11 }
 0x147   : > { %909 = vrot.lane.b32.xlu0 %v10788_v20, %s10549_s11  ;;  %v11286_v26 = vpop.permute.xlu2 %847 }
 0x148   : > { %v11288_v53 = vpop.permute.xlu1 %822 }
 0x149   : > { %18349 = vst [vmem:[#allocation61_spill] sm:$0xff] %v11288_v53  ;;  %v11290_v31 = vpop.permute.xlu0 %820  ;;  %v10375_v53 = vld [vmem:[%s10626_s30] sm:$0xff] }
 0x14d   : > { %919 = vrot.lane.b32.xlu2 %v10666_v33, %s10550_s12 }
 0x14e   : > { %917 = vrot.lane.b32.xlu1 %v10712_v62, %s10550_s12 }
 0x14f   : > { %915 = vrot.lane.b32.xlu0 %v10681_v40, %s10550_s12  ;;  %v11298_v4 = vpop.permute.xlu2 %853 }
 0x150   : > { %18350 = vst [vmem:[#allocation62_spill] sm:$0xff] %v11298_v4  ;;  %v11300_v60 = vpop.permute.xlu1 %828 }
 0x151   : > { %18351 = vst [vmem:[#allocation63_spill] sm:$0xff] %v11300_v60  ;;  %v11302_v8 = vpop.permute.xlu0 %826  ;;  %v18355_v60 = vld [vmem:[#allocation3_spill] sm:$0xff] }
 0x152   : > { %18352 = vst [vmem:[#allocation64_spill] sm:$0xff] %v11302_v8 }
 0x155   : > { %925 = vrot.lane.b32.xlu2 %v10747_v36, %s10550_s12 }
 0x156   : > { %923 = vrot.lane.b32.xlu1 %v10754_v44, %s10550_s12 }
 0x157   : > { %921 = vrot.lane.b32.xlu0 %v10703_v57, %s10550_s12  ;;  %v11310_v33 = vpop.permute.xlu2 %859 }
 0x158   : > { %v11312_v62 = vpop.permute.xlu1 %839 }
 0x159   : > { %v11314_v40 = vpop.permute.xlu0 %832 }
 0x15d   : > { %931 = vrot.lane.b32.xlu2 %v10784_v15, %s10550_s12 }
 0x15e   : > { %929 = vrot.lane.b32.xlu1 %v10791_v22, %s10550_s12 }
 0x15f   : > { %927 = vrot.lane.b32.xlu0 %v10744_v34, %s10550_s12  ;;  %v11322_v36 = vpop.permute.xlu2 %865 }
 0x160   : > { %v11324_v44 = vpop.permute.xlu1 %845 }
 0x161   : > { %v11326_v57 = vpop.permute.xlu0 %843 }
 0x165   : > { %937 = vrot.lane.b32.xlu2 %v10817_v7, %s10550_s12 }
 0x166   : > { %935 = vrot.lane.b32.xlu1 %v10820_v9, %s10550_s12 }
 0x167   : > { %933 = vrot.lane.b32.xlu0 %v10779_v11, %s10550_s12  ;;  %v11334_v15 = vpop.permute.xlu2 %871 }
 0x168   : > { %18353 = vst [vmem:[#allocation65_spill] sm:$0xff] %v11334_v15  ;;  %v11336_v22 = vpop.permute.xlu1 %851 }
 0x169   : > { %18354 = vst [vmem:[#allocation66_spill] sm:$0xff] %v11336_v22  ;;  %v11338_v34 = vpop.permute.xlu0 %849  ;;  %v18377_v22 = vld [vmem:[#allocation27_spill] sm:$0xff] }
 0x16d   : > { %943 = vrot.lane.b32.xlu2 %v10833_v24, %s10550_s12 }
 0x16e   : > { %941 = vrot.lane.b32.xlu1 %v18355_v60, %s10550_s12 }
 0x16f   : > { %939 = vrot.lane.b32.xlu0 %v10810_v54, %s10550_s12  ;;  %v11346_v7 = vpop.permute.xlu2 %877 }
 0x170   : > { %v11348_v9 = vpop.permute.xlu1 %857 }
 0x171   : > { %v11350_v11 = vpop.permute.xlu0 %855 }
 0x172   : > { %18356 = vst [vmem:[#allocation3_spill] sm:$0xff] %v11350_v11 }
 0x175   : > { %949 = vrot.lane.b32.xlu2 %v11126_v14, %s10550_s12 }
 0x176   : > { %947 = vrot.lane.b32.xlu1 %v11110_v5, %s10550_s12 }
 0x177   : > { %945 = vrot.lane.b32.xlu0 %v10830_v17, %s10550_s12  ;;  %v11358_v24 = vpop.permute.xlu2 %883  ;;  %s10556_s12 = smov 48  }
 0x178   : > { %v11360_v60 = vpop.permute.xlu1 %863 }
 0x179   : > { %v11362_v54 = vpop.permute.xlu0 %861 }
 0x17d   : > { %955 = vrot.lane.b32.xlu2 %v10872_v10, %s10551_s13 }
 0x17e   : > { %953 = vrot.lane.b32.xlu1 %v10875_v12, %s10551_s13 }
 0x17f   : > { %951 = vrot.lane.b32.xlu0 %v10850_v48, %s10551_s13  ;;  %v11370_v14 = vpop.permute.xlu2 %889 }
 0x180   : > { %18357 = vst [vmem:[#allocation67_spill] sm:$0xff] %v11370_v14  ;;  %v11372_v5 = vpop.permute.xlu1 %869  ;;  %v18381_v14 = vld [vmem:[#allocation31_spill] sm:$0xff] }
 0x181   : > { %18358 = vst [vmem:[#allocation68_spill] sm:$0xff] %v11372_v5  ;;  %v11374_v17 = vpop.permute.xlu0 %867  ;;  %v9790_v5 = vld [vmem:[%s18180_s1] sm:$0xff] }
 0x182   : > { %18359 = vst [vmem:[#allocation69_spill] sm:$0xff] %v11374_v17 }
 0x185   : > { %961 = vrot.lane.b32.xlu2 %v10892_v23, %s10551_s13 }
 0x186   : > { %959 = vrot.lane.b32.xlu1 %v10895_v28, %s10551_s13 }
 0x187   : > { %957 = vrot.lane.b32.xlu0 %v10869_v6, %s10551_s13  ;;  %v11382_v10 = vpop.permute.xlu2 %895 }
 0x188   : > { %v11384_v12 = vpop.permute.xlu1 %875 }
 0x189   : > { %18360 = vst [vmem:[#allocation70_spill] sm:$0xff] %v11384_v12  ;;  %v11386_v48 = vpop.permute.xlu0 %873 }
 0x18a   : > { %18361 = vst [vmem:[#allocation71_spill] sm:$0xff] %v11386_v48 }
 0x18d   : > { %967 = vrot.lane.b32.xlu2 %v10911_v47, %s10551_s13 }
 0x18e   : > { %965 = vrot.lane.b32.xlu1 %v10914_v56, %s10551_s13 }
 0x18f   : > { %963 = vrot.lane.b32.xlu0 %v10889_v21, %s10551_s13  ;;  %v11394_v23 = vpop.permute.xlu2 %901 }
 0x190   : > { %v11396_v28 = vpop.permute.xlu1 %881 }
 0x191   : > { %v11398_v6 = vpop.permute.xlu0 %879 }
 0x195   : > { %973 = vrot.lane.b32.xlu2 %v10931_v13, %s10551_s13 }
 0x196   : > { %971 = vrot.lane.b32.xlu1 %v10934_v16, %s10551_s13 }
 0x197   : > { %969 = vrot.lane.b32.xlu0 %v10908_v46, %s10551_s13  ;;  %v11406_v47 = vpop.permute.xlu2 %907 }
 0x198   : > { %18362 = vst [vmem:[#allocation72_spill] sm:$0xff] %v11406_v47  ;;  %v11408_v56 = vpop.permute.xlu1 %887 }
 0x199   : > { %v11410_v21 = vpop.permute.xlu0 %885 }
 0x19d   : > { %979 = vrot.lane.b32.xlu2 %v10950_v45, %s10551_s13 }
 0x19e   : > { %977 = vrot.lane.b32.xlu1 %v10953_v18, %s10551_s13 }
 0x19f   : > { %975 = vrot.lane.b32.xlu0 %v10928_v35, %s10551_s13  ;;  %v11418_v13 = vpop.permute.xlu2 %913 }
 0x1a0   : > { %v11420_v16 = vpop.permute.xlu1 %893 }
 0x1a1   : > { %18363 = vst [vmem:[#allocation73_spill] sm:$0xff] %v11420_v16  ;;  %v11422_v46 = vpop.permute.xlu0 %891  ;;  %v1418_v16 = vpack.c.b16 %v1415_v37, %v1415_v37 }
 0x1a2   : > { %18364 = vst [vmem:[#allocation74_spill] sm:$0xff] %v11422_v46 }
 0x1a3   : > { %v1496_v47 = vsel %vm1494_vm2, %v1418_v16, 0 }
 0x1a4   : > { %1503 = vmatpush.bf16.msra.mxu0 %v1496_v47  ;;  %10035 = vmatpush.bf16.msra.mxu3 %v1496_v47 }
 0x1a5   : > { %985 = vrot.lane.b32.xlu2 %v11203_v19, %s10551_s13  ;;  %10034 = vmatpush.bf16.msra.mxu2 %v1496_v47 }
 0x1a6   : > { %983 = vrot.lane.b32.xlu1 %v11206_v63, %s10551_s13 }
 0x1a7   : > { %981 = vrot.lane.b32.xlu0 %v10947_v39, %s10551_s13  ;;  %v11430_v45 = vpop.permute.xlu2 %919 }
 0x1a8   : > { %v11432_v18 = vpop.permute.xlu1 %899 }
 0x1a9   : > { %v11434_v35 = vpop.permute.xlu0 %897 }
 0x1af   : > { %v11436_v12 = vpop.permute.xlu2 %925 }
 0x1b0   : > { %18365 = vst [vmem:[#allocation75_spill] sm:$0xff] %v11436_v12  ;;  %v11438_v48 = vpop.permute.xlu1 %905  ;;  %v18380_v12 = vld [vmem:[#allocation12_spill] sm:$0xff] }
 0x1b1   : > { %18366 = vst [vmem:[#allocation76_spill] sm:$0xff] %v11438_v48  ;;  %v11440_v50 = vpop.permute.xlu0 %903 }
 0x1b7   : > { %v11442_v15 = vpop.permute.xlu2 %931 }
 0x1b8   : > { %v11444_v19 = vpop.permute.xlu1 %911 }
 0x1b9   : > { %18367 = vst [vmem:[#allocation77_spill] sm:$0xff] %v11444_v19  ;;  %v11446_v63 = vpop.permute.xlu0 %909 }
 0x1ba   : > { %18368 = vst [vmem:[#allocation78_spill] sm:$0xff] %v11446_v63  ;;  %v9791_v63 = vld [vmem:[%s18180_s1 + $0x8] sm:$0xff] }
 0x1bb   : > { %1504 = vmatpush.bf16.msra.mxu0 %v9791_v63  ;;  %10037 = vmatpush.bf16.msra.mxu3 %v9791_v63 }
 0x1bc   : > { %10036 = vmatpush.bf16.msra.mxu2 %v9791_v63 }
 0x1bf   : > { %v11448_v8 = vpop.permute.xlu2 %937  ;;  %1505 = vmatpush.bf16.msra.mxu0 %v9790_v5  ;;  %10039 = vmatpush.bf16.msra.mxu3 %v9790_v5 }
 0x1c0   : > { %v11455_v11 = vpop.permute.xlu1 %917  ;;  %10038 = vmatpush.bf16.msra.mxu2 %v9790_v5 }
 0x1c1   : > { %v11450_v39 = vpop.permute.xlu0 %915 }
 0x1c7   : > { %v11457_v46 = vpop.permute.xlu2 %943 }
 0x1c8   : > { %18369 = vst [vmem:[#allocation79_spill] sm:$0xff] %v11457_v46  ;;  %v11467_v29 = vpop.permute.xlu1 %923 }
 0x1c9   : > { %v11459_v19 = vpop.permute.xlu0 %921 }
 0x1cf   : > { %v11469_v37 = vpop.permute.xlu2 %949 }
 0x1d0   : > { %v11473_v47 = vpop.permute.xlu1 %929 }
 0x1d1   : > { %v11471_v16 = vpop.permute.xlu0 %927  ;;  %18371 = vst [vmem:[#allocation81_spill] sm:$0xff] %v11473_v47 }
 0x1d2   : > { %18370 = vst [vmem:[#allocation80_spill] sm:$0xff] %v11471_v16  ;;  %v18375_v16 = vld [vmem:[#allocation9_spill] sm:$0xff] }
 0x1d3   : > { %v989_v5 = vsel %vm987_vm3, %v10375_v53, %v18375_v16 }
 0x1d4   : > { %v1026_v59 = vsel %vm1024_vm4, %v989_v5, %v18377_v22 }
 0x1d5   : > { %v1063_v48 = vsel %vm1061_vm6, %v1026_v59, %v11150_v58 }
 0x1d7   : > { %v11475_v46 = vpop.permute.xlu2 %955 }
 0x1d8   : > { %v11481_v4 = vpop.permute.xlu1 %935 }
 0x1d9   : > { %v11477_v38 = vpop.permute.xlu0 %933 }
 0x1df   : > { %v11479_v41 = vpop.permute.xlu2 %961 }
 0x1e0   : > { %18372 = vst [vmem:[#allocation82_spill] sm:$0xff] %v11479_v41  ;;  %v11492_v47 = vpop.permute.xlu1 %941  ;;  %v1120_v41 = vsel %vm18244_vm5, %v1063_v48, %v11182_v52 }
 0x1e1   : > { %v11483_v32 = vpop.permute.xlu0 %939  ;;  %18376 = vst [vmem:[#allocation9_spill] sm:$0xff] %v11492_v47  ;;  %v10376_v47 = vld [vmem:[%s10626_s30 + $0x8] sm:$0xff] }
 0x1e2   : > { %18373 = vst [vmem:[#allocation83_spill] sm:$0xff] %v11483_v32 }
 0x1e7   : > { %v11485_v63 = vpop.permute.xlu2 %967 }
 0x1e8   : > { %v11510_v48 = vpop.permute.xlu1 %947 }
 0x1e9   : > { %v11487_v17 = vpop.permute.xlu0 %945  ;;  %18378 = vst [vmem:[#allocation27_spill] sm:$0xff] %v11510_v48 }
 0x1ea   : > { %18374 = vst [vmem:[#allocation84_spill] sm:$0xff] %v11487_v17  ;;  %v1177_v17 = vsel %vm1175_vm7, %v1120_v41, %v11312_v62  ;;  %v18379_v41 = vld [vmem:[#allocation13_spill] sm:$0xff] }
 0x1eb   : > { %v1234_v53 = vsel %vm18234_vm8, %v1177_v17, %v11398_v6  ;;  %v1023_v62 = vsel %vm987_vm3, %v10788_v20, %v18379_v41 }
 0x1ec   : > { %v1289_v22 = vsel %vm1287_vm9, %v1234_v53, %v11450_v39  ;;  %v991_v53 = vsel %vm987_vm3, %v10376_v47, %v18380_v12  ;;  %v11524_v32 = vsel %vm1024_vm4, %v1023_v62, %v18381_v14 }
 0x1ed   : > { %v1117_v48 = vsel %vm1061_vm6, %v11524_v32, %v11228_v25 }
 0x1ee   : > { %v1174_v41 = vsel %vm18244_vm5, %v1117_v48, %v11314_v40 }
 0x1ef   : > { %v11504_v16 = vpop.permute.xlu2 %973  ;;  %v1231_v14 = vsel %vm1175_vm7, %v1174_v41, %v11346_v7 }
 0x1f0   : > { %v1286_v62 = vsel %vm18234_vm8, %v1231_v14, %v11418_v13  ;;  %v954_v25 = vpop.permute.xlu1 %953  ;;  %v18385_v14 = vld [vmem:[#allocation50_spill] sm:$0xff] }
 0x1f1   : > { %v952_v58 = vpop.permute.xlu0 %951 }
 0x1f2   : > { %v1344_v52 = vsel %vm18233_vm11, %v1289_v22, %v952_v58  ;;  %v18382_v22 = vld [vmem:[#allocation26_spill] sm:$0xff] }
 0x1f3   : > { %9489 = vmatmul.msk.bf16.vlgmr.msra.gmra.mxu0 %vm1421_vm10, %v1344_v52  ;;  %v1028_v52 = vsel %vm1024_vm4, %v991_v53, %v18382_v22  ;;  %v10377_v22 = vld [vmem:[%s10626_s30 + $0x58] sm:$0xff] }
 0x1f4   : > { %v1065_v20 = vsel %vm1061_vm6, %v1028_v52, %v11148_v55  ;;  %v1341_v55 = vsel %vm1287_vm9, %v1286_v62, %v11469_v37 }
 0x1f5   : > { %v1122_v12 = vsel %vm18244_vm5, %v1065_v20, %v11242_v2  ;;  %v18384_v20 = vld [vmem:[#allocation18_spill] sm:$0xff] }
 0x1f6   : > { %v1179_v47 = vsel %vm1175_vm7, %v1122_v12, %v11274_v43  ;;  %v1007_v41 = vsel %vm987_vm3, %v10377_v22, %v18384_v20 }
 0x1f7   : > { %v11515_v17 = vpop.permute.xlu2 %979  ;;  %v1236_v53 = vsel %vm18234_vm8, %v1179_v47, %v11396_v28  ;;  %v1044_v12 = vsel %vm1024_vm4, %v1007_v41, %v11107_v27  ;;  %v18386_v27 = vld [vmem:[#allocation34_spill] sm:$0xff] }
 0x1f8   : > { %v1291_v2 = vsel %vm1287_vm9, %v1236_v53, %v11455_v11  ;;  %v1089_v47 = vsel %vm1061_vm6, %v1044_v12, %v18385_v14  ;;  %v1067_v22 = vsel %vm1061_vm6, %v1026_v59, %v18386_v27  ;;  %v18388_v59 = vld [vmem:[#allocation22_spill] sm:$0xff] }
 0x1f9   : > { %v11517_v5 = vpop.permute.xlu0 %957  ;;  %v1346_v7 = vsel %vm18233_vm11, %v1291_v2, %v954_v25  ;;  %v1146_v62 = vsel %vm18244_vm5, %v1089_v47, %v11226_v42  ;;  %v1124_v20 = vsel %vm18244_vm5, %v1067_v22, %v11240_v3 }
 0x1fa   : > { %v1203_v53 = vsel %vm1175_vm7, %v1146_v62, %v11348_v9  ;;  %v1181_v41 = vsel %vm1175_vm7, %v1124_v20, %v11326_v57  ;;  %v10378_v62 = vld [vmem:[%s10626_s30 + $0x50] sm:$0xff] }
 0x1fb   : > { %v1237_v47 = vsel %vm18234_vm8, %v1181_v41, %v11398_v6 }
 0x1ff   : > { %v11547_v40 = vpop.permute.xlu2 %985 }
 0x200   : > { %18383 = vst [vmem:[#allocation13_spill] sm:$0xff] %v11547_v40  ;;  %v1396_v43 = vsel %vm18233_vm11, %v1341_v55, %v11547_v40  ;;  %v1260_v55 = vsel %vm18234_vm8, %v1203_v53, %v11434_v35  ;;  %v18387_v53 = vld [vmem:[#allocation6_spill] sm:$0xff]  ;;  %v18389_v40 = vld [vmem:[#allocation49_spill] sm:$0xff] }
 0x201   : > { %v11551_v48 = vpop.permute.xlu0 %963  ;;  %9524 = vmatmul.msk.bf16.vlgmr.msra.gmra.mxu3 %vm1421_vm10, %v1396_v43  ;;  %v1315_v2 = vsel %vm1287_vm9, %v1260_v55, %v11477_v38  ;;  %v1005_v55 = vsel %vm987_vm3, %v10378_v62, %v18387_v53  ;;  %v18390_v62 = vld [vmem:[#allocation45_spill] sm:$0xff] }
 0x202   : > { %v11592_v22 = vsel %vm1024_vm4, %v1005_v55, %v18388_v59  ;;  %v1069_v53 = vsel %vm1061_vm6, %v1028_v52, %v18390_v62 }
 0x203   : > { %9490 = vmatmul.msk.bf16.gmra.mxu0 %vm1421_vm10, %v1346_v7  ;;  %v1091_v20 = vsel %vm1061_vm6, %v11592_v22, %v18389_v40  ;;  %v1126_v55 = vsel %vm18244_vm5, %v1069_v53, %v11195_v30  ;;  %v18392_v53 = vld [vmem:[#allocation8_spill] sm:$0xff] }
 0x204   : > { %v1148_v6 = vsel %vm18244_vm5, %v1091_v20, %v11278_v61 }
 0x205   : > { %v1205_v41 = vsel %vm1175_vm7, %v1148_v6, %v11310_v33  ;;  %v11619_v6 = vpop.permute.xlu1 %959 }
 0x209   : > { %v970_v43 = vpop.permute.xlu0 %969 }
 0x20a   : > { %v1370_v7 = vsel %vm18233_vm11, %v1315_v2, %v970_v43  ;;  %v1292_v2 = vsel %vm1287_vm9, %v1237_v47, %v11450_v39  ;;  %v1261_v39 = vsel %vm18234_vm8, %v1205_v41, %v11382_v10  ;;  %v18391_v41 = vld [vmem:[#allocation42_spill] sm:$0xff] }
 0x20b   : > { %9506 = vmatmul.msk.bf16.vlgmr.msra.gmra.mxu2 %vm1421_vm10, %v1370_v7  ;;  %v1347_v7 = vsel %vm18233_vm11, %v1292_v2, %v952_v58  ;;  %v1316_v58 = vsel %vm1287_vm9, %v1261_v39, %v11442_v15  ;;  %v1183_v2 = vsel %vm1175_vm7, %v1126_v55, %v11324_v44  ;;  %v1093_v52 = vsel %vm1061_vm6, %v1044_v12, %v18391_v41  ;;  %v18393_v12 = vld [vmem:[#allocation16_spill] sm:$0xff] }
 0x20c   : > { %v1371_v47 = vsel %vm18233_vm11, %v1316_v58, %v11485_v63  ;;  %v1150_v39 = vsel %vm18244_vm5, %v1093_v52, %v11276_v49 }
 0x20d   : > { %v1207_v58 = vsel %vm1175_vm7, %v1150_v39, %v11362_v54  ;;  %v10380_v39 = vld [vmem:[%s10626_s30 + $0x64] sm:$0xff] }
 0x213   : > { %9491 = vmatmul.msk.bf16.gmra.mxu0 %vm1421_vm10, %v1347_v7  ;;  %v1238_v7 = vsel %vm18234_vm8, %v1183_v2, %v11396_v28  ;;  %v1262_v28 = vsel %vm18234_vm8, %v1207_v58, %v11434_v35 }
 0x214   : > { %v1293_v59 = vsel %vm1287_vm9, %v1238_v7, %v11455_v11  ;;  %v1317_v11 = vsel %vm1287_vm9, %v1262_v28, %v11477_v38 }
 0x215   : > { %v1348_v20 = vsel %vm18233_vm11, %v1293_v59, %v954_v25  ;;  %v1372_v25 = vsel %vm18233_vm11, %v1317_v11, %v970_v43  ;;  %v11641_v59 = vpop.permute.xlu1 %965 }
 0x21b   : > { %9507 = vmatmul.msk.bf16.gmra.mxu2 %vm1421_vm10, %v1371_v47  ;;  %v10379_v47 = vld [vmem:[%s10626_s30 + $0x14] sm:$0xff] }
 0x21c   : > { %v993_v55 = vsel %vm987_vm3, %v10379_v47, %v18392_v53 }
 0x21d   : > { %v1030_v2 = vsel %vm1024_vm4, %v993_v55, %v18393_v12  ;;  %v972_v47 = vpop.permute.xlu1 %971 }
 0x21e   : > { %v1070_v7 = vsel %vm1061_vm6, %v1030_v2, %v18386_v27  ;;  %v18394_v27 = vld [vmem:[#allocation17_spill] sm:$0xff] }
 0x21f   : > { %v1127_v35 = vsel %vm18244_vm5, %v1070_v7, %v11240_v3  ;;  %v1009_v58 = vsel %vm987_vm3, %v10380_v39, %v18394_v27  ;;  %v18395_v3 = vld [vmem:[#allocation35_spill] sm:$0xff]  ;;  %v10381_v7 = vld [vmem:[%s10626_s30 + $0x1c] sm:$0xff] }
 0x220   : > { %v1184_v38 = vsel %vm1175_vm7, %v1127_v35, %v11326_v57  ;;  %v1046_v28 = vsel %vm1024_vm4, %v1009_v58, %v18395_v3  ;;  %v18396_v35 = vld [vmem:[#allocation11_spill] sm:$0xff] }
 0x221   : > { %v1240_v43 = vsel %vm18234_vm8, %v1184_v38, %v11358_v24  ;;  %v1094_v57 = vsel %vm1061_vm6, %v1046_v28, %v18389_v40  ;;  %v995_v38 = vsel %vm987_vm3, %v10381_v7, %v18396_v35  ;;  %v18397_v40 = vld [vmem:[#allocation30_spill] sm:$0xff]  ;;  %v10382_v39 = vld [vmem:[%s10626_s30 + $0x6c] sm:$0xff] }
 0x222   : > { %v1151_v11 = vsel %vm18244_vm5, %v1094_v57, %v11278_v61  ;;  %v1032_v61 = vsel %vm1024_vm4, %v995_v38, %v18397_v40  ;;  %v18398_v27 = vld [vmem:[#allocation7_spill] sm:$0xff]  ;;  %v18400_v7 = vld [vmem:[#allocation44_spill] sm:$0xff] }
 0x223   : > { %9492 = vmatmul.msk.bf16.gmra.mxu0 %vm1421_vm10, %v1348_v20  ;;  %v1295_v20 = vsel %vm1287_vm9, %v1240_v43, %v11430_v45  ;;  %v1011_v58 = vsel %vm987_vm3, %v10382_v39, %v18398_v27 }
 0x224   : > { %v1350_v52 = vsel %vm18233_vm11, %v1295_v20, %v11475_v46 }
 0x22b   : > { %9508 = vmatmul.msk.bf16.gmra.mxu2 %vm1421_vm10, %v1372_v25  ;;  %v1208_v25 = vsel %vm1175_vm7, %v1151_v11, %v11310_v33  ;;  %v1071_v33 = vsel %vm1061_vm6, %v1032_v61, %v18390_v62  ;;  %v18399_v62 = vld [vmem:[#allocation25_spill] sm:$0xff] }
 0x22c   : > { %v1264_v53 = vsel %vm18234_vm8, %v1208_v25, %v11432_v18  ;;  %v1128_v43 = vsel %vm18244_vm5, %v1071_v33, %v11195_v30  ;;  %v1048_v30 = vsel %vm1024_vm4, %v1011_v58, %v18399_v62  ;;  %v18401_v33 = vld [vmem:[#allocation52_spill] sm:$0xff]  ;;  %v10383_v62 = vld [vmem:[%s10626_s30 + $0x28] sm:$0xff] }
 0x22d   : > { %v1319_v55 = vsel %vm1287_vm9, %v1264_v53, %v11481_v4  ;;  %v1185_v20 = vsel %vm1175_vm7, %v1128_v43, %v11324_v44  ;;  %v1095_v44 = vsel %vm1061_vm6, %v1048_v30, %v18391_v41  ;;  %v1073_v41 = vsel %vm1061_vm6, %v1030_v2, %v18400_v7 }
 0x22e   : > { %v1374_v12 = vsel %vm18233_vm11, %v1319_v55, %v972_v47  ;;  %v1152_v11 = vsel %vm18244_vm5, %v1095_v44, %v11276_v49  ;;  %v1130_v49 = vsel %vm18244_vm5, %v1073_v41, %v11254_v1  ;;  %v1097_v2 = vsel %vm1061_vm6, %v1046_v28, %v18401_v33 }
 0x22f   : > { %v1209_v25 = vsel %vm1175_vm7, %v1152_v11, %v11362_v54  ;;  %v1187_v54 = vsel %vm1175_vm7, %v1130_v49, %v11286_v26  ;;  %v1154_v43 = vsel %vm18244_vm5, %v1097_v2, %v11238_v0  ;;  %v18405_v11 = vld [vmem:[#allocation29_spill] sm:$0xff] }
 0x230   : > { %v1266_v53 = vsel %vm18234_vm8, %v1209_v25, %v11394_v23  ;;  %v1243_v35 = vsel %vm18234_vm8, %v1187_v54, %v11358_v24  ;;  %v10384_v54 = vld [vmem:[%s10626_s30 + $0x78] sm:$0xff] }
 0x231   : > { %v1321_v55 = vsel %vm1287_vm9, %v1266_v53, %v11448_v8  ;;  %v1298_v38 = vsel %vm1287_vm9, %v1243_v35, %v11430_v45  ;;  %v11771_v53 = vld [vmem:[%s18182_s3] ss:$0 sm:$0xff]  ;;  %v18406_v35 = vld [vmem:[#allocation21_spill] sm:$0xff] }
 0x232   : > { %v1353_v40 = vsel %vm18233_vm11, %v1298_v38, %v11475_v46 }
 0x233   : > { %9493 = vmatmul.msk.bf16.gmra.mxu0 %vm1421_vm10, %v1350_v52  ;;  %v1242_v52 = vsel %vm18234_vm8, %v1185_v20, %v11410_v21  ;;  %v1211_v20 = vsel %vm1175_vm7, %v1154_v43, %v11360_v60 }
 0x234   : > { %v1297_v3 = vsel %vm1287_vm9, %v1242_v52, %v11459_v19  ;;  %v1267_v24 = vsel %vm18234_vm8, %v1211_v20, %v11432_v18  ;;  %v18402_v52 = vld [vmem:[#allocation36_spill] sm:$0xff] }
 0x235   : > { %v1352_v57 = vsel %vm18233_vm11, %v1297_v3, %v11517_v5  ;;  %v1322_v45 = vsel %vm1287_vm9, %v1267_v24, %v11481_v4  ;;  %v1075_v28 = vsel %vm1061_vm6, %v1032_v61, %v18402_v52 }
 0x236   : > { %v1377_v46 = vsel %vm18233_vm11, %v1322_v45, %v972_v47  ;;  %v1132_v39 = vsel %vm18244_vm5, %v1075_v28, %v11252_v51  ;;  %v18403_v47 = vld [vmem:[#allocation51_spill] sm:$0xff] }
 0x237   : > { %v1189_v27 = vsel %vm1175_vm7, %v1132_v39, %v11338_v34  ;;  %v1099_v61 = vsel %vm1061_vm6, %v1048_v30, %v18403_v47 }
 0x238   : > { %v1244_v58 = vsel %vm18234_vm8, %v1189_v27, %v11410_v21  ;;  %v1156_v3 = vsel %vm18244_vm5, %v1099_v61, %v11290_v31 }
 0x239   : > { %v1299_v18 = vsel %vm1287_vm9, %v1244_v58, %v11459_v19  ;;  %v18404_v19 = vld [vmem:[#allocation4_spill] sm:$0xff]  ;;  %v18408_v58 = vld [vmem:[#allocation5_spill] sm:$0xff] }
 0x23a   : > { %v1354_v4 = vsel %vm18233_vm11, %v1299_v18, %v11517_v5  ;;  %v997_v44 = vsel %vm987_vm3, %v10383_v62, %v18404_v19 }
 0x23b   : > { %9509 = vmatmul.msk.bf16.gmra.mxu2 %vm1421_vm10, %v1374_v12  ;;  %v1376_v12 = vsel %vm18233_vm11, %v1321_v55, %v11504_v16  ;;  %v11763_v25 = vsel %vm1024_vm4, %v997_v44, %v18405_v11  ;;  %v18411_v11 = vld [vmem:[#allocation67_spill] sm:$0xff] }
 0x243   : > { %9494 = vmatmul.msk.bf16.gmra.mxu0 %vm1421_vm10, %v1352_v57  ;;  %v1213_v57 = vsel %vm1175_vm7, %v1156_v3, %v11322_v36 }
 0x244   : > { %v1268_v21 = vsel %vm18234_vm8, %v1213_v57, %v11394_v23  ;;  %v1076_v23 = vsel %vm1061_vm6, %v11763_v25, %v18400_v7  ;;  %v18410_v57 = vld [vmem:[#allocation19_spill] sm:$0xff] }
 0x245   : > { %v1323_v5 = vsel %vm1287_vm9, %v1268_v21, %v11448_v8  ;;  %v1133_v8 = vsel %vm18244_vm5, %v1076_v23, %v11254_v1  ;;  %v1013_v1 = vsel %vm987_vm3, %v10384_v54, %v18406_v35  ;;  %v18415_v35 = vld [vmem:[#allocation37_spill] sm:$0xff] }
 0x246   : > { %v1378_v30 = vsel %vm18233_vm11, %v1323_v5, %v11504_v16  ;;  %v1190_v16 = vsel %vm1175_vm7, %v1133_v8, %v11286_v26  ;;  %v18407_v26 = vld [vmem:[#allocation38_spill] sm:$0xff] }
 0x247   : > { %v1246_v55 = vsel %vm18234_vm8, %v1190_v16, %v11408_v56 }
 0x248   : > { %v1301_v41 = vsel %vm1287_vm9, %v1246_v55, %v11467_v29  ;;  %v18412_v55 = vld [vmem:[#allocation75_spill] sm:$0xff] }
 0x249   : > { %v1356_v49 = vsel %vm18233_vm11, %v1301_v41, %v11619_v6  ;;  %v18413_v41 = vld [vmem:[#allocation82_spill] sm:$0xff] }
 0x24b   : > { %9510 = vmatmul.msk.bf16.gmra.mxu2 %vm1421_vm10, %v1376_v12 }
 0x253   : > { %9495 = vmatmul.msk.bf16.gmra.mxu0 %vm1421_vm10, %v1353_v40  ;;  %v11790_v40 = vsel %vm1024_vm4, %v1013_v1, %v18407_v26 }
 0x254   : > { %v1100_v2 = vsel %vm1061_vm6, %v11790_v40, %v18401_v33  ;;  %v10385_v33 = vld [vmem:[%s10626_s30 + $0x30] sm:$0xff] }
 0x255   : > { %v1157_v20 = vsel %vm18244_vm5, %v1100_v2, %v11238_v0  ;;  %v999_v18 = vsel %vm987_vm3, %v10385_v33, %v18408_v58 }
 0x256   : > { %v1214_v45 = vsel %vm1175_vm7, %v1157_v20, %v11360_v60  ;;  %v11819_v21 = vsel %vm1024_vm4, %v999_v18, %v18410_v57 }
 0x257   : > { %v1270_v28 = vsel %vm18234_vm8, %v1214_v45, %v11440_v50  ;;  %v1077_v62 = vsel %vm1061_vm6, %v11819_v21, %v18402_v52  ;;  %v11859_v45 = vpop.permute.xlu1 %977 }
 0x258   : > { %v1134_v44 = vsel %vm18244_vm5, %v1077_v62, %v11252_v51 }
 0x25b   : > { %9511 = vmatmul.msk.bf16.gmra.mxu2 %vm1421_vm10, %v1377_v46  ;;  %v11803_v46 = vpop.permute.xlu0 %975 }
 0x263   : > { %9496 = vmatmul.msk.bf16.gmra.mxu0 %vm1421_vm10, %v1354_v4  ;;  %v18409_v4 = vld [vmem:[#allocation83_spill] sm:$0xff] }
 0x264   : > { %v1325_v0 = vsel %vm1287_vm9, %v1270_v28, %v18409_v4  ;;  %v18416_v28 = vld [vmem:[#allocation76_spill] sm:$0xff] }
 0x265   : > { %v1380_v60 = vsel %vm18233_vm11, %v1325_v0, %v11803_v46 }
 0x26b   : > { %9512 = vmatmul.msk.bf16.gmra.mxu2 %vm1421_vm10, %v1378_v30  ;;  %v1191_v30 = vsel %vm1175_vm7, %v1134_v44, %v11338_v34 }
 0x26c   : > { %v1248_v23 = vsel %vm18234_vm8, %v1191_v30, %v18411_v11 }
 0x26d   : > { %v1303_v52 = vsel %vm1287_vm9, %v1248_v23, %v18412_v55 }
 0x26e   : > { %v1358_v51 = vsel %vm18233_vm11, %v1303_v52, %v18413_v41 }
 0x270   : > { %v1507_v12 = vpop.f32.mrf.mxu0 }
 0x271   : > { %v1508_v7 = vadd.f32 %v11771_v53, %v1507_v12 }
 0x273   : > { %vm1687_vm12 = vcmp.ge.f32.partialorder %v1508_v7, 0.0  ;;  %v1759_v38 = vmul.f32 0.2, %v1508_v7  ;;  %9497 = vmatmul.msk.bf16.gmra.mxu0 %vm1421_vm10, %v1356_v49  ;;  %v18414_v49 = vld [vmem:[#allocation20_spill] sm:$0xff] }
 0x275   : > { %v11795_v43 = vsel %vm1687_vm12, %v1508_v7, %v1759_v38  ;;  %v10386_v7 = vld [vmem:[%s10626_s30 + $0x80] sm:$0xff] }
 0x276   : > { %v1903_v24 = vmul.f32 %v11795_v43, %v11795_v43  ;;  %v1015_v54 = vsel %vm987_vm3, %v10386_v7, %v18414_v49  ;;  %v18421_v7 = vld [vmem:[#allocation43_spill] sm:$0xff] }
 0x277   : > { %v11846_v1 = vsel %vm1024_vm4, %v1015_v54, %v18415_v35  ;;  %v18422_v54 = vld [vmem:[#allocation61_spill] sm:$0xff] }
 0x278   : > { %v1509_v39 = vpop.f32.mrf.mxu0  ;;  %v1975_v27 = vsel %vm1024_vm4, %v1903_v24, 0.0  ;;  %v1101_v38 = vsel %vm1061_vm6, %v11846_v1, %v18403_v47  ;;  %v18417_v47 = vld [vmem:[#allocation9_spill] sm:$0xff] }
 0x279   : > { %v1510_v61 = vadd.f32 %v11771_v53, %v1509_v39  ;;  %1976 = vadd.xlane.f32.xlu0 %v1975_v27  ;;  %v1158_v2 = vsel %vm18244_vm5, %v1101_v38, %v11290_v31  ;;  %v18423_v38 = vld [vmem:[#allocation69_spill] sm:$0xff] }
 0x27a   : > { %v1215_v24 = vsel %vm1175_vm7, %v1158_v2, %v11322_v36  ;;  %v18418_v36 = vld [vmem:[#allocation48_spill] sm:$0xff] }
 0x27b   : > { %vm1688_vm13 = vcmp.ge.f32.partialorder %v1510_v61, 0.0  ;;  %v1760_v3 = vmul.f32 0.2, %v1510_v61  ;;  %9513 = vmatmul.msk.bf16.gmra.mxu2 %vm1421_vm10, %v1380_v60  ;;  %v1272_v39 = vsel %vm18234_vm8, %v1215_v24, %v18416_v28 }
 0x27c   : > { %v1327_v58 = vsel %vm1287_vm9, %v1272_v39, %v18417_v47 }
 0x27d   : > { %v11824_v19 = vsel %vm1688_vm13, %v1510_v61, %v1760_v3  ;;  %v1382_v31 = vsel %vm18233_vm11, %v1327_v58, %v11859_v45  ;;  %v1079_v61 = vsel %vm1061_vm6, %v11763_v25, %v18418_v36  ;;  %v18419_v3 = vld [vmem:[#allocation53_spill] sm:$0xff]  ;;  %v18424_v58 = vld [vmem:[#allocation47_spill] sm:$0xff] }
 0x27e   : > { %v1904_v5 = vmul.f32 %v11824_v19, %v11824_v19  ;;  %v1136_v57 = vsel %vm18244_vm5, %v1079_v61, %v18419_v3 }
 0x280   : > { %v1512_v8 = vpop.f32.mrf.mxu0  ;;  %v1978_v16 = vsel %vm1024_vm4, %v1904_v5, 0.0  ;;  %v18420_v5 = vld [vmem:[#allocation66_spill] sm:$0xff] }
 0x281   : > { %v1513_v12 = vadd.f32 %v11771_v53, %v1512_v8  ;;  %1979 = vadd.xlane.f32.xlu1 %v1978_v16  ;;  %v1193_v30 = vsel %vm1175_vm7, %v1136_v57, %v18420_v5  ;;  %v18426_v57 = vld [vmem:[#allocation62_spill] sm:$0xff] }
 0x282   : > { %v1249_v23 = vsel %vm18234_vm8, %v1193_v30, %v11408_v56  ;;  %v1103_v56 = vsel %vm1061_vm6, %v11790_v40, %v18421_v7 }
 0x283   : > { %vm1689_vm14 = vcmp.ge.f32.partialorder %v1513_v12, 0.0  ;;  %v1761_v34 = vmul.f32 0.2, %v1513_v12  ;;  %9498 = vmatmul.msk.bf16.gmra.mxu0 %vm1421_vm10, %v1358_v51  ;;  %v1304_v25 = vsel %vm1287_vm9, %v1249_v23, %v11467_v29 }
 0x285   : > { %v11851_v26 = vsel %vm1689_vm14, %v1513_v12, %v1761_v34  ;;  %v1359_v12 = vsel %vm18233_vm11, %v1304_v25, %v11619_v6  ;;  %v1160_v34 = vsel %vm18244_vm5, %v1103_v56, %v18422_v54 }
 0x286   : > { %v1905_v20 = vmul.f32 %v11851_v26, %v11851_v26  ;;  %v1217_v6 = vsel %vm1175_vm7, %v1160_v34, %v18423_v38 }
 0x287   : > { %v1273_v2 = vsel %vm18234_vm8, %v1217_v6, %v11440_v50  ;;  %v1081_v50 = vsel %vm1061_vm6, %v11819_v21, %v18424_v58 }
 0x288   : > { %v1514_v27 = vpop.f32.mrf.mxu0  ;;  %v1981_v33 = vsel %vm1024_vm4, %v1905_v20, 0.0  ;;  %v1328_v40 = vsel %vm1287_vm9, %v1273_v2, %v18409_v4 }
 0x289   : > { %v1515_v18 = vadd.f32 %v11771_v53, %v1514_v27  ;;  %1982 = vadd.xlane.f32.xlu2 %v1981_v33  ;;  %v1383_v27 = vsel %vm18233_vm11, %v1328_v40, %v11803_v46 }
 0x28b   : > { %vm1690_vm15 = vcmp.ge.f32.partialorder %v1515_v18, 0.0  ;;  %v1762_v0 = vmul.f32 0.2, %v1515_v18  ;;  %9514 = vmatmul.msk.bf16.gmra.mxu2 %vm1421_vm10, %v1382_v31  ;;  %v18425_v31 = vld [vmem:[#allocation60_spill] sm:$0xff] }
 0x28d   : > { %v11873_v60 = vsel %vm1690_vm15, %v1515_v18, %v1762_v0  ;;  %v1138_v0 = vsel %vm18244_vm5, %v1081_v50, %v18425_v31 }
 0x28e   : > { %v11877_v62 = vpop.f32.mrf.mxu2  ;;  %v1906_v44 = vmul.f32 %v11873_v60, %v11873_v60  ;;  %v1195_v46 = vsel %vm1175_vm7, %v1138_v0, %v18426_v57 }
 0x290   : > { %v1517_v8 = vpop.f32.mrf.mxu0  ;;  %v1984_v16 = vsel %vm1024_vm4, %v1906_v44, 0.0  ;;  %v1250_v44 = vsel %vm18234_vm8, %v1195_v46, %v18411_v11 }
 0x291   : > { %v1518_v52 = vadd.f32 %v11771_v53, %v1517_v8  ;;  %1985 = vadd.xlane.f32.xlu2 %v1984_v16  ;;  %v1305_v21 = vsel %vm1287_vm9, %v1250_v44, %v18412_v55 }
 0x292   : > { %v1360_v16 = vsel %vm18233_vm11, %v1305_v21, %v18413_v41  ;;  %v18429_v41 = vld [vmem:[#allocation68_spill] sm:$0xff] }
 0x293   : > { %vm1691_vm2 = vcmp.ge.f32.partialorder %v1518_v52, 0.0  ;;  %v1763_v51 = vmul.f32 0.2, %v1518_v52  ;;  %9499 = vmatmul.msk.bf16.gmra.mxu0 %vm1421_vm10, %v1359_v12 }
 0x295   : > { %v11895_v49 = vsel %vm1691_vm2, %v1518_v52, %v1763_v51  ;;  %v18427_v52 = vld [vmem:[#allocation55_spill] sm:$0xff]  ;;  %v18428_v51 = vld [vmem:[#allocation57_spill] sm:$0xff] }
 0x296   : > { %v11899_v29 = vpop.f32.mrf.mxu2  ;;  %v1907_v35 = vmul.f32 %v11895_v49, %v11895_v49  ;;  %v1105_v11 = vsel %vm1061_vm6, %v11846_v1, %v18427_v52 }
 0x297   : > { %v1162_v55 = vsel %vm18244_vm5, %v1105_v11, %v18428_v51 }
 0x298   : > { %v1519_v20 = vpop.f32.mrf.mxu0  ;;  %v1987_v24 = vsel %vm1024_vm4, %v1907_v35, 0.0  ;;  %v1219_v35 = vsel %vm1175_vm7, %v1162_v55, %v18429_v41  ;;  %v18434_v55 = vld [vmem:[#allocation80_spill] sm:$0xff] }
 0x299   : > { %v1520_v39 = vadd.f32 %v11771_v53, %v1519_v20  ;;  %1988 = vadd.xlane.f32.xlu0 %v1987_v24  ;;  %v1274_v6 = vsel %vm18234_vm8, %v1219_v35, %v18416_v28  ;;  %v18431_v28 = vld [vmem:[#allocation33_spill] sm:$0xff] }
 0x29a   : > { %v1329_v1 = vsel %vm1287_vm9, %v1274_v6, %v18417_v47  ;;  %v18435_v6 = vld [vmem:[#allocation28_spill] sm:$0xff] }
 0x29b   : > { %vm1692_vm12 = vcmp.ge.f32.partialorder %v1520_v39, 0.0  ;;  %v1764_v33 = vmul.f32 0.2, %v1520_v39  ;;  %9515 = vmatmul.msk.bf16.gmra.mxu2 %vm1421_vm10, %v1383_v27  ;;  %v1384_v40 = vsel %vm18233_vm11, %v1329_v1, %v11859_v45  ;;  %v18430_v27 = vld [vmem:[#allocation15_spill] sm:$0xff] }
 0x29d   : > { %v11917_v18 = vsel %vm1692_vm12, %v1520_v39, %v1764_v33  ;;  %v10387_v39 = vld [vmem:[%s10626_s30 + $0x3c] sm:$0xff] }
 0x29e   : > { %v11921_v4 = vpop.f32.mrf.mxu2  ;;  %v1908_v61 = vmul.f32 %v11917_v18, %v11917_v18  ;;  %v1001_v33 = vsel %vm987_vm3, %v10387_v39, %v18430_v27 }
 0x29f   : > { %v11963_v0 = vsel %vm1024_vm4, %v1001_v33, %v18431_v28  ;;  %v18436_v33 = vld [vmem:[#allocation72_spill] sm:$0xff] }
 0x2a0   : > { %v1522_v30 = vpop.f32.mrf.mxu0  ;;  %v1990_v23 = vsel %vm1024_vm4, %v1908_v61, 0.0  ;;  %v1082_v47 = vsel %vm1061_vm6, %v11963_v0, %v18418_v36  ;;  %v10388_v36 = vld [vmem:[%s10626_s30 + $0x8c] sm:$0xff] }
 0x2a1   : > { %v1523_v8 = vadd.f32 %v11771_v53, %v1522_v30  ;;  %1991 = vadd.xlane.f32.xlu1 %v1990_v23  ;;  %v1139_v45 = vsel %vm18244_vm5, %v1082_v47, %v18419_v3  ;;  %v18432_v23 = vld [vmem:[#allocation74_spill] sm:$0xff] }
 0x2a2   : > { %v1196_v30 = vsel %vm1175_vm7, %v1139_v45, %v18420_v5 }
 0x2a3   : > { %vm1693_vm13 = vcmp.ge.f32.partialorder %v1523_v8, 0.0  ;;  %v1765_v25 = vmul.f32 0.2, %v1523_v8  ;;  %9500 = vmatmul.msk.bf16.gmra.mxu0 %vm1421_vm10, %v1360_v16  ;;  %v1252_v21 = vsel %vm18234_vm8, %v1196_v30, %v18432_v23  ;;  %v10389_v30 = vld [vmem:[%s10626_s30 + $0x44] sm:$0xff] }
 0x2a4   : > { %v1307_v3 = vsel %vm1287_vm9, %v1252_v21, %v18434_v55  ;;  %v18438_v21 = vld [vmem:[#allocation14_spill] sm:$0xff] }
 0x2a5   : > { %v11939_v12 = vsel %vm1693_vm13, %v1523_v8, %v1765_v25  ;;  %v18433_v25 = vld [vmem:[#allocation10_spill] sm:$0xff]  ;;  %v1362_v35 = vsel %vm18233_vm11, %v1307_v3, %v11551_v48 }
 0x2a6   : > { %v11943_v56 = vpop.f32.mrf.mxu2  ;;  %v1909_v34 = vmul.f32 %v11939_v12, %v11939_v12  ;;  %v1017_v11 = vsel %vm987_vm3, %v10388_v36, %v18433_v25 }
 0x2a8   : > { %v1524_v2 = vpop.f32.mrf.mxu0  ;;  %v1993_v20 = vsel %vm1024_vm4, %v1909_v34, 0.0 }
 0x2a9   : > { %v1525_v24 = vadd.f32 %v11771_v53, %v1524_v2  ;;  %1994 = vadd.xlane.f32.xlu2 %v1993_v20  ;;  %v11992_v2 = vsel %vm1024_vm4, %v1017_v11, %v18435_v6  ;;  %v18440_v6 = vld [vmem:[#allocation73_spill] sm:$0xff] }
 0x2aa   : > { %v1106_v20 = vsel %vm1061_vm6, %v11992_v2, %v18421_v7  ;;  %v18437_v7 = vld [vmem:[#allocation79_spill] sm:$0xff] }
 0x2ab   : > { %vm1694_vm14 = vcmp.ge.f32.partialorder %v1525_v24, 0.0  ;;  %v1766_v50 = vmul.f32 0.2, %v1525_v24  ;;  %9516 = vmatmul.msk.bf16.gmra.mxu2 %vm1421_vm10, %v1384_v40 }
 0x2ad   : > { %v11968_v61 = vsel %vm1694_vm14, %v1525_v24, %v1766_v50  ;;  %v1163_v24 = vsel %vm18244_vm5, %v1106_v20, %v18422_v54  ;;  %vm3316_vm14 = vcmask 57344  }
 0x2ae   : > { %v11972_v46 = vpop.f32.mrf.mxu2  ;;  %v1910_v44 = vmul.f32 %v11968_v61, %v11968_v61  ;;  %v1220_v27 = vsel %vm1175_vm7, %v1163_v24, %v18423_v38 }
 0x2af   : > { %v1276_v50 = vsel %vm18234_vm8, %v1220_v27, %v18436_v33 }
 0x2b0   : > { %v1527_v8 = vpop.f32.mrf.mxu0  ;;  %v1996_v16 = vsel %vm1024_vm4, %v1910_v44, 0.0  ;;  %v1331_v45 = vsel %vm1287_vm9, %v1276_v50, %v18437_v7 }
 0x2b1   : > { %v1528_v34 = vadd.f32 %v11771_v53, %v1527_v8  ;;  %1997 = vadd.xlane.f32.xlu0 %v1996_v16  ;;  %v1386_v54 = vsel %vm18233_vm11, %v1331_v45, %v11515_v17  ;;  %v1003_v8 = vsel %vm987_vm3, %v10389_v30, %v18438_v21  ;;  %v18439_v16 = vld [vmem:[#allocation32_spill] sm:$0xff] }
 0x2b2   : > { %v12021_v36 = vsel %vm1024_vm4, %v1003_v8, %v18439_v16 }
 0x2b3   : > { %vm1695_vm15 = vcmp.ge.f32.partialorder %v1528_v34, 0.0  ;;  %v1767_v5 = vmul.f32 0.2, %v1528_v34  ;;  %9501 = vmatmul.msk.bf16.gmra.mxu0 %vm1421_vm10, %v1362_v35  ;;  %v1083_v25 = vsel %vm1061_vm6, %v12021_v36, %v18424_v58  ;;  %v18441_v58 = vld [vmem:[#allocation81_spill] sm:$0xff] }
 0x2b4   : > { %v1140_v3 = vsel %vm18244_vm5, %v1083_v25, %v18425_v31 }
 0x2b5   : > { %v11997_v1 = vsel %vm1695_vm15, %v1528_v34, %v1767_v5  ;;  %v1197_v5 = vsel %vm1175_vm7, %v1140_v3, %v18426_v57  ;;  %v12065_v3 = vpop.permute.xlu0 %981  ;;  %vm3317_vm15 = vsmask.f32 256 }
 0x2b6   : > { %v12001_v40 = vpop.f32.mrf.mxu2  ;;  %v1911_v39 = vmul.f32 %v11997_v1, %v11997_v1  ;;  %v1254_v20 = vsel %vm18234_vm8, %v1197_v5, %v18440_v6 }
 0x2b7   : > { %v1309_v27 = vsel %vm1287_vm9, %v1254_v20, %v18441_v58 }
 0x2b8   : > { %v1529_v28 = vpop.f32.mrf.mxu0  ;;  %v1999_v47 = vsel %vm1024_vm4, %v1911_v39, 0.0  ;;  %v1364_v31 = vsel %vm18233_vm11, %v1309_v27, %v11641_v59 }
 0x2b9   : > { %v1530_v44 = vadd.f32 %v11771_v53, %v1529_v28  ;;  %2000 = vadd.xlane.f32.xlu1 %v1999_v47  ;;  %v10390_v28 = vld [vmem:[%s10626_s30 + $0x94] sm:$0xff] }
 0x2ba   : > { %v18442_v47 = vld [vmem:[#allocation24_spill] sm:$0xff] }
 0x2bb   : > { %vm1696_vm2 = vcmp.ge.f32.partialorder %v1530_v44, 0.0  ;;  %v1768_v38 = vmul.f32 0.2, %v1530_v44  ;;  %9517 = vmatmul.msk.bf16.gmra.mxu2 %vm1421_vm10, %v1386_v54  ;;  %v1019_v45 = vsel %vm987_vm3, %v10390_v28, %v18442_v47 }
 0x2bd   : > { %v12026_v11 = vsel %vm1696_vm2, %v1530_v44, %v1768_v38  ;;  %v18443_v44 = vld [vmem:[#allocation41_spill] sm:$0xff]  ;;  %vm12089_vm2 = vmand %vm3316_vm14, %vm3317_vm15 }
 0x2be   : > { %v12030_v34 = vpop.f32.mrf.mxu2  ;;  %v1912_v35 = vmul.f32 %v12026_v11, %v12026_v11  ;;  %v12050_v54 = vsel %vm1024_vm4, %v1019_v45, %v18443_v44  ;;  %v18447_v45 = vld [vmem:[#allocation59_spill] sm:$0xff] }
 0x2bf   : > { %v1107_v30 = vsel %vm1061_vm6, %v12050_v54, %v18427_v52 }
 0x2c0   : > { %v1532_v24 = vpop.f32.mrf.mxu0  ;;  %v2002_v39 = vsel %vm1024_vm4, %v1912_v35, 0.0  ;;  %v1164_v8 = vsel %vm18244_vm5, %v1107_v30, %v18428_v51  ;;  %v18444_v35 = vld [vmem:[#allocation78_spill] sm:$0xff] }
 0x2c1   : > { %v1533_v50 = vadd.f32 %v11771_v53, %v1532_v24  ;;  %2003 = vadd.xlane.f32.xlu2 %v2002_v39  ;;  %v1221_v25 = vsel %vm1175_vm7, %v1164_v8, %v18429_v41  ;;  %v18445_v24 = vld [vmem:[#allocation84_spill] sm:$0xff]  ;;  %v3319_v41 = vld [vmem:[#allocation2] sm:$0x1] }
 0x2c2   : > { %v1278_v5 = vsel %vm18234_vm8, %v1221_v25, %v18444_v35  ;;  %v3320_v25 = vsel %vm12089_vm2, 0, %v3319_v41 }
 0x2c3   : > { %vm1697_vm12 = vcmp.ge.f32.partialorder %v1533_v50, 0.0  ;;  %v1769_v57 = vmul.f32 0.2, %v1533_v50  ;;  %9502 = vmatmul.msk.bf16.gmra.mxu0 %vm1421_vm10, %v1364_v31  ;;  %v1333_v39 = vsel %vm1287_vm9, %v1278_v5, %v18445_v24  ;;  %v18446_v31 = vld [vmem:[#allocation39_spill] sm:$0xff]  ;;  %3321 = vst [vmem:[#allocation2] sm:$0x1] %v3320_v25 }
 0x2c4   : > { %v1388_v27 = vsel %vm18233_vm11, %v1333_v39, %v12065_v3  ;;  %v1085_v28 = vsel %vm1061_vm6, %v11963_v0, %v18446_v31 }
 0x2c5   : > { %v12055_v21 = vsel %vm1697_vm12, %v1533_v50, %v1769_v57  ;;  %v1142_v57 = vsel %vm18244_vm5, %v1085_v28, %v18447_v45 }
 0x2c6   : > { %v12059_v38 = vpop.f32.mrf.mxu2  ;;  %v1913_v16 = vmul.f32 %v12055_v21, %v12055_v21 }
 0x2c8   : > { %v1534_v20 = vpop.f32.mrf.mxu0  ;;  %v2005_v52 = vsel %vm1024_vm4, %v1913_v16, 0.0  ;;  %v18450_v16 = vld [vmem:[#allocation3_spill] sm:$0xff] }
 0x2c9   : > { %v1535_v51 = vadd.f32 %v11771_v53, %v1534_v20  ;;  %2006 = vadd.xlane.f32.xlu0 %v2005_v52  ;;  %v1199_v0 = vsel %vm1175_vm7, %v1142_v57, %v18450_v16 }
 0x2ca   : > { %v1255_v5 = vsel %vm18234_vm8, %v1199_v0, %v18432_v23  ;;  %v18451_v23 = vld [vmem:[#allocation54_spill] sm:$0xff] }
 0x2cb   : > { %vm1698_vm13 = vcmp.ge.f32.partialorder %v1535_v51, 0.0  ;;  %v1770_v50 = vmul.f32 0.2, %v1535_v51  ;;  %9518 = vmatmul.msk.bf16.gmra.mxu2 %vm1421_vm10, %v1388_v27  ;;  %v1310_v39 = vsel %vm1287_vm9, %v1255_v5, %v18434_v55  ;;  %v10552_v27 = vmov 8.0  }
 0x2cc   : > { %10101 = vrcp.f32 %v10552_v27  ;;  %v1109_v28 = vsel %vm1061_vm6, %v11992_v2, %v18451_v23 }
 0x2cd   : > { %v12079_v47 = vsel %vm1698_vm13, %v1535_v51, %v1770_v50  ;;  %v1365_v50 = vsel %vm18233_vm11, %v1310_v39, %v11551_v48  ;;  %v18453_v48 = vld [vmem:[#allocation65_spill] sm:$0xff] }
 0x2ce   : > { %v12083_v44 = vpop.f32.mrf.mxu2  ;;  %v1914_v30 = vmul.f32 %v12079_v47, %v12079_v47 }
 0x2d0   : > { %v1537_v20 = vpop.f32.mrf.mxu0  ;;  %v2008_v52 = vsel %vm1024_vm4, %v1914_v30, 0.0  ;;  %v18452_v30 = vld [vmem:[#allocation64_spill] sm:$0xff] }
 0x2d1   : > { %v1538_v51 = vadd.f32 %v11771_v53, %v1537_v20  ;;  %2009 = vadd.xlane.f32.xlu1 %v2008_v52  ;;  %v1166_v55 = vsel %vm18244_vm5, %v1109_v28, %v18452_v30 }
 0x2d2   : > { %v12117_v5 = vpop.eup %10101  ;;  %v1223_v20 = vsel %vm1175_vm7, %v1166_v55, %v18453_v48 }
 0x2d3   : > { %vm1699_vm12 = vcmp.ge.f32.partialorder %v1538_v51, 0.0  ;;  %v1771_v41 = vmul.f32 0.2, %v1538_v51  ;;  %9503 = vmatmul.msk.bf16.gmra.mxu0 %vm1421_vm10, %v1365_v50  ;;  %v1279_v52 = vsel %vm18234_vm8, %v1223_v20, %v18436_v33  ;;  %v1087_v33 = vsel %vm1061_vm6, %v12021_v36, %v18385_v14  ;;  %v10391_v36 = vld [vmem:[%s10626_s30 + $0xa0] sm:$0xff] }
 0x2d5   : > { %v12109_v57 = vsel %vm1699_vm12, %v1538_v51, %v1771_v41  ;;  %v1334_v51 = vsel %vm1287_vm9, %v1279_v52, %v18437_v7  ;;  %v2192_v41 = vmul.f32 8.0, %v12117_v5  ;;  %v1144_v7 = vsel %vm18244_vm5, %v1087_v33, %v11226_v42 }
 0x2d6   : > { %v12113_v0 = vpop.f32.mrf.mxu2  ;;  %v1915_v25 = vmul.f32 %v12109_v57, %v12109_v57  ;;  %v1389_v50 = vsel %vm18233_vm11, %v1334_v51, %v11515_v17  ;;  %v1201_v52 = vsel %vm1175_vm7, %v1144_v7, %v11348_v9  ;;  %v18454_v51 = vld [vmem:[#allocation23_spill] sm:$0xff]  ;;  %v1682_v9 = vpop.f32.mrf.mxu3  ;;  %v1088_v7 = vsel %vm1061_vm6, %v11592_v22, %v18446_v31 }
 0x2d7   : > { %v2193_v20 = vsub.f32 1.0, %v2192_v41  ;;  %v18455_v41 = vld [vmem:[#allocation40_spill] sm:$0xff]  ;;  %v1145_v31 = vsel %vm18244_vm5, %v1088_v7, %v18447_v45  ;;  %v1595_v7 = vadd.f32 %v11771_v53, %v11899_v29 }
 0x2d8   : > { %v1539_v39 = vpop.f32.mrf.mxu0  ;;  %v2011_v2 = vsel %vm1024_vm4, %v1915_v25, 0.0 }
 0x2d9   : > { %v1540_v27 = vadd.f32 %v11771_v53, %v1539_v39  ;;  %2012 = vadd.xlane.f32.xlu2 %v2011_v2  ;;  %v1256_v39 = vsel %vm18234_vm8, %v1201_v52, %v18440_v6  ;;  %v2194_v33 = vmul.f32 %v12117_v5, %v2193_v20 }
 0x2da   : > { %v1311_v42 = vsel %vm1287_vm9, %v1256_v39, %v18441_v58  ;;  %v18457_v39 = vld [vmem:[#allocation46_spill] sm:$0xff] }
 0x2db   : > { %vm1700_vm13 = vcmp.ge.f32.partialorder %v1540_v27, 0.0  ;;  %v1772_v28 = vmul.f32 0.2, %v1540_v27  ;;  %9519 = vmatmul.msk.bf16.gmra.mxu2 %vm1421_vm10, %v1389_v50  ;;  %v1366_v6 = vsel %vm18233_vm11, %v1311_v42, %v11641_v59  ;;  %v1113_v59 = vsel %vm1061_vm6, %v11524_v32, %v18457_v39 }
 0x2dc   : > { %v2195_v45 = vadd.f32 %v12117_v5, %v2194_v33 }
 0x2dd   : > { %v12134_v55 = vsel %vm1700_vm13, %v1540_v27, %v1772_v28  ;;  %v1021_v27 = vsel %vm987_vm3, %v10391_v36, %v18454_v51  ;;  %v18459_v36 = vld [vmem:[#allocation63_spill] sm:$0xff] }
 0x2de   : > { %v12138_v25 = vpop.f32.mrf.mxu2  ;;  %v1916_v17 = vmul.f32 %v12134_v55, %v12134_v55  ;;  %v1058_v28 = vsel %vm1024_vm4, %v1021_v27, %v18455_v41  ;;  %v1170_v27 = vsel %vm18244_vm5, %v1113_v59, %v18459_v36 }
 0x2df   : > { %v1112_v20 = vsel %vm1061_vm6, %v1058_v28, %v18451_v23  ;;  %v1593_v23 = vadd.f32 %v11771_v53, %v11877_v62  ;;  %v1202_v62 = vsel %vm1175_vm7, %v1145_v31, %v18450_v16  ;;  %v1684_v31 = vpop.f32.mrf.mxu3 }
 0x2e0   : > { %v1542_v2 = vpop.f32.mrf.mxu0  ;;  %v2014_v14 = vsel %vm1024_vm4, %v1916_v17, 0.0  ;;  %v18456_v17 = vld [vmem:[#allocation56_spill] sm:$0xff]  ;;  %v1169_v32 = vsel %vm18244_vm5, %v1112_v20, %v18452_v30 }
 0x2e1   : > { %v1543_v50 = vadd.f32 %v11771_v53, %v1542_v2  ;;  %2015 = vadd.xlane.f32.xlu0 %v2014_v14  ;;  %v1115_v52 = vsel %vm1061_vm6, %v1058_v28, %v18456_v17  ;;  %v1111_v2 = vsel %vm1061_vm6, %v12050_v54, %v18457_v39  ;;  %v18458_v14 = vld [vmem:[#allocation58_spill] sm:$0xff]  ;;  %v1226_v28 = vsel %vm1175_vm7, %v1169_v32, %v18453_v48 }
 0x2e2   : > { %v1172_v22 = vsel %vm18244_vm5, %v1115_v52, %v18458_v14  ;;  %v1168_v51 = vsel %vm18244_vm5, %v1111_v2, %v18459_v36  ;;  %vm2196_vm6 = vweird.f32 %v12117_v5  ;;  %v1683_v17 = vadd.f32 %v11771_v53, %v1682_v9  ;;  %v18461_v48 = vld [vmem:[#allocation70_spill] sm:$0xff] }
 0x2e3   : > { %vm1701_vm3 = vcmp.ge.f32.partialorder %v1543_v50, 0.0  ;;  %v1773_v58 = vmul.f32 0.2, %v1543_v50  ;;  %9504 = vmatmul.msk.bf16.gmra.mxu0 %vm1421_vm10, %v1366_v6  ;;  %v18460_v6 = vld [vmem:[#allocation71_spill] sm:$0xff]  ;;  %v1258_v39 = vsel %vm18234_vm8, %v1202_v62, %v11382_v10  ;;  %v1793_v16 = vmul.f32 0.2, %v1593_v23  ;;  %v984_v10 = vpop.permute.xlu1 %983 }
 0x2e4   : > { %v12216_v59 = vsel %vm2196_vm6, %v12117_v5, %v2195_v45  ;;  %v1794_v14 = vmul.f32 0.2, %v1595_v7  ;;  %vm1721_vm13 = vcmp.ge.f32.partialorder %v1593_v23, 0.0  ;;  %v1598_v36 = vadd.f32 %v11771_v53, %v11921_v4 }
 0x2e5   : > { %v12180_v54 = vsel %vm1701_vm3, %v1543_v50, %v1773_v58  ;;  %v1225_v50 = vsel %vm1175_vm7, %v1168_v51, %v18460_v6  ;;  %v1229_v58 = vsel %vm1175_vm7, %v1172_v22, %v18461_v48  ;;  %18462 = vst [vmem:[#allocation12_spill] sm:$0xff] %v12216_v59  ;;  %v1829_v22 = vmul.f32 0.2, %v1683_v17 }
 0x2e6   : > { %v12186_v42 = vpop.f32.mrf.mxu2  ;;  %v1917_v41 = vmul.f32 %v12180_v54, %v12180_v54  ;;  %v1280_v30 = vsel %vm18234_vm8, %v1225_v50, %v18444_v35  ;;  %v1227_v35 = vsel %vm1175_vm7, %v1170_v27, %v18460_v6  ;;  %vm1722_vm7 = vcmp.ge.f32.partialorder %v1595_v7, 0.0  ;;  %v18463_v27 = vld [vmem:[#allocation77_spill] sm:$0xff] }
 0x2e7   : > { %v1335_v29 = vsel %vm1287_vm9, %v1280_v30, %v18445_v24  ;;  %v1284_v20 = vsel %vm18234_vm8, %v1227_v35, %v11418_v13  ;;  %v1313_v5 = vsel %vm1287_vm9, %v1258_v39, %v11442_v15  ;;  %vm1757_vm3 = vcmp.ge.f32.partialorder %v1683_v17, 0.0 }
 0x2e8   : > { %v1544_v33 = vpop.f32.mrf.mxu0  ;;  %v2017_v52 = vsel %vm1024_vm4, %v1917_v41, 0.0  ;;  %v1390_v9 = vsel %vm18233_vm11, %v1335_v29, %v12065_v3  ;;  %v1282_v32 = vsel %vm18234_vm8, %v1226_v28, %v18463_v27  ;;  %v1285_v41 = vsel %vm18234_vm8, %v1229_v58, %v18463_v27  ;;  %v18467_v58 = vld [vmem:[#allocation27_spill] sm:$0xff]  ;;  %v18468_v29 = vld [vmem:[#allocation13_spill] sm:$0xff] }
 0x2e9   : > { %v1545_v2 = vadd.f32 %v11771_v53, %v1544_v33  ;;  %2018 = vadd.xlane.f32.xlu1 %v2017_v52  ;;  %v1339_v45 = vsel %vm1287_vm9, %v1284_v20, %v11469_v37  ;;  %v1685_v15 = vadd.f32 %v11771_v53, %v1684_v31  ;;  %v12242_v62 = vsel %vm1721_vm13, %v1593_v23, %v1793_v16 }
 0x2ea   : > { %18464 = vst [vmem:[#allocation31_spill] sm:$0xff] %v12242_v62  ;;  %v12244_v30 = vsel %vm1722_vm7, %v1595_v7, %v1794_v14  ;;  %v1795_v28 = vmul.f32 0.2, %v1598_v36  ;;  %v1600_v33 = vadd.f32 %v11771_v53, %v11943_v56  ;;  %v12250_v48 = vsel %vm1757_vm3, %v1683_v17, %v1829_v22 }
 0x2eb   : > { %vm1702_vm12 = vcmp.ge.f32.partialorder %v1545_v2, 0.0  ;;  %v1774_v24 = vmul.f32 0.2, %v1545_v2  ;;  %9520 = vmatmul.msk.bf16.gmra.mxu2 %vm1421_vm10, %v1390_v9  ;;  %18465 = vst [vmem:[#allocation26_spill] sm:$0xff] %v12244_v30  ;;  %v1337_v39 = vsel %vm1287_vm9, %v1282_v32, %v18467_v58  ;;  %vm1723_vm6 = vcmp.ge.f32.partialorder %v1598_v36, 0.0 }
 0x2ec   : > { %v1977_v3 = vpop.xlane.xlu0 %1976  ;;  %18466 = vst [vmem:[#allocation18_spill] sm:$0xff] %v12250_v48  ;;  %v1368_v23 = vsel %vm18233_vm11, %v1313_v5, %v11485_v63  ;;  %v1340_v7 = vsel %vm1287_vm9, %v1285_v41, %v18467_v58  ;;  %v12262_v17 = vsel %vm18233_vm11, %v1339_v45, %v18468_v29  ;;  %v1830_v35 = vmul.f32 0.2, %v1685_v15 }
 0x2ed   : > { %v2198_v13 = vmul.f32 %v12216_v59, %v1977_v3  ;;  %v12226_v51 = vsel %vm1702_vm12, %v1545_v2, %v1774_v24  ;;  %v1937_v2 = vmul.f32 %v12242_v62, %v12242_v62  ;;  %vm1758_vm12 = vcmp.ge.f32.partialorder %v1685_v15, 0.0 }
 0x2ee   : > { %v12234_v6 = vpop.f32.mrf.mxu2  ;;  %v1918_v4 = vmul.f32 %v12226_v51, %v12226_v51  ;;  %v1938_v63 = vmul.f32 %v12244_v30, %v12244_v30  ;;  %v1973_v16 = vmul.f32 %v12250_v48, %v12250_v48  ;;  %v1796_v9 = vmul.f32 0.2, %v1600_v33 }
 0x2ef   : > { %v12239_v50 = vadd.f32 1e-08, %v2198_v13  ;;  %v12272_v24 = vsel %vm1723_vm6, %v1598_v36, %v1795_v28  ;;  %vm1724_vm13 = vcmp.ge.f32.partialorder %v1600_v33, 0.0  ;;  %v1603_v22 = vadd.f32 %v11771_v53, %v11972_v46 }
 0x2f0   : > { %v1547_v52 = vpop.f32.mrf.mxu0  ;;  %v2020_v37 = vsel %vm1024_vm4, %v1918_v4, 0.0  ;;  %18469 = vst [vmem:[#allocation50_spill] sm:$0xff] %v12272_v24  ;;  %v1605_v31 = vadd.f32 %v11771_v53, %v12001_v40  ;;  %v1392_v27 = vsel %vm18233_vm11, %v1337_v39, %v984_v10  ;;  %v12288_v36 = vsel %vm18233_vm11, %v1340_v7, %v984_v10 }
 0x2f1   : > { %10103 = vrsqrt.f32 %v12239_v50  ;;  %2021 = vadd.xlane.f32.xlu2 %v2020_v37  ;;  %v1548_v56 = vadd.f32 %v11771_v53, %v1547_v52  ;;  %v12291_v32 = vsel %vm1024_vm4, %v1937_v2, 0.0  ;;  %v12300_v45 = vsel %vm1024_vm4, %v1938_v63, 0.0 }
 0x2f2   : > { %v1939_v4 = vmul.f32 %v12272_v24, %v12272_v24  ;;  %v12308_v52 = vsel %vm1724_vm13, %v1600_v33, %v1796_v9  ;;  %v12311_v37 = vsel %vm1758_vm12, %v1685_v15, %v1830_v35  ;;  %v12314_v58 = vsel %vm1024_vm4, %v1973_v16, 0.0 }
 0x2f3   : > { %9505 = vmatmul.msk.bf16.gmra.mxu0 %vm1421_vm10, %v1368_v23  ;;  %vm1703_vm9 = vcmp.ge.f32.partialorder %v1548_v56, 0.0  ;;  %v1775_v20 = vmul.f32 0.2, %v1548_v56  ;;  %18470 = vst [vmem:[#allocation34_spill] sm:$0xff] %v12308_v52  ;;  %vm1725_vm7 = vcmp.ge.f32.partialorder %v1603_v22, 0.0  ;;  %vm1726_vm3 = vcmp.ge.f32.partialorder %v1605_v31, 0.0 }
 0x2f4   : > { %v1980_v14 = vpop.xlane.xlu1 %1979  ;;  %18471 = vst [vmem:[#allocation6_spill] sm:$0xff] %v12311_v37  ;;  %v1797_v39 = vmul.f32 0.2, %v1603_v22  ;;  %v1798_v23 = vmul.f32 0.2, %v1605_v31  ;;  %v12320_v33 = vstv %s9526_s18  ;;  %v12324_v15 = vsel %vm1024_vm4, %v1939_v4, 0.0 }
 0x2f5   : > { %v2199_v3 = vmul.f32 %v12216_v59, %v1980_v14  ;;  %v12284_v13 = vsel %vm1703_vm9, %v1548_v56, %v1775_v20  ;;  %18472 = vst [vmem:[#allocation22_spill] sm:$0xff] %v12314_v58  ;;  %v1940_v2 = vmul.f32 %v12308_v52, %v12308_v52  ;;  %v1974_v35 = vmul.f32 %v12311_v37, %v12311_v37 }
 0x2f6   : > { %v12282_v5 = vpop.f32.mrf.mxu2  ;;  %v1919_v41 = vmul.f32 %v12284_v13, %v12284_v13  ;;  %v1608_v63 = vadd.f32 %v11771_v53, %v12030_v34  ;;  %vm3373_vm12 = vsmask.f32 7938  ;;  %vm3154_vm9 = vcmp.ge.s32.totalorder %v12320_v33, 0 }
 0x2f7   : > { %v12293_v46 = vpop.eup %10103  ;;  %v12295_v40 = vadd.f32 1e-08, %v2199_v3  ;;  %v12334_v3 = vsel %vm1725_vm7, %v1603_v22, %v1797_v39  ;;  %vm12347_vm11 = vmand %vm3316_vm14, %vm3373_vm12  ;;  %v3375_v22 = vld [vmem:[#allocation2 + $0x10] sm:$0x1]  ;;  %vm3172_vm7 = vcmp.lt.s32.totalorder %v12320_v33, 32  ;;  %vm2348_vm14 = vweird.f32 %v12239_v50 }
 0x2f8   : > { %v2343_v10 = vmul.f32 %v12293_v46, %v12239_v50  ;;  %v1549_v28 = vpop.f32.mrf.mxu0  ;;  %v2023_v29 = vsel %vm1024_vm4, %v1919_v41, 0.0  ;;  %18473 = vst [vmem:[#allocation49_spill] sm:$0xff] %v12334_v3  ;;  %vm2349_vm13 = vweird.f32 %v12293_v46  ;;  %vm12376_vm8 = vmand %vm3154_vm9, %vm3172_vm7  ;;  %v12390_v37 = vsel %vm1024_vm4, %v1940_v2, 0.0 }
 0x2f9   : > { %10105 = vrsqrt.f32 %v12295_v40  ;;  %v1550_v56 = vadd.f32 %v11771_v53, %v1549_v28  ;;  %2024 = vadd.xlane.f32.xlu0 %v2023_v29 }
 0x2fa   : > { %v2344_v7 = vmul.f32 %v12293_v46, %v2343_v10 }
 0x2fb   : > { %9521 = vmatmul.msk.bf16.gmra.mxu2 %vm1421_vm10, %v1392_v27  ;;  %vm1704_vm6 = vcmp.ge.f32.partialorder %v1550_v56, 0.0  ;;  %v1776_v9 = vmul.f32 0.2, %v1550_v56  ;;  %v12337_v27 = vsel %vm1726_vm3, %v1605_v31, %v1798_v23  ;;  %v3376_v23 = vsel %vm12347_vm11, 0, %v3375_v22 }
 0x2fc   : > { %v2345_v16 = vmul.f32 0.5, %v2344_v7  ;;  %v1983_v20 = vpop.xlane.xlu2 %1982  ;;  %18474 = vst [vmem:[#allocation45_spill] sm:$0xff] %v12337_v27  ;;  %v1799_v7 = vmul.f32 0.2, %v1608_v63  ;;  %vm1727_vm3 = vcmp.ge.f32.partialorder %v1608_v63, 0.0  ;;  %v1942_v48 = vmul.f32 %v12337_v27, %v12337_v27 }
 0x2fd   : > { %v2200_v14 = vmul.f32 %v12216_v59, %v1983_v20  ;;  %v12343_v34 = vsel %vm1704_vm6, %v1550_v56, %v1776_v9  ;;  %3377 = vst [vmem:[#allocation2 + $0x10] sm:$0x1] %v3376_v23  ;;  %v1610_v9 = vadd.f32 %v11771_v53, %v12059_v38  ;;  %vm2350_vm6 = vmor %vm2348_vm14, %vm2349_vm13  ;;  %v12370_v20 = vsel %vm1024_vm4, %v1974_v35, 0.0 }
 0x2fe   : > { %v2346_v41 = vsub.f32 1.5, %v2345_v16  ;;  %v12341_v4 = vpop.f32.mrf.mxu2  ;;  %v1920_v39 = vmul.f32 %v12343_v34, %v12343_v34  ;;  %18477 = vst [vmem:[#allocation42_spill] sm:$0xff] %v12370_v20  ;;  %v1941_v35 = vmul.f32 %v12334_v3, %v12334_v3  ;;  %vm4223_vm14 = vcmask 60416  }
 0x2ff   : > { %v12351_v28 = vpop.eup %10105  ;;  %v12354_v31 = vadd.f32 1e-08, %v2200_v14  ;;  %vm1728_vm13 = vcmp.ge.f32.partialorder %v1610_v9, 0.0 }
 0x300   : > { %v2347_v56 = vmul.f32 %v12293_v46, %v2346_v41  ;;  %v2353_v29 = vmul.f32 %v12351_v28, %v12295_v40  ;;  %v1552_v16 = vpop.f32.mrf.mxu0  ;;  %v2026_v22 = vsel %vm1024_vm4, %v1920_v39, 0.0  ;;  %v1800_v39 = vmul.f32 0.2, %v1610_v9 }
 0x301   : > { %10107 = vrsqrt.f32 %v12354_v31  ;;  %v1553_v41 = vadd.f32 %v11771_v53, %v1552_v16  ;;  %2027 = vadd.xlane.f32.xlu1 %v2026_v22  ;;  %vm2359_vm7 = vweird.f32 %v12351_v28 }
 0x302   : > { %v2351_v14 = vsel %vm2350_vm6, %v12293_v46, %v2347_v56  ;;  %v2354_v38 = vmul.f32 %v12351_v28, %v2353_v29  ;;  %v12393_v29 = vsel %vm1727_vm3, %v1608_v63, %v1799_v7  ;;  %vm2358_vm3 = vweird.f32 %v12295_v40 }
 0x303   : > { %v3062_v23 = vmul.f32 %v2351_v14, %v11795_v43  ;;  %vm1705_vm9 = vcmp.ge.f32.partialorder %v1553_v41, 0.0  ;;  %v1777_v46 = vmul.f32 0.2, %v1553_v41  ;;  %18480 = vst [vmem:[#allocation8_spill] sm:$0xff] %v12393_v29  ;;  %vm2360_vm6 = vmor %vm2358_vm3, %vm2359_vm7  ;;  %v12421_v3 = vsel %vm1728_vm13, %v1610_v9, %v1800_v39 }
 0x304   : > { %v2355_v52 = vmul.f32 0.5, %v2354_v38  ;;  %v1986_v56 = vpop.xlane.xlu2 %1985  ;;  %18482 = vst [vmem:[#allocation17_spill] sm:$0xff] %v12421_v3  ;;  %vm3501_vm7 = vsmask.f32 4368  ;;  %vm2368_vm3 = vweird.f32 %v12354_v31 }
 0x305   : > { %v3244_v43 = vsel %vm12376_vm8, %v3062_v23, 0.0  ;;  %v2201_v16 = vmul.f32 %v12216_v59, %v1986_v56  ;;  %v12401_v38 = vsel %vm1705_vm9, %v1553_v41, %v1777_v46  ;;  %v12410_v23 = vsel %vm1024_vm4, %v1941_v35, 0.0  ;;  %vm12433_vm9 = vmand %vm4223_vm14, %vm3373_vm12 }
 0x306   : > { %v3429_v14 = vpack.c.bf16 %v3244_v43, %v3244_v43  ;;  %v2356_v22 = vsub.f32 1.5, %v2355_v52  ;;  %v12399_v2 = vpop.f32.mrf.mxu2  ;;  %18481 = vst [vmem:[#allocation16_spill] sm:$0xff] %v12401_v38  ;;  %v1921_v7 = vmul.f32 %v12401_v38, %v12401_v38  ;;  %v3322_v43 = vld [vmem:[#allocation2 + $0x14] sm:$0x1]  ;;  %v12425_v35 = vmul.f32 %v12393_v29, %v12393_v29 }
 0x307   : > { %v12403_v27 = vpop.eup %10107  ;;  %v12405_v63 = vadd.f32 1e-08, %v2201_v16  ;;  %v12418_v16 = vsel %vm1024_vm4, %v1942_v48, 0.0  ;;  %v4225_v48 = vld [vmem:[#allocation2] sm:$0xf] }
 0x308   : > { %v3504_v56 = vshrl.u32 %v3429_v14, 16  ;;  %v2357_v52 = vmul.f32 %v12351_v28, %v2356_v22  ;;  %v2363_v41 = vmul.f32 %v12403_v27, %v12354_v31  ;;  %v1554_v46 = vpop.f32.mrf.mxu0  ;;  %v3507_v40 = vshll.u32 %v3429_v14, 16 }
 0x309   : > { %10109 = vrsqrt.f32 %v12405_v63  ;;  %v1555_v39 = vadd.f32 %v11771_v53, %v1554_v46  ;;  %v2029_v29 = vsel %vm1024_vm4, %v1921_v7, 0.0  ;;  %v1613_v14 = vadd.f32 %v11771_v53, %v12083_v44 }
 0x30a   : > { %v12427_v22 = vrot.slane %v3504_v56, 7  ;;  %v2361_v24 = vsel %vm2360_vm6, %v12351_v28, %v2357_v52  ;;  %v2364_v30 = vmul.f32 %v12403_v27, %v2363_v41  ;;  %v3323_v28 = vsel %vm12089_vm2, 0, %v3322_v43  ;;  %2030 = vadd.xlane.f32.xlu2 %v2029_v29 }
 0x30b   : > { %v3063_v9 = vmul.f32 %v2361_v24, %v11824_v19  ;;  %9522 = vmatmul.msk.bf16.gmra.mxu2 %vm1421_vm10, %v12262_v17  ;;  %v12448_v56 = vadd.f32 %v11771_v53, %v12113_v0  ;;  %3324 = vst [vmem:[#allocation2 + $0x14] sm:$0x1] %v3323_v28  ;;  %vm1706_vm12 = vcmp.ge.f32.partialorder %v1555_v39, 0.0  ;;  %v1778_v17 = vmul.f32 0.2, %v1555_v39 }
 0x30c   : > { %v3509_v52 = vor.u32 %v3507_v40, %v12427_v22  ;;  %v2365_v19 = vmul.f32 0.5, %v2364_v30  ;;  %v1989_v24 = vpop.xlane.xlu0 %1988  ;;  %vm2369_vm13 = vweird.f32 %v12403_v27  ;;  %v1944_v40 = vmul.f32 %v12421_v3, %v12421_v3 }
 0x30d   : > { %v3245_v7 = vsel %vm12376_vm8, %v3063_v9, 0.0  ;;  %v2202_v41 = vmul.f32 %v12216_v59, %v1989_v24  ;;  %vm1729_vm6 = vcmp.ge.f32.partialorder %v1613_v14, 0.0  ;;  %v1801_v24 = vmul.f32 0.2, %v1613_v14  ;;  %vm2370_vm1 = vmor %vm2368_vm3, %vm2369_vm13 }
 0x30e   : > { %v4226_v44 = vsel %vm12433_vm9, %v3509_v52, %v4225_v48  ;;  %v3430_v46 = vpack.c.bf16 %v3245_v7, %v3245_v7  ;;  %v2366_v43 = vsub.f32 1.5, %v2365_v19  ;;  %v12457_v0 = vpop.f32.mrf.mxu2  ;;  %v12467_v19 = vsel %vm1706_vm12, %v1555_v39, %v1778_v17  ;;  %vm12477_vm12 = vmor %vm3317_vm15, %vm3501_vm7 }
 0x30f   : > { %v10110_v30 = vpop.eup %10109  ;;  %4227 = vst [vmem:[#allocation2] sm:$0xf] %v4226_v44  ;;  %v12460_v29 = vadd.f32 1e-08, %v2202_v41  ;;  %vm1730_vm5 = vcmp.ge.f32.partialorder %v12448_v56, 0.0  ;;  %v1922_v58 = vmul.f32 %v12467_v19, %v12467_v19  ;;  %vm2378_vm13 = vweird.f32 %v12405_v63 }
 0x310   : > { %v3512_v9 = vshrl.u32 %v3430_v46, 16  ;;  %v2367_v28 = vmul.f32 %v12403_v27, %v2366_v43  ;;  %v2373_v48 = vmul.f32 %v10110_v30, %v12405_v63  ;;  %v1557_v52 = vpop.f32.mrf.mxu0  ;;  %18485 = vst [vmem:[#allocation35_spill] sm:$0xff] %v12467_v19  ;;  %v3515_v7 = vshll.u32 %v3430_v46, 16  ;;  %v12516_v63 = vld [vmem:[%s18182_s3] ss:$0 sm:$0xff] }
 0x311   : > { %10111 = vrsqrt.f32 %v12460_v29  ;;  %v1802_v43 = vmul.f32 0.2, %v12448_v56  ;;  %v1558_v3 = vadd.f32 %v11771_v53, %v1557_v52  ;;  %v3510_v46 = vrot.slane %v12427_v22, 4 }
 0x312   : > { %v3514_v31 = vrot.slane %v3512_v9, 7  ;;  %v2371_v41 = vsel %vm2370_vm1, %v12403_v27, %v2367_v28  ;;  %v2374_v44 = vmul.f32 %v10110_v30, %v2373_v48  ;;  %vm2379_vm1 = vweird.f32 %v10110_v30 }
 0x313   : > { %v3064_v17 = vmul.f32 %v2371_v41, %v11851_v26  ;;  %vm1707_vm15 = vcmp.ge.f32.partialorder %v1558_v3, 0.0  ;;  %v1779_v20 = vmul.f32 0.2, %v1558_v3  ;;  %v2032_v38 = vsel %vm1024_vm4, %v1922_v58, 0.0  ;;  %vm2380_vm7 = vmor %vm2378_vm13, %vm2379_vm1 }
 0x314   : > { %v3517_v9 = vor.u32 %v3515_v7, %v3514_v31  ;;  %v2375_v27 = vmul.f32 0.5, %v2374_v44  ;;  %v1992_v28 = vpop.xlane.xlu1 %1991  ;;  %2033 = vadd.xlane.f32.xlu0 %v2032_v38  ;;  %v12499_v44 = vsel %vm1024_vm4, %v1944_v40, 0.0  ;;  %v12503_v58 = vsel %vm1024_vm4, %v12425_v35, 0.0 }
 0x315   : > { %v3246_v48 = vsel %vm12376_vm8, %v3064_v17, 0.0  ;;  %v2203_v41 = vmul.f32 %v12216_v59, %v1992_v28  ;;  %v12506_v17 = vsel %vm1729_vm6, %v1613_v14, %v1801_v24  ;;  %v12511_v28 = vsel %vm1707_vm15, %v1558_v3, %v1779_v20 }
 0x316   : > { %v3518_v26 = vsel %vm12477_vm12, %v3510_v46, %v3517_v9  ;;  %v3431_v53 = vpack.c.bf16 %v3246_v48, %v3246_v48  ;;  %v2376_v52 = vsub.f32 1.5, %v2375_v27  ;;  %v12492_v22 = vpop.f32.mrf.mxu2  ;;  %18488 = vst [vmem:[#allocation11_spill] sm:$0xff] %v12506_v17  ;;  %v12520_v35 = vadd.f32 %v12516_v63, %v12138_v25 }
 0x317   : > { %v12494_v7 = vpop.eup %10111  ;;  %4229 = vst.msk [vmem:[#allocation2 + $0x4] sm:$0xf] %vm4223_vm14, %v3518_v26  ;;  %v12523_v40 = vadd.f32 1e-08, %v2203_v41  ;;  %v12528_v24 = vsel %vm1730_vm5, %v12448_v56, %v1802_v43  ;;  %v3519_v56 = vrot.slane %v3514_v31, 4 }
 0x318   : > { %v3521_v38 = vshrl.u32 %v3431_v53, 16  ;;  %v2377_v46 = vmul.f32 %v10110_v30, %v2376_v52  ;;  %v2383_v9 = vmul.f32 %v12494_v7, %v12460_v29  ;;  %v1559_v27 = vpop.f32.mrf.mxu0  ;;  %18489 = vst [vmem:[#allocation30_spill] sm:$0xff] %v12511_v28  ;;  %v3524_v14 = vshll.u32 %v3431_v53, 16 }
 0x319   : > { %18490 = vst [vmem:[#allocation7_spill] sm:$0xff] %v12528_v24  ;;  %v1560_v26 = vadd.f32 %v12516_v63, %v1559_v27  ;;  %v3137_v53 = vadd.s32 1, %v12320_v33  ;;  %10113 = vrsqrt.f32 %v12523_v40  ;;  %v1923_v52 = vmul.f32 %v12511_v28, %v12511_v28 }
 0x31a   : > { %v12530_v3 = vrot.slane %v3521_v38, 7  ;;  %v2381_v20 = vsel %vm2380_vm7, %v10110_v30, %v2377_v46  ;;  %v2384_v48 = vmul.f32 %v12494_v7, %v2383_v9  ;;  %vm1731_vm1 = vcmp.ge.f32.partialorder %v12520_v35, 0.0 }
 0x31b   : > { %v3065_v25 = vmul.f32 %v2381_v20, %v11873_v60  ;;  %9523 = vmatmul.msk.bf16.gmra.mxu2 %vm1421_vm10, %v12288_v36  ;;  %vm1708_vm5 = vcmp.ge.f32.partialorder %v1560_v26, 0.0  ;;  %v1780_v60 = vmul.f32 0.2, %v1560_v26  ;;  %v2035_v46 = vsel %vm1024_vm4, %v1923_v52, 0.0 }
 0x31c   : > { %v3526_v43 = vor.u32 %v3524_v14, %v12530_v3  ;;  %v2385_v30 = vmul.f32 0.5, %v2384_v48  ;;  %v1995_v41 = vpop.xlane.xlu2 %1994  ;;  %vm2389_vm10 = vweird.f32 %v12494_v7  ;;  %2036 = vadd.xlane.f32.xlu1 %v2035_v46  ;;  %vm3155_vm3 = vcmp.ge.s32.totalorder %v3137_v53, 0 }
 0x31d   : > { %v3247_v38 = vsel %vm12376_vm8, %v3065_v25, 0.0  ;;  %v2204_v9 = vmul.f32 %v12216_v59, %v1995_v41  ;;  %vm3173_vm6 = vcmp.lt.s32.totalorder %v3137_v53, 32  ;;  %v12555_v31 = vsel %vm1708_vm5, %v1560_v26, %v1780_v60 }
 0x31e   : > { %v3527_v27 = vsel %vm12477_vm12, %v3519_v56, %v3526_v43  ;;  %v3432_v20 = vpack.c.bf16 %v3247_v38, %v3247_v38  ;;  %v2386_v28 = vsub.f32 1.5, %v2385_v30  ;;  %v12549_v36 = vpop.f32.mrf.mxu2  ;;  %18491 = vst [vmem:[#allocation25_spill] sm:$0xff] %v12555_v31  ;;  %vm2388_vm8 = vweird.f32 %v12460_v29  ;;  %v3378_v56 = vld [vmem:[#allocation2 + $0x24] sm:$0x1]  ;;  %vm12574_vm13 = vmand %vm3155_vm3, %vm3173_vm6 }
 0x31f   : > { %4230 = vst.msk [vmem:[#allocation2 + $0x8] sm:$0xf] %vm4223_vm14, %v3527_v27  ;;  %v12552_v50 = vadd.f32 1e-08, %v2204_v9  ;;  %v1924_v52 = vmul.f32 %v12555_v31, %v12555_v31  ;;  %v12561_v43 = vpop.eup %10113  ;;  %v1803_v30 = vmul.f32 0.2, %v12520_v35  ;;  %v12567_v26 = vadd.f32 %v12516_v63, %v12186_v42  ;;  %vm2390_vm15 = vmor %vm2388_vm8, %vm2389_vm10 }
 0x320   : > { %v3530_v14 = vshrl.u32 %v3432_v20, 16  ;;  %v2387_v48 = vmul.f32 %v12494_v7, %v2386_v28  ;;  %v1562_v25 = vpop.f32.mrf.mxu0  ;;  %v3533_v28 = vshll.u32 %v3432_v20, 16  ;;  %v2393_v60 = vmul.f32 %v12561_v43, %v12523_v40  ;;  %v4232_v42 = vld [vmem:[#allocation2 + $0x10] sm:$0x1] }
 0x321   : > { %10115 = vrsqrt.f32 %v12552_v50  ;;  %v1563_v9 = vadd.f32 %v12516_v63, %v1562_v25  ;;  %v2038_v27 = vsel %vm1024_vm4, %v1924_v52, 0.0  ;;  %v3379_v20 = vsel %vm12347_vm11, 0, %v3378_v56 }
 0x322   : > { %v3532_v29 = vrot.slane %v3530_v14, 7  ;;  %v2391_v38 = vsel %vm2390_vm15, %v12494_v7, %v2387_v48  ;;  %v3528_v53 = vrot.slane %v12530_v3, 4  ;;  %v2394_v19 = vmul.f32 %v12561_v43, %v2393_v60  ;;  %2039 = vadd.xlane.f32.xlu2 %v2038_v27  ;;  %3380 = vst [vmem:[#allocation2 + $0x24] sm:$0x1] %v3379_v20 }
 0x323   : > { %v3066_v46 = vmul.f32 %v2391_v38, %v11895_v49  ;;  %vm1709_vm7 = vcmp.ge.f32.partialorder %v1563_v9, 0.0  ;;  %v1781_v49 = vmul.f32 0.2, %v1563_v9  ;;  %vm2399_vm5 = vweird.f32 %v12561_v43 }
 0x324   : > { %v3535_v14 = vor.u32 %v3533_v28, %v3532_v29  ;;  %v3537_v31 = vrot.slane %v3532_v29, 4  ;;  %v1998_v7 = vpop.xlane.xlu0 %1997  ;;  %v2395_v29 = vmul.f32 0.5, %v2394_v19  ;;  %v12608_v27 = vsel %vm1731_vm1, %v12520_v35, %v1803_v30 }
 0x325   : > { %v3248_v48 = vsel %vm12574_vm13, %v3066_v46, 0.0  ;;  %v2205_v25 = vmul.f32 %v12216_v59, %v1998_v7  ;;  %v1945_v46 = vmul.f32 %v12506_v17, %v12506_v17  ;;  %18494 = vst [vmem:[#allocation44_spill] sm:$0xff] %v12608_v27  ;;  %vm1732_vm10 = vcmp.ge.f32.partialorder %v12567_v26, 0.0 }
 0x326   : > { %v3536_v52 = vsel %vm12477_vm12, %v3528_v53, %v3535_v14  ;;  %v4233_v3 = vsel %vm12089_vm2, %v3537_v31, %v4232_v42  ;;  %v3433_v56 = vpack.c.bf16 %v3248_v48, %v3248_v48  ;;  %v12595_v28 = vpop.f32.mrf.mxu2  ;;  %v2396_v31 = vsub.f32 1.5, %v2395_v29 }
 0x327   : > { %v12597_v38 = vpop.eup %10115  ;;  %4231 = vst.msk [vmem:[#allocation2 + $0xc] sm:$0xf] %vm4223_vm14, %v3536_v52  ;;  %v12601_v60 = vadd.f32 1e-08, %v2205_v25  ;;  %v12613_v53 = vsel %vm1709_vm7, %v1563_v9, %v1781_v49  ;;  %vm2398_vm3 = vweird.f32 %v12523_v40  ;;  %v1946_v35 = vmul.f32 %v12528_v24, %v12528_v24  ;;  %v4235_v9 = vld [vmem:[#allocation2 + $0x14] sm:$0xf] }
 0x328   : > { %4234 = vst [vmem:[#allocation2 + $0x10] sm:$0x1] %v4233_v3  ;;  %v3539_v19 = vshrl.u32 %v3433_v56, 16  ;;  %v2403_v42 = vmul.f32 %v12597_v38, %v12552_v50  ;;  %v1564_v20 = vpop.f32.mrf.mxu0  ;;  %v3542_v14 = vshll.u32 %v3433_v56, 16  ;;  %v2397_v7 = vmul.f32 %v12561_v43, %v2396_v31  ;;  %vm2400_vm6 = vmor %vm2398_vm3, %vm2399_vm5  ;;  %v3325_v52 = vld [vmem:[#allocation2 + $0x28] sm:$0x1] }
 0x329   : > { %18495 = vst [vmem:[#allocation52_spill] sm:$0xff] %v12613_v53  ;;  %10117 = vrsqrt.f32 %v12601_v60  ;;  %v1804_v25 = vmul.f32 0.2, %v12567_v26  ;;  %v1565_v40 = vadd.f32 %v12516_v63, %v1564_v20  ;;  %v1925_v49 = vmul.f32 %v12613_v53, %v12613_v53 }
 0x32a   : > { %v12620_v30 = vrot.slane %v3539_v19, 7  ;;  %v2404_v48 = vmul.f32 %v12597_v38, %v2403_v42  ;;  %v1947_v3 = vmul.f32 %v12608_v27, %v12608_v27  ;;  %v2401_v29 = vsel %vm2400_vm6, %v12561_v43, %v2397_v7 }
 0x32b   : > { %vm2409_vm8 = vweird.f32 %v12597_v38  ;;  %v3067_v42 = vmul.f32 %v2401_v29, %v11917_v18  ;;  %vm1710_vm1 = vcmp.ge.f32.partialorder %v1565_v40, 0.0  ;;  %v1782_v24 = vmul.f32 0.2, %v1565_v40 }
 0x32c   : > { %v3544_v56 = vor.u32 %v3542_v14, %v12620_v30  ;;  %v2405_v19 = vmul.f32 0.5, %v2404_v48  ;;  %v2001_v31 = vpop.xlane.xlu1 %2000  ;;  %v2041_v20 = vsel %vm1024_vm4, %v1925_v49, 0.0  ;;  %v3326_v14 = vsel %vm12089_vm2, 0, %v3325_v52 }
 0x32d   : > { %2042 = vadd.xlane.f32.xlu0 %v2041_v20  ;;  %v2206_v43 = vmul.f32 %v12216_v59, %v2001_v31  ;;  %v3249_v18 = vsel %vm12574_vm13, %v3067_v42, 0.0  ;;  %v12647_v29 = vsel %vm1024_vm4, %v1945_v46, 0.0  ;;  %v12650_v49 = vsel %vm1024_vm4, %v1947_v3, 0.0  ;;  %3327 = vst [vmem:[#allocation2 + $0x28] sm:$0x1] %v3326_v14 }
 0x32e   : > { %v4236_v17 = vsel %vm12433_vm9, %v3544_v56, %v4235_v9  ;;  %v2406_v53 = vsub.f32 1.5, %v2405_v19  ;;  %v12642_v7 = vpop.f32.mrf.mxu2  ;;  %18496 = vst [vmem:[#allocation36_spill] sm:$0xff] %v12647_v29  ;;  %v12653_v9 = vsel %vm1024_vm4, %v1946_v35, 0.0  ;;  %v3434_v56 = vpack.c.bf16 %v3249_v18, %v3249_v18  ;;  %v4241_v29 = vld [vmem:[#allocation2 + $0x24] sm:$0x1] }
 0x32f   : > { %v10118_v48 = vpop.eup %10117  ;;  %4237 = vst [vmem:[#allocation2 + $0x14] sm:$0xf] %v4236_v17  ;;  %vm2408_vm15 = vweird.f32 %v12552_v50  ;;  %v12660_v46 = vadd.f32 1e-08, %v2206_v43  ;;  %v12664_v31 = vsel %vm1710_vm1, %v1565_v40, %v1782_v24  ;;  %v12673_v50 = vadd.f32 %v12516_v63, %v12234_v6 }
 0x330   : > { %18497 = vst [vmem:[#allocation51_spill] sm:$0xff] %v12650_v49  ;;  %v2407_v52 = vmul.f32 %v12597_v38, %v2406_v53  ;;  %v2413_v19 = vmul.f32 %v10118_v48, %v12601_v60  ;;  %v1567_v17 = vpop.f32.mrf.mxu0  ;;  %vm2410_vm7 = vmor %vm2408_vm15, %vm2409_vm8  ;;  %v12669_v53 = vsel %vm1732_vm10, %v12567_v26, %v1804_v25  ;;  %v3547_v35 = vshrl.u32 %v3434_v56, 16  ;;  %v3381_v49 = vld [vmem:[#allocation2 + $0x38] sm:$0x1] }
 0x331   : > { %18498 = vst [vmem:[#allocation4_spill] sm:$0xff] %v12653_v9  ;;  %v1568_v3 = vadd.f32 %v12516_v63, %v1567_v17  ;;  %v12678_v14 = vadd.f32 %v12516_v63, %v12282_v5  ;;  %v3550_v43 = vshll.u32 %v3434_v56, 16  ;;  %10119 = vrsqrt.f32 %v12660_v46 }
 0x332   : > { %18499 = vst [vmem:[#allocation29_spill] sm:$0xff] %v12664_v31  ;;  %v2411_v42 = vsel %vm2410_vm7, %v12597_v38, %v2407_v52  ;;  %v2414_v20 = vmul.f32 %v10118_v48, %v2413_v19  ;;  %v3549_v40 = vrot.slane %v3547_v35, 7  ;;  %v1926_v6 = vmul.f32 %v12664_v31, %v12664_v31 }
 0x333   : > { %18500 = vst [vmem:[#allocation21_spill] sm:$0xff] %v12669_v53  ;;  %v3068_v24 = vmul.f32 %v2411_v42, %v11939_v12  ;;  %v1783_v25 = vmul.f32 0.2, %v1568_v3  ;;  %v3545_v17 = vrot.slane %v12620_v30, 4  ;;  %vm1711_vm5 = vcmp.ge.f32.partialorder %v1568_v3, 0.0 }
 0x334   : > { %v2415_v26 = vmul.f32 0.5, %v2414_v20  ;;  %v2004_v18 = vpop.xlane.xlu2 %2003  ;;  %v3552_v56 = vor.u32 %v3550_v43, %v3549_v40  ;;  %vm2419_vm10 = vweird.f32 %v10118_v48  ;;  %v12692_v35 = vadd.f32 %v12516_v63, %v12341_v4 }
 0x335   : > { %v3250_v38 = vsel %vm12574_vm13, %v3068_v24, 0.0  ;;  %v2207_v5 = vmul.f32 %v12216_v59, %v2004_v18  ;;  %vm2418_vm3 = vweird.f32 %v12601_v60  ;;  %v2044_v30 = vsel %vm1024_vm4, %v1926_v6, 0.0 }
 0x336   : > { %v3435_v52 = vpack.c.bf16 %v3250_v38, %v3250_v38  ;;  %v2416_v12 = vsub.f32 1.5, %v2415_v26  ;;  %v12688_v19 = vpop.f32.mrf.mxu2  ;;  %v3553_v20 = vsel %vm12477_vm12, %v3545_v17, %v3552_v56  ;;  %2045 = vadd.xlane.f32.xlu1 %v2044_v30  ;;  %v12701_v18 = vsel %vm1711_vm5, %v1568_v3, %v1783_v25  ;;  %vm2420_vm6 = vmor %vm2418_vm3, %vm2419_vm10 }
 0x337   : > { %v12696_v42 = vadd.f32 1e-08, %v2207_v5  ;;  %18501 = vst [vmem:[#allocation38_spill] sm:$0xff] %v12701_v18  ;;  %v12703_v38 = vpop.eup %10119  ;;  %v12706_v4 = vmul.f32 0.2, %v12673_v50  ;;  %v12716_v6 = vmul.f32 %v12669_v53, %v12669_v53  ;;  %vm1733_vm8 = vcmp.ge.f32.partialorder %v12673_v50, 0.0 }
 0x338   : > { %v3556_v24 = vshrl.u32 %v3435_v52, 16  ;;  %v2417_v43 = vmul.f32 %v10118_v48, %v2416_v12  ;;  %v1569_v26 = vpop.f32.mrf.mxu0  ;;  %v12709_v60 = vmul.f32 0.2, %v12678_v14  ;;  %4238 = vst.msk [vmem:[#allocation2 + $0x18] sm:$0xf] %vm4223_vm14, %v3553_v20  ;;  %v3559_v25 = vshll.u32 %v3435_v52, 16 }
 0x339   : > { %10121 = vrsqrt.f32 %v12696_v42  ;;  %v2423_v5 = vmul.f32 %v12703_v38, %v12660_v46  ;;  %v3138_v12 = vadd.s32 2, %v12320_v33  ;;  %v1570_v30 = vadd.f32 %v12516_v63, %v1569_v26 }
 0x33a   : > { %v12718_v3 = vrot.slane %v3556_v24, 7  ;;  %v2421_v17 = vsel %vm2420_vm6, %v10118_v48, %v2417_v43  ;;  %v1927_v20 = vmul.f32 %v12701_v18, %v12701_v18  ;;  %v12729_v53 = vmul.f32 0.2, %v12692_v35 }
 0x33b   : > { %v3069_v56 = vmul.f32 %v2421_v17, %v11968_v61  ;;  %v3554_v24 = vrot.slane %v3549_v40, 4  ;;  %v2424_v52 = vmul.f32 %v12703_v38, %v2423_v5  ;;  %vm1712_vm1 = vcmp.ge.f32.partialorder %v1570_v30, 0.0 }
 0x33c   : > { %v3561_v48 = vor.u32 %v3559_v25, %v12718_v3  ;;  %v2007_v43 = vpop.xlane.xlu0 %2006  ;;  %v1784_v17 = vmul.f32 0.2, %v1570_v30  ;;  %v2047_v26 = vsel %vm1024_vm4, %v1927_v20, 0.0  ;;  %vm1734_vm15 = vcmp.ge.f32.partialorder %v12678_v14, 0.0 }
 0x33d   : > { %v3251_v61 = vsel %vm12574_vm13, %v3069_v56, 0.0  ;;  %vm1735_vm7 = vcmp.ge.f32.partialorder %v12692_v35, 0.0  ;;  %v2425_v18 = vmul.f32 0.5, %v2424_v52  ;;  %2048 = vadd.xlane.f32.xlu2 %v2047_v26  ;;  %v2208_v25 = vmul.f32 %v12216_v59, %v2007_v43 }
 0x33e   : > { %v3562_v27 = vsel %vm12477_vm12, %v3554_v24, %v3561_v48  ;;  %v3436_v40 = vpack.c.bf16 %v3251_v61, %v3251_v61  ;;  %v12741_v5 = vpop.f32.mrf.mxu2  ;;  %v12747_v56 = vadd.f32 %v12516_v63, %v12399_v2  ;;  %vm3156_vm13 = vcmp.ge.s32.totalorder %v3138_v12, 0 }
 0x33f   : > { %v12743_v41 = vpop.eup %10121  ;;  %4239 = vst.msk [vmem:[#allocation2 + $0x1c] sm:$0xf] %vm4223_vm14, %v3562_v27  ;;  %vm3174_vm5 = vcmp.lt.s32.totalorder %v3138_v12, 32  ;;  %vm2429_vm10 = vweird.f32 %v12703_v38  ;;  %v2426_v24 = vsub.f32 1.5, %v2425_v18  ;;  %v12754_v43 = vsel %vm1712_vm1, %v1570_v30, %v1784_v17 }
 0x340   : > { %v3565_v20 = vshrl.u32 %v3436_v40, 16  ;;  %v2433_v48 = vmul.f32 %v12743_v41, %v12696_v42  ;;  %v1572_v52 = vpop.f32.mrf.mxu0  ;;  %18502 = vst [vmem:[#allocation5_spill] sm:$0xff] %v12754_v43  ;;  %v3563_v61 = vrot.slane %v12718_v3, 4  ;;  %v3568_v26 = vshll.u32 %v3436_v40, 16  ;;  %vm12773_vm0 = vmand %vm3156_vm13, %vm3174_vm5 }
 0x341   : > { %vm2428_vm3 = vweird.f32 %v12660_v46  ;;  %v12758_v2 = vadd.f32 1e-08, %v2208_v25  ;;  %v2427_v31 = vmul.f32 %v12703_v38, %v2426_v24  ;;  %v1573_v18 = vadd.f32 %v12516_v63, %v1572_v52 }
 0x342   : > { %v3567_v27 = vrot.slane %v3565_v20, 7  ;;  %v2434_v9 = vmul.f32 %v12743_v41, %v2433_v48  ;;  %vm2430_vm6 = vmor %vm2428_vm3, %vm2429_vm10  ;;  %vm2439_vm1 = vweird.f32 %v12743_v41  ;;  %v1928_v46 = vmul.f32 %v12754_v43, %v12754_v43 }
 0x343   : > { %10123 = vrsqrt.f32 %v12758_v2  ;;  %v3382_v3 = vsel %vm12347_vm11, 0, %v3381_v49  ;;  %v2431_v25 = vsel %vm2430_vm6, %v12703_v38, %v2427_v31  ;;  %vm1713_vm10 = vcmp.ge.f32.partialorder %v1573_v18, 0.0 }
 0x344   : > { %v3570_v30 = vor.u32 %v3568_v26, %v3567_v27  ;;  %v3572_v17 = vrot.slane %v3567_v27, 4  ;;  %v2435_v20 = vmul.f32 0.5, %v2434_v9  ;;  %3383 = vst [vmem:[#allocation2 + $0x38] sm:$0x1] %v3382_v3  ;;  %v2010_v24 = vpop.xlane.xlu1 %2009  ;;  %v3070_v48 = vmul.f32 %v2431_v25, %v11997_v1 }
 0x345   : > { %v1785_v52 = vmul.f32 0.2, %v1573_v18  ;;  %v2050_v43 = vsel %vm1024_vm4, %v1928_v46, 0.0  ;;  %v2209_v27 = vmul.f32 %v12216_v59, %v2010_v24  ;;  %v12792_v31 = vsel %vm1024_vm4, %v12716_v6, 0.0 }
 0x346   : > { %v3571_v49 = vsel %vm12477_vm12, %v3563_v61, %v3570_v30  ;;  %v4242_v12 = vsel %vm12089_vm2, %v3572_v17, %v4241_v29  ;;  %v2436_v26 = vsub.f32 1.5, %v2435_v20  ;;  %2051 = vadd.xlane.f32.xlu0 %v2050_v43  ;;  %v3252_v9 = vsel %vm12773_vm0, %v3070_v48, 0.0 }
 0x347   : > { %4240 = vst.msk [vmem:[#allocation2 + $0x20] sm:$0xf] %vm4223_vm14, %v3571_v49  ;;  %v12788_v1 = vsel %vm1713_vm10, %v1573_v18, %v1785_v52  ;;  %v12798_v29 = vsel %vm1733_vm8, %v12673_v50, %v12706_v4  ;;  %v3437_v38 = vpack.c.bf16 %v3252_v9, %v3252_v9  ;;  %vm2438_vm13 = vweird.f32 %v12696_v42  ;;  %v12804_v18 = vpop.f32.mrf.mxu2  ;;  %v4244_v49 = vld [vmem:[#allocation2 + $0x28] sm:$0xf] }
 0x348   : > { %18505 = vst [vmem:[#allocation83_spill] sm:$0xff] %v12798_v29  ;;  %v2437_v43 = vmul.f32 %v12743_v41, %v2436_v26  ;;  %v12802_v61 = vadd.f32 1e-08, %v2209_v27  ;;  %v1574_v46 = vpop.f32.mrf.mxu0  ;;  %vm2440_vm5 = vmor %vm2438_vm13, %vm2439_vm1  ;;  %v1929_v50 = vmul.f32 %v12788_v1, %v12788_v1  ;;  %v12815_v4 = vsel %vm1734_vm15, %v12678_v14, %v12709_v60 }
 0x349   : > { %4243 = vst [vmem:[#allocation2 + $0x24] sm:$0x1] %v4242_v12  ;;  %v10124_v3 = vpop.eup %10123  ;;  %v1575_v6 = vadd.f32 %v12516_v63, %v1574_v46  ;;  %v12821_v42 = vsel %vm1735_vm7, %v12692_v35, %v12729_v53  ;;  %vm1736_vm8 = vcmp.ge.f32.partialorder %v12747_v56, 0.0  ;;  %v3574_v30 = vshrl.u32 %v3437_v38, 16  ;;  %v3328_v53 = vld [vmem:[#allocation2 + $0x3c] sm:$0x1] }
 0x34a   : > { %18506 = vst [vmem:[#allocation19_spill] sm:$0xff] %v12815_v4  ;;  %v2441_v17 = vsel %vm2440_vm5, %v12743_v41, %v2437_v43  ;;  %v2443_v25 = vmul.f32 %v10124_v3, %v12758_v2  ;;  %v1808_v20 = vmul.f32 0.2, %v12747_v56  ;;  %v3577_v24 = vshll.u32 %v3437_v38, 16 }
 0x34b   : > { %18507 = vst [vmem:[#allocation67_spill] sm:$0xff] %v12821_v42  ;;  %v3071_v48 = vmul.f32 %v2441_v17, %v12026_v11  ;;  %10125 = vrsqrt.f32 %v12802_v61  ;;  %v3576_v14 = vrot.slane %v3574_v30, 7  ;;  %vm1714_vm15 = vcmp.ge.f32.partialorder %v1575_v6, 0.0 }
 0x34c   : > { %v2444_v60 = vmul.f32 %v10124_v3, %v2443_v25  ;;  %v1786_v52 = vmul.f32 0.2, %v1575_v6  ;;  %v2013_v35 = vpop.xlane.xlu2 %2012  ;;  %v2053_v41 = vsel %vm1024_vm4, %v1929_v50, 0.0  ;;  %v1950_v26 = vmul.f32 %v12815_v4, %v12815_v4 }
 0x34d   : > { %v3253_v12 = vsel %vm12773_vm0, %v3071_v48, 0.0  ;;  %v1949_v11 = vmul.f32 %v12798_v29, %v12798_v29  ;;  %v3579_v27 = vor.u32 %v3577_v24, %v3576_v14  ;;  %2054 = vadd.xlane.f32.xlu1 %v2053_v41  ;;  %v1951_v43 = vmul.f32 %v12821_v42, %v12821_v42 }
 0x34e   : > { %v3438_v9 = vpack.c.bf16 %v3253_v12, %v3253_v12  ;;  %v2445_v38 = vmul.f32 0.5, %v2444_v60  ;;  %v3329_v46 = vsel %vm12089_vm2, 0, %v3328_v53  ;;  %v2210_v30 = vmul.f32 %v12216_v59, %v2013_v35 }
 0x34f   : > { %v12842_v50 = vsel %vm1714_vm15, %v1575_v6, %v1786_v52  ;;  %v12847_v17 = vsel %vm1736_vm8, %v12747_v56, %v1808_v20  ;;  %v4245_v25 = vsel %vm12433_vm9, %v3579_v27, %v4244_v49  ;;  %vm2449_vm7 = vweird.f32 %v10124_v3  ;;  %3330 = vst [vmem:[#allocation2 + $0x3c] sm:$0x1] %v3329_v46  ;;  %v12860_v41 = vpop.f32.mrf.mxu2 }
 0x350   : > { %18508 = vst [vmem:[#allocation75_spill] sm:$0xff] %v12847_v17  ;;  %v3582_v24 = vshrl.u32 %v3438_v9, 16  ;;  %v2446_v48 = vsub.f32 1.5, %v2445_v38  ;;  %v1577_v60 = vpop.f32.mrf.mxu0  ;;  %vm2448_vm3 = vweird.f32 %v12758_v2  ;;  %v12852_v53 = vadd.f32 1e-08, %v2210_v30 }
 0x351   : > { %v10126_v12 = vpop.eup %10125  ;;  %4246 = vst [vmem:[#allocation2 + $0x28] sm:$0xf] %v4245_v25  ;;  %v1578_v6 = vadd.f32 %v12516_v63, %v1577_v60  ;;  %v1930_v56 = vmul.f32 %v12842_v50, %v12842_v50  ;;  %v3585_v52 = vshll.u32 %v3438_v9, 16  ;;  %v1633_v27 = vadd.f32 %v12516_v63, %v12457_v0  ;;  %vm2450_vm6 = vmor %vm2448_vm3, %vm2449_vm7 }
 0x352   : > { %v12857_v20 = vrot.slane %v3582_v24, 7  ;;  %v2447_v35 = vmul.f32 %v10124_v3, %v2446_v48  ;;  %v2453_v49 = vmul.f32 %v10126_v12, %v12802_v61  ;;  %v3580_v38 = vrot.slane %v3576_v14, 4 }
 0x353   : > { %10127 = vrsqrt.f32 %v12852_v53  ;;  %v1952_v2 = vmul.f32 %v12847_v17, %v12847_v17  ;;  %vm1715_vm1 = vcmp.ge.f32.partialorder %v1578_v6, 0.0  ;;  %v1787_v48 = vmul.f32 0.2, %v1578_v6 }
 0x354   : > { %v3587_v46 = vor.u32 %v3585_v52, %v12857_v20  ;;  %v2451_v30 = vsel %vm2450_vm6, %v10124_v3, %v2447_v35  ;;  %v2454_v9 = vmul.f32 %v10126_v12, %v2453_v49  ;;  %v2016_v25 = vpop.xlane.xlu0 %2015  ;;  %v2056_v60 = vsel %vm1024_vm4, %v1930_v56, 0.0 }
 0x355   : > { %v3072_v24 = vmul.f32 %v2451_v30, %v12055_v21  ;;  %v2211_v0 = vmul.f32 %v12216_v59, %v2016_v25  ;;  %2057 = vadd.xlane.f32.xlu2 %v2056_v60  ;;  %v12875_v17 = vsel %vm1024_vm4, %v1950_v26, 0.0  ;;  %v12878_v3 = vsel %vm1024_vm4, %v1949_v11, 0.0 }
 0x356   : > { %v3588_v14 = vsel %vm12477_vm12, %v3580_v38, %v3587_v46  ;;  %v2455_v42 = vmul.f32 0.5, %v2454_v9  ;;  %vm1737_vm10 = vcmp.ge.f32.partialorder %v1633_v27, 0.0  ;;  %v1809_v52 = vmul.f32 0.2, %v1633_v27 }
 0x357   : > { %4247 = vst.msk [vmem:[#allocation2 + $0x2c] sm:$0xf] %vm4223_vm14, %v3588_v14  ;;  %v3254_v21 = vsel %vm12773_vm0, %v3072_v24, 0.0  ;;  %v12883_v56 = vsel %vm1715_vm1, %v1578_v6, %v1787_v48  ;;  %vm2459_vm13 = vweird.f32 %v10126_v12  ;;  %v12885_v38 = vadd.f32 1e-08, %v2211_v0  ;;  %v12908_v14 = vpop.f32.mrf.mxu2 }
 0x358   : > { %v3439_v35 = vpack.c.bf16 %v3254_v21, %v3254_v21  ;;  %v2456_v49 = vsub.f32 1.5, %v2455_v42  ;;  %v1579_v46 = vpop.f32.mrf.mxu0  ;;  %v1931_v30 = vmul.f32 %v12883_v56, %v12883_v56  ;;  %v12893_v9 = vsel %vm1024_vm4, %v1952_v2, 0.0 }
 0x359   : > { %v12887_v26 = vpop.eup %10127  ;;  %v1580_v11 = vadd.f32 %v12516_v63, %v1579_v46  ;;  %v12896_v25 = vsel %vm1024_vm4, %v1951_v43, 0.0  ;;  %vm2458_vm5 = vweird.f32 %v12802_v61  ;;  %10129 = vrsqrt.f32 %v12885_v38 }
 0x35a   : > { %v3591_v6 = vshrl.u32 %v3439_v35, 16  ;;  %v2457_v24 = vmul.f32 %v10126_v12, %v2456_v49  ;;  %v2463_v42 = vmul.f32 %v12887_v26, %v12852_v53  ;;  %v3594_v48 = vshll.u32 %v3439_v35, 16  ;;  %vm2460_vm8 = vmor %vm2458_vm5, %vm2459_vm13 }
 0x35b   : > { %vm1716_vm15 = vcmp.ge.f32.partialorder %v1580_v11, 0.0  ;;  %v12903_v60 = vsel %vm1737_vm10, %v1633_v27, %v1809_v52  ;;  %v1788_v21 = vmul.f32 0.2, %v1580_v11  ;;  %v3139_v35 = vadd.s32 3, %v12320_v33 }
 0x35c   : > { %18509 = vst [vmem:[#allocation82_spill] sm:$0xff] %v12903_v60  ;;  %v12905_v2 = vrot.slane %v3591_v6, 7  ;;  %v2461_v0 = vsel %vm2460_vm8, %v10126_v12, %v2457_v24  ;;  %v2464_v43 = vmul.f32 %v12887_v26, %v2463_v42  ;;  %v2019_v61 = vpop.xlane.xlu1 %2018  ;;  %v2059_v46 = vsel %vm1024_vm4, %v1931_v30, 0.0 }
 0x35d   : > { %v3073_v49 = vmul.f32 %v2461_v0, %v12079_v47  ;;  %v2212_v29 = vmul.f32 %v12216_v59, %v2019_v61  ;;  %v3589_v27 = vrot.slane %v12857_v20, 4  ;;  %2060 = vadd.xlane.f32.xlu0 %v2059_v46  ;;  %v12917_v12 = vsel %vm1716_vm15, %v1580_v11, %v1788_v21 }
 0x35e   : > { %v3596_v52 = vor.u32 %v3594_v48, %v12905_v2  ;;  %v2465_v6 = vmul.f32 0.5, %v2464_v43  ;;  %18510 = vst [vmem:[#allocation20_spill] sm:$0xff] %v12917_v12  ;;  %v12921_v24 = vadd.f32 %v12516_v63, %v12492_v22  ;;  %v1932_v30 = vmul.f32 %v12917_v12, %v12917_v12  ;;  %v3384_v43 = vld [vmem:[#allocation2 + $0x4c] sm:$0x1] }
 0x35f   : > { %v3255_v47 = vsel %vm12773_vm0, %v3073_v49, 0.0  ;;  %v12925_v42 = vadd.f32 1e-08, %v2212_v29  ;;  %vm2469_vm7 = vweird.f32 %v12887_v26  ;;  %v12932_v21 = vpop.eup %10129  ;;  %vm3157_vm3 = vcmp.ge.s32.totalorder %v3139_v35, 0  ;;  %v12957_v12 = vpop.f32.mrf.mxu2 }
 0x360   : > { %v3597_v20 = vsel %vm12477_vm12, %v3589_v27, %v3596_v52  ;;  %v3440_v48 = vpack.c.bf16 %v3255_v47, %v3255_v47  ;;  %v2466_v0 = vsub.f32 1.5, %v2465_v6  ;;  %v1582_v11 = vpop.f32.mrf.mxu0  ;;  %vm3175_vm0 = vcmp.lt.s32.totalorder %v3139_v35, 32 }
 0x361   : > { %4248 = vst.msk [vmem:[#allocation2 + $0x30] sm:$0xf] %vm4223_vm14, %v3597_v20  ;;  %10131 = vrsqrt.f32 %v12925_v42  ;;  %v1953_v22 = vmul.f32 %v12903_v60, %v12903_v60  ;;  %vm2468_vm6 = vweird.f32 %v12852_v53  ;;  %v2473_v61 = vmul.f32 %v12932_v21, %v12885_v38  ;;  %vm12948_vm13 = vmand %vm3157_vm3, %vm3175_vm0 }
 0x362   : > { %v3600_v40 = vshrl.u32 %v3440_v48, 16  ;;  %v2467_v29 = vmul.f32 %v12887_v26, %v2466_v0  ;;  %vm1738_vm1 = vcmp.ge.f32.partialorder %v12921_v24, 0.0  ;;  %vm2470_vm10 = vmor %vm2468_vm6, %vm2469_vm7  ;;  %v1583_v49 = vadd.f32 %v12516_v63, %v1582_v11  ;;  %v4250_v11 = vld [vmem:[#allocation2 + $0x38] sm:$0x1] }
 0x363   : > { %v2062_v46 = vsel %vm1024_vm4, %v1932_v30, 0.0  ;;  %v3385_v27 = vsel %vm12347_vm11, 0, %v3384_v43  ;;  %v3603_v6 = vshll.u32 %v3440_v48, 16  ;;  %v2474_v20 = vmul.f32 %v12932_v21, %v2473_v61 }
 0x364   : > { %v3602_v52 = vrot.slane %v3600_v40, 7  ;;  %v2471_v53 = vsel %vm2470_vm10, %v12887_v26, %v2467_v29  ;;  %2063 = vadd.xlane.f32.xlu1 %v2062_v46  ;;  %3386 = vst [vmem:[#allocation2 + $0x4c] sm:$0x1] %v3385_v27  ;;  %v2022_v0 = vpop.xlane.xlu2 %2021  ;;  %vm1717_vm5 = vcmp.ge.f32.partialorder %v1583_v49, 0.0  ;;  %v1789_v60 = vmul.f32 0.2, %v1583_v49 }
 0x365   : > { %v3074_v30 = vmul.f32 %v2471_v53, %v12109_v57  ;;  %v2213_v43 = vmul.f32 %v12216_v59, %v2022_v0  ;;  %v3598_v35 = vrot.slane %v12905_v2, 4  ;;  %v2475_v4 = vmul.f32 0.5, %v2474_v20  ;;  %2078 = vadd.xlane.f32.xlu0 %v12291_v32 }
 0x366   : > { %v3605_v48 = vor.u32 %v3603_v6, %v3602_v52  ;;  %v3607_v40 = vrot.slane %v3602_v52, 4  ;;  %vm2479_vm8 = vweird.f32 %v12932_v21  ;;  %v12967_v61 = vsel %vm1717_vm5, %v1583_v49, %v1789_v60  ;;  %v3331_v60 = vld [vmem:[#allocation2 + $0x50] sm:$0x1] }
 0x367   : > { %v12960_v26 = vpop.eup %10131  ;;  %v3256_v29 = vsel %vm12948_vm13, %v3074_v30, 0.0  ;;  %v12965_v57 = vadd.f32 1e-08, %v2213_v43  ;;  %v2476_v52 = vsub.f32 1.5, %v2475_v4  ;;  %v1810_v6 = vmul.f32 0.2, %v12921_v24 }
 0x368   : > { %v3606_v2 = vsel %vm12477_vm12, %v3598_v35, %v3605_v48  ;;  %v4251_v46 = vsel %vm12089_vm2, %v3607_v40, %v4250_v11  ;;  %v3441_v27 = vpack.c.bf16 %v3256_v29, %v3256_v29  ;;  %v1584_v32 = vpop.f32.mrf.mxu0  ;;  %v2483_v53 = vmul.f32 %v12960_v26, %v12925_v42  ;;  %v4253_v40 = vld [vmem:[#allocation2 + $0x3c] sm:$0xf] }
 0x369   : > { %4249 = vst.msk [vmem:[#allocation2 + $0x34] sm:$0xf] %vm4223_vm14, %v3606_v2  ;;  %10133 = vrsqrt.f32 %v12965_v57  ;;  %v2477_v20 = vmul.f32 %v12932_v21, %v2476_v52  ;;  %vm2478_vm15 = vweird.f32 %v12885_v38  ;;  %v12981_v0 = vsel %vm1024_vm4, %v1953_v22, 0.0 }
 0x36a   : > { %4252 = vst [vmem:[#allocation2 + $0x38] sm:$0x1] %v4251_v46  ;;  %v3609_v49 = vshrl.u32 %v3441_v27, 16  ;;  %v12985_v4 = vadd.f32 %v12516_v63, %v12549_v36  ;;  %vm2480_vm7 = vmor %vm2478_vm15, %vm2479_vm8  ;;  %v2484_v11 = vmul.f32 %v12960_v26, %v2483_v53  ;;  %v1585_v30 = vadd.f32 %v12516_v63, %v1584_v32 }
 0x36b   : > { %v1933_v43 = vmul.f32 %v12967_v61, %v12967_v61  ;;  %v3612_v38 = vshll.u32 %v3441_v27, 16  ;;  %v2481_v22 = vsel %vm2480_vm7, %v12932_v21, %v2477_v20  ;;  %v3332_v36 = vsel %vm12089_vm2, 0, %v3331_v60 }
 0x36c   : > { %v12993_v35 = vrot.slane %v3609_v49, 7  ;;  %2081 = vadd.xlane.f32.xlu1 %v12300_v45  ;;  %v13001_v48 = vadd.f32 %v12516_v63, %v12595_v28  ;;  %v3075_v29 = vmul.f32 %v2481_v22, %v12134_v55  ;;  %v2485_v2 = vmul.f32 0.5, %v2484_v11  ;;  %3333 = vst [vmem:[#allocation2 + $0x50] sm:$0x1] %v3332_v36  ;;  %v2025_v52 = vpop.xlane.xlu0 %2024  ;;  %v13022_v49 = vpop.f32.mrf.mxu2 }
 0x36d   : > { %v13007_v46 = vsel %vm1738_vm1, %v12921_v24, %v1810_v6  ;;  %vm2489_vm3 = vweird.f32 %v12960_v26  ;;  %v1790_v45 = vmul.f32 0.2, %v1585_v30  ;;  %v2065_v27 = vsel %vm1024_vm4, %v1933_v43, 0.0 }
 0x36e   : > { %v3614_v21 = vor.u32 %v3612_v38, %v12993_v35  ;;  %v3257_v55 = vsel %vm12948_vm13, %v3075_v29, 0.0  ;;  %v2486_v32 = vsub.f32 1.5, %v2485_v2  ;;  %vm1718_vm0 = vcmp.ge.f32.partialorder %v1585_v30, 0.0  ;;  %2066 = vadd.xlane.f32.xlu2 %v2065_v27 }
 0x36f   : > { %v13012_v28 = vpop.eup %10133  ;;  %v2214_v53 = vmul.f32 %v12216_v59, %v2025_v52  ;;  %vm1739_vm6 = vcmp.ge.f32.partialorder %v12985_v4, 0.0  ;;  %v3442_v6 = vpack.c.bf16 %v3257_v55, %v3257_v55  ;;  %v1811_v11 = vmul.f32 0.2, %v12985_v4 }
 0x370   : > { %v4254_v24 = vsel %vm12433_vm9, %v3614_v21, %v4253_v40  ;;  %v2493_v60 = vmul.f32 %v13012_v28, %v12965_v57  ;;  %v1587_v20 = vpop.f32.mrf.mxu0  ;;  %v2487_v43 = vmul.f32 %v12960_v26, %v2486_v32  ;;  %vm2488_vm1 = vweird.f32 %v12925_v42 }
 0x371   : > { %4255 = vst [vmem:[#allocation2 + $0x3c] sm:$0xf] %v4254_v24  ;;  %v13027_v38 = vadd.f32 1e-08, %v2214_v53  ;;  %v3617_v22 = vshrl.u32 %v3442_v6, 16  ;;  %vm2490_vm10 = vmor %vm2488_vm1, %vm2489_vm3  ;;  %v1588_v40 = vadd.f32 %v12516_v63, %v1587_v20  ;;  %v13034_v29 = vsel %vm1718_vm0, %v1585_v30, %v1790_v45 }
 0x372   : > { %v2494_v36 = vmul.f32 %v13012_v28, %v2493_v60  ;;  %vm1740_vm5 = vcmp.ge.f32.partialorder %v13001_v48, 0.0  ;;  %v1812_v2 = vmul.f32 0.2, %v13001_v48  ;;  %v2491_v21 = vsel %vm2490_vm10, %v12960_v26, %v2487_v43 }
 0x373   : > { %10135 = vrsqrt.f32 %v13027_v38  ;;  %v3619_v42 = vrot.slane %v3617_v22, 7  ;;  %v3620_v27 = vshll.u32 %v3442_v6, 16  ;;  %v3076_v52 = vmul.f32 %v2491_v21, %v12180_v54 }
 0x374   : > { %v2495_v55 = vmul.f32 0.5, %v2494_v36  ;;  %2090 = vadd.xlane.f32.xlu1 %v12410_v23  ;;  %v13044_v32 = vadd.f32 %v12516_v63, %v12642_v7  ;;  %v3615_v30 = vrot.slane %v12993_v35, 4  ;;  %vm2499_vm8 = vweird.f32 %v13012_v28  ;;  %v2028_v6 = vpop.xlane.xlu1 %2027 }
 0x375   : > { %v1934_v26 = vmul.f32 %v13034_v29, %v13034_v29  ;;  %v3622_v45 = vor.u32 %v3620_v27, %v3619_v42  ;;  %v3258_v53 = vsel %vm12948_vm13, %v3076_v52, 0.0  ;;  %v1791_v54 = vmul.f32 0.2, %v1588_v40 }
 0x376   : > { %v2496_v24 = vsub.f32 1.5, %v2495_v55  ;;  %v3443_v60 = vpack.c.bf16 %v3258_v53, %v3258_v53  ;;  %vm1719_vm15 = vcmp.ge.f32.partialorder %v1588_v40, 0.0  ;;  %2084 = vadd.xlane.f32.xlu2 %v12324_v15  ;;  %v2215_v7 = vmul.f32 %v12216_v59, %v2028_v6  ;;  %v13083_v55 = vpop.f32.mrf.mxu2 }
 0x377   : > { %v2068_v23 = vsel %vm1024_vm4, %v1934_v26, 0.0  ;;  %v3623_v35 = vsel %vm12477_vm12, %v3615_v30, %v3622_v45  ;;  %vm2498_vm7 = vweird.f32 %v12965_v57  ;;  %v13062_v22 = vsel %vm1739_vm6, %v12985_v4, %v1811_v11 }
 0x378   : > { %v2497_v20 = vmul.f32 %v13012_v28, %v2496_v24  ;;  %2069 = vadd.xlane.f32.xlu0 %v2068_v23  ;;  %v1589_v43 = vpop.f32.mrf.mxu0  ;;  %4256 = vst.msk [vmem:[#allocation2 + $0x40] sm:$0xf] %vm4223_vm14, %v3623_v35  ;;  %v3626_v15 = vshrl.u32 %v3443_v60, 16  ;;  %vm2500_vm3 = vmor %vm2498_vm7, %vm2499_vm8  ;;  %v13069_v21 = vadd.f32 1e-08, %v2215_v7  ;;  %v13075_v57 = vsel %vm1740_vm5, %v13001_v48, %v1812_v2 }
 0x379   : > { %v13064_v36 = vpop.eup %10135  ;;  %v1590_v27 = vadd.f32 %v12516_v63, %v1589_v43  ;;  %v13078_v4 = vmul.f32 0.2, %v13044_v32  ;;  %v13086_v30 = vsel %vm1719_vm15, %v1588_v40, %v1791_v54  ;;  %v3629_v63 = vshll.u32 %v3443_v60, 16 }
 0x37a   : > { %v2501_v11 = vsel %vm2500_vm3, %v13012_v28, %v2497_v20  ;;  %v2503_v52 = vmul.f32 %v13064_v36, %v13027_v38  ;;  %v3628_v26 = vrot.slane %v3626_v15, 7  ;;  %10137 = vrsqrt.f32 %v13069_v21 }
 0x37b   : > { %v3077_v45 = vmul.f32 %v2501_v11, %v12226_v51  ;;  %v3140_v48 = vadd.s32 4, %v12320_v33  ;;  %vm1720_vm0 = vcmp.ge.f32.partialorder %v1590_v27, 0.0  ;;  %v1792_v28 = vmul.f32 0.2, %v1590_v27  ;;  %v13118_v11 = vld [vmem:[%s18182_s3] ss:$0 sm:$0xff] }
 0x37c   : > { %v2504_v2 = vmul.f32 %v13064_v36, %v2503_v52  ;;  %v3624_v53 = vrot.slane %v3619_v42, 4  ;;  %v3631_v24 = vor.u32 %v3629_v63, %v3628_v26  ;;  %v1935_v40 = vmul.f32 %v13086_v30, %v13086_v30  ;;  %v4259_v63 = vld [vmem:[#allocation2 + $0x4c] sm:$0x1] }
 0x37d   : > { %v3259_v6 = vsel %vm12948_vm13, %v3077_v45, 0.0  ;;  %vm1741_vm6 = vcmp.ge.f32.partialorder %v13044_v32, 0.0  ;;  %v13097_v60 = vsel %vm1720_vm0, %v1590_v27, %v1792_v28  ;;  %v1956_v23 = vmul.f32 %v13075_v57, %v13075_v57  ;;  %v2031_v42 = vpop.xlane.xlu2 %2030 }
 0x37e   : > { %v3444_v54 = vpack.c.bf16 %v3259_v6, %v3259_v6  ;;  %v2505_v51 = vmul.f32 0.5, %v2504_v2  ;;  %v3632_v7 = vsel %vm12477_vm12, %v3624_v53, %v3631_v24  ;;  %2093 = vadd.xlane.f32.xlu2 %v12418_v16  ;;  %v2071_v47 = vsel %vm1024_vm4, %v1935_v40, 0.0 }
 0x37f   : > { %v1936_v35 = vmul.f32 %v13097_v60, %v13097_v60  ;;  %v1955_v20 = vmul.f32 %v13062_v22, %v13062_v22  ;;  %4257 = vst.msk [vmem:[#allocation2 + $0x44] sm:$0xf] %vm4223_vm14, %v3632_v7  ;;  %vm2509_vm13 = vweird.f32 %v13064_v36  ;;  %2072 = vadd.xlane.f32.xlu1 %v2071_v47  ;;  %v2216_v16 = vmul.f32 %v12216_v59, %v2031_v42 }
 0x380   : > { %v3635_v43 = vshrl.u32 %v3444_v54, 16  ;;  %v2506_v15 = vsub.f32 1.5, %v2505_v51  ;;  %2087 = vadd.xlane.f32.xlu0 %v12390_v37  ;;  %v13113_v27 = vpop.eup %10137  ;;  %v1648_v52 = vadd.f32 %v13118_v11, %v12741_v5  ;;  %vm3158_vm1 = vcmp.ge.s32.totalorder %v3140_v48, 0 }
 0x381   : > { %vm3176_vm10 = vcmp.lt.s32.totalorder %v3140_v48, 32  ;;  %vm2508_vm5 = vweird.f32 %v13027_v38  ;;  %v3638_v2 = vshll.u32 %v3444_v54, 16  ;;  %v2513_v28 = vmul.f32 %v13113_v27, %v13069_v21  ;;  %v3387_v38 = vld [vmem:[#allocation2 + $0x60] sm:$0x1]  ;;  %v3390_v54 = vld [vmem:[#allocation2 + $0x74] sm:$0x1] }
 0x382   : > { %v3637_v45 = vrot.slane %v3635_v43, 7  ;;  %v2507_v37 = vmul.f32 %v13064_v36, %v2506_v15  ;;  %v1645_v53 = vadd.f32 %v13118_v11, %v12688_v19  ;;  %v3633_v24 = vrot.slane %v3628_v26, 4  ;;  %vm2510_vm8 = vmor %vm2508_vm5, %vm2509_vm13  ;;  %v13141_v26 = vpop.f32.mrf.mxu2 }
 0x383   : > { %v13130_v5 = vadd.f32 1e-08, %v2216_v16  ;;  %v2074_v6 = vsel %vm1024_vm4, %v1936_v35, 0.0  ;;  %vm13135_vm15 = vmand %vm3158_vm1, %vm3176_vm10  ;;  %v2514_v19 = vmul.f32 %v13113_v27, %v2513_v28  ;;  %v1815_v47 = vmul.f32 0.2, %v1648_v52 }
 0x384   : > { %v3640_v40 = vor.u32 %v3638_v2, %v3637_v45  ;;  %v3642_v51 = vrot.slane %v3637_v45, 4  ;;  %v2511_v7 = vsel %vm2510_vm8, %v13064_v36, %v2507_v37  ;;  %v3388_v35 = vsel %vm12347_vm11, 0, %v3387_v38 }
 0x385   : > { %v3078_v42 = vmul.f32 %v2511_v7, %v12284_v13  ;;  %10139 = vrsqrt.f32 %v13130_v5  ;;  %vm1743_vm7 = vcmp.ge.f32.partialorder %v1648_v52, 0.0  ;;  %v2515_v36 = vmul.f32 0.5, %v2514_v19  ;;  %3389 = vst [vmem:[#allocation2 + $0x60] sm:$0x1] %v3388_v35 }
 0x386   : > { %v3641_v48 = vsel %vm12477_vm12, %v3633_v24, %v3640_v40  ;;  %v4260_v43 = vsel %vm12089_vm2, %v3642_v51, %v4259_v63  ;;  %vm1742_vm3 = vcmp.ge.f32.partialorder %v1645_v53, 0.0  ;;  %v1814_v15 = vmul.f32 0.2, %v1645_v53  ;;  %2075 = vadd.xlane.f32.xlu2 %v2074_v6 }
 0x387   : > { %4258 = vst.msk [vmem:[#allocation2 + $0x48] sm:$0xf] %vm4223_vm14, %v3641_v48  ;;  %v3260_v13 = vsel %vm13135_vm15, %v3078_v42, 0.0  ;;  %v1954_v16 = vmul.f32 %v13007_v46, %v13007_v46  ;;  %v2516_v2 = vsub.f32 1.5, %v2515_v36  ;;  %vm2519_vm0 = vweird.f32 %v13113_v27  ;;  %2099 = vadd.xlane.f32.xlu1 %v12499_v44  ;;  %v2034_v28 = vpop.xlane.xlu0 %2033 }
 0x388   : > { %4261 = vst [vmem:[#allocation2 + $0x4c] sm:$0x1] %v4260_v43  ;;  %v3445_v45 = vpack.c.bf16 %v3260_v13, %v3260_v13  ;;  %2096 = vadd.xlane.f32.xlu0 %v12503_v58  ;;  %v13160_v63 = vsel %vm1024_vm4, %v1956_v23, 0.0  ;;  %v13164_v37 = vadd.f32 %v13118_v11, %v12804_v18  ;;  %v13167_v24 = vsel %vm1024_vm4, %v1955_v20, 0.0 }
 0x389   : > { %v13170_v6 = vsel %vm1743_vm7, %v1648_v52, %v1815_v47  ;;  %v13176_v44 = vsel %vm1741_vm6, %v13044_v32, %v13078_v4  ;;  %v2517_v23 = vmul.f32 %v13113_v27, %v2516_v2  ;;  %vm2518_vm13 = vweird.f32 %v13069_v21  ;;  %v3334_v32 = vld [vmem:[#allocation2 + $0x64] sm:$0x1] }
 0x38a   : > { %v3644_v58 = vshrl.u32 %v3445_v45, 16  ;;  %v2217_v18 = vmul.f32 %v12216_v59, %v2034_v28  ;;  %v13185_v20 = vadd.f32 %v13118_v11, %v12860_v41  ;;  %v13189_v52 = vadd.f32 %v13118_v11, %v12908_v14  ;;  %vm2520_vm6 = vmor %vm2518_vm13, %vm2519_vm0  ;;  %v4262_v14 = vld [vmem:[#allocation2 + $0x50] sm:$0xf]  ;;  %v13215_v43 = vpop.f32.mrf.mxu2 }
 0x38b   : > { %v13181_v38 = vpop.eup %10139  ;;  %v13194_v4 = vsel %vm1024_vm4, %v1954_v16, 0.0  ;;  %v13197_v21 = vsel %vm1742_vm3, %v1645_v53, %v1814_v15  ;;  %v3647_v51 = vshll.u32 %v3445_v45, 16  ;;  %v2521_v41 = vsel %vm2520_vm6, %v13113_v27, %v2517_v23  ;;  %v18515_v15 = vld [vmem:[#allocation36_spill] sm:$0xff] }
 0x38c   : > { %v13199_v40 = vrot.slane %v3644_v58, 7  ;;  %v2523_v7 = vmul.f32 %v13181_v38, %v13130_v5  ;;  %v3079_v19 = vmul.f32 %v2521_v41, %v12343_v34  ;;  %v13205_v47 = vadd.f32 1e-08, %v2217_v18  ;;  %v18516_v58 = vld [vmem:[#allocation51_spill] sm:$0xff] }
 0x38d   : > { %v3335_v42 = vsel %vm12089_vm2, 0, %v3334_v32  ;;  %v1959_v53 = vmul.f32 %v13170_v6, %v13170_v6  ;;  %vm1744_vm1 = vcmp.ge.f32.partialorder %v13164_v37, 0.0  ;;  %v1816_v35 = vmul.f32 0.2, %v13164_v37 }
 0x38e   : > { %v3649_v27 = vor.u32 %v3647_v51, %v13199_v40  ;;  %v2524_v48 = vmul.f32 %v13181_v38, %v2523_v7  ;;  %3336 = vst [vmem:[#allocation2 + $0x64] sm:$0x1] %v3335_v42  ;;  %vm1745_vm10 = vcmp.ge.f32.partialorder %v13185_v20, 0.0  ;;  %v13220_v34 = vadd.f32 %v13118_v11, %v12957_v12  ;;  %2102 = vadd.xlane.f32.xlu2 %v18515_v15  ;;  %v18517_v12 = vld [vmem:[#allocation4_spill] sm:$0xff] }
 0x38f   : > { %v3261_v36 = vsel %vm13135_vm15, %v3079_v19, 0.0  ;;  %10141 = vrsqrt.f32 %v13205_v47  ;;  %v1958_v13 = vmul.f32 %v13197_v21, %v13197_v21  ;;  %v1817_v16 = vmul.f32 0.2, %v13185_v20  ;;  %2108 = vadd.xlane.f32.xlu1 %v18516_v58  ;;  %v2037_v18 = vpop.xlane.xlu1 %2036 }
 0x390   : > { %v4263_v45 = vsel %vm12433_vm9, %v3649_v27, %v4262_v14  ;;  %v3446_v2 = vpack.c.bf16 %v3261_v36, %v3261_v36  ;;  %v2525_v28 = vmul.f32 0.5, %v2524_v48  ;;  %2105 = vadd.xlane.f32.xlu0 %v18517_v12  ;;  %vm1746_vm5 = vcmp.ge.f32.partialorder %v13189_v52, 0.0 }
 0x391   : > { %v1818_v23 = vmul.f32 0.2, %v13189_v52  ;;  %4264 = vst [vmem:[#allocation2 + $0x50] sm:$0xf] %v4263_v45  ;;  %v13236_v32 = vsel %vm1024_vm4, %v1959_v53, 0.0  ;;  %v1957_v51 = vmul.f32 %v13176_v44, %v13176_v44  ;;  %vm2529_vm8 = vweird.f32 %v13181_v38 }
 0x392   : > { %v3652_v41 = vshrl.u32 %v3446_v2, 16  ;;  %v2526_v7 = vsub.f32 1.5, %v2525_v28  ;;  %v2218_v14 = vmul.f32 %v12216_v59, %v2037_v18  ;;  %vm1747_vm7 = vcmp.ge.f32.partialorder %v13220_v34, 0.0  ;;  %v18518_v18 = vld [vmem:[#allocation16_spill] sm:$0xff] }
 0x393   : > { %v13245_v19 = vadd.f32 %v13118_v11, %v13022_v49  ;;  %vm2528_vm3 = vweird.f32 %v13130_v5  ;;  %v13249_v42 = vsel %vm1024_vm4, %v1958_v13, 0.0  ;;  %v3655_v27 = vshll.u32 %v3446_v2, 16 }
 0x394   : > { %v13251_v53 = vrot.slane %v3652_v41, 7  ;;  %v2527_v48 = vmul.f32 %v13181_v38, %v2526_v7  ;;  %v13254_v36 = vadd.f32 1e-08, %v2218_v14  ;;  %v1819_v45 = vmul.f32 0.2, %v13220_v34  ;;  %vm2530_vm0 = vmor %vm2528_vm3, %vm2529_vm8  ;;  %v1669_v41 = vpop.f32.mrf.mxu2 }
 0x395   : > { %v13256_v15 = vpop.eup %10141  ;;  %v1663_v49 = vadd.f32 %v13118_v11, %v13083_v55  ;;  %v13262_v5 = vsel %vm1024_vm4, %v1957_v51, 0.0  ;;  %v13267_v13 = vsel %vm1744_vm1, %v13164_v37, %v1816_v35  ;;  %v3650_v2 = vrot.slane %v13199_v40, 4  ;;  %v2040_v37 = vpop.xlane.xlu2 %2039 }
 0x396   : > { %v3657_v28 = vor.u32 %v3655_v27, %v13251_v53  ;;  %v2531_v58 = vsel %vm2530_vm0, %v13181_v38, %v2527_v48  ;;  %v2533_v12 = vmul.f32 %v13256_v15, %v13205_v47  ;;  %v13276_v55 = vadd.f32 %v13118_v11, %v13141_v26  ;;  %2111 = vadd.xlane.f32.xlu2 %v12792_v31 }
 0x397   : > { %v3080_v51 = vmul.f32 %v2531_v58, %v18518_v18  ;;  %10143 = vrsqrt.f32 %v13254_v36  ;;  %v13284_v40 = vsel %vm1746_vm5, %v13189_v52, %v1818_v23  ;;  %vm1748_vm13 = vcmp.ge.f32.partialorder %v13245_v19, 0.0  ;;  %2117 = vadd.xlane.f32.xlu1 %v12875_v17 }
 0x398   : > { %v13288_v38 = vmul.f32 0.2, %v13245_v19  ;;  %v3658_v26 = vsel %vm12477_vm12, %v3650_v2, %v3657_v28  ;;  %v2534_v35 = vmul.f32 %v13256_v15, %v2533_v12  ;;  %2114 = vadd.xlane.f32.xlu0 %v12878_v3  ;;  %v2219_v31 = vmul.f32 %v12216_v59, %v2040_v37 }
 0x399   : > { %vm1749_vm6 = vcmp.ge.f32.partialorder %v1663_v49, 0.0  ;;  %v1821_v52 = vmul.f32 0.2, %v1663_v49  ;;  %4265 = vst.msk [vmem:[#allocation2 + $0x54] sm:$0xf] %vm4223_vm14, %v3658_v26  ;;  %v3262_v23 = vsel %vm13135_vm15, %v3080_v51, 0.0  ;;  %v1960_v7 = vmul.f32 %v13267_v13, %v13267_v13 }
 0x39a   : > { %v3447_v14 = vpack.c.bf16 %v3262_v23, %v3262_v23  ;;  %v2535_v27 = vmul.f32 0.5, %v2534_v35  ;;  %v13301_v48 = vadd.f32 1e-08, %v2219_v31  ;;  %v13306_v17 = vsel %vm1745_vm10, %v13185_v20, %v1817_v16 }
 0x39b   : > { %v13309_v3 = vmul.f32 0.2, %v13276_v55  ;;  %v13313_v2 = vadd.f32 %v13118_v11, %v13215_v43  ;;  %v1962_v28 = vmul.f32 %v13284_v40, %v13284_v40  ;;  %v13320_v58 = vsel %vm1747_vm7, %v13220_v34, %v1819_v45 }
 0x39c   : > { %18519 = vst [vmem:[#allocation37_spill] sm:$0xff] %v13320_v58  ;;  %v3661_v12 = vshrl.u32 %v3447_v14, 16  ;;  %v2536_v18 = vsub.f32 1.5, %v2535_v27  ;;  %vm2539_vm1 = vweird.f32 %v13256_v15  ;;  %10145 = vrsqrt.f32 %v13301_v48 }
 0x39d   : > { %v13324_v20 = vpop.eup %10143  ;;  %vm2538_vm10 = vweird.f32 %v13205_v47  ;;  %v13328_v43 = vadd.f32 %v13118_v11, %v1669_v41  ;;  %v3141_v16 = vadd.s32 5, %v12320_v33  ;;  %v1961_v51 = vmul.f32 %v13306_v17, %v13306_v17 }
 0x39e   : > { %vm1750_vm5 = vcmp.ge.f32.partialorder %v13276_v55, 0.0  ;;  %v13334_v34 = vrot.slane %v3661_v12, 7  ;;  %v3664_v45 = vshll.u32 %v3447_v14, 16  ;;  %v2537_v37 = vmul.f32 %v13256_v15, %v2536_v18  ;;  %vm2540_vm8 = vmor %vm2538_vm10, %vm2539_vm1  ;;  %2120 = vadd.xlane.f32.xlu2 %v12896_v25  ;;  %v18521_v25 = vld [vmem:[#allocation35_spill] sm:$0xff] }
 0x39f   : > { %v2543_v26 = vmul.f32 %v13324_v20, %v13254_v36  ;;  %v13340_v47 = vmul.f32 0.2, %v13313_v2  ;;  %v13344_v35 = vsel %vm1024_vm4, %v1960_v7, 0.0  ;;  %v13347_v41 = vsel %vm1024_vm4, %v1962_v28, 0.0  ;;  %2126 = vadd.xlane.f32.xlu1 %v12981_v0 }
 0x3a0   : > { %v13350_v31 = vsel %vm1749_vm6, %v1663_v49, %v1821_v52  ;;  %v3659_v23 = vrot.slane %v13251_v53, 4  ;;  %v3666_v14 = vor.u32 %v3664_v45, %v13334_v34  ;;  %v2541_v27 = vsel %vm2540_vm8, %v13256_v15, %v2537_v37  ;;  %2123 = vadd.xlane.f32.xlu0 %v12893_v9  ;;  %v2043_v18 = vpop.xlane.xlu0 %2042  ;;  %v1672_v9 = vpop.f32.mrf.mxu2  ;;  %v4452_v37 = vld [vmem:[#allocation2 + $0x10] sm:$0x1] }
 0x3a1   : > { %18520 = vst [vmem:[#allocation76_spill] sm:$0xff] %v13350_v31  ;;  %v2544_v12 = vmul.f32 %v13324_v20, %v2543_v26  ;;  %v3081_v7 = vmul.f32 %v2541_v27, %v18521_v25  ;;  %v13360_v28 = vmul.f32 0.2, %v13328_v43  ;;  %v13363_v49 = vsel %vm1024_vm4, %v1961_v51, 0.0 }
 0x3a2   : > { %v1963_v53 = vmul.f32 %v13320_v58, %v13320_v58  ;;  %v13367_v52 = vpop.eup %10145  ;;  %v3667_v15 = vsel %vm12477_vm12, %v3659_v23, %v3666_v14  ;;  %vm3159_vm7 = vcmp.ge.s32.totalorder %v3141_v16, 0  ;;  %v2220_v45 = vmul.f32 %v12216_v59, %v2043_v18 }
 0x3a3   : > { %v2545_v0 = vmul.f32 0.5, %v2544_v12  ;;  %4266 = vst.msk [vmem:[#allocation2 + $0x58] sm:$0xf] %vm4223_vm14, %v3667_v15  ;;  %v3263_v51 = vsel %vm13135_vm15, %v3081_v7, 0.0  ;;  %v2553_v26 = vmul.f32 %v13367_v52, %v13301_v48  ;;  %v1965_v27 = vmul.f32 %v13350_v31, %v13350_v31 }
 0x3a4   : > { %v13383_v23 = vsel %vm1748_vm13, %v13245_v19, %v13288_v38  ;;  %v3448_v14 = vpack.c.bf16 %v3263_v51, %v3263_v51  ;;  %vm2549_vm3 = vweird.f32 %v13324_v20  ;;  %v13386_v25 = vadd.f32 1e-08, %v2220_v45 }
 0x3a5   : > { %v2546_v12 = vsub.f32 1.5, %v2545_v0  ;;  %vm3177_vm15 = vcmp.lt.s32.totalorder %v3141_v16, 32  ;;  %v2554_v7 = vmul.f32 %v13367_v52, %v2553_v26  ;;  %v3391_v18 = vsel %vm12347_vm11, 0, %v3390_v54 }
 0x3a6   : > { %v4854_v15 = vunpack.c.l.b16 %v4452_v37  ;;  %v3670_v31 = vshrl.u32 %v3448_v14, 16  ;;  %vm2548_vm0 = vweird.f32 %v13254_v36  ;;  %10147 = vrsqrt.f32 %v13386_v25  ;;  %3392 = vst [vmem:[#allocation2 + $0x74] sm:$0x1] %v3391_v18  ;;  %2129 = vadd.xlane.f32.xlu2 %v13194_v4  ;;  %v13407_v36 = vld [vmem:[#allocation2 + $0x8] sm:$0xff]  ;;  %vm13412_vm1 = vmand %vm3159_vm7, %vm3177_vm15 }
 0x3a7   : > { %v2547_v58 = vmul.f32 %v13324_v20, %v2546_v12  ;;  %vm13394_vm13 = vmor %vm2548_vm0, %vm2549_vm3  ;;  %v2555_v38 = vmul.f32 0.5, %v2554_v7  ;;  %v13400_v0 = vsel %vm1024_vm4, %v1963_v53, 0.0  ;;  %v13403_v45 = vsel %vm1024_vm4, %v1965_v27, 0.0  ;;  %2135 = vadd.xlane.f32.xlu1 %v13160_v63  ;;  %v4268_v27 = vld [vmem:[#allocation2 + $0x60] sm:$0x1] }
 0x3a8   : > { %v1964_v37 = vmul.f32 %v13383_v23, %v13383_v23  ;;  %vm1751_vm6 = vcmp.ge.f32.partialorder %v13313_v2, 0.0  ;;  %v3672_v51 = vrot.slane %v3670_v31, 7  ;;  %v3673_v26 = vshll.u32 %v3448_v14, 16  ;;  %2132 = vadd.xlane.f32.xlu0 %v13167_v24  ;;  %v18526_v31 = vld [vmem:[#allocation30_spill] sm:$0xff] }
 0x3a9   : > { %v2551_v4 = vsel %vm13394_vm13, %v13324_v20, %v2547_v58  ;;  %v13420_v53 = vadd.f32 %v13118_v11, %v1672_v9  ;;  %v2556_v54 = vsub.f32 1.5, %v2555_v38  ;;  %vm2559_vm10 = vweird.f32 %v13367_v52  ;;  %v2046_v18 = vpop.xlane.xlu1 %2045 }
 0x3aa   : > { %v3082_v14 = vmul.f32 %v2551_v4, %v18526_v31  ;;  %v13430_v16 = vsel %vm1750_vm5, %v13276_v55, %v13309_v3  ;;  %v3668_v58 = vrot.slane %v13334_v34, 4  ;;  %v3675_v20 = vor.u32 %v3673_v26, %v3672_v51  ;;  %v13458_v31 = vld [vmem:[#allocation2] sm:$0xff]  }
 0x3ab   : > { %18527 = vst [vmem:[#allocation9_spill] sm:$0xff] %v13430_v16  ;;  %v3677_v9 = vrot.slane %v3672_v51, 4  ;;  %v13433_v7 = vpack.c.b16 %v4854_v15, %v4854_v15  ;;  %v2557_v24 = vmul.f32 %v13367_v52, %v2556_v54  ;;  %vm2558_vm8 = vweird.f32 %v13301_v48  ;;  %v1674_v15 = vpop.f32.mrf.mxu2  ;;  %v18529_v54 = vld [vmem:[#allocation25_spill] sm:$0xff] }
 0x3ac   : > { %v3264_v63 = vsel %vm13412_vm1, %v3082_v14, 0.0  ;;  %v4894_v19 = vshll.u32 %v13407_v36, 16  ;;  %v13440_v38 = vpop.eup %10147  ;;  %v3676_v55 = vsel %vm12477_vm12, %v3668_v58, %v3675_v20  ;;  %vm2560_vm5 = vmor %vm2558_vm8, %vm2559_vm10  ;;  %v2221_v51 = vmul.f32 %v12216_v59, %v2046_v18 }
 0x3ad   : > { %18528 = vst [vmem:[#allocation48_spill] sm:$0xff] %v13433_v7  ;;  %v4269_v3 = vsel %vm12089_vm2, %v3677_v9, %v4268_v27  ;;  %v3449_v34 = vpack.c.bf16 %v3264_v63, %v3264_v63  ;;  %v2561_v48 = vsel %vm2560_vm5, %v13367_v52, %v2557_v24  ;;  %v2563_v26 = vmul.f32 %v13440_v38, %v13386_v25  ;;  %v3337_v63 = vld [vmem:[#allocation2 + $0x78] sm:$0x1] }
 0x3ae   : > { %4267 = vst.msk [vmem:[#allocation2 + $0x5c] sm:$0xf] %vm4223_vm14, %v3676_v55  ;;  %v13454_v4 = vsel %vm1024_vm4, %v1964_v37, 0.0  ;;  %v1966_v27 = vmul.f32 %v13430_v16, %v13430_v16  ;;  %vm1752_vm7 = vcmp.ge.f32.partialorder %v13328_v43, 0.0  ;;  %v3083_v58 = vmul.f32 %v2561_v48, %v18529_v54  ;;  %2138 = vadd.xlane.f32.xlu2 %v13262_v5  ;;  %v4271_v48 = vld [vmem:[#allocation2 + $0x64] sm:$0xf] }
 0x3af   : > { %4270 = vst [vmem:[#allocation2 + $0x60] sm:$0x1] %v4269_v3  ;;  %v3679_v14 = vshrl.u32 %v3449_v34, 16  ;;  %v13462_v20 = vadd.f32 1e-08, %v2221_v51  ;;  %v4902_v52 = vshll.u32 %v13433_v7, 16  ;;  %v2564_v37 = vmul.f32 %v13440_v38, %v2563_v26  ;;  %2144 = vadd.xlane.f32.xlu1 %v13236_v32 }
 0x3b0   : > { %v13466_v9 = vmul.f32 0.2, %v13420_v53  ;;  %v13470_v24 = vrot.slane %v4894_v19, 1  ;;  %v4898_v18 = vshrl.u32 %v13407_v36, 16  ;;  %v3682_v3 = vshll.u32 %v3449_v34, 16  ;;  %2141 = vadd.xlane.f32.xlu0 %v13249_v42  ;;  %v2049_v19 = vpop.xlane.xlu2 %2048 }
 0x3b1   : > { %v3681_v55 = vrot.slane %v3679_v14, 7  ;;  %vm1753_vm3 = vcmp.ge.f32.partialorder %v13420_v53, 0.0  ;;  %v3265_v51 = vsel %vm13412_vm1, %v3083_v58, 0.0  ;;  %10149 = vrsqrt.f32 %v13462_v20 }
 0x3b2   : > { %v3450_v5 = vpack.c.bf16 %v3265_v51, %v3265_v51  ;;  %v2565_v26 = vmul.f32 0.5, %v2564_v37  ;;  %v13480_v54 = vsel %vm1024_vm4, %v1966_v27, 0.0  ;;  %v4887_v36 = vshrl.u32 %v13458_v31, 16  ;;  %v13493_v27 = vld [vmem:[#allocation2 + $0x14] sm:$0xff]  }
 0x3b3   : > { %v3684_v34 = vor.u32 %v3682_v3, %v3681_v55  ;;  %v3338_v14 = vsel %vm12089_vm2, 0, %v3337_v63  ;;  %v4904_v58 = vrot.slane %v4902_v52, 1  ;;  %v4889_v7 = vshll.u32 %v13458_v31, 16  ;;  %18530 = vst [vmem:[#allocation53_spill] sm:$0xff] %v13493_v27  ;;  %v13495_v37 = vld [vmem:[#allocation2 + $0x14] sm:$0xf0] }
 0x3b4   : > { %v3687_v16 = vshrl.u32 %v3450_v5, 16  ;;  %v2566_v32 = vsub.f32 1.5, %v2565_v26  ;;  %vm2569_vm15 = vweird.f32 %v13440_v38  ;;  %3339 = vst [vmem:[#allocation2 + $0x78] sm:$0x1] %v3338_v14  ;;  %v13491_v42 = vsel %vm1751_vm6, %v13313_v2, %v13340_v47 }
 0x3b5   : > { %18531 = vst [vmem:[#allocation66_spill] sm:$0xff] %v13495_v37  ;;  %v4272_v52 = vsel %vm12433_vm9, %v3684_v34, %v4271_v48  ;;  %v13500_v31 = vadd.f32 %v13118_v11, %v1674_v15  ;;  %v2222_v63 = vmul.f32 %v12216_v59, %v2049_v19  ;;  %v4900_v3 = vor.u32 %v4898_v18, %v13470_v24  ;;  %v1677_v48 = vpop.f32.mrf.mxu2 }
 0x3b6   : > { %4273 = vst [vmem:[#allocation2 + $0x64] sm:$0xf] %v4272_v52  ;;  %v13504_v51 = vrot.slane %v3687_v16, 7  ;;  %v3690_v26 = vshll.u32 %v3450_v5, 16  ;;  %v2567_v2 = vmul.f32 %v13440_v38, %v2566_v32  ;;  %vm2568_vm0 = vweird.f32 %v13386_v25  ;;  %2147 = vadd.xlane.f32.xlu2 %v13344_v35  ;;  %v18532_v25 = vld [vmem:[#allocation52_spill] sm:$0xff] }
 0x3b7   : > { %v10150_v47 = vpop.eup %10149  ;;  %vm2570_vm13 = vmor %vm2568_vm0, %vm2569_vm15  ;;  %v13510_v34 = vadd.f32 1e-08, %v2222_v63  ;;  %v1967_v15 = vmul.f32 %v13491_v42, %v13491_v42  ;;  %v3685_v19 = vrot.slane %v3681_v55, 4  ;;  %vm1754_vm6 = vcmp.ge.f32.partialorder %v13500_v31, 0.0  ;;  %2153 = vadd.xlane.f32.xlu1 %v13347_v41 }
 0x3b8   : > { %v3692_v18 = vor.u32 %v3690_v26, %v13504_v51  ;;  %v2571_v16 = vsel %vm2570_vm13, %v13440_v38, %v2567_v2  ;;  %v2573_v5 = vmul.f32 %v10150_v47, %v13462_v20  ;;  %2150 = vadd.xlane.f32.xlu0 %v13363_v49  ;;  %v4891_v32 = vrot.slane %v4889_v7, 1 }
 0x3b9   : > { %v3084_v14 = vmul.f32 %v2571_v16, %v18532_v25  ;;  %10151 = vrsqrt.f32 %v13510_v34  ;;  %v13526_v38 = vadd.f32 %v13118_v11, %v1677_v48  ;;  %v2052_v63 = vpop.xlane.xlu0 %2051  ;;  %v13532_v35 = vsel %vm1752_vm7, %v13328_v43, %v13360_v28 }
 0x3ba   : > { %v3693_v55 = vsel %vm12477_vm12, %v3685_v19, %v3692_v18  ;;  %v2574_v52 = vmul.f32 %v10150_v47, %v2573_v5  ;;  %v1826_v41 = vmul.f32 0.2, %v13500_v31  ;;  %v2223_v7 = vmul.f32 %v12216_v59, %v2052_v63 }
 0x3bb   : > { %4274 = vst.msk [vmem:[#allocation2 + $0x68] sm:$0xf] %vm4223_vm14, %v3693_v55  ;;  %v3266_v49 = vsel %vm13412_vm1, %v3084_v14, 0.0  ;;  %v13543_v48 = vsel %vm1753_vm3, %v13420_v53, %v13466_v9  ;;  %vm18534_vm10 = vsmask.f32 7424  ;;  %v1968_v19 = vmul.f32 %v13532_v35, %v13532_v35 }
 0x3bc   : > { %v3451_v26 = vpack.c.bf16 %v3266_v49, %v3266_v49  ;;  %v2575_v2 = vmul.f32 0.5, %v2574_v52  ;;  %18533 = vst [vmem:[#allocation43_spill] sm:$0xff] %v13543_v48  ;;  %v13546_v43 = vsel %vm18534_vm10, %v4900_v3, %v4904_v58  ;;  %v13548_v28 = vadd.f32 1e-08, %v2223_v7 }
 0x3bd   : > { %v13553_v18 = vsel %vm1024_vm4, %v1967_v15, 0.0  ;;  %v13555_v16 = vor.u32 %v4891_v32, %v4887_v36  ;;  %vm1755_vm8 = vcmp.ge.f32.partialorder %v13526_v38, 0.0  ;;  %vm2579_vm5 = vweird.f32 %v10150_v47  ;;  %v13570_v32 = vld [vmem:[#allocation2 + $0x24] sm:$0x1] }
 0x3be   : > { %v3696_v5 = vshrl.u32 %v3451_v26, 16  ;;  %v2576_v25 = vsub.f32 1.5, %v2575_v2  ;;  %vm2578_vm7 = vweird.f32 %v13462_v20  ;;  %10153 = vrsqrt.f32 %v13548_v28  ;;  %2156 = vadd.xlane.f32.xlu2 %v13400_v0 }
 0x3bf   : > { %v13558_v53 = vpop.eup %10151  ;;  %v1969_v9 = vmul.f32 %v13543_v48, %v13543_v48  ;;  %v4909_v58 = vshll.u32 %v13493_v27, 16  ;;  %v3699_v36 = vshll.u32 %v3451_v26, 16  ;;  %v1827_v20 = vmul.f32 0.2, %v13526_v38  ;;  %vm2580_vm3 = vmor %vm2578_vm7, %vm2579_vm5  ;;  %2162 = vadd.xlane.f32.xlu1 %v13403_v45  ;;  %v1679_v26 = vpop.f32.mrf.mxu2 }
 0x3c0   : > { %v13565_v3 = vrot.slane %v3696_v5, 7  ;;  %v2577_v15 = vmul.f32 %v10150_v47, %v2576_v25  ;;  %v2583_v14 = vmul.f32 %v13558_v53, %v13510_v34  ;;  %v3142_v55 = vadd.s32 6, %v12320_v33  ;;  %2159 = vadd.xlane.f32.xlu0 %v13454_v4  ;;  %v2055_v5 = vpop.xlane.xlu1 %2054  ;;  %v18535_v25 = vld [vmem:[#allocation29_spill] sm:$0xff] }
 0x3c1   : > { %v2170_v52 = vsel %vm1024_vm4, %v1968_v19, 0.0  ;;  %v3694_v49 = vrot.slane %v13504_v51, 4  ;;  %v2224_v48 = vmul.f32 %v12216_v59, %v2055_v5  ;;  %v13583_v45 = vrot.slane %v4909_v58, 1 }
 0x3c2   : > { %v3701_v7 = vor.u32 %v3699_v36, %v13565_v3  ;;  %v2581_v0 = vsel %vm2580_vm3, %v10150_v47, %v2577_v15  ;;  %v2584_v2 = vmul.f32 %v13558_v53, %v2583_v14  ;;  %v4855_v4 = vunpack.c.l.b16 %v13570_v32  ;;  %v13596_v36 = vld [vmem:[#allocation2 + $0x1c] sm:$0xff] }
 0x3c3   : > { %v3085_v37 = vmul.f32 %v2581_v0, %v18535_v25  ;;  %v13589_v51 = vsel %vm1024_vm4, %v1969_v9, 0.0  ;;  %v13594_v47 = vsel %vm1754_vm6, %v13500_v31, %v1826_v41  ;;  %v1680_v14 = vadd.f32 %v13118_v11, %v1679_v26  ;;  %v3393_v41 = vld [vmem:[#allocation2 + $0x88] sm:$0x1]  ;;  %v18538_v25 = vld [vmem:[#allocation38_spill] sm:$0xff] }
 0x3c4   : > { %v3702_v19 = vsel %vm12477_vm12, %v3694_v49, %v3701_v7  ;;  %v2585_v63 = vmul.f32 0.5, %v2584_v2  ;;  %v13598_v15 = vpop.eup %10153  ;;  %vm3160_vm15 = vcmp.ge.s32.totalorder %v3142_v55, 0  ;;  %v13604_v32 = vadd.f32 1e-08, %v2224_v48 }
 0x3c5   : > { %4275 = vst.msk [vmem:[#allocation2 + $0x6c] sm:$0xf] %vm4223_vm14, %v3702_v19  ;;  %v3267_v58 = vsel %vm13412_vm1, %v3085_v37, 0.0  ;;  %vm2589_vm0 = vweird.f32 %v13558_v53  ;;  %v2593_v31 = vmul.f32 %v13598_v15, %v13548_v28  ;;  %vm3178_vm13 = vcmp.lt.s32.totalorder %v3142_v55, 32 }
 0x3c6   : > { %v3452_v9 = vpack.c.bf16 %v3267_v58, %v3267_v58  ;;  %v2586_v49 = vsub.f32 1.5, %v2585_v63  ;;  %10155 = vrsqrt.f32 %v13604_v32  ;;  %v3394_v12 = vsel %vm12347_vm11, 0, %v3393_v41  ;;  %2165 = vadd.xlane.f32.xlu2 %v13480_v54 }
 0x3c7   : > { %v13615_v11 = vsel %vm1755_vm8, %v13526_v38, %v1827_v20  ;;  %vm2588_vm1 = vweird.f32 %v13510_v34  ;;  %v2594_v63 = vmul.f32 %v13598_v15, %v2593_v31  ;;  %3395 = vst [vmem:[#allocation2 + $0x88] sm:$0x1] %v3394_v12  ;;  %vm1756_vm6 = vcmp.ge.f32.partialorder %v1680_v14, 0.0  ;;  %2171 = vadd.xlane.f32.xlu1 %v2170_v52  ;;  %vm13629_vm8 = vmand %vm3160_vm15, %vm3178_vm13 }
 0x3c8   : > { %v3705_v37 = vshrl.u32 %v3452_v9, 16  ;;  %v2587_v48 = vmul.f32 %v13558_v53, %v2586_v49  ;;  %v1828_v7 = vmul.f32 0.2, %v1680_v14  ;;  %vm2590_vm10 = vmor %vm2588_vm1, %vm2589_vm0  ;;  %2168 = vadd.xlane.f32.xlu0 %v13553_v18  ;;  %v1970_v38 = vmul.f32 %v13594_v47, %v13594_v47  ;;  %v2058_v5 = vpop.xlane.xlu2 %2057  ;;  %v4277_v18 = vld [vmem:[#allocation2 + $0x74] sm:$0x1] }
 0x3c9   : > { %v4914_v20 = vshll.u32 %v13596_v36, 16  ;;  %v3708_v34 = vshll.u32 %v3452_v9, 16  ;;  %v2595_v2 = vmul.f32 0.5, %v2594_v63  ;;  %v3703_v52 = vrot.slane %v13565_v3, 4 }
 0x3ca   : > { %v3707_v0 = vrot.slane %v3705_v37, 7  ;;  %v2591_v26 = vsel %vm2590_vm10, %v13558_v53, %v2587_v48  ;;  %v2225_v58 = vmul.f32 %v12216_v59, %v2058_v5  ;;  %v1971_v9 = vmul.f32 %v13615_v11, %v13615_v11 }
 0x3cb   : > { %v3086_v19 = vmul.f32 %v2591_v26, %v18538_v25  ;;  %v2596_v31 = vsub.f32 1.5, %v2595_v2  ;;  %vm2599_vm5 = vweird.f32 %v13598_v15  ;;  %vm2598_vm7 = vweird.f32 %v13548_v28  ;;  %v18539_v25 = vld [vmem:[#allocation5_spill] sm:$0xff] }
 0x3cc   : > { %v3710_v49 = vor.u32 %v3708_v34, %v3707_v0  ;;  %v3712_v55 = vrot.slane %v3707_v0, 4  ;;  %v13640_v41 = vpop.eup %10155  ;;  %v13645_v3 = vadd.f32 1e-08, %v2225_v58  ;;  %v13647_v12 = vpack.c.b16 %v4855_v4, %v4855_v4  ;;  %v3340_v34 = vld [vmem:[#allocation2 + $0x8c] sm:$0x1]  ;;  %vm2600_vm3 = vmor %vm2598_vm7, %vm2599_vm5 }
 0x3cd   : > { %v3268_v53 = vsel %vm13629_vm8, %v3086_v19, 0.0  ;;  %v2597_v0 = vmul.f32 %v13598_v15, %v2596_v31  ;;  %v2603_v28 = vmul.f32 %v13640_v41, %v13604_v32  ;;  %v13659_v4 = vsel %vm1756_vm6, %v1680_v14, %v1828_v7  ;;  %v4280_v31 = vld [vmem:[#allocation2 + $0x78] sm:$0xf] }
 0x3ce   : > { %v3711_v37 = vsel %vm12477_vm12, %v3703_v52, %v3710_v49  ;;  %v4278_v48 = vsel %vm12089_vm2, %v3712_v55, %v4277_v18  ;;  %v3453_v63 = vpack.c.bf16 %v3268_v53, %v3268_v53  ;;  %10157 = vrsqrt.f32 %v13645_v3  ;;  %2174 = vadd.xlane.f32.xlu2 %v13589_v51  ;;  %v13679_v55 = vld [vmem:[#allocation2 + $0x28] sm:$0xff]  }
 0x3cf   : > { %4276 = vst.msk [vmem:[#allocation2 + $0x70] sm:$0xf] %vm4223_vm14, %v3711_v37  ;;  %v4916_v26 = vrot.slane %v4914_v20, 1  ;;  %v2601_v5 = vsel %vm2600_vm3, %v13598_v15, %v2597_v0  ;;  %v2179_v52 = vsel %vm1024_vm4, %v1971_v9, 0.0  ;;  %v2176_v18 = vsel %vm1024_vm4, %v1970_v38, 0.0 }
 0x3d0   : > { %4279 = vst [vmem:[#allocation2 + $0x74] sm:$0x1] %v4278_v48  ;;  %v3714_v2 = vshrl.u32 %v3453_v63, 16  ;;  %v3087_v19 = vmul.f32 %v2601_v5, %v18539_v25  ;;  %v2604_v58 = vmul.f32 %v13640_v41, %v2603_v28  ;;  %2180 = vadd.xlane.f32.xlu1 %v2179_v52  ;;  %2177 = vadd.xlane.f32.xlu0 %v2176_v18  ;;  %v3341_v14 = vsel %vm12089_vm2, 0, %v3340_v34  ;;  %v2061_v20 = vpop.xlane.xlu0 %2060  ;;  %v4454_v28 = vld [vmem:[#allocation2 + $0x38] sm:$0x1] }
 0x3d1   : > { %vm18540_vm15 = vsmask.f32 7424  ;;  %v3717_v51 = vshll.u32 %v3453_v63, 16  ;;  %3342 = vst [vmem:[#allocation2 + $0x8c] sm:$0x1] %v3341_v14  ;;  %v1972_v38 = vmul.f32 %v13659_v4, %v13659_v4  ;;  %v18541_v9 = vshrl.u32 %v13493_v27, 16 }
 0x3d2   : > { %v13672_v7 = vsel %vm18540_vm15, %v13555_v16, %v13470_v24  ;;  %v3716_v15 = vrot.slane %v3714_v2, 7  ;;  %v3269_v53 = vsel %vm13629_vm8, %v3087_v19, 0.0  ;;  %v2605_v37 = vmul.f32 0.5, %v2604_v58  ;;  %vm18542_vm0 = vmmov %vm18540_vm15  ;;  %v13703_v14 = vld [vmem:[#allocation2 + $0x30] sm:$0xff] }
 0x3d3   : > { %v4912_v49 = vor.u32 %v13583_v45, %v18541_v9  ;;  %v2226_v24 = vmul.f32 %v12216_v59, %v2061_v20  ;;  %v4918_v16 = vshrl.u32 %v13596_v36, 16  ;;  %v3454_v63 = vpack.c.bf16 %v3269_v53, %v3269_v53  ;;  %vm18545_vm5 = vmmov %vm18542_vm0 }
 0x3d4   : > { %v3719_v48 = vor.u32 %v3717_v51, %v3716_v15  ;;  %v4922_v34 = vshll.u32 %v13647_v12, 16  ;;  %v13689_v45 = vpop.eup %10157  ;;  %v2606_v2 = vsub.f32 1.5, %v2605_v37  ;;  %vm2609_vm13 = vweird.f32 %v13640_v41  ;;  %v18543_v37 = vld [vmem:[#allocation42_spill] sm:$0xff] }
 0x3d5   : > { %v13686_v0 = vsel %vm18542_vm0, %v4912_v49, %v4916_v26  ;;  %v13692_v5 = vadd.f32 1e-08, %v2226_v24  ;;  %v4929_v52 = vshll.u32 %v13679_v55, 16  ;;  %v3722_v18 = vshrl.u32 %v3454_v63, 16 }
 0x3d6   : > { %v4281_v36 = vsel %vm12433_vm9, %v3719_v48, %v4280_v31  ;;  %v2613_v25 = vmul.f32 %v13689_v45, %v13645_v3  ;;  %v2182_v19 = vsel %vm1024_vm4, %v1972_v38, 0.0  ;;  %v2607_v58 = vmul.f32 %v13640_v41, %v2606_v2 }
 0x3d7   : > { %4282 = vst [vmem:[#allocation2 + $0x78] sm:$0xf] %v4281_v36  ;;  %vm2608_vm1 = vweird.f32 %v13604_v32  ;;  %10159 = vrsqrt.f32 %v13692_v5  ;;  %v4856_v51 = vunpack.c.l.b16 %v4454_v28  ;;  %v13705_v20 = vrot.slane %v3722_v18, 7  ;;  %2183 = vadd.xlane.f32.xlu2 %v2182_v19  ;;  %v2064_v38 = vpop.xlane.xlu1 %2063  ;;  %v18544_v32 = vld [vmem:[#allocation22_spill] sm:$0xff] }
 0x3d8   : > { %v3725_v9 = vshll.u32 %v3454_v63, 16  ;;  %vm2610_vm6 = vmor %vm2608_vm1, %vm2609_vm13  ;;  %v2614_v49 = vmul.f32 %v13689_v45, %v2613_v25  ;;  %v4920_v31 = vor.u32 %v4918_v16, %v4916_v26  ;;  %2189 = vadd.xlane.f32.xlu1 %v18543_v37  ;;  %2186 = vadd.xlane.f32.xlu0 %v18544_v32  ;;  %v2227_v24 = vmul.f32 %v12216_v59, %v2064_v38  ;;  %v2079_v26 = vpop.xlane.xlu0 %2078 }
 0x3d9   : > { %v2611_v53 = vsel %vm2610_vm6, %v13640_v41, %v2607_v58  ;;  %v4924_v48 = vrot.slane %v4922_v34, 1  ;;  %v4931_v28 = vrot.slane %v4929_v52, 1  ;;  %v3720_v2 = vrot.slane %v3716_v15, 4 }
 0x3da   : > { %v3727_v63 = vor.u32 %v3725_v9, %v13705_v20  ;;  %v3088_v36 = vmul.f32 %v2611_v53, %v12788_v1  ;;  %v2615_v18 = vmul.f32 0.5, %v2614_v49  ;;  %vm2619_vm10 = vweird.f32 %v13689_v45 }
 0x3db   : > { %v13717_v25 = vadd.f32 1e-08, %v2227_v24  ;;  %v4934_v41 = vshll.u32 %v13703_v14, 16  ;;  %v13720_v16 = vpack.c.b16 %v4856_v51, %v4856_v51  ;;  %v2232_v52 = vmul.f32 %v12216_v59, %v2079_v26 }
 0x3dc   : > { %v3728_v19 = vsel %vm12477_vm12, %v3720_v2, %v3727_v63  ;;  %v3270_v15 = vsel %vm13629_vm8, %v3088_v36, 0.0  ;;  %v2616_v34 = vsub.f32 1.5, %v2615_v18  ;;  %v13730_v9 = vsel %vm18545_vm5, %v4920_v31, %v4924_v48  ;;  %v13748_v63 = vld [vmem:[#allocation2 + $0x3c] sm:$0xff]  }
 0x3dd   : > { %v10160_v1 = vpop.eup %10159  ;;  %4283 = vst.msk [vmem:[#allocation2 + $0x7c] sm:$0xf] %vm4223_vm14, %v3728_v19  ;;  %v3455_v58 = vpack.c.bf16 %v3270_v15, %v3270_v15  ;;  %10161 = vrsqrt.f32 %v13717_v25  ;;  %v4927_v51 = vshrl.u32 %v13679_v55, 16  ;;  %vm2618_vm7 = vweird.f32 %v13645_v3  ;;  %v13750_v36 = vld [vmem:[#allocation2 + $0x3c] sm:$0xf0] }
 0x3de   : > { %v2617_v49 = vmul.f32 %v13689_v45, %v2616_v34  ;;  %v3143_v38 = vadd.s32 7, %v12320_v33  ;;  %v2623_v53 = vmul.f32 %v10160_v1, %v13692_v5  ;;  %vm2620_vm3 = vmor %vm2618_vm7, %vm2619_vm10  ;;  %v13739_v32 = vadd.f32 1e-08, %v2232_v52  ;;  %18546 = vst [vmem:[#allocation61_spill] sm:$0xff] %v13748_v63 }
 0x3df   : > { %v3731_v37 = vshrl.u32 %v3455_v58, 16  ;;  %v13741_v24 = vor.u32 %v4931_v28, %v4927_v51  ;;  %v13745_v2 = vrot.slane %v4934_v41, 1  ;;  %v4942_v3 = vshll.u32 %v13720_v16, 16 }
 0x3e0   : > { %v2621_v55 = vsel %vm2620_vm3, %v13689_v45, %v2617_v49  ;;  %v2624_v48 = vmul.f32 %v10160_v1, %v2623_v53  ;;  %v3734_v26 = vshll.u32 %v3455_v58, 16  ;;  %10163 = vrsqrt.f32 %v13739_v32 }
 0x3e1   : > { %v3733_v18 = vrot.slane %v3731_v37, 7  ;;  %v3089_v19 = vmul.f32 %v2621_v55, %v12842_v50  ;;  %v3729_v28 = vrot.slane %v13705_v20, 4  ;;  %vm3161_vm15 = vcmp.ge.s32.totalorder %v3143_v38, 0  ;;  %v2067_v51 = vpop.xlane.xlu2 %2066 }
 0x3e2   : > { %v2625_v15 = vmul.f32 0.5, %v2624_v48  ;;  %v13756_v45 = vadd.s32 8, %v12320_v33  ;;  %vm2629_vm0 = vweird.f32 %v10160_v1  ;;  %vm3179_vm13 = vcmp.lt.s32.totalorder %v3143_v38, 32 }
 0x3e3   : > { %v13758_v41 = vpop.eup %10161  ;;  %v3736_v34 = vor.u32 %v3734_v26, %v3733_v18  ;;  %v3271_v52 = vsel %vm13629_vm8, %v3089_v19, 0.0  ;;  %v2228_v53 = vmul.f32 %v12216_v59, %v2067_v51  ;;  %v13767_v37 = vrot.slane %v4942_v3, 1  ;;  %vm13778_vm10 = vmand %vm3161_vm15, %vm3179_vm13  ;;  %v3399_v51 = vld [vmem:[#allocation2 + $0xb0] sm:$0x1] }
 0x3e4   : > { %v3456_v49 = vpack.c.bf16 %v3271_v52, %v3271_v52  ;;  %v2626_v58 = vsub.f32 1.5, %v2625_v15  ;;  %v2633_v50 = vmul.f32 %v13758_v41, %v13717_v25  ;;  %vm2628_vm8 = vweird.f32 %v13692_v5 }
 0x3e5   : > { %v3737_v20 = vsel %vm12477_vm12, %v3729_v28, %v3736_v34  ;;  %vm2630_vm1 = vmor %vm2628_vm8, %vm2629_vm0  ;;  %vm2638_vm6 = vweird.f32 %v13717_v25  ;;  %v13775_v28 = vadd.f32 1e-08, %v2228_v53  ;;  %vm3162_vm5 = vcmp.ge.s32.totalorder %v13756_v45, 0 }
 0x3e6   : > { %4284 = vst.msk [vmem:[#allocation2 + $0x80] sm:$0xf] %vm4223_vm14, %v3737_v20  ;;  %v3740_v55 = vshrl.u32 %v3456_v49, 16  ;;  %v2627_v54 = vmul.f32 %v10160_v1, %v2626_v58  ;;  %v2634_v48 = vmul.f32 %v13758_v41, %v2633_v50  ;;  %v13772_v26 = vpop.eup %10163  ;;  %v3743_v19 = vshll.u32 %v3456_v49, 16  ;;  %v2082_v49 = vpop.xlane.xlu1 %2081  ;;  %v4286_v50 = vld [vmem:[#allocation2 + $0x88] sm:$0x1] }
 0x3e7   : > { %v2683_v5 = vmul.f32 %v13772_v26, %v13739_v32  ;;  %v3738_v58 = vrot.slane %v3733_v18, 4  ;;  %vm2639_vm7 = vweird.f32 %v13758_v41  ;;  %10165 = vrsqrt.f32 %v13775_v28 }
 0x3e8   : > { %v3742_v15 = vrot.slane %v3740_v55, 7  ;;  %v2631_v34 = vsel %vm2630_vm1, %v10160_v1, %v2627_v54  ;;  %v2635_v52 = vmul.f32 0.5, %v2634_v48  ;;  %v3400_v48 = vsel %vm12347_vm11, 0, %v3399_v51  ;;  %vm2640_vm3 = vmor %vm2638_vm6, %vm2639_vm7 }
 0x3e9   : > { %v3090_v20 = vmul.f32 %v2631_v34, %v12883_v56  ;;  %v2684_v1 = vmul.f32 %v13772_v26, %v2683_v5  ;;  %v2233_v18 = vmul.f32 %v12216_v59, %v2082_v49  ;;  %v4949_v31 = vshll.u32 %v13748_v63, 16  ;;  %3401 = vst [vmem:[#allocation2 + $0xb0] sm:$0x1] %v3400_v48  ;;  %v4455_v48 = vld [vmem:[#allocation2 + $0x4c] sm:$0x1] }
 0x3ea   : > { %v3745_v38 = vor.u32 %v3743_v19, %v3742_v15  ;;  %v3747_v53 = vrot.slane %v3742_v15, 4  ;;  %v2636_v55 = vsub.f32 1.5, %v2635_v52  ;;  %vm18549_vm15 = vsmask.f32 7424 }
 0x3eb   : > { %v3272_v54 = vsel %vm13778_vm10, %v3090_v20, 0.0  ;;  %v2685_v52 = vmul.f32 0.5, %v2684_v1  ;;  %v13805_v5 = vadd.f32 1e-08, %v2233_v18  ;;  %v13812_v51 = vsel %vm18549_vm15, %v13741_v24, %v13745_v2  ;;  %v4289_v18 = vld [vmem:[#allocation2 + $0x8c] sm:$0xf]  ;;  %vm18554_vm7 = vmmov %vm18549_vm15 }
 0x3ec   : > { %v3746_v56 = vsel %vm12477_vm12, %v3738_v58, %v3745_v38  ;;  %v4287_v19 = vsel %vm12089_vm2, %v3747_v53, %v4286_v50  ;;  %v3457_v15 = vpack.c.bf16 %v3272_v54, %v3272_v54  ;;  %v2637_v34 = vmul.f32 %v13758_v41, %v2636_v55  ;;  %5208 = vrot.lane.b32.xlu0 %v13546_v43, %s10545_s7  ;;  %v13817_v50 = vld [vmem:[#allocation2 + $0x44] sm:$0xff]  ;;  %v18551_v38 = vld [vmem:[#allocation20_spill] sm:$0xff] }
 0x3ed   : > { %4285 = vst.msk [vmem:[#allocation2 + $0x84] sm:$0xf] %vm4223_vm14, %v3746_v56  ;;  %v18550_v49 = vshrl.u32 %v13703_v14, 16  ;;  %vm3180_vm0 = vcmp.lt.s32.totalorder %v13756_v45, 32  ;;  %vm2688_vm13 = vweird.f32 %v13739_v32  ;;  %v13822_v43 = vpop.eup %10165  ;;  %v2686_v24 = vsub.f32 1.5, %v2685_v52 }
 0x3ee   : > { %4288 = vst [vmem:[#allocation2 + $0x88] sm:$0x1] %v4287_v19  ;;  %v3749_v25 = vshrl.u32 %v3457_v15, 16  ;;  %v2641_v20 = vsel %vm2640_vm3, %v13758_v41, %v2637_v34  ;;  %vm2689_vm8 = vweird.f32 %v13772_v26  ;;  %10167 = vrsqrt.f32 %v13805_v5  ;;  %v3346_v14 = vld [vmem:[#allocation2 + $0xb4] sm:$0x1]  ;;  %v2085_v41 = vpop.xlane.xlu2 %2084  ;;  %vm13849_vm6 = vmand %vm3162_vm5, %vm3180_vm0 }
 0x3ef   : > { %v4940_v58 = vor.u32 %v18550_v49, %v13745_v2  ;;  %v3091_v53 = vmul.f32 %v2641_v20, %v18551_v38  ;;  %v3752_v55 = vshll.u32 %v3457_v15, 16  ;;  %v2643_v1 = vmul.f32 %v13822_v43, %v13775_v28  ;;  %5206 = vrot.lane.b32.xlu2 %v13672_v7, %s10545_s7  ;;  %vm2690_vm1 = vmor %vm2688_vm13, %vm2689_vm8 }
 0x3f0   : > { %v3751_v2 = vrot.slane %v3749_v25, 7  ;;  %v4951_v54 = vrot.slane %v4949_v31, 1  ;;  %v2687_v19 = vmul.f32 %v13772_v26, %v2686_v24  ;;  %v3347_v34 = vsel %vm12089_vm2, 0, %v3346_v14  ;;  %v18555_v14 = vld [vmem:[#allocation31_spill] sm:$0xff]  ;;  %vm18556_vm13 = vmmov %vm18554_vm7 }
 0x3f1   : > { %v3273_v56 = vsel %vm13778_vm10, %v3091_v53, 0.0  ;;  %v4954_v15 = vshll.u32 %v13817_v50, 16  ;;  %v2644_v7 = vmul.f32 %v13822_v43, %v2643_v1  ;;  %3348 = vst [vmem:[#allocation2 + $0xb4] sm:$0x1] %v3347_v34  ;;  %5210 = vrot.lane.b32.xlu1 %v13686_v0, %s10545_s7  ;;  %v4947_v31 = vshrl.u32 %v13748_v63, 16 }
 0x3f2   : > { %v3754_v52 = vor.u32 %v3752_v55, %v3751_v2  ;;  %v3458_v49 = vpack.c.bf16 %v3273_v56, %v3273_v56  ;;  %v2691_v20 = vsel %vm2690_vm1, %v13772_v26, %v2687_v19  ;;  %v2234_v32 = vmul.f32 %v12216_v59, %v2085_v41  ;;  %v2091_v41 = vpop.xlane.xlu1 %2090  ;;  %v3396_v34 = vld [vmem:[#allocation2 + $0x9c] sm:$0x1] }
 0x3f3   : > { %v4945_v38 = vsel %vm18554_vm7, %v4940_v58, %v13767_v37  ;;  %v4857_v53 = vunpack.c.l.b16 %v4455_v48  ;;  %v3096_v55 = vmul.f32 %v2691_v20, %v18555_v14  ;;  %v4952_v1 = vor.u32 %v4951_v54, %v4947_v31 }
 0x3f4   : > { %v4290_v0 = vsel %vm12433_vm9, %v3754_v52, %v4289_v18  ;;  %v3757_v24 = vshrl.u32 %v3458_v49, 16  ;;  %v13860_v45 = vpop.eup %10167  ;;  %v2645_v56 = vmul.f32 0.5, %v2644_v7  ;;  %vm2648_vm5 = vweird.f32 %v13775_v28  ;;  %5212 = vrot.lane.b32.xlu0 %v13730_v9, %s10545_s7  ;;  %v2070_v52 = vpop.xlane.xlu0 %2069 }
 0x3f5   : > { %4291 = vst [vmem:[#allocation2 + $0x8c] sm:$0xf] %v4290_v0  ;;  %v13863_v26 = vadd.f32 1e-08, %v2234_v32  ;;  %v4956_v37 = vrot.slane %v4954_v15, 1  ;;  %v3760_v48 = vshll.u32 %v3458_v49, 16  ;;  %v2693_v54 = vmul.f32 %v13860_v45, %v13805_v5 }
 0x3f6   : > { %v13867_v58 = vrot.slane %v3757_v24, 7  ;;  %v3278_v18 = vsel %vm13849_vm6, %v3096_v55, 0.0  ;;  %v2646_v19 = vsub.f32 1.5, %v2645_v56  ;;  %vm2649_vm3 = vweird.f32 %v13822_v43 }
 0x3f7   : > { %10169 = vrsqrt.f32 %v13863_v26  ;;  %v13875_v7 = vpack.c.b16 %v4857_v53, %v4857_v53  ;;  %v3755_v9 = vrot.slane %v3751_v2, 4  ;;  %v2694_v49 = vmul.f32 %v13860_v45, %v2693_v54  ;;  %5214 = vrot.lane.b32.xlu2 %v13812_v51, %s10545_s7  ;;  %vm2650_vm15 = vmor %vm2648_vm5, %vm2649_vm3 }
 0x3f8   : > { %v3762_v15 = vor.u32 %v3760_v48, %v13867_v58  ;;  %v2236_v31 = vmul.f32 %v12216_v59, %v2091_v41  ;;  %v13882_v20 = vpack.c.bf16 %v3278_v18, %v3278_v18  ;;  %v2647_v32 = vmul.f32 %v13822_v43, %v2646_v19 }
 0x3f9   : > { %v3397_v0 = vsel %vm12347_vm11, 0, %v3396_v34  ;;  %v4958_v53 = vshrl.u32 %v13817_v50, 16  ;;  %v2695_v24 = vmul.f32 0.5, %v2694_v49  ;;  %v2229_v51 = vmul.f32 %v12216_v59, %v2070_v52  ;;  %5216 = vrot.lane.b32.xlu1 %v4945_v38, %s10545_s7  ;;  %v3402_v34 = vld [vmem:[#allocation2 + $0xc4] sm:$0x1]  ;;  %v2094_v52 = vpop.xlane.xlu2 %2093 }
 0x3fa   : > { %v3763_v2 = vsel %vm12477_vm12, %v3755_v9, %v3762_v15  ;;  %v13894_v14 = vadd.f32 1e-08, %v2236_v31  ;;  %3398 = vst [vmem:[#allocation2 + $0x9c] sm:$0x1] %v3397_v0  ;;  %v2651_v50 = vsel %vm2650_vm15, %v13822_v43, %v2647_v32  ;;  %vm2699_vm0 = vweird.f32 %v13860_v45 }
 0x3fb   : > { %4292 = vst.msk [vmem:[#allocation2 + $0x90] sm:$0xf] %vm4223_vm14, %v3763_v2  ;;  %v4957_v55 = vsel %vm18556_vm13, %v4952_v1, %v4956_v37  ;;  %v4962_v56 = vshll.u32 %v13875_v7, 16  ;;  %v3092_v28 = vmul.f32 %v2651_v50, %v12967_v61  ;;  %v2696_v41 = vsub.f32 1.5, %v2695_v24 }
 0x3fc   : > { %10171 = vrsqrt.f32 %v13894_v14  ;;  %v4960_v48 = vor.u32 %v4958_v53, %v4956_v37  ;;  %vm2698_vm8 = vweird.f32 %v13805_v5  ;;  %v3145_v38 = vadd.s32 9, %v12320_v33  ;;  %5218 = vrot.lane.b32.xlu0 %v4957_v55, %s10545_s7  ;;  %v18557_v53 = vld [vmem:[#allocation26_spill] sm:$0xff] }
 0x3fd   : > { %v13905_v18 = vpop.eup %10169  ;;  %v13909_v54 = vadd.f32 1e-08, %v2229_v51  ;;  %v4964_v43 = vrot.slane %v4962_v56, 1  ;;  %v3801_v1 = vshrl.u32 %v13882_v20, 16  ;;  %v3274_v61 = vsel %vm13778_vm10, %v3092_v28, 0.0  ;;  %vm2700_vm1 = vmor %vm2698_vm8, %vm2699_vm0 }
 0x3fe   : > { %v2697_v19 = vmul.f32 %v13860_v45, %v2696_v41  ;;  %v2703_v37 = vmul.f32 %v13905_v18, %v13863_v26  ;;  %v3459_v5 = vpack.c.bf16 %v3274_v61, %v3274_v61  ;;  %v3403_v9 = vsel %vm12347_vm11, 0, %v3402_v34 }
 0x3ff   : > { %10173 = vrsqrt.f32 %v13909_v54  ;;  %3404 = vst [vmem:[#allocation2 + $0xc4] sm:$0x1] %v3403_v9  ;;  %v2237_v31 = vmul.f32 %v12216_v59, %v2094_v52  ;;  %v4965_v32 = vsel %vm18554_vm7, %v4960_v48, %v4964_v43  ;;  %vm3163_vm5 = vcmp.ge.s32.totalorder %v3145_v38, 0  ;;  %v3343_v48 = vld [vmem:[#allocation2 + $0xa0] sm:$0x1] }
 0x400   : > { %v2701_v15 = vsel %vm2700_vm1, %v13860_v45, %v2697_v19  ;;  %v2704_v49 = vmul.f32 %v13905_v18, %v2703_v37  ;;  %v3766_v0 = vshrl.u32 %v3459_v5, 16  ;;  %vm3181_vm3 = vcmp.lt.s32.totalorder %v3145_v38, 32  ;;  %5220 = vrot.lane.b32.xlu2 %v4965_v32, %s10545_s7 }
 0x401   : > { %v3097_v2 = vmul.f32 %v2701_v15, %v18557_v53  ;;  %v13931_v51 = vrot.slane %v3801_v1, 7  ;;  %vm2708_vm15 = vweird.f32 %v13863_v26  ;;  %v13934_v45 = vadd.f32 1e-08, %v2237_v31  ;;  %v2073_v1 = vpop.xlane.xlu1 %2072  ;;  %v13963_v53 = vld [vmem:[#allocation2 + $0x50] sm:$0xff]   ;;  %vm13968_vm1 = vmand %vm3163_vm5, %vm3181_vm3 }
 0x402   : > { %v13929_v24 = vpop.eup %10171  ;;  %v2705_v50 = vmul.f32 0.5, %v2704_v49  ;;  %v13936_v55 = vrot.slane %v3766_v0, 7  ;;  %v3769_v56 = vshll.u32 %v3459_v5, 16  ;;  %vm2709_vm0 = vweird.f32 %v13905_v18 }
 0x403   : > { %v3279_v28 = vsel %vm13849_vm6, %v3097_v2, 0.0  ;;  %v2723_v41 = vmul.f32 %v13929_v24, %v13894_v14  ;;  %10175 = vrsqrt.f32 %v13934_v45  ;;  %v3764_v37 = vrot.slane %v13867_v58, 4  ;;  %vm2710_vm8 = vmor %vm2708_vm15, %vm2709_vm0 }
 0x404   : > { %v3464_v43 = vpack.c.bf16 %v3279_v28, %v3279_v28  ;;  %v2706_v61 = vsub.f32 1.5, %v2705_v50  ;;  %v3771_v34 = vor.u32 %v3769_v56, %v13936_v55  ;;  %v3344_v5 = vsel %vm12089_vm2, 0, %v3343_v48  ;;  %v18560_v48 = vld [vmem:[#allocation50_spill] sm:$0xff]  ;;  %v3352_v56 = vld [vmem:[#allocation2 + $0xdc] sm:$0x1] }
 0x405   : > { %v13944_v19 = vpop.eup %10173  ;;  %v2724_v52 = vmul.f32 %v13929_v24, %v2723_v41  ;;  %vm2728_vm13 = vweird.f32 %v13894_v14  ;;  %3345 = vst [vmem:[#allocation2 + $0xa0] sm:$0x1] %v3344_v5  ;;  %v3808_v31 = vrot.slane %v13931_v51, 4  ;;  %v2230_v0 = vmul.f32 %v12216_v59, %v2073_v1  ;;  %v4304_v41 = vld [vmem:[#allocation2 + $0xb0] sm:$0x1] }
 0x406   : > { %v3810_v9 = vshrl.u32 %v3464_v43, 16  ;;  %v2707_v15 = vmul.f32 %v13905_v18, %v2706_v61  ;;  %v2653_v49 = vmul.f32 %v13944_v19, %v13909_v54  ;;  %v3772_v58 = vsel %vm12477_vm12, %v3764_v37, %v3771_v34 }
 0x407   : > { %v2725_v32 = vmul.f32 0.5, %v2724_v52  ;;  %4293 = vst.msk [vmem:[#allocation2 + $0x94] sm:$0xf] %vm4223_vm14, %v3772_v58  ;;  %v3813_v50 = vshll.u32 %v3464_v43, 16  ;;  %vm2729_vm7 = vweird.f32 %v13929_v24  ;;  %v13976_v37 = vadd.f32 1e-08, %v2230_v0 }
 0x408   : > { %v3812_v2 = vrot.slane %v3810_v9, 7  ;;  %v2711_v28 = vsel %vm2710_vm8, %v13905_v18, %v2707_v15  ;;  %v2654_v26 = vmul.f32 %v13944_v19, %v2653_v49  ;;  %v4969_v5 = vshll.u32 %v13963_v53, 16  ;;  %v13984_v49 = vld [vmem:[#allocation2 + $0x58] sm:$0xff]  ;;  %vm2730_vm3 = vmor %vm2728_vm13, %vm2729_vm7 }
 0x409   : > { %v3098_v61 = vmul.f32 %v2711_v28, %v18560_v48  ;;  %v2726_v1 = vsub.f32 1.5, %v2725_v32  ;;  %v10176_v34 = vpop.eup %10175  ;;  %vm2659_vm5 = vweird.f32 %v13944_v19  ;;  %vm2658_vm15 = vweird.f32 %v13909_v54  ;;  %v4456_v54 = vld [vmem:[#allocation2 + $0x60] sm:$0x1] }
 0x40a   : > { %v3815_v43 = vor.u32 %v3813_v50, %v3812_v2  ;;  %v3817_v52 = vrot.slane %v3812_v2, 4  ;;  %v2655_v38 = vmul.f32 0.5, %v2654_v26  ;;  %v2733_v15 = vmul.f32 %v10176_v34, %v13934_v45  ;;  %v2088_v50 = vpop.xlane.xlu0 %2087  ;;  %vm2660_vm0 = vmor %vm2658_vm15, %vm2659_vm5 }
 0x40b   : > { %v3280_v9 = vsel %vm13968_vm1, %v3098_v61, 0.0  ;;  %v2727_v18 = vmul.f32 %v13929_v24, %v2726_v1  ;;  %10177 = vrsqrt.f32 %v13976_v37  ;;  %v4971_v1 = vrot.slane %v4969_v5, 1 }
 0x40c   : > { %v3816_v58 = vsel %vm12477_vm12, %v3808_v31, %v3815_v43  ;;  %v4305_v32 = vsel %vm12089_vm2, %v3817_v52, %v4304_v41  ;;  %v3465_v0 = vpack.c.bf16 %v3280_v9, %v3280_v9  ;;  %v2656_v2 = vsub.f32 1.5, %v2655_v38  ;;  %v18561_v41 = vld [vmem:[#allocation49_spill] sm:$0xff] }
 0x40d   : > { %4303 = vst.msk [vmem:[#allocation2 + $0xac] sm:$0xf] %vm4223_vm14, %v3816_v58  ;;  %v2731_v28 = vsel %vm2730_vm3, %v13929_v24, %v2727_v18  ;;  %v2734_v26 = vmul.f32 %v10176_v34, %v2733_v15  ;;  %vm2739_vm13 = vweird.f32 %v10176_v34  ;;  %v2235_v43 = vmul.f32 %v12216_v59, %v2088_v50  ;;  %v4307_v15 = vld [vmem:[#allocation2 + $0xb4] sm:$0xf] }
 0x40e   : > { %4306 = vst [vmem:[#allocation2 + $0xb0] sm:$0x1] %v4305_v32  ;;  %v3819_v31 = vshrl.u32 %v3465_v0, 16  ;;  %v3100_v48 = vmul.f32 %v2731_v28, %v18561_v41  ;;  %v2657_v61 = vmul.f32 %v13944_v19, %v2656_v2  ;;  %v4974_v24 = vshll.u32 %v13984_v49, 16 }
 0x40f   : > { %v2735_v14 = vmul.f32 0.5, %v2734_v26  ;;  %v3822_v38 = vshll.u32 %v3465_v0, 16  ;;  %v14012_v2 = vadd.f32 1e-08, %v2235_v43  ;;  %v4967_v28 = vshrl.u32 %v13963_v53, 16  ;;  %v2076_v53 = vpop.xlane.xlu2 %2075 }
 0x410   : > { %v14004_v52 = vrot.slane %v3819_v31, 7  ;;  %v3282_v9 = vsel %vm13968_vm1, %v3100_v48, 0.0  ;;  %v2661_v18 = vsel %vm2660_vm0, %v13944_v19, %v2657_v61  ;;  %v4858_v26 = vunpack.c.l.b16 %v4456_v54 }
 0x411   : > { %v14009_v5 = vpack.c.bf16 %v3282_v9, %v3282_v9  ;;  %v3093_v58 = vmul.f32 %v2661_v18, %v13034_v29  ;;  %v2736_v32 = vsub.f32 1.5, %v2735_v14  ;;  %v14016_v31 = vpop.eup %10177  ;;  %vm2738_vm8 = vweird.f32 %v13934_v45  ;;  %v18562_v45 = vld [vmem:[#allocation45_spill] sm:$0xff] }
 0x412   : > { %v3824_v50 = vor.u32 %v3822_v38, %v14004_v52  ;;  %v4976_v19 = vrot.slane %v4974_v24, 1  ;;  %vm2740_vm7 = vmor %vm2738_vm8, %vm2739_vm13  ;;  %v2663_v61 = vmul.f32 %v14016_v31, %v13976_v37  ;;  %10179 = vrsqrt.f32 %v14012_v2 }
 0x413   : > { %v3275_v0 = vsel %vm13778_vm10, %v3093_v58, 0.0  ;;  %v2737_v41 = vmul.f32 %v10176_v34, %v2736_v32  ;;  %v3836_v14 = vshrl.u32 %v14009_v5, 16  ;;  %v4972_v3 = vor.u32 %v4971_v1, %v4967_v28  ;;  %v4295_v28 = vld [vmem:[#allocation2 + $0x9c] sm:$0x1] }
 0x414   : > { %v4308_v29 = vsel %vm12433_vm9, %v3824_v50, %v4307_v15  ;;  %v3460_v48 = vpack.c.bf16 %v3275_v0, %v3275_v0  ;;  %v2664_v38 = vmul.f32 %v14016_v31, %v2663_v61  ;;  %v14030_v9 = vpack.c.b16 %v4858_v26, %v4858_v26 }
 0x415   : > { %4309 = vst [vmem:[#allocation2 + $0xb4] sm:$0xf] %v4308_v29  ;;  %v2741_v43 = vsel %vm2740_vm7, %v10176_v34, %v2737_v41  ;;  %v3773_v18 = vrot.slane %v13936_v55, 4  ;;  %v2231_v15 = vmul.f32 %v12216_v59, %v2076_v53  ;;  %vm18563_vm10 = vsmask.f32 7424 }
 0x416   : > { %v3775_v54 = vshrl.u32 %v3460_v48, 16  ;;  %v3101_v24 = vmul.f32 %v2741_v43, %v18562_v45  ;;  %v4977_v58 = vsel %vm18563_vm10, %v4972_v3, %v4976_v19  ;;  %v3778_v50 = vshll.u32 %v3460_v48, 16  ;;  %vm18565_vm0 = vmmov %vm18563_vm10 }
 0x417   : > { %v2665_v0 = vmul.f32 0.5, %v2664_v38  ;;  %5222 = vrot.lane.b32.xlu1 %v4977_v58, %s10545_s7  ;;  %v14038_v1 = vrot.slane %v3836_v14, 7  ;;  %vm2669_vm5 = vweird.f32 %v14016_v31  ;;  %v14041_v26 = vadd.f32 1e-08, %v2231_v15  ;;  %v2100_v14 = vpop.xlane.xlu1 %2099  ;;  %v14056_v15 = vld [vmem:[#allocation2 + $0x64] sm:$0xff]  }
 0x418   : > { %v3777_v32 = vrot.slane %v3775_v54, 7  ;;  %v3283_v34 = vsel %vm13968_vm1, %v3101_v24, 0.0  ;;  %v4982_v53 = vshll.u32 %v14030_v9, 16  ;;  %v14044_v48 = vpop.eup %10179  ;;  %vm2668_vm3 = vweird.f32 %v13976_v37  ;;  %18564 = vst [vmem:[#allocation69_spill] sm:$0xff] %v14056_v15  ;;  %v14058_v58 = vld [vmem:[#allocation2 + $0x64] sm:$0xf0] }
 0x419   : > { %v3468_v41 = vpack.c.bf16 %v3283_v34, %v3283_v34  ;;  %v2666_v61 = vsub.f32 1.5, %v2665_v0  ;;  %10181 = vrsqrt.f32 %v14041_v26  ;;  %v4978_v3 = vshrl.u32 %v13984_v49, 16  ;;  %vm2670_vm15 = vmor %vm2668_vm3, %vm2669_vm5 }
 0x41a   : > { %v3780_v55 = vor.u32 %v3778_v50, %v3777_v32  ;;  %v3782_v29 = vrot.slane %v3777_v32, 4  ;;  %v2713_v38 = vmul.f32 %v14044_v48, %v14012_v2  ;;  %v3843_v37 = vrot.slane %v14038_v1, 4  ;;  %v4313_v50 = vld [vmem:[#allocation2 + $0xc4] sm:$0x1] }
 0x41b   : > { %v3845_v43 = vshrl.u32 %v3468_v41, 16  ;;  %v2667_v24 = vmul.f32 %v14016_v31, %v2666_v61  ;;  %v3848_v32 = vshll.u32 %v3468_v41, 16  ;;  %vm2719_vm13 = vweird.f32 %v14044_v48 }
 0x41c   : > { %v3781_v54 = vsel %vm12477_vm12, %v3773_v18, %v3780_v55  ;;  %v4296_v45 = vsel %vm12089_vm2, %v3782_v29, %v4295_v28  ;;  %v4980_v18 = vor.u32 %v4978_v3, %v4976_v19  ;;  %v2714_v0 = vmul.f32 %v14044_v48, %v2713_v38 }
 0x41d   : > { %4294 = vst.msk [vmem:[#allocation2 + $0x98] sm:$0xf] %vm4223_vm14, %v3781_v54  ;;  %v3847_v49 = vrot.slane %v3845_v43, 7  ;;  %v2671_v34 = vsel %vm2670_vm15, %v14016_v31, %v2667_v24  ;;  %v2239_v28 = vmul.f32 %v12216_v59, %v2100_v14  ;;  %v4984_v55 = vrot.slane %v4982_v53, 1  ;;  %v3349_v54 = vld [vmem:[#allocation2 + $0xc8] sm:$0x1]  ;;  %v2097_v43 = vpop.xlane.xlu0 %2096 }
 0x41e   : > { %4297 = vst [vmem:[#allocation2 + $0x9c] sm:$0x1] %v4296_v45  ;;  %v3094_v63 = vmul.f32 %v2671_v34, %v13086_v30  ;;  %v2715_v41 = vmul.f32 0.5, %v2714_v0  ;;  %v3350_v19 = vsel %vm12089_vm2, 0, %v3349_v54  ;;  %v2238_v3 = vmul.f32 %v12216_v59, %v2097_v43  ;;  %v4298_v43 = vld [vmem:[#allocation2 + $0xa0] sm:$0xf] }
 0x41f   : > { %v3850_v29 = vor.u32 %v3848_v32, %v3847_v49  ;;  %v3852_v61 = vrot.slane %v3847_v49, 4  ;;  %v14068_v27 = vadd.f32 1e-08, %v2239_v28  ;;  %v10182_v31 = vpop.eup %10181  ;;  %3351 = vst [vmem:[#allocation2 + $0xc8] sm:$0x1] %v3350_v19  ;;  %v4985_v14 = vsel %vm18565_vm0, %v4980_v18, %v4984_v55  ;;  %v2103_v28 = vpop.xlane.xlu2 %2102 }
 0x420   : > { %v3276_v30 = vsel %vm13849_vm6, %v3094_v63, 0.0  ;;  %v2716_v38 = vsub.f32 1.5, %v2715_v41  ;;  %v2673_v49 = vmul.f32 %v10182_v31, %v14041_v26  ;;  %5224 = vrot.lane.b32.xlu0 %v4985_v14, %s10545_s7  ;;  %v14086_v32 = vadd.f32 1e-08, %v2238_v3  ;;  %v18566_v41 = vld [vmem:[#allocation34_spill] sm:$0xff] }
 0x421   : > { %v3851_v45 = vsel %vm12477_vm12, %v3843_v37, %v3850_v29  ;;  %v4314_v53 = vsel %vm12089_vm2, %v3852_v61, %v4313_v50  ;;  %v3461_v24 = vpack.c.bf16 %v3276_v30, %v3276_v30  ;;  %v3804_v37 = vshll.u32 %v13882_v20, 16 }
 0x422   : > { %4312 = vst.msk [vmem:[#allocation2 + $0xc0] sm:$0xf] %vm4223_vm14, %v3851_v45  ;;  %10183 = vrsqrt.f32 %v14068_v27  ;;  %v2717_v18 = vmul.f32 %v14044_v48, %v2716_v38  ;;  %vm2718_vm8 = vweird.f32 %v14012_v2  ;;  %v2674_v50 = vmul.f32 %v10182_v31, %v2673_v49 }
 0x423   : > { %4315 = vst [vmem:[#allocation2 + $0xc4] sm:$0x1] %v4314_v53  ;;  %v3784_v63 = vshrl.u32 %v3461_v24, 16  ;;  %v14091_v34 = vor.u32 %v3804_v37, %v13931_v51  ;;  %v3787_v0 = vshll.u32 %v3461_v24, 16  ;;  %vm2720_vm7 = vmor %vm2718_vm8, %vm2719_vm13  ;;  %10185 = vrsqrt.f32 %v14086_v32 }
 0x424   : > { %v2721_v55 = vsel %vm2720_vm7, %v14044_v48, %v2717_v18  ;;  %v2675_v29 = vmul.f32 0.5, %v2674_v50  ;;  %v2240_v61 = vmul.f32 %v12216_v59, %v2103_v28  ;;  %v3825_v54 = vrot.slane %v14004_v52, 4  ;;  %v2109_v18 = vpop.xlane.xlu1 %2108 }
 0x425   : > { %v14094_v20 = vrot.slane %v3784_v63, 7  ;;  %v3839_v2 = vshll.u32 %v14009_v5, 16  ;;  %v3099_v51 = vmul.f32 %v2721_v55, %v18566_v41  ;;  %v14102_v19 = vadd.s32 10, %v12320_v33  ;;  %v14133_v41 = vld [vmem:[#allocation2 + $0x6c] sm:$0xff] }
 0x426   : > { %v2676_v45 = vsub.f32 1.5, %v2675_v29  ;;  %vm2679_vm10 = vweird.f32 %v10182_v31  ;;  %v14105_v53 = vadd.f32 1e-08, %v2240_v61  ;;  %vm2678_vm5 = vweird.f32 %v14041_v26 }
 0x427   : > { %v3789_v3 = vor.u32 %v3787_v0, %v14094_v20  ;;  %v3841_v30 = vor.u32 %v3839_v2, %v14038_v1  ;;  %v3281_v52 = vsel %vm13968_vm1, %v3099_v51, 0.0  ;;  %v4989_v5 = vshll.u32 %v14056_v15, 16  ;;  %vm2680_vm3 = vmor %vm2678_vm5, %vm2679_vm10 }
 0x428   : > { %v14107_v48 = vpop.eup %10183  ;;  %v3466_v24 = vpack.c.bf16 %v3281_v52, %v3281_v52  ;;  %v2677_v38 = vmul.f32 %v10182_v31, %v2676_v45  ;;  %vm3164_vm15 = vcmp.ge.s32.totalorder %v14102_v19, 0  ;;  %vm3182_vm1 = vcmp.lt.s32.totalorder %v14102_v19, 32 }
 0x429   : > { %v4299_v14 = vsel %vm12433_vm9, %v3789_v3, %v4298_v43  ;;  %v2753_v49 = vmul.f32 %v14107_v48, %v14068_v27  ;;  %v14118_v37 = vpop.eup %10185  ;;  %vm2758_vm0 = vweird.f32 %v14068_v27  ;;  %10187 = vrsqrt.f32 %v14105_v53  ;;  %vm14166_vm10 = vmand %vm3164_vm15, %vm3182_vm1 }
 0x42a   : > { %4300 = vst [vmem:[#allocation2 + $0xa0] sm:$0xf] %v4299_v14  ;;  %v3827_v1 = vshrl.u32 %v3466_v24, 16  ;;  %v2681_v26 = vsel %vm2680_vm3, %v10182_v31, %v2677_v38  ;;  %v4987_v50 = vshrl.u32 %v14056_v15, 16  ;;  %v3790_v0 = vrot.slane %v14094_v20, 4 }
 0x42b   : > { %v2754_v63 = vmul.f32 %v14107_v48, %v2753_v49  ;;  %v3095_v28 = vmul.f32 %v2681_v26, %v13097_v60  ;;  %v2743_v55 = vmul.f32 %v14118_v37, %v14086_v32  ;;  %vm2748_vm13 = vweird.f32 %v14086_v32  ;;  %v4457_v14 = vld [vmem:[#allocation2 + $0x74] sm:$0x1] }
 0x42c   : > { %v4991_v29 = vrot.slane %v4989_v5, 1  ;;  %v3829_v61 = vrot.slane %v3827_v1, 7  ;;  %v3830_v2 = vshll.u32 %v3466_v24, 16  ;;  %v3353_v31 = vsel %vm12089_vm2, 0, %v3352_v56  ;;  %v18570_v32 = vld [vmem:[#allocation8_spill] sm:$0xff] }
 0x42d   : > { %v2755_v43 = vmul.f32 0.5, %v2754_v63  ;;  %v3277_v51 = vsel %vm13849_vm6, %v3095_v28, 0.0  ;;  %vm2759_vm8 = vweird.f32 %v14107_v48  ;;  %v2744_v60 = vmul.f32 %v14118_v37, %v2743_v55  ;;  %3354 = vst [vmem:[#allocation2 + $0xdc] sm:$0x1] %v3353_v31 }
 0x42e   : > { %v2242_v20 = vmul.f32 %v12216_v59, %v2109_v18  ;;  %v3832_v3 = vor.u32 %v3830_v2, %v3829_v61  ;;  %v3834_v45 = vrot.slane %v3829_v61, 4  ;;  %v3462_v52 = vpack.c.bf16 %v3277_v51, %v3277_v51  ;;  %v3405_v61 = vld [vmem:[#allocation2 + $0xd8] sm:$0x1]  ;;  %v2106_v2 = vpop.xlane.xlu0 %2105  ;;  %vm2760_vm6 = vmor %vm2758_vm0, %vm2759_vm8 }
 0x42f   : > { %v2756_v5 = vsub.f32 1.5, %v2755_v43  ;;  %v14140_v24 = vpop.eup %10187  ;;  %v2745_v38 = vmul.f32 0.5, %v2744_v60  ;;  %vm2749_vm7 = vweird.f32 %v14118_v37  ;;  %v4992_v25 = vor.u32 %v4991_v29, %v4987_v50 }
 0x430   : > { %v14143_v49 = vadd.f32 1e-08, %v2242_v20  ;;  %v3833_v56 = vsel %vm12477_vm12, %v3825_v54, %v3832_v3  ;;  %v3842_v1 = vsel %vm12477_vm12, %v3834_v45, %v3841_v30  ;;  %v3792_v26 = vshrl.u32 %v3462_v52, 16  ;;  %v18569_v45 = vld [vmem:[#allocation17_spill] sm:$0xff]  ;;  %vm2750_vm5 = vmor %vm2748_vm13, %vm2749_vm7 }
 0x431   : > { %v4994_v63 = vshll.u32 %v14133_v41, 16  ;;  %4310 = vst.msk [vmem:[#allocation2 + $0xb8] sm:$0xf] %vm4223_vm14, %v3833_v56  ;;  %v2757_v18 = vmul.f32 %v14107_v48, %v2756_v5  ;;  %v2746_v28 = vsub.f32 1.5, %v2745_v38  ;;  %v2763_v55 = vmul.f32 %v14140_v24, %v14105_v53 }
 0x432   : > { %v4859_v50 = vunpack.c.l.b16 %v4457_v14  ;;  %4311 = vst.msk [vmem:[#allocation2 + $0xbc] sm:$0xf] %vm4223_vm14, %v3842_v1  ;;  %v3794_v54 = vrot.slane %v3792_v26, 7  ;;  %v3795_v29 = vshll.u32 %v3462_v52, 16  ;;  %10189 = vrsqrt.f32 %v14143_v49 }
 0x433   : > { %v3406_v30 = vsel %vm12347_vm11, 0, %v3405_v61  ;;  %v2761_v31 = vsel %vm2760_vm6, %v14107_v48, %v2757_v18  ;;  %v2747_v51 = vmul.f32 %v14118_v37, %v2746_v28  ;;  %v2764_v27 = vmul.f32 %v14140_v24, %v2763_v55 }
 0x434   : > { %3407 = vst [vmem:[#allocation2 + $0xd8] sm:$0x1] %v3406_v30  ;;  %v2241_v60 = vmul.f32 %v12216_v59, %v2106_v2  ;;  %v3797_v20 = vor.u32 %v3795_v29, %v3794_v54  ;;  %v3799_v3 = vrot.slane %v3794_v54, 4  ;;  %v3103_v52 = vmul.f32 %v2761_v31, %v18569_v45  ;;  %v2112_v29 = vpop.xlane.xlu2 %2111 }
 0x435   : > { %v4996_v19 = vrot.slane %v4994_v63, 1  ;;  %v2751_v5 = vsel %vm2750_vm5, %v14118_v37, %v2747_v51  ;;  %v2765_v48 = vmul.f32 0.5, %v2764_v27  ;;  %v14182_v38 = vpack.c.b16 %v4859_v50, %v4859_v50 }
 0x436   : > { %v14180_v14 = vadd.f32 1e-08, %v2241_v60  ;;  %v3798_v56 = vsel %vm12477_vm12, %v3790_v0, %v3797_v20  ;;  %v3807_v1 = vsel %vm12477_vm12, %v3799_v3, %v14091_v34  ;;  %v3285_v26 = vsel %vm14166_vm10, %v3103_v52, 0.0  ;;  %v18572_v3 = vld [vmem:[#allocation11_spill] sm:$0xff] }
 0x437   : > { %v3102_v18 = vmul.f32 %v2751_v5, %v18570_v32  ;;  %4301 = vst.msk [vmem:[#allocation2 + $0xa4] sm:$0xf] %vm4223_vm14, %v3798_v56  ;;  %v3470_v37 = vpack.c.bf16 %v3285_v26, %v3285_v26  ;;  %v2766_v63 = vsub.f32 1.5, %v2765_v48  ;;  %vm2769_vm3 = vweird.f32 %v14140_v24 }
 0x438   : > { %10191 = vrsqrt.f32 %v14180_v14  ;;  %v14195_v28 = vpop.eup %10189  ;;  %4302 = vst.msk [vmem:[#allocation2 + $0xa8] sm:$0xf] %vm4223_vm14, %v3807_v1  ;;  %vm18571_vm15 = vsmask.f32 7424  ;;  %v4998_v55 = vshrl.u32 %v14133_v41, 16  ;;  %v5002_v61 = vshll.u32 %v14182_v38, 16 }
 0x439   : > { %v3284_v34 = vsel %vm14166_vm10, %v3102_v18, 0.0  ;;  %v4997_v0 = vsel %vm18571_vm15, %v4992_v25, %v4996_v19  ;;  %v3862_v2 = vshrl.u32 %v3470_v37, 16  ;;  %v2767_v54 = vmul.f32 %v14140_v24, %v2766_v63  ;;  %vm18573_vm13 = vmmov %vm18571_vm15 }
 0x43a   : > { %v3469_v50 = vpack.c.bf16 %v3284_v34, %v3284_v34  ;;  %vm2768_vm1 = vweird.f32 %v14105_v53  ;;  %5226 = vrot.lane.b32.xlu2 %v4997_v0, %s10545_s7  ;;  %v3147_v30 = vadd.s32 11, %v12320_v33  ;;  %v2783_v31 = vmul.f32 %v14195_v28, %v14143_v49 }
 0x43b   : > { %vm2770_vm0 = vmor %vm2768_vm1, %vm2769_vm3  ;;  %v5000_v25 = vor.u32 %v4998_v55, %v4996_v19  ;;  %v5004_v51 = vrot.slane %v5002_v61, 1  ;;  %v3864_v41 = vrot.slane %v3862_v2, 7  ;;  %v3865_v27 = vshll.u32 %v3470_v37, 16  ;;  %v4316_v19 = vld [vmem:[#allocation2 + $0xc8] sm:$0xf]  ;;  %v9942_v55 = vld [vmem:[#allocation2 + $0x78] sm:$0xff]  }
 0x43c   : > { %v3854_v60 = vshrl.u32 %v3469_v50, 16  ;;  %v2771_v20 = vsel %vm2770_vm0, %v14140_v24, %v2767_v54  ;;  %v2784_v53 = vmul.f32 %v14195_v28, %v2783_v31  ;;  %v2243_v5 = vmul.f32 %v12216_v59, %v2112_v29  ;;  %v2118_v54 = vpop.xlane.xlu1 %2117 }
 0x43d   : > { %v3104_v45 = vmul.f32 %v2771_v20, %v18572_v3  ;;  %v5005_v52 = vsel %vm18573_vm13, %v5000_v25, %v5004_v51  ;;  %v3867_v56 = vor.u32 %v3865_v27, %v3864_v41  ;;  %v3857_v26 = vshll.u32 %v3469_v50, 16  ;;  %v3408_v50 = vld [vmem:[#allocation2 + $0xec] sm:$0x1] }
 0x43e   : > { %v14214_v48 = vpop.eup %10191  ;;  %v3856_v1 = vrot.slane %v3854_v60, 7  ;;  %5228 = vrot.lane.b32.xlu1 %v5005_v52, %s10545_s7  ;;  %vm3165_vm8 = vcmp.ge.s32.totalorder %v3147_v30, 0  ;;  %v2785_v24 = vmul.f32 0.5, %v2784_v53  ;;  %v14221_v0 = vadd.f32 1e-08, %v2243_v5 }
 0x43f   : > { %v3286_v32 = vsel %vm14166_vm10, %v3104_v45, 0.0  ;;  %v2773_v18 = vmul.f32 %v14214_v48, %v14180_v14  ;;  %vm3183_vm7 = vcmp.lt.s32.totalorder %v3147_v30, 32  ;;  %vm2789_vm6 = vweird.f32 %v14195_v28  ;;  %v2115_v30 = vpop.xlane.xlu0 %2114 }
 0x440   : > { %v3859_v37 = vor.u32 %v3857_v26, %v3856_v1  ;;  %v3860_v63 = vrot.slane %v3856_v1, 4  ;;  %v3471_v34 = vpack.c.bf16 %v3286_v32, %v3286_v32  ;;  %v2786_v61 = vsub.f32 1.5, %v2785_v24  ;;  %vm14242_vm15 = vmand %vm3165_vm8, %vm3183_vm7  ;;  %v18576_v26 = vld [vmem:[#allocation44_spill] sm:$0xff] }
 0x441   : > { %v2774_v2 = vmul.f32 %v14214_v48, %v2773_v18  ;;  %vm2788_vm5 = vweird.f32 %v14143_v49  ;;  %10193 = vrsqrt.f32 %v14221_v0  ;;  %v5009_v60 = vshll.u32 %v9942_v55, 16 }
 0x442   : > { %v3868_v29 = vsel %vm12477_vm12, %v3860_v63, %v3867_v56  ;;  %v4317_v31 = vsel %vm12433_vm9, %v3859_v37, %v4316_v19  ;;  %v3871_v25 = vshrl.u32 %v3471_v34, 16  ;;  %v2787_v51 = vmul.f32 %v14195_v28, %v2786_v61  ;;  %vm2790_vm3 = vmor %vm2788_vm5, %vm2789_vm6 }
 0x443   : > { %4318 = vst [vmem:[#allocation2 + $0xc8] sm:$0xf] %v4317_v31  ;;  %v2775_v27 = vmul.f32 0.5, %v2774_v2  ;;  %v3874_v3 = vshll.u32 %v3471_v34, 16  ;;  %v3409_v45 = vsel %vm12347_vm11, 0, %v3408_v50  ;;  %v2245_v49 = vmul.f32 %v12216_v59, %v2118_v54 }
 0x444   : > { %4319 = vst.msk [vmem:[#allocation2 + $0xcc] sm:$0xf] %vm4223_vm14, %v3868_v29  ;;  %v14233_v20 = vrot.slane %v3871_v25, 7  ;;  %v2791_v52 = vsel %vm2790_vm3, %v14195_v28, %v2787_v51  ;;  %vm2779_vm1 = vweird.f32 %v14214_v48  ;;  %v3869_v56 = vrot.slane %v3864_v41, 4  ;;  %v9798_v41 = vld [vmem:[#allocation2 + $0x80] sm:$0xff]  ;;  %v18577_v29 = vld [vmem:[#allocation7_spill] sm:$0xff] }
 0x445   : > { %v2776_v5 = vsub.f32 1.5, %v2775_v27  ;;  %3410 = vst [vmem:[#allocation2 + $0xec] sm:$0x1] %v3409_v45  ;;  %v3106_v19 = vmul.f32 %v2791_v52, %v18576_v26  ;;  %v14250_v32 = vadd.f32 1e-08, %v2245_v49  ;;  %vm2778_vm0 = vweird.f32 %v14180_v14 }
 0x446   : > { %v3876_v1 = vor.u32 %v3874_v3, %v14233_v20  ;;  %v5011_v18 = vrot.slane %v5009_v60, 1  ;;  %vm2780_vm13 = vmor %vm2778_vm0, %vm2779_vm1  ;;  %v5007_v63 = vshrl.u32 %v9942_v55, 16  ;;  %v4458_v34 = vld [vmem:[#allocation2 + $0x88] sm:$0x1]  ;;  %v2244_v50 = vmul.f32 %v12216_v59, %v2115_v30 }
 0x447   : > { %v2777_v24 = vmul.f32 %v14214_v48, %v2776_v5  ;;  %v3288_v37 = vsel %vm14242_vm15, %v3106_v19, 0.0  ;;  %10195 = vrsqrt.f32 %v14250_v32  ;;  %v10194_v61 = vpop.eup %10193  ;;  %v4860_v54 = vunpack.c.l.b16 %v4458_v34  ;;  %v4325_v19 = vld [vmem:[#allocation2 + $0xdc] sm:$0xf] }
 0x448   : > { %v3877_v28 = vsel %vm12477_vm12, %v3869_v56, %v3876_v1  ;;  %v3473_v2 = vpack.c.bf16 %v3288_v37, %v3288_v37  ;;  %v2793_v25 = vmul.f32 %v10194_v61, %v14221_v0  ;;  %v5014_v51 = vshll.u32 %v9798_v41, 16  ;;  %v2127_v37 = vpop.xlane.xlu1 %2126 }
 0x449   : > { %4320 = vst.msk [vmem:[#allocation2 + $0xd0] sm:$0xf] %vm4223_vm14, %v3877_v28  ;;  %v2781_v14 = vsel %vm2780_vm13, %v14214_v48, %v2777_v24  ;;  %v14264_v60 = vadd.f32 1e-08, %v2244_v50  ;;  %v5012_v3 = vor.u32 %v5011_v18, %v5007_v63  ;;  %v14266_v55 = vpack.c.b16 %v4860_v54, %v4860_v54 }
 0x44a   : > { %v3105_v31 = vmul.f32 %v2781_v14, %v18577_v29  ;;  %v3889_v27 = vshrl.u32 %v3473_v2, 16  ;;  %v2794_v49 = vmul.f32 %v10194_v61, %v2793_v25  ;;  %v5016_v52 = vrot.slane %v5014_v51, 1  ;;  %v4322_v25 = vld [vmem:[#allocation2 + $0xd8] sm:$0x1] }
 0x44b   : > { %v5018_v48 = vshrl.u32 %v9798_v41, 16  ;;  %v3892_v56 = vshll.u32 %v3473_v2, 16  ;;  %10197 = vrsqrt.f32 %v14264_v60  ;;  %vm18578_vm8 = vsmask.f32 7424 }
 0x44c   : > { %v3287_v45 = vsel %vm14166_vm10, %v3105_v31, 0.0  ;;  %v14270_v5 = vrot.slane %v3889_v27, 7  ;;  %v2795_v24 = vmul.f32 0.5, %v2794_v49  ;;  %v5017_v30 = vsel %vm18578_vm8, %v5012_v3, %v5016_v52  ;;  %vm18579_vm6 = vmmov %vm18578_vm8 }
 0x44d   : > { %v3472_v1 = vpack.c.bf16 %v3287_v45, %v3287_v45  ;;  %v10196_v26 = vpop.eup %10195  ;;  %v5020_v18 = vor.u32 %v5018_v48, %v5016_v52  ;;  %v5022_v28 = vshll.u32 %v14266_v55, 16  ;;  %v3878_v43 = vrot.slane %v14233_v20, 4  ;;  %5230 = vrot.lane.b32.xlu0 %v5017_v30, %s10545_s7  ;;  %v3355_v52 = vld [vmem:[#allocation2 + $0xf0] sm:$0x1]  ;;  %v2121_v48 = vpop.xlane.xlu2 %2120  ;;  %v18580_v30 = vld [vmem:[#allocation21_spill] sm:$0xff] }
 0x44e   : > { %v3894_v63 = vor.u32 %v3892_v56, %v14270_v5  ;;  %v2796_v34 = vsub.f32 1.5, %v2795_v24  ;;  %vm2799_vm10 = vweird.f32 %v10194_v61  ;;  %v2813_v2 = vmul.f32 %v10196_v26, %v14250_v32 }
 0x44f   : > { %v3880_v41 = vshrl.u32 %v3472_v1, 16  ;;  %v5024_v14 = vrot.slane %v5022_v28, 1  ;;  %v3883_v29 = vshll.u32 %v3472_v1, 16  ;;  %v2248_v31 = vmul.f32 %v12216_v59, %v2127_v37 }
 0x450   : > { %v4326_v50 = vsel %vm12433_vm9, %v3894_v63, %v4325_v19  ;;  %v2797_v20 = vmul.f32 %v10194_v61, %v2796_v34  ;;  %vm2798_vm7 = vweird.f32 %v14221_v0  ;;  %v2814_v51 = vmul.f32 %v10196_v26, %v2813_v2 }
 0x451   : > { %v3882_v54 = vrot.slane %v3880_v41, 7  ;;  %4327 = vst [vmem:[#allocation2 + $0xdc] sm:$0xf] %v4326_v50  ;;  %v5025_v27 = vsel %vm18579_vm6, %v5020_v18, %v5024_v14  ;;  %v10198_v3 = vpop.eup %10197  ;;  %vm2800_vm5 = vmor %vm2798_vm7, %vm2799_vm10  ;;  %vm2819_vm3 = vweird.f32 %v10196_v26  ;;  %v14292_v28 = vadd.f32 1e-08, %v2248_v31 }
 0x452   : > { %5232 = vrot.lane.b32.xlu2 %v5025_v27, %s10545_s7  ;;  %v2801_v56 = vsel %vm2800_vm5, %v10194_v61, %v2797_v20  ;;  %v2815_v1 = vmul.f32 0.5, %v2814_v51  ;;  %v2803_v19 = vmul.f32 %v10198_v3, %v14264_v60  ;;  %v3356_v61 = vsel %vm12089_vm2, 0, %v3355_v52  ;;  %v18581_v20 = vld [vmem:[#allocation19_spill] sm:$0xff] }
 0x453   : > { %v3885_v45 = vor.u32 %v3883_v29, %v3882_v54  ;;  %v3887_v49 = vrot.slane %v3882_v54, 4  ;;  %v3107_v18 = vmul.f32 %v2801_v56, %v18580_v30  ;;  %v2246_v41 = vmul.f32 %v12216_v59, %v2121_v48  ;;  %3357 = vst [vmem:[#allocation2 + $0xf0] sm:$0x1] %v3356_v61  ;;  %v18582_v30 = vld [vmem:[#allocation83_spill] sm:$0xff] }
 0x454   : > { %v2816_v37 = vsub.f32 1.5, %v2815_v1  ;;  %v2804_v63 = vmul.f32 %v10198_v3, %v2803_v19  ;;  %vm2818_vm1 = vweird.f32 %v14250_v32  ;;  %10199 = vrsqrt.f32 %v14292_v28 }
 0x455   : > { %v3886_v0 = vsel %vm12477_vm12, %v3878_v43, %v3885_v45  ;;  %v4323_v24 = vsel %vm12089_vm2, %v3887_v49, %v4322_v25  ;;  %v3289_v43 = vsel %vm14242_vm15, %v3107_v18, 0.0  ;;  %v14302_v50 = vadd.f32 1e-08, %v2246_v41  ;;  %vm2820_vm0 = vmor %vm2818_vm1, %vm2819_vm3  ;;  %v2124_v25 = vpop.xlane.xlu0 %2123 }
 0x456   : > { %4321 = vst.msk [vmem:[#allocation2 + $0xd4] sm:$0xf] %vm4223_vm14, %v3886_v0  ;;  %v3474_v34 = vpack.c.bf16 %v3289_v43, %v3289_v43  ;;  %v2817_v2 = vmul.f32 %v10196_v26, %v2816_v37  ;;  %v2805_v14 = vmul.f32 0.5, %v2804_v63  ;;  %vm2809_vm13 = vweird.f32 %v10198_v3  ;;  %v2136_v37 = vpop.xlane.xlu1 %2135 }
 0x457   : > { %4324 = vst [vmem:[#allocation2 + $0xd8] sm:$0x1] %v4323_v24  ;;  %10201 = vrsqrt.f32 %v14302_v50  ;;  %v2247_v32 = vmul.f32 %v12216_v59, %v2124_v25  ;;  %vm2808_vm8 = vweird.f32 %v14264_v60  ;;  %v3148_v48 = vadd.s32 12, %v12320_v33 }
 0x458   : > { %v3897_v54 = vshrl.u32 %v3474_v34, 16  ;;  %v2821_v29 = vsel %vm2820_vm0, %v10196_v26, %v2817_v2  ;;  %v2806_v31 = vsub.f32 1.5, %v2805_v14  ;;  %v3900_v45 = vshll.u32 %v3474_v34, 16  ;;  %vm2810_vm10 = vmor %vm2808_vm8, %vm2809_vm13 }
 0x459   : > { %v3109_v51 = vmul.f32 %v2821_v29, %v18581_v20  ;;  %v14316_v56 = vadd.f32 1e-08, %v2247_v32  ;;  %v3895_v1 = vrot.slane %v14270_v5, 4  ;;  %vm3166_vm7 = vcmp.ge.s32.totalorder %v3148_v48, 0  ;;  %v3411_v32 = vld [vmem:[#allocation2 + $0x100] sm:$0x1] }
 0x45a   : > { %v14308_v27 = vrot.slane %v3897_v54, 7  ;;  %v2807_v49 = vmul.f32 %v10198_v3, %v2806_v31  ;;  %v14311_v52 = vpop.eup %10199  ;;  %v2251_v43 = vmul.f32 %v12216_v59, %v2136_v37  ;;  %vm3184_vm6 = vcmp.lt.s32.totalorder %v3148_v48, 32  ;;  %v4331_v54 = vld [vmem:[#allocation2 + $0xec] sm:$0x1] }
 0x45b   : > { %v3291_v26 = vsel %vm14242_vm15, %v3109_v51, 0.0  ;;  %v2843_v60 = vmul.f32 %v14311_v52, %v14292_v28  ;;  %10203 = vrsqrt.f32 %v14316_v56  ;;  %vm2848_vm5 = vweird.f32 %v14292_v28  ;;  %vm14359_vm1 = vmand %vm3166_vm7, %vm3184_vm6 }
 0x45c   : > { %v3902_v19 = vor.u32 %v3900_v45, %v14308_v27  ;;  %v3476_v0 = vpack.c.bf16 %v3291_v26, %v3291_v26  ;;  %v2811_v24 = vsel %vm2810_vm10, %v10198_v3, %v2807_v49  ;;  %v14336_v25 = vadd.f32 1e-08, %v2251_v43  ;;  %v2130_v45 = vpop.xlane.xlu2 %2129 }
 0x45d   : > { %v3108_v18 = vmul.f32 %v2811_v24, %v18582_v30  ;;  %v14326_v41 = vpop.eup %10201  ;;  %v2844_v3 = vmul.f32 %v14311_v52, %v2843_v60  ;;  %v3904_v53 = vrot.slane %v14308_v27, 4  ;;  %v3412_v37 = vsel %vm12347_vm11, 0, %v3411_v32  ;;  %v2133_v32 = vpop.xlane.xlu0 %2132 }
 0x45e   : > { %v3903_v63 = vsel %vm12477_vm12, %v3895_v1, %v3902_v19  ;;  %v3915_v61 = vshrl.u32 %v3476_v0, 16  ;;  %v2823_v14 = vmul.f32 %v14326_v41, %v14302_v50  ;;  %v3918_v29 = vshll.u32 %v3476_v0, 16  ;;  %3413 = vst [vmem:[#allocation2 + $0x100] sm:$0x1] %v3412_v37  ;;  %v14397_v37 = vld [vmem:[#allocation2 + $0x9c] sm:$0x1] }
 0x45f   : > { %4328 = vst.msk [vmem:[#allocation2 + $0xe0] sm:$0xf] %vm4223_vm14, %v3903_v63  ;;  %v3290_v5 = vsel %vm14242_vm15, %v3108_v18, 0.0  ;;  %v2845_v31 = vmul.f32 0.5, %v2844_v3  ;;  %vm2849_vm15 = vweird.f32 %v14311_v52  ;;  %10205 = vrsqrt.f32 %v14336_v25 }
 0x460   : > { %v3917_v34 = vrot.slane %v3915_v61, 7  ;;  %v3475_v2 = vpack.c.bf16 %v3290_v5, %v3290_v5  ;;  %v2824_v19 = vmul.f32 %v14326_v41, %v2823_v14  ;;  %v2249_v63 = vmul.f32 %v12216_v59, %v2130_v45  ;;  %vm2850_vm3 = vmor %vm2848_vm5, %vm2849_vm15 }
 0x461   : > { %v14340_v49 = vpop.eup %10203  ;;  %v2846_v1 = vsub.f32 1.5, %v2845_v31  ;;  %vm2829_vm0 = vweird.f32 %v14326_v41  ;;  %vm2828_vm13 = vweird.f32 %v14302_v50  ;;  %vm2838_vm7 = vweird.f32 %v14316_v56 }
 0x462   : > { %v3922_v20 = vrot.slane %v3917_v34, 4  ;;  %v3906_v51 = vshrl.u32 %v3475_v2, 16  ;;  %v3920_v26 = vor.u32 %v3918_v29, %v3917_v34  ;;  %v3909_v30 = vshll.u32 %v3475_v2, 16  ;;  %v18585_v29 = vld [vmem:[#allocation82_spill] sm:$0xff]  ;;  %vm2830_vm8 = vmor %vm2828_vm13, %vm2829_vm0 }
 0x463   : > { %v2833_v27 = vmul.f32 %v14340_v49, %v14316_v56  ;;  %v2847_v18 = vmul.f32 %v14311_v52, %v2846_v1  ;;  %v2825_v60 = vmul.f32 0.5, %v2824_v19  ;;  %v14365_v14 = vadd.f32 1e-08, %v2249_v63 }
 0x464   : > { %v4332_v0 = vsel %vm12089_vm2, %v3922_v20, %v4331_v54  ;;  %v3908_v24 = vrot.slane %v3906_v51, 7  ;;  %v14378_v51 = vadd.s32 13, %v12320_v33  ;;  %vm2839_vm10 = vweird.f32 %v14340_v49 }
 0x465   : > { %4333 = vst [vmem:[#allocation2 + $0xec] sm:$0x1] %v4332_v0  ;;  %v2834_v3 = vmul.f32 %v14340_v49, %v2833_v27  ;;  %v2851_v34 = vsel %vm2850_vm3, %v14311_v52, %v2847_v18  ;;  %v2826_v2 = vsub.f32 1.5, %v2825_v60  ;;  %v14372_v20 = vpop.eup %10205  ;;  %10207 = vrsqrt.f32 %v14365_v14  ;;  %vm2840_vm6 = vmor %vm2838_vm7, %vm2839_vm10 }
 0x466   : > { %v3911_v61 = vor.u32 %v3909_v30, %v3908_v24  ;;  %v3913_v5 = vrot.slane %v3908_v24, 4  ;;  %v3112_v31 = vmul.f32 %v2851_v34, %v18585_v29  ;;  %v2873_v50 = vmul.f32 %v14372_v20, %v14336_v25  ;;  %v18586_v30 = vld [vmem:[#allocation67_spill] sm:$0xff] }
 0x467   : > { %v2835_v48 = vmul.f32 0.5, %v2834_v3  ;;  %v2827_v52 = vmul.f32 %v14326_v41, %v2826_v2  ;;  %v2250_v24 = vmul.f32 %v12216_v59, %v2133_v32  ;;  %vm3167_vm5 = vcmp.ge.s32.totalorder %v14378_v51, 0 }
 0x468   : > { %v3912_v28 = vsel %vm12477_vm12, %v3904_v53, %v3911_v61  ;;  %v3921_v54 = vsel %vm12477_vm12, %v3913_v5, %v3920_v26  ;;  %v3358_v53 = vld [vmem:[#allocation2 + $0x104] sm:$0x1]  ;;  %v3294_v45 = vsel %vm14359_vm1, %v3112_v31, 0.0  ;;  %v2874_v60 = vmul.f32 %v14372_v20, %v2873_v50  ;;  %v14403_v61 = vld [vmem:[#allocation2 + $0x94] sm:$0xff] }
 0x469   : > { %4329 = vst.msk [vmem:[#allocation2 + $0xe4] sm:$0xf] %vm4223_vm14, %v3912_v28  ;;  %v2836_v26 = vsub.f32 1.5, %v2835_v48  ;;  %v3479_v1 = vpack.c.bf16 %v3294_v45, %v3294_v45  ;;  %v2831_v19 = vsel %vm2830_vm8, %v14326_v41, %v2827_v52  ;;  %v3359_v0 = vsel %vm12089_vm2, 0, %v3358_v53  ;;  %v18587_v28 = vld [vmem:[#allocation75_spill] sm:$0xff] }
 0x46a   : > { %4330 = vst.msk [vmem:[#allocation2 + $0xe8] sm:$0xf] %vm4223_vm14, %v3921_v54  ;;  %v3110_v27 = vmul.f32 %v2831_v19, %v18586_v30  ;;  %vm3185_vm15 = vcmp.lt.s32.totalorder %v14378_v51, 32  ;;  %v14401_v41 = vadd.f32 1e-08, %v2250_v24  ;;  %v2875_v3 = vmul.f32 0.5, %v2874_v60 }
 0x46b   : > { %v2837_v18 = vmul.f32 %v14340_v49, %v2836_v26  ;;  %3360 = vst [vmem:[#allocation2 + $0x104] sm:$0x1] %v3359_v0  ;;  %v3941_v63 = vshrl.u32 %v3479_v1, 16  ;;  %vm2878_vm3 = vweird.f32 %v14336_v25  ;;  %v14409_v34 = vpop.eup %10207  ;;  %vm2879_vm0 = vweird.f32 %v14372_v20  ;;  %v3361_v52 = vld [vmem:[#allocation2 + $0x118] sm:$0x1]  ;;  %v2145_v26 = vpop.xlane.xlu1 %2144  ;;  %vm14451_vm7 = vmand %vm3167_vm5, %vm3185_vm15 }
 0x46c   : > { %v3292_v5 = vsel %vm14359_vm1, %v3110_v27, 0.0  ;;  %10209 = vrsqrt.f32 %v14401_v41  ;;  %v2876_v48 = vsub.f32 1.5, %v2875_v3  ;;  %vm2858_vm13 = vweird.f32 %v14365_v14  ;;  %vm14433_vm10 = vmor %vm2878_vm3, %vm2879_vm0 }
 0x46d   : > { %v2841_v56 = vsel %vm2840_vm6, %v14340_v49, %v2837_v18  ;;  %v3477_v2 = vpack.c.bf16 %v3292_v5, %v3292_v5  ;;  %v14414_v31 = vrot.slane %v3941_v63, 7  ;;  %v2853_v49 = vmul.f32 %v14409_v34, %v14365_v14  ;;  %v4334_v5 = vld [vmem:[#allocation2 + $0xf0] sm:$0xf] }
 0x46e   : > { %v3111_v54 = vmul.f32 %v2841_v56, %v18587_v28  ;;  %v3944_v53 = vshll.u32 %v3479_v1, 16  ;;  %v14421_v45 = vadd.s32 14, %v12320_v33  ;;  %v2877_v0 = vmul.f32 %v14372_v20, %v2876_v48  ;;  %v2139_v28 = vpop.xlane.xlu2 %2138  ;;  %v4461_v1 = vld [vmem:[#allocation2 + $0xc4] sm:$0x1] }
 0x46f   : > { %v3924_v32 = vshrl.u32 %v3477_v2, 16  ;;  %v2854_v24 = vmul.f32 %v14409_v34, %v2853_v49  ;;  %vm2859_vm8 = vweird.f32 %v14409_v34  ;;  %v3927_v27 = vshll.u32 %v3477_v2, 16 }
 0x470   : > { %v3293_v19 = vsel %vm14359_vm1, %v3111_v54, 0.0  ;;  %v3362_v60 = vsel %vm12089_vm2, 0, %v3361_v52  ;;  %v3946_v63 = vor.u32 %v3944_v53, %v14414_v31  ;;  %v2881_v56 = vsel %vm14433_vm10, %v14372_v20, %v2877_v0  ;;  %v2142_v20 = vpop.xlane.xlu0 %2141  ;;  %vm2860_vm6 = vmor %vm2858_vm13, %vm2859_vm8 }
 0x471   : > { %v3926_v30 = vrot.slane %v3924_v32, 7  ;;  %v3478_v18 = vpack.c.bf16 %v3293_v19, %v3293_v19  ;;  %v2855_v3 = vmul.f32 0.5, %v2854_v24  ;;  %3363 = vst [vmem:[#allocation2 + $0x118] sm:$0x1] %v3362_v60  ;;  %v2254_v2 = vmul.f32 %v12216_v59, %v2145_v26 }
 0x472   : > { %v14444_v25 = vpop.eup %10209  ;;  %v3115_v26 = vmul.f32 %v2881_v56, %v13075_v57  ;;  %v2252_v51 = vmul.f32 %v12216_v59, %v2139_v28  ;;  %v2253_v56 = vmul.f32 %v12216_v59, %v2142_v20  ;;  %vm2868_vm15 = vweird.f32 %v14401_v41 }
 0x473   : > { %v3929_v48 = vor.u32 %v3927_v27, %v3926_v30  ;;  %v3930_v49 = vrot.slane %v3926_v30, 4  ;;  %v3932_v32 = vshrl.u32 %v3478_v18, 16  ;;  %v3935_v53 = vshll.u32 %v3478_v18, 16 }
 0x474   : > { %v2856_v19 = vsub.f32 1.5, %v2855_v3  ;;  %v2863_v0 = vmul.f32 %v14444_v25, %v14401_v41  ;;  %v14460_v27 = vadd.f32 1e-08, %v2254_v2  ;;  %v3297_v60 = vsel %vm14451_vm7, %v3115_v26, 0.0  ;;  %v14504_v41 = vld [vmem:[#allocation2 + $0xb4] sm:$0xff]  }
 0x475   : > { %v4335_v24 = vsel %vm12433_vm9, %v3929_v48, %v4334_v5  ;;  %v3934_v30 = vrot.slane %v3932_v32, 7  ;;  %v3482_v29 = vpack.c.bf16 %v3297_v60, %v3297_v60  ;;  %v14474_v28 = vadd.f32 1e-08, %v2252_v51  ;;  %v3414_v48 = vld [vmem:[#allocation2 + $0x114] sm:$0x1]  ;;  %v9801_v32 = vld [vmem:[#allocation2 + $0xbc] sm:$0xff] }
 0x476   : > { %4336 = vst [vmem:[#allocation2 + $0xf0] sm:$0xf] %v4335_v24  ;;  %v2857_v18 = vmul.f32 %v14409_v34, %v2856_v19  ;;  %v2864_v57 = vmul.f32 %v14444_v25, %v2863_v0  ;;  %10211 = vrsqrt.f32 %v14460_v27  ;;  %v4863_v26 = vunpack.c.l.b16 %v4461_v1  ;;  %v14506_v60 = vld [vmem:[#allocation2 + $0xb4] sm:$0xf0]  ;;  %v2148_v54 = vpop.xlane.xlu2 %2147 }
 0x477   : > { %v3937_v3 = vor.u32 %v3935_v53, %v3934_v30  ;;  %v3939_v50 = vrot.slane %v3934_v30, 4  ;;  %v3967_v19 = vshrl.u32 %v3482_v29, 16  ;;  %vm2869_vm5 = vweird.f32 %v14444_v25  ;;  %18592 = vst [vmem:[#allocation47_spill] sm:$0xff] %v14504_v41 }
 0x478   : > { %v2861_v5 = vsel %vm2860_vm6, %v14409_v34, %v2857_v18  ;;  %v2865_v2 = vmul.f32 0.5, %v2864_v57  ;;  %v3970_v14 = vshll.u32 %v3482_v29, 16  ;;  %10213 = vrsqrt.f32 %v14474_v28  ;;  %vm2870_vm3 = vmor %vm2868_vm15, %vm2869_vm5 }
 0x479   : > { %v3938_v20 = vsel %vm12477_vm12, %v3930_v49, %v3937_v3  ;;  %v3947_v53 = vsel %vm12477_vm12, %v3939_v50, %v3946_v63  ;;  %v3113_v34 = vmul.f32 %v2861_v5, %v13007_v46  ;;  %v14485_v24 = vrot.slane %v3967_v19, 7 }
 0x47a   : > { %4337 = vst.msk [vmem:[#allocation2 + $0xf4] sm:$0xf] %vm4223_vm14, %v3938_v20  ;;  %v2866_v0 = vsub.f32 1.5, %v2865_v2  ;;  %v3415_v50 = vsel %vm12347_vm11, 0, %v3414_v48  ;;  %v14490_v63 = vadd.f32 1e-08, %v2253_v56  ;;  %v14495_v46 = vpack.c.b16 %v4863_v26, %v4863_v26 }
 0x47b   : > { %4338 = vst.msk [vmem:[#allocation2 + $0xf8] sm:$0xf] %vm4223_vm14, %v3947_v53  ;;  %v3295_v49 = vsel %vm14359_vm1, %v3113_v34, 0.0  ;;  %v5074_v30 = vshll.u32 %v9801_v32, 16  ;;  %vm3168_vm0 = vcmp.ge.s32.totalorder %v14421_v45, 0  ;;  %vm3186_vm13 = vcmp.lt.s32.totalorder %v14421_v45, 32 }
 0x47c   : > { %v2867_v29 = vmul.f32 %v14444_v25, %v2866_v0  ;;  %3416 = vst [vmem:[#allocation2 + $0x114] sm:$0x1] %v3415_v50  ;;  %v14497_v51 = vpop.eup %10211  ;;  %v3480_v1 = vpack.c.bf16 %v3295_v49, %v3295_v49  ;;  %10215 = vrsqrt.f32 %v14490_v63  ;;  %v5078_v43 = vshrl.u32 %v9801_v32, 16 }
 0x47d   : > { %v3972_v18 = vor.u32 %v3970_v14, %v14485_v24  ;;  %v2903_v56 = vmul.f32 %v14497_v51, %v14460_v27  ;;  %vm2908_vm1 = vweird.f32 %v14460_v27  ;;  %vm2909_vm8 = vweird.f32 %v14497_v51 }
 0x47e   : > { %v2871_v57 = vsel %vm2870_vm3, %v14444_v25, %v2867_v29  ;;  %v3950_v3 = vshrl.u32 %v3480_v1, 16  ;;  %v3953_v5 = vshll.u32 %v3480_v1, 16  ;;  %v14515_v48 = vrot.slane %v5074_v30, 1  ;;  %v14517_v32 = vpop.eup %10213  ;;  %vm2910_vm3 = vmor %vm2908_vm1, %vm2909_vm8 }
 0x47f   : > { %v3114_v2 = vmul.f32 %v2871_v57, %v13062_v22  ;;  %v2904_v26 = vmul.f32 %v14497_v51, %v2903_v56  ;;  %v5082_v20 = vshll.u32 %v14495_v46, 16  ;;  %v2883_v19 = vmul.f32 %v14517_v32, %v14474_v28  ;;  %v4340_v22 = vld [vmem:[#allocation2 + $0x100] sm:$0x1] }
 0x480   : > { %v3952_v25 = vrot.slane %v3950_v3, 7  ;;  %vm2888_vm10 = vweird.f32 %v14474_v28  ;;  %vm2889_vm6 = vweird.f32 %v14517_v32  ;;  %v5080_v0 = vor.u32 %v5078_v43, %v14515_v48 }
 0x481   : > { %v3296_v53 = vsel %vm14451_vm7, %v3114_v2, 0.0  ;;  %v2905_v34 = vmul.f32 0.5, %v2904_v26  ;;  %v5084_v50 = vrot.slane %v5082_v20, 1  ;;  %v2884_v1 = vmul.f32 %v14517_v32, %v2883_v19 }
 0x482   : > { %v3481_v14 = vpack.c.bf16 %v3296_v53, %v3296_v53  ;;  %v14528_v49 = vpop.eup %10215  ;;  %v3955_v29 = vor.u32 %v3953_v5, %v3952_v25  ;;  %v3957_v30 = vrot.slane %v3952_v25, 4  ;;  %v18593_v15 = vrot.slane %v14414_v31, 4  ;;  %v4343_v5 = vld [vmem:[#allocation2 + $0x104] sm:$0xf] }
 0x483   : > { %v2906_v3 = vsub.f32 1.5, %v2905_v34  ;;  %v2893_v2 = vmul.f32 %v14528_v49, %v14490_v63  ;;  %v2885_v20 = vmul.f32 0.5, %v2884_v1  ;;  %vm2899_vm5 = vweird.f32 %v14528_v49 }
 0x484   : > { %v3959_v57 = vshrl.u32 %v3481_v14, 16  ;;  %v3962_v56 = vshll.u32 %v3481_v14, 16  ;;  %v3956_v26 = vsel %vm12477_vm12, %v18593_v15, %v3955_v29  ;;  %v4341_v43 = vsel %vm12089_vm2, %v3957_v30, %v4340_v22 }
 0x485   : > { %4339 = vst.msk [vmem:[#allocation2 + $0xfc] sm:$0xf] %vm4223_vm14, %v3956_v26  ;;  %v2907_v53 = vmul.f32 %v14497_v51, %v2906_v3  ;;  %v2894_v19 = vmul.f32 %v14528_v49, %v2893_v2  ;;  %vm18594_vm15 = vsmask.f32 7424  ;;  %v2886_v15 = vsub.f32 1.5, %v2885_v20  ;;  %v2154_v26 = vpop.xlane.xlu1 %2153 }
 0x486   : > { %v3961_v25 = vrot.slane %v3959_v57, 7  ;;  %v5085_v14 = vsel %vm18594_vm15, %v5080_v0, %v5084_v50  ;;  %4342 = vst [vmem:[#allocation2 + $0x100] sm:$0x1] %v4341_v43  ;;  %v5067_v31 = vshrl.u32 %v14504_v41, 16  ;;  %v5069_v22 = vshll.u32 %v14504_v41, 16  ;;  %vm14556_vm15 = vmand %vm3168_vm0, %vm3186_vm13  ;;  %v2151_v43 = vpop.xlane.xlu0 %2150 }
 0x487   : > { %5244 = vrot.lane.b32.xlu2 %v5085_v14, %s10545_s7  ;;  %v2255_v34 = vmul.f32 %v12216_v59, %v2148_v54  ;;  %v2911_v27 = vsel %vm2910_vm3, %v14497_v51, %v2907_v53  ;;  %v2895_v50 = vmul.f32 0.5, %v2894_v19  ;;  %v2887_v57 = vmul.f32 %v14517_v32, %v2886_v15  ;;  %v3417_v54 = vld [vmem:[#allocation2 + $0x128] sm:$0x1]  ;;  %vm2890_vm0 = vmor %vm2888_vm10, %vm2889_vm6 }
 0x488   : > { %v3964_v29 = vor.u32 %v3962_v56, %v3961_v25  ;;  %v3965_v30 = vrot.slane %v3961_v25, 4  ;;  %v3118_v1 = vmul.f32 %v2911_v27, %v13170_v6  ;;  %v5071_v3 = vrot.slane %v5069_v22, 1 }
 0x489   : > { %v14563_v2 = vadd.f32 1e-08, %v2255_v34  ;;  %v2896_v51 = vsub.f32 1.5, %v2895_v50  ;;  %v3418_v6 = vsel %vm12347_vm11, 0, %v3417_v54  ;;  %vm2898_vm13 = vweird.f32 %v14490_v63 }
 0x48a   : > { %v3973_v56 = vsel %vm12477_vm12, %v3965_v30, %v3972_v18  ;;  %v4344_v45 = vsel %vm12433_vm9, %v3964_v29, %v4343_v5  ;;  %v3300_v20 = vsel %vm14556_vm15, %v3118_v1, 0.0  ;;  %v2891_v18 = vsel %vm2890_vm0, %v14517_v32, %v2887_v57  ;;  %vm2900_vm1 = vmor %vm2898_vm13, %vm2899_vm5  ;;  %3419 = vst [vmem:[#allocation2 + $0x128] sm:$0x1] %v3418_v6  ;;  %v2157_v57 = vpop.xlane.xlu2 %2156 }
 0x48b   : > { %4345 = vst [vmem:[#allocation2 + $0x104] sm:$0xf] %v4344_v45  ;;  %v5072_v25 = vor.u32 %v5071_v3, %v5067_v31  ;;  %10217 = vrsqrt.f32 %v14563_v2  ;;  %v3485_v5 = vpack.c.bf16 %v3300_v20, %v3300_v20  ;;  %v3116_v28 = vmul.f32 %v2891_v18, %v13176_v44 }
 0x48c   : > { %4346 = vst.msk [vmem:[#allocation2 + $0x108] sm:$0xf] %vm4223_vm14, %v3973_v56  ;;  %v2897_v53 = vmul.f32 %v14528_v49, %v2896_v51  ;;  %vm18597_vm8 = vsmask.f32 7424  ;;  %v2257_v32 = vmul.f32 %v12216_v59, %v2154_v26  ;;  %v2256_v14 = vmul.f32 %v12216_v59, %v2151_v43 }
 0x48d   : > { %v5077_v19 = vsel %vm18597_vm8, %v5072_v25, %v14515_v48  ;;  %v3994_v15 = vshrl.u32 %v3485_v5, 16  ;;  %v3298_v31 = vsel %vm14451_vm7, %v3116_v28, 0.0  ;;  %v18598_v63 = vunpack.c.l.b16 %v14397_v37  ;;  %v4352_v37 = vld [vmem:[#allocation2 + $0x118] sm:$0xf]  ;;  %v3364_v28 = vld [vmem:[#allocation2 + $0x12c] sm:$0x1]  ;;  %vm18600_vm5 = vmmov %vm18597_vm8 }
 0x48e   : > { %v2901_v44 = vsel %vm2900_vm1, %v14528_v49, %v2897_v53  ;;  %5242 = vrot.lane.b32.xlu0 %v5077_v19, %s10545_s7  ;;  %v3483_v34 = vpack.c.bf16 %v3298_v31, %v3298_v31  ;;  %v14599_v29 = vadd.f32 1e-08, %v2257_v32  ;;  %v14601_v30 = vadd.f32 1e-08, %v2256_v14  ;;  %v2163_v53 = vpop.xlane.xlu1 %2162 }
 0x48f   : > { %v14596_v22 = vpack.c.b16 %v18598_v63, %v18598_v63  ;;  %v3117_v48 = vmul.f32 %v2901_v44, %v13197_v21  ;;  %v14603_v27 = vrot.slane %v3994_v15, 7  ;;  %v3997_v50 = vshll.u32 %v3485_v5, 16 }
 0x490   : > { %v18599_v1 = vshll.u32 %v14403_v61, 16  ;;  %v3976_v54 = vshrl.u32 %v3483_v34, 16  ;;  %10219 = vrsqrt.f32 %v14599_v29  ;;  %v5038_v21 = vshrl.u32 %v14403_v61, 16 }
 0x491   : > { %v14609_v3 = vpop.eup %10217  ;;  %v3299_v56 = vsel %vm14451_vm7, %v3117_v48, 0.0  ;;  %v3999_v45 = vor.u32 %v3997_v50, %v14603_v27  ;;  %v5042_v26 = vshll.u32 %v14596_v22, 16  ;;  %v3979_v20 = vshll.u32 %v3483_v34, 16  ;;  %v4349_v48 = vld [vmem:[#allocation2 + $0x114] sm:$0x1] }
 0x492   : > { %v14607_v49 = vrot.slane %v18599_v1, 1  ;;  %v3484_v51 = vpack.c.bf16 %v3299_v56, %v3299_v56  ;;  %v2913_v6 = vmul.f32 %v14609_v3, %v14563_v2  ;;  %v3978_v43 = vrot.slane %v3976_v54, 7 }
 0x493   : > { %10221 = vrsqrt.f32 %v14601_v30  ;;  %v2258_v18 = vmul.f32 %v12216_v59, %v2157_v57  ;;  %v3974_v52 = vrot.slane %v14485_v24, 4  ;;  %v4353_v25 = vsel %vm12433_vm9, %v3999_v45, %v4352_v37 }
 0x494   : > { %v3985_v61 = vshrl.u32 %v3484_v51, 16  ;;  %v2914_v5 = vmul.f32 %v14609_v3, %v2913_v6  ;;  %4354 = vst [vmem:[#allocation2 + $0x118] sm:$0xf] %v4353_v25  ;;  %v3981_v19 = vor.u32 %v3979_v20, %v3978_v43  ;;  %v3988_v32 = vshll.u32 %v3484_v51, 16  ;;  %v9944_v25 = vld [vmem:[#allocation2 + $0xc8] sm:$0xff]  }
 0x495   : > { %vm2919_vm7 = vweird.f32 %v14609_v3  ;;  %v5040_v14 = vor.u32 %v5038_v21, %v14607_v49  ;;  %v3983_v15 = vrot.slane %v3978_v43, 4  ;;  %v5044_v63 = vrot.slane %v5042_v26, 1  ;;  %v2160_v26 = vpop.xlane.xlu0 %2159 }
 0x496   : > { %v3987_v31 = vrot.slane %v3985_v61, 7  ;;  %v2915_v44 = vmul.f32 0.5, %v2914_v5  ;;  %v14627_v24 = vpop.eup %10219  ;;  %v3982_v34 = vsel %vm12477_vm12, %v3974_v52, %v3981_v19  ;;  %v3365_v50 = vsel %vm12089_vm2, 0, %v3364_v28  ;;  %v14662_v5 = vld [vmem:[#allocation2 + $0xd0] sm:$0xff] }
 0x497   : > { %v14633_v1 = vadd.f32 1e-08, %v2258_v18  ;;  %v2260_v57 = vmul.f32 %v12216_v59, %v2163_v53  ;;  %4347 = vst.msk [vmem:[#allocation2 + $0x10c] sm:$0xf] %vm4223_vm14, %v3982_v34  ;;  %v2933_v21 = vmul.f32 %v14627_v24, %v14599_v29  ;;  %v4000_v51 = vrot.slane %v14603_v27, 4 }
 0x498   : > { %v3990_v37 = vor.u32 %v3988_v32, %v3987_v31  ;;  %v3992_v54 = vrot.slane %v3987_v31, 4  ;;  %v2916_v56 = vsub.f32 1.5, %v2915_v44  ;;  %vm2918_vm10 = vweird.f32 %v14563_v2  ;;  %3366 = vst [vmem:[#allocation2 + $0x12c] sm:$0x1] %v3365_v50 }
 0x499   : > { %v14639_v45 = vpop.eup %10221  ;;  %vm2938_vm6 = vweird.f32 %v14599_v29  ;;  %v5045_v6 = vsel %vm18600_vm5, %v5040_v14, %v5044_v63  ;;  %v2934_v52 = vmul.f32 %v14627_v24, %v2933_v21  ;;  %vm2920_vm3 = vmor %vm2918_vm10, %vm2919_vm7  ;;  %vm2928_vm0 = vweird.f32 %v14601_v30 }
 0x49a   : > { %v3991_v43 = vsel %vm12477_vm12, %v3983_v15, %v3990_v37  ;;  %v4350_v20 = vsel %vm12089_vm2, %v3992_v54, %v4349_v48  ;;  %v2917_v18 = vmul.f32 %v14609_v3, %v2916_v56  ;;  %5236 = vrot.lane.b32.xlu0 %v5045_v6, %s10545_s7  ;;  %v2923_v2 = vmul.f32 %v14639_v45, %v14601_v30  ;;  %v4462_v48 = vld [vmem:[#allocation2 + $0xd8] sm:$0x1] }
 0x49b   : > { %4348 = vst.msk [vmem:[#allocation2 + $0x110] sm:$0xf] %vm4223_vm14, %v3991_v43  ;;  %v14659_v61 = vadd.s32 15, %v12320_v33  ;;  %10223 = vrsqrt.f32 %v14633_v1  ;;  %v2935_v53 = vmul.f32 0.5, %v2934_v52  ;;  %v14665_v19 = vadd.f32 1e-08, %v2260_v57 }
 0x49c   : > { %4351 = vst [vmem:[#allocation2 + $0x114] sm:$0x1] %v4350_v20  ;;  %v2921_v28 = vsel %vm2920_vm3, %v14609_v3, %v2917_v18  ;;  %v2259_v32 = vmul.f32 %v12216_v59, %v2160_v26  ;;  %vm2939_vm13 = vweird.f32 %v14627_v24  ;;  %v2924_v15 = vmul.f32 %v14639_v45, %v2923_v2 }
 0x49d   : > { %v3119_v14 = vmul.f32 %v2921_v28, %v13267_v13  ;;  %v5089_v31 = vshll.u32 %v9944_v25, 16  ;;  %v2936_v44 = vsub.f32 1.5, %v2935_v53  ;;  %10225 = vrsqrt.f32 %v14665_v19  ;;  %vm2940_vm8 = vmor %vm2938_vm6, %vm2939_vm13 }
 0x49e   : > { %v14672_v63 = vadd.f32 1e-08, %v2259_v32  ;;  %v5087_v34 = vshrl.u32 %v9944_v25, 16  ;;  %v2925_v50 = vmul.f32 0.5, %v2924_v15  ;;  %v5094_v37 = vshll.u32 %v14662_v5, 16 }
 0x49f   : > { %v3301_v3 = vsel %vm14556_vm15, %v3119_v14, 0.0  ;;  %v5091_v57 = vrot.slane %v5089_v31, 1  ;;  %v2937_v54 = vmul.f32 %v14627_v24, %v2936_v44  ;;  %vm2929_vm1 = vweird.f32 %v14639_v45 }
 0x4a0   : > { %v3486_v13 = vpack.c.bf16 %v3301_v3, %v3301_v3  ;;  %10227 = vrsqrt.f32 %v14672_v63  ;;  %v2926_v21 = vsub.f32 1.5, %v2925_v50  ;;  %v5096_v26 = vrot.slane %v5094_v37, 1  ;;  %vm2930_vm13 = vmor %vm2928_vm0, %vm2929_vm1  ;;  %v3420_v37 = vld [vmem:[#allocation2 + $0x13c] sm:$0x1] }
 0x4a1   : > { %v14680_v56 = vpop.eup %10223  ;;  %v5092_v6 = vor.u32 %v5091_v57, %v5087_v34  ;;  %v4864_v43 = vunpack.c.l.b16 %v4462_v48  ;;  %v2941_v52 = vsel %vm2940_vm8, %v14627_v24, %v2937_v54  ;;  %vm3169_vm7 = vcmp.ge.s32.totalorder %v14659_v61, 0 }
 0x4a2   : > { %v4002_v20 = vshrl.u32 %v3486_v13, 16  ;;  %v4005_v18 = vshll.u32 %v3486_v13, 16  ;;  %vm3187_vm10 = vcmp.lt.s32.totalorder %v14659_v61, 32  ;;  %v2943_v25 = vmul.f32 %v14680_v56, %v14633_v1 }
 0x4a3   : > { %v3121_v2 = vmul.f32 %v2941_v52, %v13284_v40  ;;  %v2927_v29 = vmul.f32 %v14639_v45, %v2926_v21  ;;  %vm2948_vm6 = vweird.f32 %v14633_v1  ;;  %vm2949_vm5 = vweird.f32 %v14680_v56  ;;  %v14696_v53 = vpop.eup %10225  ;;  %v4358_v52 = vld [vmem:[#allocation2 + $0x128] sm:$0x1] }
 0x4a4   : > { %vm18601_vm3 = vsmask.f32 7424  ;;  %v14698_v24 = vrot.slane %v4002_v20, 7  ;;  %v2944_v32 = vmul.f32 %v14680_v56, %v2943_v25  ;;  %v14706_v40 = vpack.c.b16 %v4864_v43, %v4864_v43 }
 0x4a5   : > { %v5097_v28 = vsel %vm18601_vm3, %v5092_v6, %v5096_v26  ;;  %v5098_v14 = vshrl.u32 %v14662_v5, 16  ;;  %v3303_v15 = vsel %vm14556_vm15, %v3121_v2, 0.0  ;;  %v2931_v31 = vsel %vm2930_vm13, %v14639_v45, %v2927_v29  ;;  %v2166_v29 = vpop.xlane.xlu2 %2165  ;;  %vm14745_vm3 = vmand %vm3169_vm7, %vm3187_vm10 }
 0x4a6   : > { %5246 = vrot.lane.b32.xlu1 %v5097_v28, %s10545_s7  ;;  %v2963_v44 = vmul.f32 %v14696_v53, %v14665_v19  ;;  %vm2968_vm8 = vweird.f32 %v14665_v19  ;;  %vm2969_vm0 = vweird.f32 %v14696_v53  ;;  %v14716_v30 = vpop.eup %10227  ;;  %v4007_v34 = vor.u32 %v4005_v18, %v14698_v24 }
 0x4a7   : > { %v4009_v48 = vrot.slane %v14698_v24, 4  ;;  %v3488_v3 = vpack.c.bf16 %v3303_v15, %v3303_v15  ;;  %v3120_v5 = vmul.f32 %v2931_v31, %v13306_v17  ;;  %v2945_v50 = vmul.f32 0.5, %v2944_v32 }
 0x4a8   : > { %v2964_v57 = vmul.f32 %v14696_v53, %v2963_v44  ;;  %v2953_v45 = vmul.f32 %v14716_v30, %v14672_v63  ;;  %vm2959_vm1 = vweird.f32 %v14716_v30  ;;  %v4008_v13 = vsel %vm12477_vm12, %v4000_v51, %v4007_v34 }
 0x4a9   : > { %v4020_v54 = vshrl.u32 %v3488_v3, 16  ;;  %v4023_v21 = vshll.u32 %v3488_v3, 16  ;;  %v3302_v6 = vsel %vm14556_vm15, %v3120_v5, 0.0  ;;  %4355 = vst.msk [vmem:[#allocation2 + $0x11c] sm:$0xf] %vm4223_vm14, %v4008_v13  ;;  %v2946_v43 = vsub.f32 1.5, %v2945_v50  ;;  %vm2950_vm15 = vmor %vm2948_vm6, %vm2949_vm5 }
 0x4aa   : > { %v3487_v17 = vpack.c.bf16 %v3302_v6, %v3302_v6  ;;  %v2965_v20 = vmul.f32 0.5, %v2964_v57  ;;  %v2954_v18 = vmul.f32 %v14716_v30, %v2953_v45  ;;  %v5100_v2 = vor.u32 %v5098_v14, %v5096_v26  ;;  %v18604_v57 = vld [vmem:[#allocation37_spill] sm:$0xff]  ;;  %vm2970_vm6 = vmor %vm2968_vm8, %vm2969_vm0  ;;  %v14764_v6 = vld [vmem:[#allocation2 + $0x8c] sm:$0xff]  }
 0x4ab   : > { %v4022_v25 = vrot.slane %v4020_v54, 7  ;;  %v5102_v27 = vshll.u32 %v14706_v40, 16  ;;  %v3421_v51 = vsel %vm12347_vm11, 0, %v3420_v37  ;;  %v2947_v0 = vmul.f32 %v14680_v56, %v2946_v43  ;;  %18606 = vst [vmem:[#allocation60_spill] sm:$0xff] %v14764_v6  ;;  %v18607_v43 = vld [vmem:[#allocation76_spill] sm:$0xff] }
 0x4ac   : > { %v4011_v28 = vshrl.u32 %v3487_v17, 16  ;;  %v4014_v24 = vshll.u32 %v3487_v17, 16  ;;  %v2966_v32 = vsub.f32 1.5, %v2965_v20  ;;  %3422 = vst [vmem:[#allocation2 + $0x13c] sm:$0x1] %v3421_v51  ;;  %v2955_v26 = vmul.f32 0.5, %v2954_v18  ;;  %v2169_v51 = vpop.xlane.xlu0 %2168 }
 0x4ad   : > { %v4025_v15 = vor.u32 %v4023_v21, %v4022_v25  ;;  %v4027_v31 = vrot.slane %v4022_v25, 4  ;;  %v5104_v14 = vrot.slane %v5102_v27, 1  ;;  %v2951_v3 = vsel %vm2950_vm15, %v14680_v56, %v2947_v0  ;;  %v14766_v17 = vld [vmem:[#allocation2 + $0x8c] sm:$0xf0]  ;;  %v3367_v27 = vld [vmem:[#allocation2 + $0x140] sm:$0x1] }
 0x4ae   : > { %v4013_v44 = vrot.slane %v4011_v28, 7  ;;  %v2967_v5 = vmul.f32 %v14696_v53, %v2966_v32  ;;  %v2261_v50 = vmul.f32 %v12216_v59, %v2166_v29  ;;  %v3122_v45 = vmul.f32 %v2951_v3, %v18604_v57 }
 0x4af   : > { %v4359_v1 = vsel %vm12089_vm2, %v4027_v31, %v4358_v52  ;;  %v2956_v61 = vsub.f32 1.5, %v2955_v26  ;;  %vm18605_vm7 = vsmask.f32 7424  ;;  %vm2958_vm10 = vweird.f32 %v14672_v63 }
 0x4b0   : > { %v5105_v37 = vsel %vm18605_vm7, %v5100_v2, %v5104_v14  ;;  %4360 = vst [vmem:[#allocation2 + $0x128] sm:$0x1] %v4359_v1  ;;  %v4016_v13 = vor.u32 %v4014_v24, %v4013_v44  ;;  %v4018_v56 = vrot.slane %v4013_v44, 4  ;;  %v2971_v54 = vsel %vm2970_vm6, %v14696_v53, %v2967_v5  ;;  %vm2960_vm5 = vmor %vm2958_vm10, %vm2959_vm1  ;;  %v2172_v2 = vpop.xlane.xlu1 %2171 }
 0x4b1   : > { %5248 = vrot.lane.b32.xlu0 %v5105_v37, %s10545_s7  ;;  %v14762_v21 = vadd.f32 1e-08, %v2261_v50  ;;  %v3304_v19 = vsel %vm14745_vm3, %v3122_v45, 0.0  ;;  %v3124_v20 = vmul.f32 %v2971_v54, %v18607_v43  ;;  %v2957_v18 = vmul.f32 %v14716_v30, %v2956_v61  ;;  %v14805_v43 = vld [vmem:[#allocation2 + $0xdc] sm:$0xff]  }
 0x4b2   : > { %v4017_v53 = vsel %vm12477_vm12, %v4009_v48, %v4016_v13  ;;  %v4026_v52 = vsel %vm12477_vm12, %v4018_v56, %v4025_v15  ;;  %v3489_v25 = vpack.c.bf16 %v3304_v19, %v3304_v19  ;;  %v2263_v0 = vmul.f32 %v12216_v59, %v2172_v2  ;;  %18608 = vst [vmem:[#allocation62_spill] sm:$0xff] %v14805_v43  ;;  %v2175_v2 = vpop.xlane.xlu2 %2174 }
 0x4b3   : > { %10229 = vrsqrt.f32 %v14762_v21  ;;  %4356 = vst.msk [vmem:[#allocation2 + $0x120] sm:$0xf] %vm4223_vm14, %v4017_v53  ;;  %v3306_v63 = vsel %vm14745_vm3, %v3124_v20, 0.0  ;;  %v2961_v29 = vsel %vm2960_vm5, %v14716_v30, %v2957_v18  ;;  %v3368_v32 = vsel %vm12089_vm2, 0, %v3367_v27  ;;  %v4361_v30 = vld [vmem:[#allocation2 + $0x12c] sm:$0xf] }
 0x4b4   : > { %4357 = vst.msk [vmem:[#allocation2 + $0x124] sm:$0xf] %vm4223_vm14, %v4026_v52  ;;  %v4029_v48 = vshrl.u32 %v3489_v25, 16  ;;  %v3491_v28 = vpack.c.bf16 %v3306_v63, %v3306_v63  ;;  %v3123_v24 = vmul.f32 %v2961_v29, %v13383_v23  ;;  %v2262_v15 = vmul.f32 %v12216_v59, %v2169_v51  ;;  %v14807_v20 = vld [vmem:[#allocation2 + $0xdc] sm:$0xf0]  ;;  %v14809_v18 = vld [vmem:[#allocation2 + $0xe4] sm:$0xff] }
 0x4b5   : > { %v4032_v26 = vshll.u32 %v3489_v25, 16  ;;  %3369 = vst [vmem:[#allocation2 + $0x140] sm:$0x1] %v3368_v32  ;;  %v14792_v5 = vadd.f32 1e-08, %v2263_v0  ;;  %v14800_v13 = vadd.s32 16, %v12320_v33  ;;  %vm2978_vm13 = vweird.f32 %v14762_v21 }
 0x4b6   : > { %v4031_v31 = vrot.slane %v4029_v48, 7  ;;  %v4046_v14 = vshrl.u32 %v3491_v28, 16  ;;  %v3305_v44 = vsel %vm14745_vm3, %v3123_v24, 0.0  ;;  %v14794_v50 = vadd.f32 1e-08, %v2262_v15  ;;  %v14815_v48 = vld [vmem:[#allocation2 + $0xa0] sm:$0xff]  }
 0x4b7   : > { %v3490_v3 = vpack.c.bf16 %v3305_v44, %v3305_v44  ;;  %v4049_v45 = vshll.u32 %v3491_v28, 16  ;;  %10231 = vrsqrt.f32 %v14792_v5  ;;  %v5029_v27 = vshll.u32 %v14764_v6, 16 }
 0x4b8   : > { %v4034_v1 = vor.u32 %v4032_v26, %v4031_v31  ;;  %v14796_v57 = vrot.slane %v4046_v14, 7  ;;  %v4035_v56 = vrot.slane %v4031_v31, 4  ;;  %10233 = vrsqrt.f32 %v14794_v50 }
 0x4b9   : > { %v10230_v23 = vpop.eup %10229  ;;  %v4037_v61 = vshrl.u32 %v3490_v3, 16  ;;  %v4040_v19 = vshll.u32 %v3490_v3, 16  ;;  %vm3170_vm0 = vcmp.ge.s32.totalorder %v14800_v13, 0  ;;  %v5027_v28 = vshrl.u32 %v14764_v6, 16 }
 0x4ba   : > { %v2973_v37 = vmul.f32 %v10230_v23, %v14762_v21  ;;  %v4362_v54 = vsel %vm12433_vm9, %v4034_v1, %v4361_v30  ;;  %v4051_v53 = vor.u32 %v4049_v45, %v14796_v57  ;;  %vm2979_vm8 = vweird.f32 %v10230_v23  ;;  %v18609_v21 = vld [vmem:[#allocation9_spill] sm:$0xff] }
 0x4bb   : > { %4363 = vst [vmem:[#allocation2 + $0x12c] sm:$0xf] %v4362_v54  ;;  %v4039_v52 = vrot.slane %v4037_v61, 7  ;;  %v5031_v24 = vrot.slane %v5029_v27, 1  ;;  %v5114_v0 = vshll.u32 %v14809_v18, 16  ;;  %v2264_v32 = vmul.f32 %v12216_v59, %v2175_v2  ;;  %vm2980_vm15 = vmor %vm2978_vm13, %vm2979_vm8 }
 0x4bc   : > { %v2974_v25 = vmul.f32 %v10230_v23, %v2973_v37  ;;  %vm3188_vm1 = vcmp.lt.s32.totalorder %v14800_v13, 32  ;;  %v5047_v3 = vshrl.u32 %v14815_v48, 16  ;;  %v4053_v45 = vrot.slane %v14796_v57, 4  ;;  %vm18610_vm13 = vmmov %vm18605_vm7 }
 0x4bd   : > { %v4042_v51 = vor.u32 %v4040_v19, %v4039_v52  ;;  %v4044_v63 = vrot.slane %v4039_v52, 4  ;;  %v14825_v14 = vpop.eup %10231  ;;  %v5032_v44 = vor.u32 %v5031_v24, %v5027_v28  ;;  %v14829_v30 = vadd.f32 1e-08, %v2264_v32  ;;  %v3370_v52 = vld [vmem:[#allocation2 + $0x154] sm:$0x1] }
 0x4be   : > { %v2975_v29 = vmul.f32 0.5, %v2974_v25  ;;  %v14832_v1 = vpop.eup %10233  ;;  %v2993_v37 = vmul.f32 %v14825_v14, %v14792_v5  ;;  %vm2998_vm6 = vweird.f32 %v14792_v5  ;;  %v2181_v25 = vpop.xlane.xlu1 %2180  ;;  %v5107_v28 = vshrl.u32 %v14805_v43, 16 }
 0x4bf   : > { %v4043_v15 = vsel %vm12477_vm12, %v4035_v56, %v4042_v51  ;;  %v4052_v31 = vsel %vm12477_vm12, %v4044_v63, %v4051_v53  ;;  %v5049_v56 = vshll.u32 %v14815_v48, 16  ;;  %v2983_v54 = vmul.f32 %v14832_v1, %v14794_v50 }
 0x4c0   : > { %v2976_v26 = vsub.f32 1.5, %v2975_v29  ;;  %4364 = vst.msk [vmem:[#allocation2 + $0x130] sm:$0xf] %vm4223_vm14, %v4043_v15  ;;  %v5037_v19 = vsel %vm18605_vm7, %v5032_v44, %v14607_v49  ;;  %v5109_v53 = vshll.u32 %v14805_v43, 16  ;;  %v2994_v27 = vmul.f32 %v14825_v14, %v2993_v37  ;;  %v15456_v43 = vld [vmem:[#allocation2 + $0xc8] sm:$0xff]  }
 0x4c1   : > { %4365 = vst.msk [vmem:[#allocation2 + $0x134] sm:$0xf] %vm4223_vm14, %v4052_v31  ;;  %5234 = vrot.lane.b32.xlu1 %v5037_v19, %s10545_s7  ;;  %v14850_v51 = vrot.slane %v5114_v0, 1  ;;  %10235 = vrsqrt.f32 %v14829_v30  ;;  %v2984_v29 = vmul.f32 %v14832_v1, %v2983_v54  ;;  %v3371_v32 = vsel %vm12089_vm2, 0, %v3370_v52  ;;  %v3423_v54 = vld [vmem:[#allocation2 + $0x150] sm:$0x1]  ;;  %v2178_v19 = vpop.xlane.xlu0 %2177 }
 0x4c2   : > { %v2977_v61 = vmul.f32 %v10230_v23, %v2976_v26  ;;  %v5111_v49 = vrot.slane %v5109_v53, 1  ;;  %v2995_v24 = vmul.f32 0.5, %v2994_v27  ;;  %v5051_v15 = vrot.slane %v5049_v56, 1  ;;  %3372 = vst [vmem:[#allocation2 + $0x154] sm:$0x1] %v3371_v32 }
 0x4c3   : > { %vm2999_vm10 = vweird.f32 %v14825_v14  ;;  %v2985_v31 = vmul.f32 0.5, %v2984_v29  ;;  %vm2989_vm5 = vweird.f32 %v14832_v1  ;;  %v3424_v34 = vsel %vm12347_vm11, 0, %v3423_v54 }
 0x4c4   : > { %v2981_v2 = vsel %vm2980_vm15, %v10230_v23, %v2977_v61  ;;  %v2266_v23 = vmul.f32 %v12216_v59, %v2181_v25  ;;  %v5112_v26 = vor.u32 %v5111_v49, %v5107_v28  ;;  %v2996_v61 = vsub.f32 1.5, %v2995_v24  ;;  %v4463_v25 = vld [vmem:[#allocation2 + $0xec] sm:$0x1]  ;;  %3425 = vst [vmem:[#allocation2 + $0x150] sm:$0x1] %v3424_v34  ;;  %vm3000_vm15 = vmor %vm2998_vm6, %vm2999_vm10  ;;  %v2184_v34 = vpop.xlane.xlu2 %2183 }
 0x4c5   : > { %v3125_v63 = vmul.f32 %v2981_v2, %v18609_v21  ;;  %v2986_v53 = vsub.f32 1.5, %v2985_v31  ;;  %v2265_v52 = vmul.f32 %v12216_v59, %v2178_v19  ;;  %vm2988_vm8 = vweird.f32 %v14794_v50 }
 0x4c6   : > { %v14863_v37 = vadd.f32 1e-08, %v2266_v23  ;;  %v5117_v56 = vsel %vm18610_vm13, %v5112_v26, %v14850_v51  ;;  %v14893_v50 = vadd.s32 17, %v12320_v33  ;;  %v4865_v5 = vunpack.c.l.b16 %v4463_v25  ;;  %v4367_v23 = vld [vmem:[#allocation2 + $0x13c] sm:$0x1] }
 0x4c7   : > { %v3307_v0 = vsel %vm14745_vm3, %v3125_v63, 0.0  ;;  %v14870_v2 = vpop.eup %10235  ;;  %vm14876_vm3 = vmand %vm3170_vm0, %vm3188_vm1  ;;  %v2997_v63 = vmul.f32 %v14825_v14, %v2996_v61  ;;  %5250 = vrot.lane.b32.xlu2 %v5117_v56, %s10545_s7  ;;  %v2987_v13 = vmul.f32 %v14832_v1, %v2986_v53  ;;  %vm3008_vm0 = vweird.f32 %v14829_v30  ;;  %v14926_v56 = vld [vmem:[#allocation2 + $0xa8] sm:$0xff] }
 0x4c8   : > { %v3492_v44 = vpack.c.bf16 %v3307_v0, %v3307_v0  ;;  %10237 = vrsqrt.f32 %v14863_v37  ;;  %v3003_v28 = vmul.f32 %v14870_v2, %v14829_v30  ;;  %vm2990_vm1 = vmor %vm2988_vm8, %vm2989_vm5  ;;  %v14898_v32 = vadd.f32 1e-08, %v2265_v52 }
 0x4c9   : > { %v3001_v24 = vsel %vm3000_vm15, %v14825_v14, %v2997_v63  ;;  %v2991_v31 = vsel %vm2990_vm1, %v14832_v1, %v2987_v13  ;;  %v14905_v33 = vor.u32 %v5051_v15, %v5047_v3  ;;  %v14911_v53 = vpack.c.b16 %v4865_v5, %v4865_v5  ;;  %v2187_v10 = vpop.xlane.xlu0 %2186 }
 0x4ca   : > { %v4055_v27 = vshrl.u32 %v3492_v44, 16  ;;  %v4058_v29 = vshll.u32 %v3492_v44, 16  ;;  %v3127_v0 = vmul.f32 %v3001_v24, %v13532_v35  ;;  %v3004_v26 = vmul.f32 %v14870_v2, %v3003_v28 }
 0x4cb   : > { %v3126_v14 = vmul.f32 %v2991_v31, %v13491_v42  ;;  %10239 = vrsqrt.f32 %v14898_v32  ;;  %v5118_v35 = vshrl.u32 %v14809_v18, 16  ;;  %vm3171_vm6 = vcmp.ge.s32.totalorder %v14893_v50, 0 }
 0x4cc   : > { %v4057_v49 = vrot.slane %v4055_v27, 7  ;;  %v3309_v54 = vsel %vm14876_vm3, %v3127_v0, 0.0  ;;  %v3005_v19 = vmul.f32 0.5, %v3004_v26  ;;  %vm3189_vm7 = vcmp.lt.s32.totalorder %v14893_v50, 32 }
 0x4cd   : > { %v3494_v3 = vpack.c.bf16 %v3309_v54, %v3309_v54  ;;  %v3308_v15 = vsel %vm14876_vm3, %v3126_v14, 0.0  ;;  %vm3009_vm10 = vweird.f32 %v14870_v2  ;;  %v5120_v27 = vor.u32 %v5118_v35, %v14850_v51  ;;  %v4370_v54 = vld [vmem:[#allocation2 + $0x140] sm:$0xf] }
 0x4ce   : > { %v4060_v44 = vor.u32 %v4058_v29, %v4057_v49  ;;  %v4062_v61 = vrot.slane %v4057_v49, 4  ;;  %v14914_v1 = vpop.eup %10237  ;;  %v3493_v18 = vpack.c.bf16 %v3308_v15, %v3308_v15  ;;  %v3006_v57 = vsub.f32 1.5, %v3005_v19  ;;  %vm3010_vm5 = vmor %vm3008_vm0, %vm3009_vm10  ;;  %v18613_v19 = vld [vmem:[#allocation43_spill] sm:$0xff] }
 0x4cf   : > { %v4072_v52 = vshrl.u32 %v3494_v3, 16  ;;  %v4075_v25 = vshll.u32 %v3494_v3, 16  ;;  %v5122_v63 = vshll.u32 %v14911_v53, 16  ;;  %v5054_v0 = vshll.u32 %v14926_v56, 16  ;;  %vm14975_vm10 = vmand %vm3171_vm6, %vm3189_vm7 }
 0x4d0   : > { %v4061_v48 = vsel %vm12477_vm12, %v4053_v45, %v4060_v44  ;;  %v4368_v42 = vsel %vm12089_vm2, %v4062_v61, %v4367_v23  ;;  %v3023_v45 = vmul.f32 %v14914_v1, %v14863_v37  ;;  %v4064_v29 = vshrl.u32 %v3493_v18, 16 }
 0x4d1   : > { %4366 = vst.msk [vmem:[#allocation2 + $0x138] sm:$0xf] %vm4223_vm14, %v4061_v48  ;;  %v4067_v13 = vshll.u32 %v3493_v18, 16  ;;  %v3007_v28 = vmul.f32 %v14870_v2, %v3006_v57  ;;  %v14936_v24 = vpop.eup %10239  ;;  %v14938_v5 = vrot.slane %v4072_v52, 7  ;;  %v5124_v23 = vrot.slane %v5122_v63, 1 }
 0x4d2   : > { %4369 = vst [vmem:[#allocation2 + $0x13c] sm:$0x1] %v4368_v42  ;;  %v3024_v49 = vmul.f32 %v14914_v1, %v3023_v45  ;;  %v2267_v51 = vmul.f32 %v12216_v59, %v2184_v34  ;;  %v4066_v31 = vrot.slane %v4064_v29, 7  ;;  %v3013_v61 = vmul.f32 %v14936_v24, %v14898_v32  ;;  %v3426_v63 = vld [vmem:[#allocation2 + $0x164] sm:$0x1]  ;;  %v2190_v29 = vpop.xlane.xlu1 %2189 }
 0x4d3   : > { %v3011_v26 = vsel %vm3010_vm5, %v14870_v2, %v3007_v28  ;;  %v4077_v14 = vor.u32 %v4075_v25, %v14938_v5  ;;  %vm3028_vm13 = vweird.f32 %v14863_v37  ;;  %vm3029_vm8 = vweird.f32 %v14914_v1 }
 0x4d4   : > { %v3025_v44 = vmul.f32 0.5, %v3024_v49  ;;  %v3128_v35 = vmul.f32 %v3011_v26, %v18613_v19  ;;  %v4069_v30 = vor.u32 %v4067_v13, %v4066_v31  ;;  %v4070_v48 = vrot.slane %v4066_v31, 4  ;;  %v4460_v13 = vld [vmem:[#allocation2 + $0xb0] sm:$0x1]  ;;  %vm3030_vm0 = vmor %vm3028_vm13, %vm3029_vm8 }
 0x4d5   : > { %v3014_v3 = vmul.f32 %v14936_v24, %v3013_v61  ;;  %vm18614_vm15 = vsmask.f32 7424  ;;  %v5056_v18 = vrot.slane %v5054_v0, 1  ;;  %v14955_v57 = vadd.f32 1e-08, %v2267_v51 }
 0x4d6   : > { %v3026_v42 = vsub.f32 1.5, %v3025_v44  ;;  %v3310_v2 = vsel %vm14876_vm3, %v3128_v35, 0.0  ;;  %v5125_v15 = vsel %vm18614_vm15, %v5120_v27, %v5124_v23  ;;  %v4078_v45 = vsel %vm12477_vm12, %v4070_v48, %v4077_v14  ;;  %vm18615_vm1 = vmmov %vm18614_vm15 }
 0x4d7   : > { %v4371_v34 = vsel %vm12433_vm9, %v4069_v30, %v4370_v54  ;;  %v3495_v52 = vpack.c.bf16 %v3310_v2, %v3310_v2  ;;  %5252 = vrot.lane.b32.xlu1 %v5125_v15, %s10545_s7  ;;  %v3015_v27 = vmul.f32 0.5, %v3014_v3  ;;  %v5057_v28 = vsel %vm18615_vm1, %v14905_v33, %v5056_v18  ;;  %4373 = vst.msk [vmem:[#allocation2 + $0x144] sm:$0xf] %vm4223_vm14, %v4078_v45  ;;  %vm18618_vm8 = vmmov %vm18615_vm1 }
 0x4d8   : > { %v3027_v25 = vmul.f32 %v14914_v1, %v3026_v42  ;;  %4372 = vst [vmem:[#allocation2 + $0x140] sm:$0xf] %v4371_v34  ;;  %10241 = vrsqrt.f32 %v14955_v57  ;;  %vm3019_vm5 = vweird.f32 %v14936_v24  ;;  %5238 = vrot.lane.b32.xlu2 %v5057_v28, %s10545_s7  ;;  %v3427_v0 = vsel %vm12347_vm11, 0, %v3426_v63 }
 0x4d9   : > { %v4081_v49 = vshrl.u32 %v3495_v52, 16  ;;  %v3016_v31 = vsub.f32 1.5, %v3015_v27  ;;  %3428 = vst [vmem:[#allocation2 + $0x164] sm:$0x1] %v3427_v0  ;;  %v2269_v26 = vmul.f32 %v12216_v59, %v2190_v29  ;;  %v4862_v50 = vunpack.c.l.b16 %v4460_v13  ;;  %v15019_v13 = vld [vmem:[#allocation2 + $0xf0] sm:$0xff]  }
 0x4da   : > { %v3031_v37 = vsel %vm3030_vm0, %v14914_v1, %v3027_v25  ;;  %v4084_v61 = vshll.u32 %v3495_v52, 16  ;;  %vm3018_vm6 = vweird.f32 %v14898_v32  ;;  %v2268_v32 = vmul.f32 %v12216_v59, %v2187_v10 }
 0x4db   : > { %v3130_v51 = vmul.f32 %v3031_v37, %v13615_v11  ;;  %v14986_v44 = vrot.slane %v4081_v49, 7  ;;  %v3017_v14 = vmul.f32 %v14936_v24, %v3016_v31  ;;  %v14992_v54 = vadd.f32 1e-08, %v2269_v26  ;;  %vm3020_vm11 = vmor %vm3018_vm6, %vm3019_vm5  ;;  %v15023_v49 = vld [vmem:[#allocation2 + $0xf8] sm:$0xff] }
 0x4dc   : > { %v14994_v19 = vpack.c.b16 %v4862_v50, %v4862_v50  ;;  %v4079_v11 = vrot.slane %v14938_v5, 4  ;;  %v5058_v15 = vshrl.u32 %v14926_v56, 16  ;;  %v15012_v34 = vadd.f32 1e-08, %v2268_v32  ;;  %v4464_v50 = vld [vmem:[#allocation2 + $0x100] sm:$0x1] }
 0x4dd   : > { %v3312_v1 = vsel %vm14975_vm10, %v3130_v51, 0.0  ;;  %v4086_v35 = vor.u32 %v4084_v61, %v14986_v44  ;;  %v3021_v42 = vsel %vm3020_vm11, %v14936_v24, %v3017_v14  ;;  %10243 = vrsqrt.f32 %v14992_v54  ;;  %v4376_v32 = vld [vmem:[#allocation2 + $0x150] sm:$0x1]  ;;  %vm18621_vm11 = vmmov %vm18615_vm1 }
 0x4de   : > { %v3497_v30 = vpack.c.bf16 %v3312_v1, %v3312_v1  ;;  %v15001_v48 = vpop.eup %10241  ;;  %v3129_v5 = vmul.f32 %v3021_v42, %v13594_v47  ;;  %v5062_v52 = vshll.u32 %v14994_v19, 16  ;;  %v5060_v29 = vor.u32 %v5058_v15, %v5056_v18  ;;  %v4379_v47 = vld [vmem:[#allocation2 + $0x154] sm:$0xf] }
 0x4df   : > { %v4087_v3 = vsel %vm12477_vm12, %v4079_v11, %v4086_v35  ;;  %v3033_v45 = vmul.f32 %v15001_v48, %v14955_v57  ;;  %10245 = vrsqrt.f32 %v15012_v34  ;;  %v4088_v37 = vrot.slane %v14986_v44, 4 }
 0x4e0   : > { %v4099_v2 = vshrl.u32 %v3497_v30, 16  ;;  %4374 = vst.msk [vmem:[#allocation2 + $0x148] sm:$0xf] %vm4223_vm14, %v4087_v3  ;;  %v4102_v25 = vshll.u32 %v3497_v30, 16  ;;  %v3311_v63 = vsel %vm14876_vm3, %v3129_v5, 0.0  ;;  %vm3038_vm7 = vweird.f32 %v14955_v57 }
 0x4e1   : > { %v3496_v27 = vpack.c.bf16 %v3311_v63, %v3311_v63  ;;  %v3034_v28 = vmul.f32 %v15001_v48, %v3033_v45  ;;  %v5064_v51 = vrot.slane %v5062_v52, 1  ;;  %vm3039_vm3 = vweird.f32 %v15001_v48 }
 0x4e2   : > { %v15015_v24 = vrot.slane %v4099_v2, 7  ;;  %v5129_v26 = vshll.u32 %v15019_v13, 16  ;;  %vm3058_vm13 = vweird.f32 %v14992_v54  ;;  %v5134_v30 = vshll.u32 %v15023_v49, 16  ;;  %vm3040_vm15 = vmor %vm3038_vm7, %vm3039_vm3 }
 0x4e3   : > { %v15028_v21 = vpop.eup %10243  ;;  %v4090_v18 = vshrl.u32 %v3496_v27, 16  ;;  %v3035_v31 = vmul.f32 0.5, %v3034_v28  ;;  %v4093_v1 = vshll.u32 %v3496_v27, 16  ;;  %v5065_v14 = vsel %vm18618_vm8, %v5060_v29, %v5064_v51  ;;  %v15056_v27 = vld [vmem:[#allocation2 + $0x104] sm:$0xff]   ;;  %vm18623_vm3 = vmmov %vm18615_vm1 }
 0x4e4   : > { %v4104_v0 = vor.u32 %v4102_v25, %v15015_v24  ;;  %v3053_v44 = vmul.f32 %v15028_v21, %v14992_v54  ;;  %5240 = vrot.lane.b32.xlu1 %v5065_v14, %s10545_s7  ;;  %v5131_v35 = vrot.slane %v5129_v26, 1  ;;  %v5127_v42 = vshrl.u32 %v15019_v13, 16  ;;  %18619 = vst [vmem:[#allocation55_spill] sm:$0xff] %v15056_v27  ;;  %v15058_v28 = vld [vmem:[#allocation2 + $0x104] sm:$0xf0]  ;;  %vm18631_vm8 = vmmov %vm18615_vm1 }
 0x4e5   : > { %v4092_v10 = vrot.slane %v4090_v18, 7  ;;  %v3036_v11 = vsub.f32 1.5, %v3035_v31  ;;  %v4866_v3 = vunpack.c.l.b16 %v4464_v50  ;;  %v15043_v2 = vpop.eup %10245  ;;  %v5138_v52 = vshrl.u32 %v15023_v49, 16 }
 0x4e6   : > { %v4380_v61 = vsel %vm12433_vm9, %v4104_v0, %v4379_v47  ;;  %v3054_v62 = vmul.f32 %v15028_v21, %v3053_v44  ;;  %vm3059_vm9 = vweird.f32 %v15028_v21  ;;  %v3043_v63 = vmul.f32 %v15043_v2, %v15012_v34  ;;  %v15060_v0 = vld [vmem:[#allocation2 + $0x10c] sm:$0xff]  ;;  %v4465_v44 = vld [vmem:[#allocation2 + $0x114] sm:$0x1] }
 0x4e7   : > { %4381 = vst [vmem:[#allocation2 + $0x154] sm:$0xf] %v4380_v61  ;;  %v4095_v5 = vor.u32 %v4093_v1, %v4092_v10  ;;  %v4097_v15 = vrot.slane %v4092_v10, 4  ;;  %v3037_v45 = vmul.f32 %v15001_v48, %v3036_v11  ;;  %vm3048_vm0 = vweird.f32 %v15012_v34  ;;  %vm3060_vm5 = vmor %vm3058_vm13, %vm3059_vm9 }
 0x4e8   : > { %v3055_v25 = vmul.f32 0.5, %v3054_v62  ;;  %v15054_v29 = vor.u32 %v5131_v35, %v5127_v42  ;;  %v5136_v47 = vrot.slane %v5134_v30, 1  ;;  %v15067_v31 = vpack.c.b16 %v4866_v3, %v4866_v3  ;;  %vm18624_vm13 = vmmov %vm18615_vm1 }
 0x4e9   : > { %v4096_v51 = vsel %vm12477_vm12, %v4088_v37, %v4095_v5  ;;  %v4377_v57 = vsel %vm12089_vm2, %v4097_v15, %v4376_v32  ;;  %v3041_v18 = vsel %vm3040_vm15, %v15001_v48, %v3037_v45  ;;  %v3044_v61 = vmul.f32 %v15043_v2, %v3043_v63  ;;  %v18620_v15 = vld [vmem:[#allocation6_spill] sm:$0xff] }
 0x4ea   : > { %4375 = vst.msk [vmem:[#allocation2 + $0x14c] sm:$0xf] %vm4223_vm14, %v4096_v51  ;;  %v3131_v26 = vmul.f32 %v3041_v18, %v13659_v4  ;;  %v3056_v50 = vsub.f32 1.5, %v3055_v25  ;;  %v5137_v1 = vsel %vm18615_vm1, %v15054_v29, %v5136_v47  ;;  %v5140_v37 = vor.u32 %v5138_v52, %v5136_v47 }
 0x4eb   : > { %4378 = vst [vmem:[#allocation2 + $0x150] sm:$0x1] %v4377_v57  ;;  %5254 = vrot.lane.b32.xlu0 %v5137_v1, %s10545_s7  ;;  %v5142_v14 = vshll.u32 %v15067_v31, 16  ;;  %v3045_v11 = vmul.f32 0.5, %v3044_v61  ;;  %v5154_v4 = vshll.u32 %v15060_v0, 16  ;;  %v4867_v32 = vunpack.c.l.b16 %v4465_v44 }
 0x4ec   : > { %v3313_v48 = vsel %vm14975_vm10, %v3131_v26, 0.0  ;;  %v3057_v10 = vmul.f32 %v15028_v21, %v3056_v50  ;;  %vm3049_vm6 = vweird.f32 %v15043_v2  ;;  %v5158_v25 = vshrl.u32 %v15060_v0, 16  ;;  %v15099_v50 = vld [vmem:[#allocation2 + $0x120] sm:$0xff] }
 0x4ed   : > { %v3498_v35 = vpack.c.bf16 %v3313_v48, %v3313_v48  ;;  %v5144_v30 = vrot.slane %v5142_v14, 1  ;;  %v3046_v42 = vsub.f32 1.5, %v3045_v11  ;;  %v5156_v3 = vrot.slane %v5154_v4, 1  ;;  %vm3050_vm7 = vmor %vm3048_vm0, %vm3049_vm6  ;;  %v15103_v14 = vld [vmem:[#allocation2 + $0x118] sm:$0xff]   ;;  %v18622_v11 = vld [vmem:[#allocation18_spill] sm:$0xff] }
 0x4ee   : > { %v3061_v62 = vsel %vm3060_vm5, %v15028_v21, %v3057_v10  ;;  %v5149_v54 = vshll.u32 %v15056_v27, 16  ;;  %v15092_v51 = vpack.c.b16 %v4867_v32, %v4867_v32  ;;  %v5147_v18 = vshrl.u32 %v15056_v27, 16  ;;  %v4466_v32 = vld [vmem:[#allocation2 + $0x128] sm:$0x1] }
 0x4ef   : > { %v4107_v5 = vshrl.u32 %v3498_v35, 16  ;;  %v3133_v45 = vmul.f32 %v3061_v62, %v18620_v15  ;;  %v5145_v52 = vsel %vm18621_vm11, %v5140_v37, %v5144_v30  ;;  %v4110_v63 = vshll.u32 %v3498_v35, 16 }
 0x4f0   : > { %v3047_v47 = vmul.f32 %v15043_v2, %v3046_v42  ;;  %5256 = vrot.lane.b32.xlu2 %v5145_v52, %s10545_s7  ;;  %v5160_v26 = vor.u32 %v5158_v25, %v5156_v3  ;;  %v5151_v44 = vrot.slane %v5149_v54, 1  ;;  %v5162_v37 = vshll.u32 %v15092_v51, 16  ;;  %v4385_v25 = vld [vmem:[#allocation2 + $0x164] sm:$0x1] }
 0x4f1   : > { %v4109_v21 = vrot.slane %v4107_v5, 7  ;;  %v3315_v57 = vsel %vm14975_vm10, %v3133_v45, 0.0  ;;  %v4105_v48 = vrot.slane %v15015_v24, 4  ;;  %v5169_v42 = vshll.u32 %v15103_v14, 16 }
 0x4f2   : > { %v3500_v61 = vpack.c.bf16 %v3315_v57, %v3315_v57  ;;  %v3051_v1 = vsel %vm3050_vm7, %v15043_v2, %v3047_v47  ;;  %v5152_v35 = vor.u32 %v5151_v44, %v5147_v18  ;;  %v5164_v30 = vrot.slane %v5162_v37, 1 }
 0x4f3   : > { %v4112_v10 = vor.u32 %v4110_v63, %v4109_v21  ;;  %v3132_v4 = vmul.f32 %v3051_v1, %v18622_v11  ;;  %v5174_v5 = vshll.u32 %v15099_v50, 16  ;;  %v5167_v23 = vshrl.u32 %v15103_v14, 16  ;;  %v15128_v11 = vld [vmem:[#allocation2 + $0x134] sm:$0xff] }
 0x4f4   : > { %v4125_v34 = vshrl.u32 %v3500_v61, 16  ;;  %v5157_v45 = vsel %vm18623_vm3, %v5152_v35, %v5156_v3  ;;  %v5165_v52 = vsel %vm18624_vm13, %v5160_v26, %v5164_v30  ;;  %v5171_v63 = vrot.slane %v5169_v42, 1  ;;  %v15124_v26 = vld [vmem:[#allocation2 + $0x12c] sm:$0xff]  }
 0x4f5   : > { %v4113_v62 = vsel %vm12477_vm12, %v4105_v48, %v4112_v10  ;;  %v3314_v2 = vsel %vm14975_vm10, %v3132_v4, 0.0  ;;  %5258 = vrot.lane.b32.xlu1 %v5157_v45, %s10545_s7  ;;  %5260 = vrot.lane.b32.xlu0 %v5165_v52, %s10545_s7  ;;  %v5176_v47 = vrot.slane %v5174_v5, 1  ;;  %v4868_v54 = vunpack.c.l.b16 %v4466_v32  ;;  %18625 = vst [vmem:[#allocation57_spill] sm:$0xff] %v15124_v26  ;;  %v15126_v10 = vld [vmem:[#allocation2 + $0x12c] sm:$0xf0]  ;;  %vm18626_vm10 = vmmov %vm18615_vm1 }
 0x4f6   : > { %4382 = vst.msk [vmem:[#allocation2 + $0x158] sm:$0xf] %vm4223_vm14, %v4113_v62  ;;  %v4127_v24 = vrot.slane %v4125_v34, 7  ;;  %v3499_v15 = vpack.c.bf16 %v3314_v2, %v3314_v2  ;;  %v4128_v57 = vshll.u32 %v3500_v61, 16  ;;  %v4114_v44 = vrot.slane %v4109_v21, 4 }
 0x4f7   : > { %v15119_v37 = vor.u32 %v5171_v63, %v5167_v23  ;;  %v15121_v48 = vpack.c.b16 %v4868_v54, %v4868_v54  ;;  %v5178_v3 = vshrl.u32 %v15099_v50, 16  ;;  %v4467_v62 = vld [vmem:[#allocation2 + $0x13c] sm:$0x1]  ;;  %v9962_v45 = vld [vmem:[#allocation2] sm:$0xf0]  ;;  %v5198_v54 = vshrl.u32 %v15128_v11, 16 }
 0x4f8   : > { %v4132_v18 = vrot.slane %v4127_v24, 4  ;;  %v4116_v1 = vshrl.u32 %v3499_v15, 16  ;;  %v4130_v4 = vor.u32 %v4128_v57, %v4127_v24  ;;  %v4119_v35 = vshll.u32 %v3499_v15, 16  ;;  %v9963_v63 = vld [vmem:[#allocation2] sm:$0xe] }
 0x4f9   : > { %v5177_v21 = vsel %vm18626_vm10, %v15119_v37, %v5176_v47  ;;  %v5180_v30 = vor.u32 %v5178_v3, %v5176_v47  ;;  %v5182_v32 = vshll.u32 %v15121_v48, 16  ;;  %v5194_v24 = vshll.u32 %v15128_v11, 16 }
 0x4fa   : > { %v4386_v34 = vsel %vm12089_vm2, %v4132_v18, %v4385_v25  ;;  %v4118_v61 = vrot.slane %v4116_v1, 7  ;;  %5262 = vrot.lane.b32.xlu2 %v5177_v21, %s10545_s7  ;;  %v4869_v52 = vunpack.c.l.b16 %v4467_v62  ;;  %vm18627_vm2 = vmmov %vm18615_vm1  ;;  %v9964_v57 = vor.u32 %v9963_v63, %v9962_v45  ;;  %v15151_v21 = vpop.permute.xlu2 %5206  ;;  %v10436_v63 = vld [vmem:[#allocation2 + $0x3c] sm:$0xe] }
 0x4fb   : > { %4387 = vst [vmem:[#allocation2 + $0x164] sm:$0x1] %v4386_v34  ;;  %v5184_v5 = vrot.slane %v5182_v32, 1  ;;  %v5196_v23 = vrot.slane %v5194_v24, 1  ;;  %v5189_v39 = vshll.u32 %v15124_v26, 16  ;;  %v5326_v45 = vrot.slane %v13647_v12, 1 }
 0x4fc   : > { %v4121_v2 = vor.u32 %v4119_v35, %v4118_v61  ;;  %v4123_v42 = vrot.slane %v4118_v61, 4  ;;  %v15145_v47 = vpack.c.b16 %v4869_v52, %v4869_v52  ;;  %v10433_v61 = vld [vmem:[#allocation2 + $0x14] sm:$0xe]  ;;  %18628 = vst [vmem:[#allocation68_spill] sm:$0xff] %v15151_v21  ;;  %v9966_v12 = vld [vmem:[#allocation2 + $0x28] sm:$0xe] }
 0x4fd   : > { %v5185_v25 = vsel %vm18627_vm2, %v5180_v30, %v5184_v5  ;;  %v5200_v18 = vor.u32 %v5198_v54, %v5196_v23  ;;  %v5191_v34 = vrot.slane %v5189_v39, 1  ;;  %v5318_v30 = vrot.slane %v9964_v57, 1  ;;  %v18632_v5 = vld [vmem:[#allocation66_spill] sm:$0xff]  ;;  %v18633_v52 = vld [vmem:[#allocation48_spill] sm:$0xff]  ;;  %v9965_v39 = vld [vmem:[#allocation2 + $0x28] sm:$0xf0] }
 0x4fe   : > { %v4122_v8 = vsel %vm12477_vm12, %v4114_v44, %v4121_v2  ;;  %v4131_v15 = vsel %vm12477_vm12, %v4123_v42, %v4130_v4  ;;  %5264 = vrot.lane.b32.xlu1 %v5185_v25, %s10545_s7  ;;  %v5202_v1 = vshll.u32 %v15145_v47, 16  ;;  %v10394_v44 = vld [vmem:[#allocation2 + $0x8] sm:$0xff]  ;;  %v5187_v4 = vshrl.u32 %v15124_v26, 16 }
 0x4ff   : > { %4383 = vst.msk [vmem:[#allocation2 + $0x15c] sm:$0xf] %vm4223_vm14, %v4122_v8  ;;  %v5319_v3 = vrot.slane %v10394_v44, 1  ;;  %vm18630_vm12 = vcmask 1046528   ;;  %v10434_v24 = vor.u32 %v10433_v61, %v18632_v5  ;;  %v10395_v8 = vld [vmem:[#allocation2 + $0x1c] sm:$0xff]  ;;  %v5321_v25 = vrot.slane %v18633_v52, 1 }
 0x500   : > { %4384 = vst.msk [vmem:[#allocation2 + $0x160] sm:$0xf] %vm4223_vm14, %v4131_v15  ;;  %v5204_v35 = vrot.slane %v5202_v1, 1  ;;  %v5192_v32 = vor.u32 %v5191_v34, %v5187_v4  ;;  %vm18629_vm14 = vmmov %vm18615_vm1  ;;  %v5324_v15 = vrot.slane %v10395_v8, 1  ;;  %v10437_v44 = vor.u32 %v10436_v63, %v13750_v36  ;;  %v10396_v61 = vld [vmem:[#allocation2 + $0x44] sm:$0xff]  ;;  %v15182_v63 = vpop.permute.xlu1 %5210 }
 0x501   : > { %v5320_v2 = vsel %vm18630_vm12, %v5318_v30, %v5319_v3  ;;  %v5323_v54 = vrot.slane %v10434_v24, 1  ;;  %vm18634_vm9 = vmmov %vm18630_vm12  ;;  %v9967_v4 = vor.u32 %v9966_v12, %v9965_v39  ;;  %v5331_v34 = vrot.slane %v13720_v16, 1  ;;  %v10397_v30 = vld [vmem:[#allocation2 + $0x30] sm:$0xff]  ;;  %18642 = vst [vmem:[#allocation74_spill] sm:$0xff] %v15182_v63  ;;  %v15184_v39 = vpop.permute.xlu0 %5208  ;;  %v4550_v63 = vld [vmem:[#allocation2 + $0x38] sm:$0x1] }
 0x502   : > { %v5205_v62 = vsel %vm18629_vm14, %v5200_v18, %v5204_v35  ;;  %v5197_v42 = vsel %vm18631_vm8, %v5192_v32, %v5196_v23  ;;  %v15163_v23 = vpop.permute.xlu2 %5214  ;;  %vm18636_vm15 = vmmov %vm18634_vm9  ;;  %v5334_v35 = vrot.slane %v10396_v61, 1  ;;  %v5329_v32 = vrot.slane %v10397_v30, 1  ;;  %v9969_v8 = vld [vmem:[#allocation2 + $0x50] sm:$0xe]  ;;  %18643 = vst [vmem:[#allocation10_spill] sm:$0xff] %v15184_v39  ;;  %v10399_v30 = vld [vmem:[#allocation2 + $0x80] sm:$0xff] }
 0x503   : > { %5268 = vrot.lane.b32.xlu2 %v5205_v62, %s10545_s7  ;;  %5266 = vrot.lane.b32.xlu0 %v5197_v42, %s10545_s7  ;;  %v5325_v57 = vsel %vm18634_vm9, %v5323_v54, %v5324_v15  ;;  %18635 = vst [vmem:[#allocation15_spill] sm:$0xff] %v15163_v23  ;;  %v5327_v18 = vsel %vm18636_vm15, %v5324_v15, %v5326_v45  ;;  %vm18637_vm0 = vmmov %vm18634_vm9  ;;  %v5333_v62 = vrot.slane %v10437_v44, 1  ;;  %v9968_v42 = vld [vmem:[#allocation2 + $0x50] sm:$0xf0]  ;;  %v10398_v15 = vld [vmem:[#allocation2 + $0x58] sm:$0xff]  ;;  %v5341_v52 = vrot.slane %v14030_v9, 1 }
 0x504   : > { %v5322_v1 = vsel %vm18637_vm0, %v5319_v3, %v5321_v25  ;;  %vm18638_vm1 = vmmov %vm18637_vm0  ;;  %v9970_v16 = vor.u32 %v9969_v8, %v9968_v42  ;;  %v5339_v45 = vrot.slane %v10398_v15, 1  ;;  %v5336_v25 = vrot.slane %v13875_v7, 1  ;;  %v9972_v7 = vld [vmem:[#allocation2 + $0x78] sm:$0xe]  ;;  %v10442_v42 = vld [vmem:[#allocation2 + $0x8c] sm:$0xe] }
 0x505   : > { %v5332_v3 = vsel %vm18638_vm1, %v5329_v32, %v5331_v34  ;;  %vm18639_vm5 = vmmov %vm18637_vm0  ;;  %v5346_v34 = vrot.slane %v14182_v38, 1  ;;  %v10443_v38 = vor.u32 %v10442_v42, %v14766_v17  ;;  %v10401_v15 = vld [vmem:[#allocation2 + $0x94] sm:$0xff]  ;;  %s10553_s7 = smov 40  }
 0x506   : > { %5398 = vrot.lane.b32.xlu1 %v5320_v2, %s10547_s9  ;;  %v5328_v2 = vrot.slane %v9967_v4, 1  ;;  %v5335_v5 = vsel %vm18639_vm5, %v5333_v62, %v5334_v35  ;;  %vm18640_vm6 = vmmov %vm18637_vm0  ;;  %v5338_v54 = vrot.slane %v9970_v16, 1  ;;  %v10400_v62 = vld [vmem:[#allocation2 + $0x6c] sm:$0xff] }
 0x507   : > { %vm18644_vm11 = vmmov %vm18637_vm0 }
 0x508   : > { %v5330_v24 = vsel %vm18640_vm6, %v5328_v2, %v5329_v32  ;;  %vm18645_vm7 = vmmov %vm18637_vm0  ;;  %v5349_v32 = vrot.slane %v10399_v30, 1  ;;  %v5344_v2 = vrot.slane %v10400_v62, 1 }
 0x509   : > { %v5342_v12 = vsel %vm18645_vm7, %v5339_v45, %v5341_v52  ;;  %vm18646_vm3 = vmmov %vm18637_vm0  ;;  %v15199_v8 = vpop.permute.xlu0 %5212  ;;  %v10445_v52 = vld [vmem:[#allocation2 + $0xb4] sm:$0xe] }
 0x50a   : > { %v15178_v36 = vpop.permute.xlu2 %5220  ;;  %v5337_v44 = vsel %vm18646_vm3, %v5334_v35, %v5336_v25  ;;  %vm18649_vm13 = vmmov %vm18637_vm0  ;;  %18650 = vst [vmem:[#allocation72_spill] sm:$0xff] %v15199_v8  ;;  %v15207_v25 = vld [vmem:[#allocation2 + $0x3c] sm:$0xff]  }
 0x50b   : > { %5402 = vrot.lane.b32.xlu2 %v5325_v57, %s10547_s9  ;;  %5400 = vrot.lane.b32.xlu0 %v5322_v1, %s10547_s9  ;;  %18641 = vst [vmem:[#allocation33_spill] sm:$0xff] %v15178_v36  ;;  %v10439_v57 = vld [vmem:[#allocation2 + $0x64] sm:$0xe]  ;;  %v5340_v1 = vsel %vm18644_vm11, %v5338_v54, %v5339_v45  ;;  %vm18651_vm10 = vmmov %vm18637_vm0  ;;  %v5354_v45 = vrot.slane %v10401_v15, 1  ;;  %v15209_v54 = vld [vmem:[#allocation2 + $0x3c] sm:$0xf0] }
 0x50c   : > { %v10440_v4 = vor.u32 %v10439_v57, %v14058_v58  ;;  %vm18652_vm2 = vmmov %vm18637_vm0  ;;  %v5356_v57 = vrot.slane %v14596_v22, 1  ;;  %v5359_v22 = vrot.slane %v14926_v56, 1  ;;  %v15235_v56 = vld [vmem:[#allocation2 + $0x44] sm:$0xff]  ;;  %vm18668_vm11 = vsmask.f32 7424  ;;  %v15454_v36 = vld [vmem:[#allocation2 + $0xbc] sm:$0xff] }
 0x50d   : > { %vm18654_vm14 = vmmov %vm18637_vm0  ;;  %v15521_v8 = vld [vmem:[#allocation2 + $0x120] sm:$0xff] }
 0x50e   : > { %5404 = vrot.lane.b32.xlu1 %v5327_v18, %s10547_s9  ;;  %v9971_v18 = vld [vmem:[#allocation2 + $0x78] sm:$0xf0]  ;;  %vm18655_vm12 = vmmov %vm18637_vm0 }
 0x50f   : > { %v9973_v9 = vor.u32 %v9972_v7, %v9971_v18  ;;  %v5351_v18 = vrot.slane %v14266_v55, 1  ;;  %v5357_v17 = vsel %vm18655_vm12, %v5354_v45, %v5356_v57  ;;  %vm18656_vm8 = vmmov %vm18637_vm0 }
 0x510   : > { %vm18660_vm9 = vmmov %vm18637_vm0 }
 0x511   : > { %v5348_v35 = vrot.slane %v9973_v9, 1  ;;  %v9975_v9 = vld [vmem:[#allocation2 + $0xa0] sm:$0xe]  ;;  %v15224_v55 = vpop.permute.xlu0 %5218  ;;  %vm18661_vm15 = vmmov %vm18637_vm0 }
 0x512   : > { %v15194_v61 = vpop.permute.xlu2 %5226  ;;  %18658 = vst [vmem:[#allocation32_spill] sm:$0xff] %v15224_v55  ;;  %vm18665_vm1 = vmmov %vm18637_vm0  ;;  %v15477_v55 = vld [vmem:[#allocation2 + $0x104] sm:$0xff]  }
 0x513   : > { %5408 = vrot.lane.b32.xlu2 %v5332_v3, %s10547_s9  ;;  %5406 = vrot.lane.b32.xlu0 %v5330_v24, %s10547_s9  ;;  %18647 = vst [vmem:[#allocation80_spill] sm:$0xff] %v15194_v61  ;;  %v5343_v3 = vrot.slane %v10440_v4, 1  ;;  %v5347_v24 = vsel %vm18649_vm13, %v5344_v2, %v5346_v34  ;;  %v5350_v16 = vsel %vm18651_vm10, %v5348_v35, %v5349_v32  ;;  %v5361_v35 = vrot.slane %v14994_v19, 1  ;;  %vm18666_vm5 = vmmov %vm18637_vm0 }
 0x514   : > { %v5352_v4 = vsel %vm18656_vm8, %v5349_v32, %v5351_v18  ;;  %v10446_v34 = vor.u32 %v10445_v52, %v14506_v60  ;;  %v10402_v60 = vld [vmem:[#allocation2 + $0xbc] sm:$0xff]  ;;  %v10403_v18 = vld [vmem:[#allocation2 + $0xd0] sm:$0xff]  ;;  %vm18667_vm6 = vmmov %vm18637_vm0 }
 0x515   : > { %v5345_v58 = vsel %vm18652_vm2, %v5343_v3, %v5344_v2  ;;  %v5364_v3 = vrot.slane %v10402_v60, 1  ;;  %v9981_v60 = vld [vmem:[#allocation2 + $0xf0] sm:$0xe]  ;;  %vm18671_vm7 = vmmov %vm18637_vm0 }
 0x516   : > { %5410 = vrot.lane.b32.xlu1 %v5335_v5, %s10547_s9  ;;  %v15196_v5 = vpop.permute.xlu1 %5216  ;;  %v5363_v2 = vrot.slane %v10446_v34, 1  ;;  %v5775_v34 = vshrl.u32 %v15207_v25, 16  ;;  %vm18673_vm3 = vmmov %vm18637_vm0 }
 0x517   : > { %18648 = vst [vmem:[#allocation28_spill] sm:$0xff] %v15196_v5  ;;  %vm18674_vm13 = vmmov %vm18637_vm0 }
 0x518   : > { %v5365_v15 = vsel %vm18661_vm15, %v5363_v2, %v5364_v3  ;;  %vm18675_vm10 = vmmov %vm18637_vm0 }
 0x519   : > { %vm18677_vm2 = vmmov %vm18637_vm0 }
 0x51a   : > { %vm18680_vm12 = vmmov %vm18637_vm0 }
 0x51b   : > { %5414 = vrot.lane.b32.xlu2 %v5340_v1, %s10547_s9  ;;  %5412 = vrot.lane.b32.xlu0 %v5337_v44, %s10547_s9  ;;  %v5353_v1 = vrot.slane %v10443_v38, 1  ;;  %v15213_v44 = vpop.permute.xlu2 %5232  ;;  %v5362_v38 = vsel %vm18660_vm9, %v5359_v22, %v5361_v35  ;;  %v9980_v35 = vld [vmem:[#allocation2 + $0xf0] sm:$0xf0]  ;;  %vm18681_vm8 = vmmov %vm18637_vm0 }
 0x51c   : > { %18653 = vst [vmem:[#allocation79_spill] sm:$0xff] %v15213_v44  ;;  %vm18684_vm9 = vmmov %vm18637_vm0 }
 0x51d   : > { %v5355_v7 = vsel %vm18654_vm14, %v5353_v1, %v5354_v45  ;;  %v5369_v1 = vrot.slane %v10403_v18, 1  ;;  %v5376_v18 = vrot.slane %v14911_v53, 1  ;;  %vm18679_vm14 = vmmov %vm18637_vm0 }
 0x51e   : > { %5416 = vrot.lane.b32.xlu1 %v5342_v12, %s10547_s9  ;;  %v9974_v12 = vld [vmem:[#allocation2 + $0xa0] sm:$0xf0]  ;;  %v15220_v62 = vpop.permute.xlu1 %5222  ;;  %vm18686_vm15 = vmmov %vm18637_vm0 }
 0x51f   : > { %v9976_v30 = vor.u32 %v9975_v9, %v9974_v12  ;;  %18657 = vst [vmem:[#allocation14_spill] sm:$0xff] %v15220_v62  ;;  %v10448_v12 = vld [vmem:[#allocation2 + $0xdc] sm:$0xe]  ;;  %v5371_v9 = vrot.slane %v14706_v40, 1  ;;  %v10405_v62 = vld [vmem:[#allocation2 + $0xa0] sm:$0xff]  }
 0x521   : > { %v5358_v42 = vrot.slane %v9976_v30, 1 }
 0x523   : > { %5420 = vrot.lane.b32.xlu2 %v5347_v24, %s10547_s9  ;;  %5418 = vrot.lane.b32.xlu0 %v5345_v58, %s10547_s9  ;;  %v15228_v32 = vpop.permute.xlu2 %5244  ;;  %v9977_v24 = vld [vmem:[#allocation2 + $0xc8] sm:$0xf0]  ;;  %v5777_v58 = vshll.u32 %v15207_v25, 16  ;;  %v5360_v45 = vsel %vm18637_vm0, %v5358_v42, %v5359_v22 }
 0x524   : > { %18659 = vst [vmem:[#allocation73_spill] sm:$0xff] %v15228_v32 }
 0x525   : > { %v5779_v52 = vrot.slane %v5777_v58, 1  ;;  %v5372_v58 = vsel %vm18666_vm5, %v5369_v1, %v5371_v9  ;;  %vm18689_vm5 = vmmov %vm18637_vm0 }
 0x526   : > { %5422 = vrot.lane.b32.xlu1 %v5350_v16, %s10547_s9  ;;  %v9978_v16 = vld [vmem:[#allocation2 + $0xc8] sm:$0xe]  ;;  %v15239_v57 = vpop.permute.xlu1 %5228 }
 0x527   : > { %v9979_v19 = vor.u32 %v9978_v16, %v9977_v24  ;;  %18662 = vst [vmem:[#allocation81_spill] sm:$0xff] %v15239_v57  ;;  %v5780_v42 = vor.u32 %v5779_v52, %v5775_v34  ;;  %v10451_v16 = vld [vmem:[#allocation2 + $0x3c] sm:$0xe]  ;;  %v15407_v57 = vld [vmem:[#allocation2 + $0x80] sm:$0xff] }
 0x529   : > { %v5368_v30 = vrot.slane %v9979_v19, 1  ;;  %v10454_v19 = vld [vmem:[#allocation2 + $0x104] sm:$0xe] }
 0x52b   : > { %5426 = vrot.lane.b32.xlu2 %v5355_v7, %s10547_s9  ;;  %5424 = vrot.lane.b32.xlu0 %v5352_v4, %s10547_s9  ;;  %v15241_v7 = vpop.permute.xlu0 %5224  ;;  %v5782_v4 = vshll.u32 %v15235_v56, 16  ;;  %v15247_v22 = vpop.permute.xlu2 %5250  ;;  %v5370_v24 = vsel %vm18665_vm1, %v5368_v30, %v5369_v1  ;;  %v5379_v1 = vrot.slane %v15023_v49, 1  ;;  %vm18688_vm1 = vmmov %vm18668_vm11 }
 0x52c   : > { %18663 = vst [vmem:[#allocation24_spill] sm:$0xff] %v15241_v7 }
 0x52d   : > { %18664 = vst [vmem:[#allocation41_spill] sm:$0xff] %v15247_v22  ;;  %v15249_v2 = vrot.slane %v5782_v4, 1 }
 0x52e   : > { %5428 = vrot.lane.b32.xlu1 %v5357_v17, %s10547_s9  ;;  %v5366_v17 = vrot.slane %v14495_v46, 1  ;;  %v10449_v46 = vor.u32 %v10448_v12, %v14807_v20  ;;  %v15262_v52 = vpop.permute.xlu1 %5246  ;;  %v10452_v20 = vor.u32 %v10451_v16, %v15209_v54  ;;  %v10404_v12 = vld [vmem:[#allocation2 + $0xe4] sm:$0xff]  ;;  %v6177_v54 = vrot.slane %v15235_v56, 1 }
 0x52f   : > { %18669 = vst [vmem:[#allocation78_spill] sm:$0xff] %v15262_v52  ;;  %v5842_v52 = vshll.u32 %v15407_v57, 16 }
 0x530   : > { %v5367_v40 = vsel %vm18667_vm6, %v5364_v3, %v5366_v17  ;;  %v5373_v9 = vrot.slane %v10449_v46, 1  ;;  %v5374_v17 = vrot.slane %v10404_v12, 1  ;;  %v6176_v49 = vrot.slane %v10452_v20, 1  ;;  %v9984_v12 = vld [vmem:[#allocation2 + $0x118] sm:$0xe]  ;;  %vm18696_vm6 = vmmov %vm18637_vm0 }
 0x531   : > { %v15495_v32 = vrot.slane %v5842_v52, 1 }
 0x532   : > { %v5377_v30 = vsel %vm18671_vm7, %v5374_v17, %v5376_v18  ;;  %v5375_v53 = vsel %vm18674_vm13, %v5373_v9, %v5374_v17  ;;  %v15282_v16 = vsel %vm18675_vm10, %v6176_v49, %v6177_v54  ;;  %v9983_v9 = vld [vmem:[#allocation2 + $0x118] sm:$0xf0]  ;;  %vm18710_vm7 = vmmov %vm18637_vm0 }
 0x533   : > { %5432 = vrot.lane.b32.xlu2 %v5362_v38, %s10547_s9  ;;  %5430 = vrot.lane.b32.xlu0 %v5360_v45, %s10547_s9  ;;  %v4551_v38 = vld [vmem:[#allocation2 + $0x4c] sm:$0x1]  ;;  %v9982_v45 = vor.u32 %v9981_v60, %v9980_v35  ;;  %v15267_v4 = vpop.permute.xlu0 %5230  ;;  %v15272_v35 = vpop.permute.xlu2 %5238  ;;  %vm18725_vm13 = vmmov %vm18688_vm1 }
 0x534   : > { %v5704_v3 = vunpack.c.l.b16 %v4551_v38  ;;  %18670 = vst [vmem:[#allocation84_spill] sm:$0xff] %v15267_v4  ;;  %v5386_v38 = vrot.slane %v15092_v51, 1  ;;  %v9985_v51 = vor.u32 %v9984_v12, %v9983_v9  ;;  %v5396_v12 = vrot.slane %v15145_v47, 1  ;;  %vm18733_vm10 = vmmov %vm18637_vm0 }
 0x535   : > { %v5378_v34 = vrot.slane %v9982_v45, 1  ;;  %18672 = vst [vmem:[#allocation39_spill] sm:$0xff] %v15272_v35  ;;  %v5381_v45 = vrot.slane %v15067_v31, 1 }
 0x536   : > { %5434 = vrot.lane.b32.xlu1 %v5365_v15, %s10547_s9  ;;  %v15258_v15 = vsel %vm18668_vm11, %v5780_v42, %v15249_v2  ;;  %v15270_v42 = vpack.c.b16 %v5704_v3, %v5704_v3  ;;  %v15288_v18 = vpop.permute.xlu1 %5234  ;;  %v5388_v49 = vrot.slane %v9985_v51, 1  ;;  %v15329_v51 = vld [vmem:[#allocation2 + $0x1c] sm:$0xff]  ;;  %vm18705_vm11 = vmmov %vm18688_vm1 }
 0x537   : > { %v5380_v60 = vsel %vm18673_vm3, %v5378_v34, %v5379_v1  ;;  %18676 = vst [vmem:[#allocation59_spill] sm:$0xff] %v15288_v18  ;;  %v5382_v17 = vsel %vm18681_vm8, %v5379_v1, %v5381_v45  ;;  %v15312_v45 = vld [vmem:[#allocation2 + $0x14] sm:$0xf0]  ;;  %vm18715_vm3 = vmmov %vm18637_vm0 }
 0x538   : > { %v6179_v46 = vrot.slane %v15270_v42, 1  ;;  %vm18742_vm8 = vmmov %vm18688_vm1 }
 0x53a   : > { %v15291_v20 = vsel %vm18677_vm2, %v6177_v54, %v6179_v46  ;;  %v5389_v54 = vrot.slane %v15099_v50, 1  ;;  %vm18738_vm2 = vmmov %vm18688_vm1 }
 0x53b   : > { %5438 = vrot.lane.b32.xlu2 %v5370_v24, %s10547_s9  ;;  %5436 = vrot.lane.b32.xlu0 %v5367_v40, %s10547_s9  ;;  %v10455_v24 = vor.u32 %v10454_v19, %v15058_v28  ;;  %v10457_v40 = vld [vmem:[#allocation2 + $0x12c] sm:$0xe]  ;;  %v15293_v28 = vpop.permute.xlu0 %5242 }
 0x53c   : > { %18678 = vst [vmem:[#allocation3_spill] sm:$0xff] %v15293_v28  ;;  %v10458_v34 = vor.u32 %v10457_v40, %v15126_v10 }
 0x53d   : > { %v5383_v3 = vrot.slane %v10455_v24, 1 }
 0x53e   : > { %5440 = vrot.lane.b32.xlu1 %v5372_v58, %s10547_s9  ;;  %v5384_v58 = vrot.slane %v15060_v0, 1  ;;  %v5393_v24 = vrot.slane %v10458_v34, 1 }
 0x540   : > { %v5385_v19 = vsel %vm18679_vm14, %v5383_v3, %v5384_v58  ;;  %v5387_v0 = vsel %vm18680_vm12, %v5384_v58, %v5386_v38  ;;  %v15310_v38 = vld [vmem:[#allocation2 + $0x14] sm:$0xff]   ;;  %vm18739_vm14 = vmmov %vm18688_vm1 }
 0x541   : > { %v15314_v3 = vld [vmem:[#allocation2 + $0x58] sm:$0xff]  ;;  %vm18740_vm12 = vmmov %vm18688_vm1 }
 0x543   : > { %5444 = vrot.lane.b32.xlu2 %v5377_v30, %s10547_s9  ;;  %5442 = vrot.lane.b32.xlu0 %v5375_v53, %s10547_s9  ;;  %v9948_v30 = vld [vmem:[#allocation2 + $0x50] sm:$0xff]   ;;  %v5394_v53 = vrot.slane %v15128_v11, 1  ;;  %v15316_v10 = vpop.permute.xlu0 %5236  ;;  %v5390_v11 = vsel %vm18637_vm0, %v5388_v49, %v5389_v54  ;;  %v4552_v49 = vld [vmem:[#allocation2 + $0x60] sm:$0x1]  ;;  %vm18749_vm0 = vmmov %vm18688_vm1 }
 0x544   : > { %v5797_v1 = vshll.u32 %v9948_v30, 16  ;;  %18685 = vst [vmem:[#allocation65_spill] sm:$0xff] %v15316_v10  ;;  %v5795_v9 = vshrl.u32 %v9948_v30, 16  ;;  %v15385_v10 = vld [vmem:[#allocation2 + $0x8c] sm:$0xff]  }
 0x546   : > { %5446 = vrot.lane.b32.xlu1 %v5380_v60, %s10547_s9  ;;  %v5391_v60 = vrot.slane %v15121_v48, 1  ;;  %v5395_v48 = vsel %vm18686_vm15, %v5393_v24, %v5394_v53  ;;  %v5799_v50 = vrot.slane %v5797_v1, 1  ;;  %v5705_v24 = vunpack.c.l.b16 %v4552_v49  ;;  %vm18746_vm15 = vmmov %vm18688_vm1 }
 0x548   : > { %v5392_v46 = vsel %vm18684_vm9, %v5389_v54, %v5391_v60  ;;  %v5397_v60 = vsel %vm18689_vm5, %v5394_v53, %v5396_v12  ;;  %v15351_v53 = vld [vmem:[#allocation2 + $0x28] sm:$0xff]   ;;  %vm18743_vm9 = vmmov %vm18688_vm1 }
 0x549   : > { %v15307_v58 = vpop.permute.xlu1 %5252  ;;  %vm18751_vm5 = vmmov %vm18749_vm0 }
 0x54a   : > { %v15301_v31 = vpop.permute.xlu2 %5256  ;;  %18683 = vst [vmem:[#allocation64_spill] sm:$0xff] %v15307_v58 }
 0x54b   : > { %5450 = vrot.lane.b32.xlu2 %v5385_v19, %s10547_s9  ;;  %5448 = vrot.lane.b32.xlu0 %v5382_v17, %s10547_s9  ;;  %18682 = vst [vmem:[#allocation54_spill] sm:$0xff] %v15301_v31  ;;  %v5802_v19 = vshll.u32 %v15314_v3, 16  ;;  %v15343_v47 = vpop.permute.xlu0 %5248  ;;  %v15429_v31 = vld [vmem:[#allocation2 + $0xa8] sm:$0xff] }
 0x54c   : > { %18691 = vst [vmem:[#allocation56_spill] sm:$0xff] %v15343_v47  ;;  %v15479_v47 = vld [vmem:[#allocation2 + $0x104] sm:$0xf0] }
 0x54d   : > { %v15327_v17 = vrot.slane %v5802_v19, 1  ;;  %18721 = vst [vmem:[#allocation49_spill] sm:$0xff] %v15479_v47 }
 0x54e   : > { %5452 = vrot.lane.b32.xlu1 %v5387_v0, %s10547_s9  ;;  %v5800_v0 = vor.u32 %v5799_v50, %v5795_v9  ;;  %v4501_v50 = vld [vmem:[#allocation2 + $0x64] sm:$0xff]  }
 0x54f   : > { %v10459_v9 = vld [vmem:[#allocation2 + $0x64] sm:$0xf0]  ;;  %v5817_v35 = vshll.u32 %v4501_v50, 16  ;;  %v5815_v18 = vshrl.u32 %v4501_v50, 16 }
 0x550   : > { %v15333_v34 = vsel %vm18688_vm1, %v5800_v0, %v15327_v17  ;;  %v18276_v0 = vrot.slane %v15314_v3, 1  ;;  %vm18750_vm1 = vmmov %vm18749_vm0 }
 0x553   : > { %5456 = vrot.lane.b32.xlu2 %v5392_v46, %s10547_s9  ;;  %5454 = vrot.lane.b32.xlu0 %v5390_v11, %s10547_s9  ;;  %v15347_v46 = vld [vmem:[#allocation2 + $0x30] sm:$0xff] }
 0x554   : > { %v15323_v40 = vpop.permute.xlu2 %5262 }
 0x555   : > { %18687 = vst [vmem:[#allocation23_spill] sm:$0xff] %v15323_v40 }
 0x556   : > { %5458 = vrot.lane.b32.xlu1 %v5395_v48, %s10547_s9  ;;  %v15338_v54 = vpop.permute.xlu1 %5240  ;;  %v15349_v48 = vpack.c.b16 %v5705_v24, %v5705_v24 }
 0x557   : > { %18690 = vst [vmem:[#allocation40_spill] sm:$0xff] %v15338_v54  ;;  %v15553_v54 = vld [vmem:[#allocation2 + $0x140] sm:$0xff]  }
 0x55b   : > { %5622 = vrot.lane.b32.xlu2 %v15310_v38, %s10549_s11  ;;  %5460 = vrot.lane.b32.xlu0 %v5397_v60, %s10547_s9  ;;  %v6184_v60 = vrot.slane %v15349_v48, 1  ;;  %s10554_s9 = smov 56  }
 0x55d   : > { %v15345_v1 = vpop.permute.xlu2 %5268  ;;  %v15359_v11 = vpop.permute.xlu0 %5254  ;;  %v15370_v49 = vsel %vm18696_vm6, %v18276_v0, %v6184_v60  ;;  %v15387_v60 = vld [vmem:[#allocation2 + $0x8c] sm:$0xf0]  ;;  %v5819_v0 = vrot.slane %v5817_v35, 1  ;;  %v10460_v35 = vld [vmem:[#allocation2 + $0x64] sm:$0xe]  ;;  %vm18754_vm6 = vmmov %vm18715_vm3 }
 0x55e   : > { %5624 = vrot.lane.b32.xlu1 %v15329_v51, %s10549_s11  ;;  %18692 = vst [vmem:[#allocation46_spill] sm:$0xff] %v15345_v1  ;;  %v15383_v1 = vld [vmem:[#allocation2 + $0x6c] sm:$0xff]  ;;  %v10461_v61 = vor.u32 %v10460_v35, %v10459_v9 }
 0x55f   : > { %18693 = vst [vmem:[#allocation58_spill] sm:$0xff] %v15359_v11  ;;  %v5820_v40 = vor.u32 %v5819_v0, %v5815_v18  ;;  %v6187_v11 = vrot.slane %v15383_v1, 1 }
 0x560   : > { %18697 = vst [vmem:[#allocation70_spill] sm:$0xff] %v15370_v49 }
 0x561   : > { %18701 = vst [vmem:[#allocation36_spill] sm:$0xff] %v15387_v60  ;;  %v5735_v60 = vshrl.u32 %v15310_v38, 16 }
 0x563   : > { %5628 = vrot.lane.b32.xlu2 %v15347_v46, %s10549_s11  ;;  %5626 = vrot.lane.b32.xlu0 %v15351_v53, %s10549_s11 }
 0x565   : > { %v15363_v12 = vpop.permute.xlu2 %5402 }
 0x566   : > { %5630 = vrot.lane.b32.xlu1 %v15207_v25, %s10549_s11  ;;  %18695 = vst [vmem:[#allocation71_spill] sm:$0xff] %v15363_v12 }
 0x567   : > { %v15361_v19 = vpop.permute.xlu1 %5258  ;;  %v15377_v25 = vpop.permute.xlu0 %5260 }
 0x568   : > { %18694 = vst [vmem:[#allocation63_spill] sm:$0xff] %v15361_v19  ;;  %v4553_v19 = vld [vmem:[#allocation2 + $0x74] sm:$0x1] }
 0x569   : > { %18698 = vst [vmem:[#allocation77_spill] sm:$0xff] %v15377_v25  ;;  %v15405_v25 = vld [vmem:[#allocation2 + $0x94] sm:$0xff] }
 0x56b   : > { %5634 = vrot.lane.b32.xlu2 %v9948_v30, %s10549_s11  ;;  %5632 = vrot.lane.b32.xlu0 %v15235_v56, %s10549_s11  ;;  %v15389_v30 = vld [vmem:[#allocation2 + $0x78] sm:$0xff]  }
 0x56c   : > { %v5837_v22 = vshll.u32 %v15389_v30, 16 }
 0x56d   : > { %v15381_v59 = vpop.permute.xlu2 %5408 }
 0x56e   : > { %5636 = vrot.lane.b32.xlu1 %v15314_v3, %s10549_s11  ;;  %18700 = vst [vmem:[#allocation13_spill] sm:$0xff] %v15381_v59  ;;  %v5839_v59 = vrot.slane %v5837_v22, 1  ;;  %v15497_v22 = vld [vmem:[#allocation2 + $0x10c] sm:$0xff] }
 0x570   : > { %v15379_v24 = vpop.permute.xlu1 %5264 }
 0x571   : > { %18699 = vst [vmem:[#allocation27_spill] sm:$0xff] %v15379_v24  ;;  %v5822_v24 = vshll.u32 %v15383_v1, 16 }
 0x573   : > { %5640 = vrot.lane.b32.xlu2 %v15383_v1, %s10549_s11  ;;  %5638 = vrot.lane.b32.xlu0 %v4501_v50, %s10549_s11  ;;  %v15403_v4 = vrot.slane %v5822_v24, 1  ;;  %v15415_v50 = vld [vmem:[#allocation2 + $0xb4] sm:$0xff]  }
 0x575   : > { %v15398_v6 = vpop.permute.xlu0 %5266  ;;  %v15401_v44 = vpop.permute.xlu2 %5414  ;;  %v15411_v27 = vsel %vm18705_vm11, %v5820_v40, %v15403_v4  ;;  %v5706_v40 = vunpack.c.l.b16 %v4553_v19  ;;  %vm18755_vm11 = vmmov %vm18749_vm0 }
 0x576   : > { %5642 = vrot.lane.b32.xlu1 %v15389_v30, %s10549_s11  ;;  %18703 = vst [vmem:[#allocation4_spill] sm:$0xff] %v15398_v6  ;;  %v15417_v6 = vld [vmem:[#allocation2 + $0xb4] sm:$0xf0] }
 0x577   : > { %18704 = vst [vmem:[#allocation16_spill] sm:$0xff] %v15401_v44  ;;  %v15431_v7 = vpack.c.b16 %v5706_v40, %v5706_v40  ;;  %v6186_v44 = vrot.slane %v10461_v61, 1  ;;  %v15452_v61 = vld [vmem:[#allocation2 + $0xd0] sm:$0xff] }
 0x578   : > { %v15396_v26 = vpop.permute.xlu1 %5398  ;;  %18706 = vst [vmem:[#allocation35_spill] sm:$0xff] %v15417_v6  ;;  %v5755_v6 = vshrl.u32 %v15351_v53, 16 }
 0x579   : > { %18702 = vst [vmem:[#allocation51_spill] sm:$0xff] %v15396_v26  ;;  %v15440_v19 = vsel %vm18710_vm7, %v6186_v44, %v6187_v11  ;;  %v6189_v40 = vrot.slane %v15431_v7, 1  ;;  %v15460_v44 = vld [vmem:[#allocation2 + $0xdc] sm:$0xff]   ;;  %vm18756_vm7 = vmmov %vm18749_vm0 }
 0x57a   : > { %18711 = vst [vmem:[#allocation29_spill] sm:$0xff] %v15440_v19 }
 0x57b   : > { %5646 = vrot.lane.b32.xlu2 %v15385_v10, %s10549_s11  ;;  %5644 = vrot.lane.b32.xlu0 %v15407_v57, %s10549_s11  ;;  %v15450_v58 = vsel %vm18715_vm3, %v6187_v11, %v6189_v40  ;;  %vm18757_vm3 = vmmov %vm18749_vm0 }
 0x57c   : > { %18716 = vst [vmem:[#allocation22_spill] sm:$0xff] %v15450_v58 }
 0x57d   : > { %v15425_v0 = vpop.permute.xlu0 %5400  ;;  %v15427_v24 = vpop.permute.xlu2 %5420 }
 0x57e   : > { %5648 = vrot.lane.b32.xlu1 %v15405_v25, %s10549_s11  ;;  %18708 = vst [vmem:[#allocation25_spill] sm:$0xff] %v15425_v0 }
 0x57f   : > { %18709 = vst [vmem:[#allocation52_spill] sm:$0xff] %v15427_v24 }
 0x580   : > { %v15423_v18 = vpop.permute.xlu1 %5404 }
 0x581   : > { %18707 = vst [vmem:[#allocation30_spill] sm:$0xff] %v15423_v18  ;;  %v15499_v18 = vld [vmem:[#allocation2 + $0xf8] sm:$0xff] }
 0x583   : > { %5652 = vrot.lane.b32.xlu2 %v15429_v31, %s10549_s11  ;;  %5650 = vrot.lane.b32.xlu0 %v10405_v62, %s10549_s11  ;;  %v15462_v62 = vld [vmem:[#allocation2 + $0xdc] sm:$0xf0] }
 0x584   : > { %18717 = vst [vmem:[#allocation20_spill] sm:$0xff] %v15462_v62 }
 0x585   : > { %v15444_v35 = vpop.permute.xlu0 %5406  ;;  %v15447_v24 = vpop.permute.xlu2 %5426 }
 0x586   : > { %5654 = vrot.lane.b32.xlu1 %v15415_v50, %s10549_s11  ;;  %18713 = vst [vmem:[#allocation5_spill] sm:$0xff] %v15444_v35 }
 0x587   : > { %18714 = vst [vmem:[#allocation42_spill] sm:$0xff] %v15447_v24 }
 0x588   : > { %v15442_v9 = vpop.permute.xlu1 %5410 }
 0x589   : > { %18712 = vst [vmem:[#allocation38_spill] sm:$0xff] %v15442_v9  ;;  %v15475_v9 = vld [vmem:[#allocation2 + $0xe4] sm:$0xff] }
 0x58b   : > { %5658 = vrot.lane.b32.xlu2 %v15456_v43, %s10549_s11  ;;  %5656 = vrot.lane.b32.xlu0 %v15454_v36, %s10549_s11 }
 0x58d   : > { %v15470_v40 = vpop.permute.xlu0 %5412  ;;  %v15472_v24 = vpop.permute.xlu2 %5432 }
 0x58e   : > { %5660 = vrot.lane.b32.xlu1 %v15452_v61, %s10549_s11  ;;  %18719 = vst [vmem:[#allocation26_spill] sm:$0xff] %v15470_v40 }
 0x58f   : > { %18720 = vst [vmem:[#allocation50_spill] sm:$0xff] %v15472_v24 }
 0x590   : > { %v15468_v11 = vpop.permute.xlu1 %5416 }
 0x591   : > { %18718 = vst [vmem:[#allocation31_spill] sm:$0xff] %v15468_v11  ;;  %v5835_v11 = vshrl.u32 %v15389_v30, 16  ;;  %v15507_v30 = vld [vmem:[#allocation2 + $0x12c] sm:$0xff]  }
 0x593   : > { %5664 = vrot.lane.b32.xlu2 %v15475_v9, %s10549_s11  ;;  %5662 = vrot.lane.b32.xlu0 %v15460_v44, %s10549_s11  ;;  %v5840_v23 = vor.u32 %v5839_v59, %v5835_v11 }
 0x595   : > { %v15490_v5 = vpop.permute.xlu0 %5418  ;;  %v15493_v35 = vpop.permute.xlu2 %5438 }
 0x596   : > { %5666 = vrot.lane.b32.xlu1 %v15019_v13, %s10549_s11  ;;  %18723 = vst [vmem:[#allocation34_spill] sm:$0xff] %v15490_v5  ;;  %v15503_v13 = vsel %vm18725_vm13, %v5840_v23, %v15495_v32  ;;  %v4554_v5 = vld [vmem:[#allocation2 + $0x88] sm:$0x1]  ;;  %vm18759_vm13 = vmmov %vm18749_vm0 }
 0x597   : > { %18724 = vst [vmem:[#allocation17_spill] sm:$0xff] %v15493_v35  ;;  %v5707_v23 = vunpack.c.l.b16 %v4554_v5  ;;  %v4549_v35 = vld [vmem:[#allocation2 + $0x24] sm:$0x1] }
 0x598   : > { %v15488_v40 = vpop.permute.xlu1 %5422  ;;  %v5702_v41 = vunpack.c.l.b16 %v4549_v35  ;;  %v18282_v35 = vrot.slane %v15407_v57, 1 }
 0x599   : > { %18722 = vst [vmem:[#allocation45_spill] sm:$0xff] %v15488_v40  ;;  %v15509_v40 = vld [vmem:[#allocation2 + $0x12c] sm:$0xf0]  ;;  %v15523_v28 = vpack.c.b16 %v5707_v23, %v5707_v23 }
 0x59a   : > { %18726 = vst [vmem:[#allocation8_spill] sm:$0xff] %v15509_v40 }
 0x59b   : > { %5670 = vrot.lane.b32.xlu2 %v15477_v55, %s10549_s11  ;;  %5668 = vrot.lane.b32.xlu0 %v15499_v18, %s10549_s11  ;;  %v6194_v23 = vrot.slane %v15523_v28, 1 }
 0x59d   : > { %v15517_v52 = vpop.permute.xlu0 %5424  ;;  %v15519_v11 = vpop.permute.xlu2 %5444  ;;  %v15545_v24 = vsel %vm18733_vm10, %v18282_v35, %v6194_v23  ;;  %v5703_v23 = vunpack.c.l.b16 %v4550_v63  ;;  %v5746_v35 = vshrl.u32 %v15329_v51, 16  ;;  %vm18760_vm10 = vmmov %vm18749_vm0 }
 0x59e   : > { %5672 = vrot.lane.b32.xlu1 %v15497_v22, %s10549_s11  ;;  %18728 = vst [vmem:[#allocation44_spill] sm:$0xff] %v15517_v52  ;;  %v5742_v52 = vshll.u32 %v15329_v51, 16 }
 0x59f   : > { %18729 = vst [vmem:[#allocation7_spill] sm:$0xff] %v15519_v11  ;;  %v15536_v11 = vpack.c.b16 %v5702_v41, %v5702_v41  ;;  %v15551_v41 = vld [vmem:[#allocation2 + $0x134] sm:$0xff]  ;;  %v15572_v49 = vpack.c.b16 %v5703_v23, %v5703_v23  ;;  %v4555_v23 = vld [vmem:[#allocation2 + $0x9c] sm:$0x1] }
 0x5a0   : > { %v15515_v59 = vpop.permute.xlu1 %5428  ;;  %18734 = vst [vmem:[#allocation82_spill] sm:$0xff] %v15545_v24  ;;  %v5744_v0 = vrot.slane %v5742_v52, 1 }
 0x5a1   : > { %18727 = vst [vmem:[#allocation11_spill] sm:$0xff] %v15515_v59  ;;  %v5750_v39 = vshll.u32 %v15536_v11, 16 }
 0x5a2   : > { %v5748_v47 = vor.u32 %v5746_v35, %v5744_v0 }
 0x5a3   : > { %5676 = vrot.lane.b32.xlu2 %v15521_v8, %s10549_s11  ;;  %5674 = vrot.lane.b32.xlu0 %v15103_v14, %s10549_s11  ;;  %v5757_v14 = vshll.u32 %v15351_v53, 16  ;;  %v5752_v62 = vrot.slane %v5750_v39, 1  ;;  %v5790_v39 = vshll.u32 %v15270_v42, 16  ;;  %v5770_v53 = vshll.u32 %v15572_v49, 16 }
 0x5a5   : > { %v15533_v5 = vpop.permute.xlu0 %5430  ;;  %v15540_v12 = vpop.permute.xlu2 %5450  ;;  %v5759_v26 = vrot.slane %v5757_v14, 1  ;;  %v5753_v14 = vsel %vm18738_vm2, %v5748_v47, %v5752_v62  ;;  %v5792_v47 = vrot.slane %v5790_v39, 1  ;;  %v5708_v39 = vunpack.c.l.b16 %v4555_v23  ;;  %vm18763_vm2 = vmmov %vm18749_vm0 }
 0x5a6   : > { %5678 = vrot.lane.b32.xlu1 %v15507_v30, %s10549_s11  ;;  %18731 = vst [vmem:[#allocation19_spill] sm:$0xff] %v15533_v5  ;;  %v5737_v5 = vshll.u32 %v15310_v38, 16  ;;  %v5786_v38 = vshrl.u32 %v15235_v56, 16  ;;  %v5806_v56 = vshrl.u32 %v15314_v3, 16  ;;  %v5857_v23 = vshll.u32 %v15385_v10, 16 }
 0x5a7   : > { %18732 = vst [vmem:[#allocation83_spill] sm:$0xff] %v15540_v12  ;;  %v5762_v12 = vshll.u32 %v15347_v46, 16  ;;  %v5760_v58 = vor.u32 %v5759_v26, %v5755_v6  ;;  %v5766_v6 = vshrl.u32 %v15347_v46, 16 }
 0x5a8   : > { %v15531_v59 = vpop.permute.xlu1 %5434  ;;  %v5739_v21 = vrot.slane %v5737_v5, 1 }
 0x5a9   : > { %18730 = vst [vmem:[#allocation21_spill] sm:$0xff] %v15531_v59  ;;  %v15549_v59 = vld [vmem:[#allocation2 + $0x148] sm:$0xff]  ;;  %v5764_v24 = vrot.slane %v5762_v12, 1 }
 0x5aa   : > { %18735 = vst [vmem:[#allocation67_spill] sm:$0xff] %v15549_v59  ;;  %v5740_v19 = vor.u32 %v5739_v21, %v5735_v60  ;;  %v5772_v60 = vrot.slane %v5770_v53, 1  ;;  %v5895_v53 = vshrl.u32 %v15415_v50, 16 }
 0x5ab   : > { %5682 = vrot.lane.b32.xlu2 %v15553_v54, %s10549_s11  ;;  %5680 = vrot.lane.b32.xlu0 %v15551_v41, %s10549_s11  ;;  %v5765_v5 = vsel %vm18739_vm14, %v5760_v58, %v5764_v24  ;;  %v5788_v58 = vor.u32 %v5786_v38, %v15249_v2  ;;  %v5768_v42 = vor.u32 %v5766_v6, %v5764_v24  ;;  %v5850_v6 = vshll.u32 %v15523_v28, 16  ;;  %vm18764_vm14 = vmmov %vm18749_vm0 }
 0x5ac   : > { %v5808_v24 = vor.u32 %v5806_v56, %v15327_v17  ;;  %v5830_v17 = vshll.u32 %v15431_v7, 16  ;;  %v5862_v28 = vshll.u32 %v15405_v25, 16  ;;  %v15624_v7 = vpack.c.b16 %v5708_v39, %v5708_v39  ;;  %v4556_v39 = vld [vmem:[#allocation2 + $0xb0] sm:$0x1] }
 0x5ad   : > { %v15566_v52 = vpop.permute.xlu0 %5436  ;;  %v15569_v63 = vpop.permute.xlu2 %5456  ;;  %v5773_v62 = vsel %vm18743_vm9, %v5768_v42, %v5772_v60  ;;  %v5846_v60 = vshrl.u32 %v15407_v57, 16  ;;  %v5852_v56 = vrot.slane %v5850_v6, 1  ;;  %v5859_v6 = vrot.slane %v5857_v23, 1  ;;  %vm18769_vm9 = vmmov %vm18749_vm0 }
 0x5ae   : > { %5684 = vrot.lane.b32.xlu1 %v15549_v59, %s10549_s11  ;;  %18737 = vst [vmem:[#allocation37_spill] sm:$0xff] %v15569_v63  ;;  %s10555_s11 = smov 64  }
 0x5b0   : > { %v15564_v40 = vpop.permute.xlu1 %5440 }
 0x5b1   : > { %18736 = vst [vmem:[#allocation75_spill] sm:$0xff] %v15564_v40  ;;  %v5745_v40 = vsel %vm18740_vm12, %v5740_v19, %v5744_v0  ;;  %v5810_v0 = vshll.u32 %v15349_v48, 16  ;;  %v5793_v19 = vsel %vm18742_vm8, %v5788_v58, %v5792_v47  ;;  %v4557_v58 = vld [vmem:[#allocation2 + $0xc4] sm:$0x1]  ;;  %vm18765_vm12 = vmmov %vm18749_vm0 }
 0x5b2   : > { %vm18768_vm8 = vmmov %vm18749_vm0 }
 0x5b3   : > { %6056 = vrot.lane.b32.xlu2 %v5753_v14, %s10551_s13  ;;  %6054 = vrot.lane.b32.xlu0 %v5745_v40, %s10551_s13  ;;  %v5812_v48 = vrot.slane %v5810_v0, 1  ;;  %v5902_v14 = vshll.u32 %v15454_v36, 16 }
 0x5b5   : > { %v15586_v21 = vpop.permute.xlu0 %5442  ;;  %v15589_v12 = vpop.permute.xlu2 %5622  ;;  %v5904_v47 = vrot.slane %v5902_v14, 1  ;;  %v5864_v14 = vrot.slane %v5862_v28, 1 }
 0x5b6   : > { %6058 = vrot.lane.b32.xlu1 %v5765_v5, %s10551_s13  ;;  %v5813_v5 = vsel %vm18746_vm15, %v5808_v24, %v5812_v48  ;;  %vm18770_vm15 = vmmov %vm18749_vm0 }
 0x5b8   : > { %v15584_v26 = vpop.permute.xlu1 %5446 }
 0x5b9   : > { %18741 = vst [vmem:[#allocation76_spill] sm:$0xff] %v15584_v26  ;;  %v6037_v26 = vshll.u32 %v15553_v54, 16 }
 0x5bb   : > { %6062 = vrot.lane.b32.xlu2 %v15258_v15, %s10551_s13  ;;  %6060 = vrot.lane.b32.xlu0 %v5773_v62, %s10551_s13  ;;  %v5897_v15 = vshll.u32 %v15415_v50, 16  ;;  %v5826_v50 = vshrl.u32 %v15383_v1, 16  ;;  %v5710_v62 = vunpack.c.l.b16 %v4557_v58  ;;  %v5832_v1 = vrot.slane %v5830_v17, 1 }
 0x5bc   : > { %v5709_v17 = vunpack.c.l.b16 %v4556_v39 }
 0x5bd   : > { %v15601_v40 = vpop.permute.xlu0 %5448  ;;  %v15604_v35 = vpop.permute.xlu2 %5628  ;;  %v5899_v38 = vrot.slane %v5897_v15, 1  ;;  %v5828_v48 = vor.u32 %v5826_v50, %v15403_v4  ;;  %v5870_v15 = vshll.u32 %v15624_v7, 16  ;;  %v5866_v4 = vshrl.u32 %v15405_v25, 16 }
 0x5be   : > { %6064 = vrot.lane.b32.xlu1 %v5793_v19, %s10551_s13  ;;  %18745 = vst [vmem:[#allocation43_spill] sm:$0xff] %v15601_v40 }
 0x5bf   : > { %v5900_v42 = vor.u32 %v5899_v38, %v5895_v53  ;;  %v5833_v38 = vsel %vm18751_vm5, %v5828_v48, %v5832_v1  ;;  %v5872_v50 = vrot.slane %v5870_v15, 1  ;;  %v18283_v48 = vrot.slane %v15454_v36, 1  ;;  %vm18774_vm5 = vmmov %vm18749_vm0 }
 0x5c0   : > { %v15599_v2 = vpop.permute.xlu1 %5452 }
 0x5c1   : > { %18744 = vst [vmem:[#allocation9_spill] sm:$0xff] %v15599_v2 }
 0x5c3   : > { %6068 = vrot.lane.b32.xlu2 %v5813_v5, %s10551_s13  ;;  %6066 = vrot.lane.b32.xlu0 %v15333_v34, %s10551_s13  ;;  %v5848_v34 = vor.u32 %v5846_v60, %v15495_v32  ;;  %v5726_v5 = vpack.c.b16 %v5710_v62, %v5710_v62  ;;  %v5882_v32 = vshll.u32 %v15429_v31, 16  ;;  %v5868_v60 = vor.u32 %v5866_v4, %v5864_v14 }
 0x5c4   : > { %v5906_v4 = vshrl.u32 %v15454_v36, 16 }
 0x5c5   : > { %v15621_v19 = vpop.permute.xlu0 %5454  ;;  %v15630_v24 = vpop.permute.xlu2 %5634  ;;  %v5853_v53 = vsel %vm18750_vm1, %v5848_v34, %v5852_v56  ;;  %v6209_v28 = vrot.slane %v5726_v5, 1  ;;  %v5884_v62 = vrot.slane %v5882_v32, 1  ;;  %v4558_v56 = vld [vmem:[#allocation2 + $0xd8] sm:$0x1]  ;;  %v5873_v39 = vsel %vm18755_vm11, %v5868_v60, %v5872_v50  ;;  %vm18773_vm1 = vmmov %vm18749_vm0 }
 0x5c6   : > { %6070 = vrot.lane.b32.xlu1 %v15411_v27, %s10551_s13  ;;  %18748 = vst [vmem:[#allocation18_spill] sm:$0xff] %v15621_v19  ;;  %v15627_v27 = vsel %vm18749_vm0, %v5900_v42, %v5904_v47  ;;  %v5711_v15 = vunpack.c.l.b16 %v4558_v56  ;;  %vm18780_vm11 = vmmov %vm18749_vm0 }
 0x5c7   : > { %v15656_v23 = vsel %vm18754_vm6, %v18283_v48, %v6209_v28  ;;  %vm18779_vm6 = vmmov %vm18749_vm0 }
 0x5c8   : > { %v15619_v0 = vpop.permute.xlu1 %5458  ;;  %v15674_v28 = vpack.c.b16 %v5711_v15, %v5711_v15 }
 0x5c9   : > { %18747 = vst [vmem:[#allocation6_spill] sm:$0xff] %v15619_v0 }
 0x5ca   : > { %v5930_v63 = vshll.u32 %v15674_v28, 16 }
 0x5cb   : > { %6074 = vrot.lane.b32.xlu2 %v15503_v13, %s10551_s13  ;;  %6072 = vrot.lane.b32.xlu0 %v5833_v38, %s10551_s13  ;;  %v5855_v13 = vshrl.u32 %v15385_v10, 16  ;;  %v5885_v38 = vsel %vm18756_vm7, %v14905_v33, %v5884_v62  ;;  %v5910_v10 = vshll.u32 %v5726_v5, 16  ;;  %v5937_v33 = vshll.u32 %v15460_v44, 16  ;;  %vm18781_vm7 = vmmov %vm18749_vm0 }
 0x5cc   : > { %v5908_v5 = vor.u32 %v5906_v4, %v5904_v47  ;;  %v5926_v4 = vshrl.u32 %v15452_v61, 16 }
 0x5cd   : > { %v15645_v42 = vpop.permute.xlu0 %5460  ;;  %v15647_v34 = vpop.permute.xlu2 %5640  ;;  %v5860_v1 = vor.u32 %v5859_v6, %v5855_v13  ;;  %v5886_v6 = vshrl.u32 %v15429_v31, 16  ;;  %v5912_v13 = vrot.slane %v5910_v10, 1  ;;  %v5942_v10 = vshll.u32 %v15475_v9, 16 }
 0x5ce   : > { %6076 = vrot.lane.b32.xlu1 %v5853_v53, %s10551_s13  ;;  %18752 = vst [vmem:[#allocation66_spill] sm:$0xff] %v15645_v42  ;;  %v15651_v53 = vpack.c.b16 %v5709_v17, %v5709_v17  ;;  %v5939_v42 = vrot.slane %v5937_v33, 1 }
 0x5cf   : > { %18753 = vst [vmem:[#allocation48_spill] sm:$0xff] %v15647_v34  ;;  %v5865_v32 = vsel %vm18757_vm3, %v5860_v1, %v5864_v14  ;;  %v5922_v14 = vshll.u32 %v15452_v61, 16  ;;  %v5888_v1 = vor.u32 %v5886_v6, %v5884_v62  ;;  %v5913_v19 = vsel %vm18759_vm13, %v5908_v5, %v5912_v13  ;;  %vm18783_vm3 = vmmov %vm18749_vm0 }
 0x5d0   : > { %v15643_v58 = vpop.permute.xlu1 %5624  ;;  %v5890_v17 = vshll.u32 %v15651_v53, 16  ;;  %v5935_v62 = vshrl.u32 %v15460_v44, 16  ;;  %v5915_v5 = vshrl.u32 %v15456_v43, 16  ;;  %v5962_v44 = vshll.u32 %v15499_v18, 16 }
 0x5d1   : > { %v5924_v0 = vrot.slane %v5922_v14, 1  ;;  %vm18784_vm13 = vcmask 1046528  }
 0x5d2   : > { %v5892_v48 = vrot.slane %v5890_v17, 1  ;;  %v5940_v33 = vor.u32 %v5939_v42, %v5935_v62 }
 0x5d3   : > { %6080 = vrot.lane.b32.xlu2 %v5873_v39, %s10551_s13  ;;  %6078 = vrot.lane.b32.xlu0 %v5865_v32, %s10551_s13  ;;  %v4560_v39 = vld [vmem:[#allocation2 + $0x100] sm:$0x1]  ;;  %v5917_v32 = vshll.u32 %v15456_v43, 16  ;;  %v5928_v14 = vor.u32 %v5926_v4, %v5924_v0  ;;  %v5964_v43 = vrot.slane %v5962_v44, 1 }
 0x5d4   : > { %v5893_v2 = vsel %vm18760_vm10, %v5888_v1, %v5892_v48  ;;  %v5713_v47 = vunpack.c.l.b16 %v4560_v39  ;;  %v4561_v1 = vld [vmem:[#allocation2 + $0x114] sm:$0x1]  ;;  %v5944_v39 = vrot.slane %v5942_v10, 1  ;;  %v5946_v10 = vshrl.u32 %v15475_v9, 16  ;;  %vm18785_vm10 = vmmov %vm18749_vm0 }
 0x5d5   : > { %v15670_v50 = vpop.permute.xlu0 %5626  ;;  %v15676_v56 = vpop.permute.xlu2 %5646  ;;  %v5919_v6 = vrot.slane %v5917_v32, 1  ;;  %v5714_v62 = vunpack.c.l.b16 %v4561_v1 }
 0x5d6   : > { %6082 = vrot.lane.b32.xlu1 %v5885_v38, %s10551_s13  ;;  %18758 = vst [vmem:[#allocation85_spill] sm:$0xff] %v15676_v56  ;;  %v4559_v38 = vld [vmem:[#allocation2 + $0xec] sm:$0x1]  ;;  %v5945_v32 = vsel %vm18763_vm2, %v5940_v33, %v5944_v39  ;;  %v5948_v1 = vor.u32 %v5946_v10, %v5944_v39  ;;  %v6002_v56 = vshll.u32 %v15521_v8, 16  ;;  %vm18788_vm2 = vmmov %vm18784_vm13 }
 0x5d7   : > { %v5712_v15 = vunpack.c.l.b16 %v4559_v38  ;;  %v5920_v38 = vor.u32 %v5919_v6, %v5915_v5 }
 0x5d8   : > { %v15668_v60 = vpop.permute.xlu1 %5630  ;;  %v6004_v10 = vrot.slane %v6002_v56, 1 }
 0x5da   : > { %v6005_v56 = vsel %vm18749_vm0, %v15119_v37, %v6004_v10  ;;  %v6006_v37 = vshrl.u32 %v15521_v8, 16  ;;  %vm18809_vm0 = vmmov %vm18788_vm2 }
 0x5db   : > { %6086 = vrot.lane.b32.xlu2 %v15627_v27, %s10551_s13  ;;  %6084 = vrot.lane.b32.xlu0 %v5893_v2, %s10551_s13  ;;  %v5932_v27 = vrot.slane %v5930_v63, 1  ;;  %v15699_v2 = vpack.c.b16 %v5712_v15, %v5712_v15  ;;  %v5925_v63 = vsel %vm18765_vm12, %v5920_v38, %v5924_v0  ;;  %v5966_v15 = vshrl.u32 %v15499_v18, 16  ;;  %vm18790_vm12 = vmmov %vm18788_vm2 }
 0x5dc   : > { %v5982_v0 = vshll.u32 %v15497_v22, 16 }
 0x5dd   : > { %v15691_v48 = vpop.permute.xlu0 %5632  ;;  %v15694_v13 = vpop.permute.xlu2 %5652  ;;  %v5933_v42 = vsel %vm18764_vm14, %v5928_v14, %v5932_v27  ;;  %v5950_v4 = vshll.u32 %v15699_v2, 16  ;;  %v15716_v14 = vpack.c.b16 %v5714_v62, %v5714_v62  ;;  %v5968_v27 = vor.u32 %v5966_v15, %v5964_v43  ;;  %vm18789_vm14 = vmmov %vm18788_vm2 }
 0x5de   : > { %6088 = vrot.lane.b32.xlu1 %v5913_v19, %s10551_s13  ;;  %18762 = vst [vmem:[#allocation87_spill] sm:$0xff] %v15694_v13  ;;  %v15696_v19 = vpack.c.b16 %v5713_v47, %v5713_v47  ;;  %v5965_v13 = vsel %vm18768_vm8, %v15054_v29, %v5964_v43  ;;  %v5986_v15 = vshrl.u32 %v15497_v22, 16  ;;  %vm18794_vm8 = vmmov %vm18788_vm2 }
 0x5df   : > { %v5952_v38 = vrot.slane %v5950_v4, 1  ;;  %v5990_v40 = vshll.u32 %v15716_v14, 16 }
 0x5e0   : > { %v15689_v17 = vpop.permute.xlu1 %5636  ;;  %v5970_v47 = vshll.u32 %v15696_v19, 16 }
 0x5e1   : > { %18761 = vst [vmem:[#allocation86_spill] sm:$0xff] %v15689_v17 }
 0x5e2   : > { %v5972_v5 = vrot.slane %v5970_v47, 1  ;;  %v5953_v47 = vsel %vm18770_vm15, %v5948_v1, %v5952_v38  ;;  %v6022_v38 = vshll.u32 %v15551_v41, 16  ;;  %vm18806_vm15 = vmmov %vm18788_vm2 }
 0x5e3   : > { %6092 = vrot.lane.b32.xlu2 %v5933_v42, %s10551_s13  ;;  %6090 = vrot.lane.b32.xlu0 %v5925_v63, %s10551_s13  ;;  %v4562_v42 = vld [vmem:[#allocation2 + $0x128] sm:$0x1]  ;;  %v5977_v63 = vshll.u32 %v15477_v55, 16 }
 0x5e4   : > { %v5973_v62 = vsel %vm18769_vm9, %v5968_v27, %v5972_v5  ;;  %v5715_v4 = vunpack.c.l.b16 %v4562_v42  ;;  %v5992_v27 = vrot.slane %v5990_v40, 1  ;;  %v4564_v42 = vld [vmem:[#allocation2 + $0x150] sm:$0x1]  ;;  %vm18804_vm9 = vmmov %vm18788_vm2 }
 0x5e5   : > { %v15713_v33 = vpop.permute.xlu0 %5638  ;;  %v15718_v44 = vpop.permute.xlu2 %5658  ;;  %v5979_v29 = vrot.slane %v5977_v63, 1  ;;  %v6017_v63 = vshll.u32 %v15507_v30, 16  ;;  %v5717_v40 = vunpack.c.l.b16 %v4564_v42 }
 0x5e6   : > { %6094 = vrot.lane.b32.xlu1 %v5945_v32, %s10551_s13  ;;  %18767 = vst [vmem:[#allocation89_spill] sm:$0xff] %v15713_v33  ;;  %v4563_v32 = vld [vmem:[#allocation2 + $0x13c] sm:$0x1] }
 0x5e7   : > { %v5716_v39 = vunpack.c.l.b16 %v4563_v32  ;;  %v15741_v32 = vpack.c.b16 %v5715_v4, %v5715_v4  ;;  %v15761_v42 = vpack.c.b16 %v5717_v40, %v5717_v40 }
 0x5e8   : > { %v15711_v6 = vpop.permute.xlu1 %5642 }
 0x5e9   : > { %18766 = vst [vmem:[#allocation88_spill] sm:$0xff] %v15711_v6  ;;  %v5984_v6 = vrot.slane %v5982_v0, 1  ;;  %v15738_v1 = vpack.c.b16 %v5716_v39, %v5716_v39  ;;  %v6010_v4 = vshll.u32 %v15741_v32, 16 }
 0x5ea   : > { %18777 = vst [vmem:[#allocation94_spill] sm:$0xff] %v15761_v42 }
 0x5eb   : > { %6098 = vrot.lane.b32.xlu2 %v5965_v13, %s10551_s13  ;;  %6096 = vrot.lane.b32.xlu0 %v5953_v47, %s10551_s13  ;;  %v5988_v34 = vor.u32 %v5986_v15, %v5984_v6  ;;  %v5975_v13 = vshrl.u32 %v15477_v55, 16  ;;  %v6024_v55 = vrot.slane %v6022_v38, 1  ;;  %v6030_v39 = vshll.u32 %v15738_v1, 16 }
 0x5ec   : > { %v6042_v38 = vshll.u32 %v15549_v59, 16 }
 0x5ed   : > { %v15733_v0 = vpop.permute.xlu0 %5644  ;;  %v15735_v5 = vpop.permute.xlu2 %5664  ;;  %v5993_v47 = vsel %vm18773_vm1, %v5988_v34, %v5992_v27  ;;  %vm18810_vm1 = vmmov %vm18809_vm0 }
 0x5ee   : > { %6100 = vrot.lane.b32.xlu1 %v5973_v62, %s10551_s13  ;;  %18772 = vst [vmem:[#allocation91_spill] sm:$0xff] %v15733_v0  ;;  %v5980_v62 = vor.u32 %v5979_v29, %v5975_v13  ;;  %v6019_v29 = vrot.slane %v6017_v63, 1  ;;  %v6026_v13 = vshrl.u32 %v15551_v41, 16  ;;  %v6012_v63 = vrot.slane %v6010_v4, 1  ;;  %v10463_v0 = vld [vmem:[#allocation2 + $0x14] sm:$0xe] }
 0x5ef   : > { %v6044_v33 = vrot.slane %v6042_v38, 1  ;;  %v10464_v4 = vor.u32 %v10463_v0, %v15312_v45  ;;  %v9987_v0 = vld [vmem:[#allocation2 + $0x28] sm:$0xe] }
 0x5f0   : > { %v15731_v43 = vpop.permute.xlu1 %5648  ;;  %v5985_v15 = vsel %vm18774_vm5, %v5980_v62, %v5984_v6  ;;  %v6015_v6 = vshrl.u32 %v15507_v30, 16  ;;  %v6028_v62 = vor.u32 %v6026_v13, %v6024_v55  ;;  %vm18811_vm5 = vmmov %vm18809_vm0 }
 0x5f1   : > { %18771 = vst [vmem:[#allocation90_spill] sm:$0xff] %v15731_v43 }
 0x5f2   : > { %v6020_v43 = vor.u32 %v6019_v29, %v6015_v6  ;;  %v6167_v6 = vrot.slane %v15329_v51, 1 }
 0x5f3   : > { %6104 = vrot.lane.b32.xlu2 %v5993_v47, %s10551_s13  ;;  %6102 = vrot.lane.b32.xlu0 %v5985_v15, %s10551_s13  ;;  %v6032_v47 = vrot.slane %v6030_v39, 1  ;;  %v6008_v15 = vor.u32 %v6006_v37, %v6004_v10  ;;  %v6046_v10 = vshrl.u32 %v15549_v59, 16  ;;  %v6039_v39 = vrot.slane %v6037_v26, 1 }
 0x5f4   : > { %v6035_v37 = vshrl.u32 %v15553_v54, 16 }
 0x5f5   : > { %v15757_v27 = vpop.permute.xlu0 %5650  ;;  %v6033_v30 = vsel %vm18780_vm11, %v6028_v62, %v6032_v47  ;;  %v6013_v40 = vsel %vm18781_vm7, %v6008_v15, %v6012_v63  ;;  %v6166_v62 = vrot.slane %v10464_v4, 1  ;;  %v9986_v47 = vld [vmem:[#allocation2 + $0x28] sm:$0xf0]  ;;  %vm18817_vm11 = vmmov %vm18809_vm0 }
 0x5f6   : > { %6106 = vrot.lane.b32.xlu1 %v6005_v56, %s10551_s13  ;;  %18776 = vst [vmem:[#allocation93_spill] sm:$0xff] %v15757_v27  ;;  %v15763_v56 = vpop.permute.xlu2 %5670  ;;  %v6050_v27 = vshll.u32 %v15761_v42, 16  ;;  %v6040_v38 = vor.u32 %v6039_v39, %v6035_v37  ;;  %v9988_v51 = vor.u32 %v9987_v0, %v9986_v47  ;;  %v9989_v39 = vld [vmem:[#allocation2 + $0x50] sm:$0xf0]  ;;  %v18793_v47 = vrot.slane %v15314_v3, 1  ;;  %v18797_v3 = vld [vmem:[#allocation29_spill] sm:$0xff]  ;;  %vm18820_vm7 = vmmov %vm18809_vm0 }
 0x5f7   : > { %18778 = vst [vmem:[#allocation95_spill] sm:$0xff] %v15763_v56  ;;  %v6168_v26 = vsel %vm18784_vm13, %v6166_v62, %v6167_v6  ;;  %v10466_v0 = vld [vmem:[#allocation2 + $0x8c] sm:$0xe]  ;;  %vm18822_vm13 = vmmov %vm18809_vm0  ;;  %v10025_v56 = vld [vmem:[#allocation2 + $0xf0] sm:$0xf0] }
 0x5f8   : > { %v15755_v34 = vpop.permute.xlu1 %5654  ;;  %v6052_v13 = vrot.slane %v6050_v27, 1  ;;  %v6045_v45 = vsel %vm18785_vm10, %v6040_v38, %v6044_v33  ;;  %v6172_v27 = vrot.slane %v15347_v46, 1  ;;  %v9990_v46 = vld [vmem:[#allocation2 + $0x50] sm:$0xe]  ;;  %vm18826_vm10 = vmmov %vm18809_vm0 }
 0x5f9   : > { %18775 = vst [vmem:[#allocation92_spill] sm:$0xff] %v15755_v34  ;;  %v6025_v34 = vsel %vm18779_vm6, %v6020_v43, %v6024_v55  ;;  %v6048_v55 = vor.u32 %v6046_v10, %v6044_v33  ;;  %v6169_v33 = vrot.slane %v15536_v11, 1  ;;  %v6171_v10 = vrot.slane %v9988_v51, 1  ;;  %v9992_v51 = vld [vmem:[#allocation2 + $0x78] sm:$0xf0]  ;;  %vm18815_vm6 = vmmov %vm18809_vm0 }
 0x5fb   : > { %6110 = vrot.lane.b32.xlu2 %v6025_v34, %s10551_s13  ;;  %6108 = vrot.lane.b32.xlu0 %v6013_v40, %s10551_s13  ;;  %v6053_v15 = vsel %vm18783_vm3, %v6048_v55, %v6052_v13  ;;  %v6173_v4 = vsel %vm18788_vm2, %v6171_v10, %v6172_v27  ;;  %v6170_v13 = vsel %vm18790_vm12, %v6167_v6, %v6169_v33  ;;  %v18800_v33 = vld [vmem:[#allocation36_spill] sm:$0xff]  ;;  %vm18821_vm3 = vmmov %vm18809_vm0 }
 0x5fc   : > { %vm18827_vm2 = vmmov %vm18809_vm0 }
 0x5fd   : > { %v15777_v43 = vpop.permute.xlu0 %5656  ;;  %vm18832_vm12 = vmmov %vm18809_vm0 }
 0x5fe   : > { %6112 = vrot.lane.b32.xlu1 %v6033_v30, %s10551_s13  ;;  %v15781_v34 = vpop.permute.xlu2 %5676  ;;  %v6174_v30 = vrot.slane %v15572_v49, 1  ;;  %v9991_v49 = vor.u32 %v9990_v46, %v9989_v39  ;;  %v9995_v46 = vld [vmem:[#allocation2 + $0xa0] sm:$0xf0] }
 0x5ff   : > { %18782 = vst [vmem:[#allocation96_spill] sm:$0xff] %v15781_v34 }
 0x600   : > { %v15775_v29 = vpop.permute.xlu1 %5660  ;;  %v6175_v55 = vsel %vm18789_vm14, %v6172_v27, %v6174_v30  ;;  %v6181_v62 = vrot.slane %v9991_v49, 1  ;;  %v18798_v27 = vld [vmem:[#allocation22_spill] sm:$0xff]  ;;  %v9993_v30 = vld [vmem:[#allocation2 + $0x78] sm:$0xe]  ;;  %vm18828_vm14 = vmmov %vm18809_vm0 }
 0x601   : > { %v9994_v10 = vor.u32 %v9993_v30, %v9992_v51  ;;  %v18807_v51 = vld [vmem:[#allocation82_spill] sm:$0xff] }
 0x603   : > { %6116 = vrot.lane.b32.xlu2 %v6053_v15, %s10551_s13  ;;  %6114 = vrot.lane.b32.xlu0 %v6045_v45, %s10551_s13  ;;  %v6183_v15 = vsel %vm18794_vm8, %v6181_v62, %v18793_v47  ;;  %v6191_v62 = vrot.slane %v9994_v10, 1  ;;  %v9996_v47 = vld [vmem:[#allocation2 + $0xa0] sm:$0xe]  ;;  %vm18833_vm8 = vmmov %vm18809_vm0 }
 0x605   : > { %v15792_v63 = vpop.permute.xlu0 %5662 }
 0x606   : > { %6246 = vrot.lane.b32.xlu1 %v6168_v26, %s10553_s7  ;;  %v15795_v40 = vpop.permute.xlu2 %5682 }
 0x607   : > { %18787 = vst [vmem:[#allocation98_spill] sm:$0xff] %v15795_v40  ;;  %v10478_v40 = vld [vmem:[#allocation2 + $0x12c] sm:$0xe] }
 0x608   : > { %v15789_v54 = vpop.permute.xlu1 %5666 }
 0x609   : > { %18786 = vst [vmem:[#allocation97_spill] sm:$0xff] %v15789_v54 }
 0x60b   : > { %6250 = vrot.lane.b32.xlu2 %v6173_v4, %s10553_s7  ;;  %6248 = vrot.lane.b32.xlu0 %v6170_v13, %s10553_s7 }
 0x60d   : > { %v15806_v38 = vpop.permute.xlu0 %5668 }
 0x60e   : > { %6252 = vrot.lane.b32.xlu1 %v6175_v55, %s10553_s7  ;;  %18792 = vst [vmem:[#allocation100_spill] sm:$0xff] %v15806_v38  ;;  %v15808_v11 = vpop.permute.xlu2 %6056  ;;  %v6197_v55 = vrot.slane %v15405_v25, 1 }
 0x610   : > { %v15804_v37 = vpop.permute.xlu1 %5672 }
 0x611   : > { %18791 = vst [vmem:[#allocation99_spill] sm:$0xff] %v15804_v37 }
 0x613   : > { %6256 = vrot.lane.b32.xlu2 %v15291_v20, %s10553_s7  ;;  %6254 = vrot.lane.b32.xlu0 %v15282_v16, %s10553_s7  ;;  %v18799_v20 = vld [vmem:[#allocation70_spill] sm:$0xff]  ;;  %v10467_v16 = vor.u32 %v10466_v0, %v18800_v33 }
 0x615   : > { %v15820_v26 = vpop.permute.xlu0 %5674  ;;  %v6196_v49 = vrot.slane %v10467_v16, 1  ;;  %v10469_v16 = vld [vmem:[#allocation2 + $0xb4] sm:$0xe] }
 0x616   : > { %6258 = vrot.lane.b32.xlu1 %v6183_v15, %s10553_s7  ;;  %18796 = vst [vmem:[#allocation102_spill] sm:$0xff] %v15820_v26  ;;  %v15822_v45 = vpop.permute.xlu2 %6062  ;;  %v9997_v15 = vor.u32 %v9996_v47, %v9995_v46  ;;  %v6204_v46 = vrot.slane %v15651_v53, 1 }
 0x618   : > { %v15818_v6 = vpop.permute.xlu1 %5678  ;;  %v6201_v33 = vrot.slane %v9997_v15, 1 }
 0x619   : > { %18795 = vst [vmem:[#allocation101_spill] sm:$0xff] %v15818_v6 }
 0x61b   : > { %6262 = vrot.lane.b32.xlu2 %v18797_v3, %s10553_s7  ;;  %6260 = vrot.lane.b32.xlu0 %v18799_v20, %s10553_s7  ;;  %v6198_v3 = vsel %vm18804_vm9, %v6196_v49, %v6197_v55  ;;  %v6202_v20 = vrot.slane %v15429_v31, 1  ;;  %v9998_v49 = vld [vmem:[#allocation2 + $0xc8] sm:$0xf0]  ;;  %vm18834_vm9 = vmmov %vm18809_vm0 }
 0x61c   : > { %v18812_v31 = vld [vmem:[#allocation35_spill] sm:$0xff] }
 0x61d   : > { %v15833_v4 = vpop.permute.xlu0 %5680  ;;  %v6203_v47 = vsel %vm18809_vm0, %v6201_v33, %v6202_v20  ;;  %v6212_v33 = vrot.slane %v15452_v61, 1 }
 0x61e   : > { %6264 = vrot.lane.b32.xlu1 %v18798_v27, %s10553_s7  ;;  %18802 = vst [vmem:[#allocation22_spill] sm:$0xff] %v15833_v4  ;;  %v15836_v13 = vpop.permute.xlu2 %6068  ;;  %v18805_v27 = vrot.slane %v15407_v57, 1  ;;  %v6199_v57 = vrot.slane %v15624_v7, 1  ;;  %v10472_v7 = vld [vmem:[#allocation2 + $0xdc] sm:$0xe] }
 0x61f   : > { %18803 = vst [vmem:[#allocation70_spill] sm:$0xff] %v15836_v13 }
 0x620   : > { %v15831_v39 = vpop.permute.xlu1 %5684  ;;  %v6193_v0 = vsel %vm18806_vm15, %v6191_v62, %v18805_v27  ;;  %v9999_v62 = vld [vmem:[#allocation2 + $0xc8] sm:$0xe]  ;;  %v6200_v27 = vsel %vm18811_vm5, %v6197_v55, %v6199_v57  ;;  %v18814_v57 = vld [vmem:[#allocation20_spill] sm:$0xff]  ;;  %vm18837_vm15 = vsmask.f32 7424  ;;  %vm18842_vm5 = vmmov %vm18809_vm0 }
 0x621   : > { %18801 = vst [vmem:[#allocation29_spill] sm:$0xff] %v15831_v39  ;;  %v10000_v15 = vor.u32 %v9999_v62, %v9998_v49  ;;  %v10475_v62 = vld [vmem:[#allocation2 + $0x104] sm:$0xe] }
 0x623   : > { %6268 = vrot.lane.b32.xlu2 %v18807_v51, %s10553_s7  ;;  %6266 = vrot.lane.b32.xlu0 %v6193_v0, %s10553_s7  ;;  %v10470_v0 = vor.u32 %v10469_v16, %v18812_v31  ;;  %v6211_v55 = vrot.slane %v10000_v15, 1  ;;  %v6219_v31 = vrot.slane %v15699_v2, 1  ;;  %v6217_v15 = vrot.slane %v15475_v9, 1  ;;  %v18823_v2 = vld [vmem:[#allocation49_spill] sm:$0xff] }
 0x625   : > { %v15849_v30 = vpop.permute.xlu0 %6054  ;;  %v6213_v16 = vsel %vm18815_vm6, %v6211_v55, %v6212_v33  ;;  %v6220_v55 = vsel %vm18821_vm3, %v6217_v15, %v6219_v31  ;;  %v10004_v31 = vld [vmem:[#allocation2 + $0x118] sm:$0xf0]  ;;  %vm18845_vm6 = vmmov %vm18809_vm0 }
 0x626   : > { %6270 = vrot.lane.b32.xlu1 %v6198_v3, %s10553_s7  ;;  %v15851_v10 = vpop.permute.xlu2 %6074  ;;  %v6205_v3 = vsel %vm18810_vm1, %v6202_v20, %v6204_v46  ;;  %v6206_v20 = vrot.slane %v10470_v0, 1  ;;  %v10473_v46 = vor.u32 %v10472_v7, %v18814_v57  ;;  %v10001_v7 = vld [vmem:[#allocation2 + $0xf0] sm:$0xf0]  ;;  %vm18840_vm1 = vmmov %vm18809_vm0 }
 0x627   : > { %18808 = vst [vmem:[#allocation36_spill] sm:$0xff] %v15851_v10 }
 0x628   : > { %v15846_v25 = vpop.permute.xlu1 %6058 }
 0x62b   : > { %6274 = vrot.lane.b32.xlu2 %v6203_v47, %s10553_s7  ;;  %6272 = vrot.lane.b32.xlu0 %v6200_v27, %s10553_s7  ;;  %v18816_v47 = vrot.slane %v15454_v36, 1  ;;  %v6216_v27 = vrot.slane %v10473_v46, 1  ;;  %v6214_v36 = vrot.slane %v15674_v28, 1  ;;  %v10476_v46 = vor.u32 %v10475_v62, %v18823_v2  ;;  %v15914_v2 = vld [vmem:[#allocation2 + $0x30] sm:$0xff] }
 0x62d   : > { %v15864_v53 = vpop.permute.xlu0 %6060  ;;  %v6215_v57 = vsel %vm18822_vm13, %v6212_v33, %v6214_v36  ;;  %v6222_v33 = vrot.slane %v15499_v18, 1  ;;  %v6226_v36 = vrot.slane %v10476_v46, 1  ;;  %v6232_v18 = vrot.slane %v15521_v8, 1  ;;  %vm18852_vm13 = vmmov %vm18809_vm0 }
 0x62e   : > { %6276 = vrot.lane.b32.xlu1 %v6205_v3, %s10553_s7  ;;  %v15867_v39 = vpop.permute.xlu2 %6080  ;;  %v6208_v3 = vsel %vm18817_vm11, %v6206_v20, %v18816_v47  ;;  %v10002_v20 = vld [vmem:[#allocation2 + $0xf0] sm:$0xe]  ;;  %v6224_v47 = vrot.slane %v15696_v19, 1  ;;  %vm18847_vm11 = vmmov %vm18809_vm0 }
 0x62f   : > { %18813 = vst [vmem:[#allocation82_spill] sm:$0xff] %v15867_v39 }
 0x630   : > { %v15862_v51 = vpop.permute.xlu1 %6064 }
 0x633   : > { %6280 = vrot.lane.b32.xlu2 %v15656_v23, %s10553_s7  ;;  %6278 = vrot.lane.b32.xlu0 %v6208_v3, %s10553_s7  ;;  %v6218_v23 = vsel %vm18820_vm7, %v6216_v27, %v6217_v15  ;;  %v6227_v3 = vrot.slane %v15497_v22, 1  ;;  %v9909_v22 = vld [vmem:[#allocation2 + $0x28] sm:$0xff]   ;;  %vm18848_vm7 = vmmov %vm18837_vm15 }
 0x634   : > { %vm18851_vm3 = vmmov %vm18848_vm7 }
 0x635   : > { %v15880_v49 = vpop.permute.xlu0 %6066 }
 0x636   : > { %6282 = vrot.lane.b32.xlu1 %v6213_v16, %s10553_s7  ;;  %v15883_v0 = vpop.permute.xlu2 %6086  ;;  %v10003_v16 = vor.u32 %v10002_v20, %v10001_v7  ;;  %v6228_v7 = vsel %vm18827_vm2, %v6226_v36, %v6227_v3  ;;  %v10010_v36 = vld [vmem:[#allocation2 + $0x28] sm:$0xf0]  ;;  %vm18856_vm2 = vmmov %vm18809_vm0 }
 0x637   : > { %18819 = vst [vmem:[#allocation20_spill] sm:$0xff] %v15883_v0 }
 0x638   : > { %v15878_v61 = vpop.permute.xlu1 %6070  ;;  %v6221_v15 = vrot.slane %v10003_v16, 1  ;;  %v6234_v16 = vrot.slane %v15741_v32, 1  ;;  %v10011_v32 = vld [vmem:[#allocation2 + $0x28] sm:$0xe] }
 0x639   : > { %18818 = vst [vmem:[#allocation35_spill] sm:$0xff] %v15878_v61 }
 0x63a   : > { %v6223_v20 = vsel %vm18828_vm14, %v6221_v15, %v6222_v33  ;;  %vm18859_vm14 = vmmov %vm18851_vm3 }
 0x63b   : > { %6286 = vrot.lane.b32.xlu2 %v6218_v23, %s10553_s7  ;;  %6284 = vrot.lane.b32.xlu0 %v6215_v57, %s10553_s7  ;;  %v10005_v23 = vld [vmem:[#allocation2 + $0x118] sm:$0xe] }
 0x63c   : > { %v10006_v62 = vor.u32 %v10005_v23, %v10004_v31  ;;  %v6585_v31 = vshll.u32 %v9909_v22, 16  ;;  %v6590_v23 = vshll.u32 %v15914_v2, 16 }
 0x63d   : > { %v15896_v9 = vpop.permute.xlu0 %6072 }
 0x63e   : > { %6288 = vrot.lane.b32.xlu1 %v6220_v55, %s10553_s7  ;;  %18825 = vst [vmem:[#allocation103_spill] sm:$0xff] %v15896_v9  ;;  %v15900_v27 = vpop.permute.xlu2 %6092  ;;  %v6225_v55 = vsel %vm18826_vm10, %v6222_v33, %v6224_v47  ;;  %v6231_v46 = vrot.slane %v10006_v62, 1  ;;  %v6229_v33 = vrot.slane %v15716_v14, 1  ;;  %v6587_v62 = vrot.slane %v6585_v31, 1  ;;  %vm18855_vm10 = vmmov %vm18851_vm3 }
 0x63f   : > { %v6592_v0 = vrot.slane %v6590_v23, 1 }
 0x640   : > { %v15894_v28 = vpop.permute.xlu1 %6076  ;;  %v6233_v15 = vsel %vm18832_vm12, %v6231_v46, %v6232_v18  ;;  %v6230_v8 = vsel %vm18834_vm9, %v6227_v3, %v6229_v33  ;;  %v6583_v46 = vshrl.u32 %v9909_v22, 16  ;;  %v4646_v33 = vld [vmem:[#allocation2 + $0x38] sm:$0x1]  ;;  %vm18860_vm12 = vmmov %vm18809_vm0 }
 0x641   : > { %18824 = vst [vmem:[#allocation49_spill] sm:$0xff] %v15894_v28  ;;  %v6550_v31 = vunpack.c.l.b16 %v4646_v33  ;;  %v4654_v33 = vld [vmem:[#allocation2 + $0xd8] sm:$0x1]  ;;  %v10483_v28 = vld [vmem:[#allocation2 + $0xdc] sm:$0xf0]  ;;  %vm18863_vm9 = vmmov %vm18809_vm0 }
 0x642   : > { %v6588_v3 = vor.u32 %v6587_v62, %v6583_v46 }
 0x643   : > { %6292 = vrot.lane.b32.xlu2 %v6225_v55, %s10553_s7  ;;  %6290 = vrot.lane.b32.xlu0 %v6223_v20, %s10553_s7  ;;  %v6235_v55 = vsel %vm18833_vm8, %v6232_v18, %v6234_v16  ;;  %v7015_v18 = vrot.slane %v15914_v2, 1  ;;  %vm18862_vm8 = vmmov %vm18851_vm3 }
 0x645   : > { %v15912_v57 = vpop.permute.xlu0 %6078 }
 0x646   : > { %6294 = vrot.lane.b32.xlu1 %v6228_v7, %s10553_s7  ;;  %18830 = vst [vmem:[#allocation105_spill] sm:$0xff] %v15912_v57  ;;  %v15917_v47 = vpop.permute.xlu2 %6098  ;;  %v10012_v7 = vor.u32 %v10011_v32, %v10010_v36  ;;  %v18838_v36 = vld [vmem:[#allocation8_spill] sm:$0xff] }
 0x647   : > { %18831 = vst [vmem:[#allocation106_spill] sm:$0xff] %v15917_v47  ;;  %v10479_v23 = vor.u32 %v10478_v40, %v18838_v36  ;;  %v6558_v40 = vunpack.c.l.b16 %v4654_v33 }
 0x648   : > { %v15909_v19 = vpop.permute.xlu1 %6082 }
 0x649   : > { %18829 = vst [vmem:[#allocation104_spill] sm:$0xff] %v15909_v19  ;;  %v6574_v33 = vpack.c.b16 %v6558_v40, %v6558_v40  ;;  %v4619_v40 = vld [vmem:[#allocation2 + $0xdc] sm:$0xff]  }
 0x64a   : > { %v6765_v26 = vshll.u32 %v4619_v40, 16 }
 0x64b   : > { %6298 = vrot.lane.b32.xlu2 %v6233_v15, %s10553_s7  ;;  %6296 = vrot.lane.b32.xlu0 %v6230_v8, %s10553_s7  ;;  %v7014_v15 = vrot.slane %v10012_v7, 1  ;;  %v6239_v7 = vrot.slane %v15738_v1, 1  ;;  %v6594_v1 = vshrl.u32 %v15914_v2, 16 }
 0x64d   : > { %v15929_v20 = vpop.permute.xlu0 %6084  ;;  %v7016_v8 = vsel %vm18809_vm0, %v7014_v15, %v7015_v18  ;;  %v6566_v15 = vpack.c.b16 %v6550_v31, %v6550_v31  ;;  %v4587_v31 = vld [vmem:[#allocation2 + $0x3c] sm:$0xff]   ;;  %v6596_v6 = vor.u32 %v6594_v1, %v6592_v0 }
 0x64e   : > { %6300 = vrot.lane.b32.xlu1 %v6235_v55, %s10553_s7  ;;  %18835 = vst [vmem:[#allocation107_spill] sm:$0xff] %v15929_v20  ;;  %v15932_v16 = vpop.permute.xlu2 %6104  ;;  %v6593_v55 = vsel %vm18837_vm15, %v6588_v3, %v6592_v0  ;;  %v6237_v3 = vrot.slane %v15551_v41, 1  ;;  %v10007_v20 = vld [vmem:[#allocation2 + $0x140] sm:$0xf0]  ;;  %vm18865_vm15 = vmmov %vm18851_vm3 }
 0x64f   : > { %18836 = vst [vmem:[#allocation108_spill] sm:$0xff] %v15932_v16  ;;  %v6598_v4 = vshll.u32 %v6566_v15, 16 }
 0x650   : > { %v15927_v14 = vpop.permute.xlu1 %6088  ;;  %v6240_v19 = vsel %vm18840_vm1, %v6237_v3, %v6239_v7  ;;  %vm18868_vm1 = vmmov %vm18851_vm3 }
 0x651   : > { %v6600_v57 = vrot.slane %v6598_v4, 1 }
 0x653   : > { %6902 = vrot.lane.b32.xlu2 %v6593_v55, %s10554_s9  ;;  %6470 = vrot.lane.b32.xlu0 %v9909_v22, %s10556_s12  ;;  %v6236_v55 = vrot.slane %v10479_v23, 1  ;;  %v15949_v22 = vld [vmem:[#allocation2 + $0xd0] sm:$0xff]  ;;  %v10480_v23 = vld [vmem:[#allocation2 + $0x3c] sm:$0xf0] }
 0x654   : > { %18841 = vst [vmem:[#allocation109_spill] sm:$0xff] %v15949_v22  ;;  %v6754_v4 = vshrl.u32 %v15949_v22, 16 }
 0x655   : > { %v15942_v62 = vpop.permute.xlu0 %6090  ;;  %v6238_v36 = vsel %vm18842_vm5, %v6236_v55, %v6237_v3  ;;  %v6750_v3 = vshll.u32 %v15949_v22, 16  ;;  %vm18869_vm5 = vmmov %vm18809_vm0 }
 0x656   : > { %7094 = vrot.lane.b32.xlu1 %v7016_v8, %s10555_s11  ;;  %v15945_v46 = vpop.permute.xlu2 %6110  ;;  %v10008_v8 = vld [vmem:[#allocation2 + $0x140] sm:$0xe] }
 0x657   : > { %18839 = vst [vmem:[#allocation8_spill] sm:$0xff] %v15945_v46  ;;  %v10009_v41 = vor.u32 %v10008_v8, %v10007_v20  ;;  %v7017_v46 = vrot.slane %v6566_v15, 1  ;;  %v6758_v8 = vshll.u32 %v6574_v33, 16  ;;  %v6601_v15 = vsel %vm18848_vm7, %v6596_v6, %v6600_v57 }
 0x658   : > { %v15940_v32 = vpop.permute.xlu1 %6094  ;;  %v7057_v6 = vrot.slane %v6574_v33, 1  ;;  %vm7779_vm7 = vcmask 1043456  }
 0x659   : > { %v7018_v20 = vsel %vm18845_vm6, %v7015_v18, %v7017_v46  ;;  %v15980_v46 = vld [vmem:[#allocation2 + $0x44] sm:$0xff]  ;;  %v6760_v1 = vrot.slane %v6758_v8, 1  ;;  %vm18872_vm6 = vmmov %vm18868_vm1 }
 0x65a   : > { %v7020_v10 = vrot.slane %v15980_v46, 1 }
 0x65b   : > { %6304 = vrot.lane.b32.xlu2 %v6240_v19, %s10553_s7  ;;  %6302 = vrot.lane.b32.xlu0 %v6238_v36, %s10553_s7  ;;  %v18284_v19 = vrot.slane %v15549_v59, 1  ;;  %v6241_v36 = vrot.slane %v10009_v41, 1 }
 0x65d   : > { %v15959_v7 = vpop.permute.xlu0 %6096  ;;  %v6243_v34 = vsel %vm18847_vm11, %v6241_v36, %v18284_v19  ;;  %v6605_v36 = vshll.u32 %v4587_v31, 16  ;;  %vm18873_vm11 = vmmov %vm18809_vm0 }
 0x65e   : > { %6472 = vrot.lane.b32.xlu1 %v15914_v2, %s10556_s12  ;;  %v15963_v55 = vpop.permute.xlu2 %6116  ;;  %v15966_v2 = vrot.slane %v6750_v3, 1  ;;  %v10481_v3 = vld [vmem:[#allocation2 + $0x3c] sm:$0xe] }
 0x65f   : > { %18844 = vst [vmem:[#allocation111_spill] sm:$0xff] %v15963_v55  ;;  %v6607_v33 = vrot.slane %v6605_v36, 1  ;;  %v10482_v8 = vor.u32 %v10481_v3, %v10480_v23  ;;  %v6767_v23 = vrot.slane %v6765_v26, 1  ;;  %v4655_v26 = vld [vmem:[#allocation2 + $0xec] sm:$0x1] }
 0x660   : > { %v15957_v39 = vpop.permute.xlu1 %6100  ;;  %18846 = vst [vmem:[#allocation112_spill] sm:$0xff] %v15966_v2  ;;  %v6756_v41 = vor.u32 %v6754_v4, %v15966_v2 }
 0x661   : > { %18843 = vst [vmem:[#allocation110_spill] sm:$0xff] %v15957_v39  ;;  %v7019_v16 = vrot.slane %v10482_v8, 1 }
 0x663   : > { %7096 = vrot.lane.b32.xlu2 %v7018_v20, %s10555_s11  ;;  %6904 = vrot.lane.b32.xlu0 %v6601_v15, %s10554_s9  ;;  %v6761_v20 = vsel %vm18851_vm3, %v6756_v41, %v6760_v1  ;;  %v6610_v15 = vshll.u32 %v15980_v46, 16  ;;  %v10484_v41 = vld [vmem:[#allocation2 + $0xdc] sm:$0xe]  ;;  %v6603_v1 = vshrl.u32 %v4587_v31, 16  ;;  %v7021_v3 = vsel %vm18856_vm2, %v7019_v16, %v7020_v10  ;;  %vm18877_vm3 = vmmov %vm18868_vm1 }
 0x664   : > { %vm18882_vm2 = vmmov %vm18809_vm0 }
 0x665   : > { %v15978_v18 = vpop.permute.xlu0 %6102 }
 0x666   : > { %6306 = vrot.lane.b32.xlu1 %v6243_v34, %s10553_s7  ;;  %18850 = vst [vmem:[#allocation114_spill] sm:$0xff] %v15978_v18  ;;  %v15983_v57 = vpop.permute.xlu2 %6250  ;;  %v18285_v34 = vrot.slane %v15949_v22, 1 }
 0x668   : > { %v15976_v0 = vpop.permute.xlu1 %6106  ;;  %v7058_v19 = vsel %vm18852_vm13, %v18285_v34, %v7057_v6  ;;  %v9833_v34 = vld [vmem:[#allocation2 + $0xe4] sm:$0xff]  ;;  %vm18878_vm13 = vmmov %vm18809_vm0 }
 0x669   : > { %18849 = vst [vmem:[#allocation113_spill] sm:$0xff] %v15976_v0  ;;  %v6612_v0 = vrot.slane %v6610_v15, 1  ;;  %v6763_v15 = vshrl.u32 %v4619_v40, 16 }
 0x66b   : > { %6936 = vrot.lane.b32.xlu2 %v6761_v20, %s10554_s9  ;;  %6504 = vrot.lane.b32.xlu0 %v15949_v22, %s10556_s12  ;;  %v4647_v20 = vld [vmem:[#allocation2 + $0x4c] sm:$0x1]  ;;  %v6768_v8 = vor.u32 %v6767_v23, %v6763_v15 }
 0x66c   : > { %v6551_v36 = vunpack.c.l.b16 %v4647_v20 }
 0x66d   : > { %v15997_v55 = vpop.permute.xlu0 %6108 }
 0x66e   : > { %7128 = vrot.lane.b32.xlu1 %v7058_v19, %s10555_s11  ;;  %18854 = vst [vmem:[#allocation116_spill] sm:$0xff] %v15997_v55  ;;  %v16000_v6 = vpop.permute.xlu2 %6256  ;;  %v6608_v19 = vor.u32 %v6607_v33, %v6603_v1  ;;  %v6770_v55 = vshll.u32 %v9833_v34, 16  ;;  %v6567_v33 = vpack.c.b16 %v6551_v36, %v6551_v36  ;;  %v6614_v36 = vshrl.u32 %v15980_v46, 16 }
 0x670   : > { %v15995_v4 = vpop.permute.xlu1 %6112  ;;  %v6613_v37 = vsel %vm18855_vm10, %v6608_v19, %v6612_v0  ;;  %v6772_v16 = vrot.slane %v6770_v55, 1  ;;  %v6618_v19 = vshll.u32 %v6567_v33, 16  ;;  %vm18881_vm10 = vmmov %vm18868_vm1 }
 0x671   : > { %18853 = vst [vmem:[#allocation115_spill] sm:$0xff] %v15995_v4  ;;  %v10485_v4 = vor.u32 %v10484_v41, %v10483_v28  ;;  %v7060_v28 = vrot.slane %v9833_v34, 1  ;;  %v6559_v41 = vunpack.c.l.b16 %v4655_v26 }
 0x672   : > { %v6620_v15 = vrot.slane %v6618_v19, 1 }
 0x673   : > { %6906 = vrot.lane.b32.xlu2 %v6613_v37, %s10554_s9  ;;  %6474 = vrot.lane.b32.xlu0 %v4587_v31, %s10556_s12  ;;  %v7059_v1 = vrot.slane %v10485_v4, 1  ;;  %v6773_v37 = vsel %vm18859_vm14, %v6768_v8, %v6772_v16  ;;  %v6575_v55 = vpack.c.b16 %v6559_v41, %v6559_v41  ;;  %v7022_v8 = vrot.slane %v6567_v33, 1  ;;  %v16035_v33 = vld [vmem:[#allocation2 + $0x58] sm:$0xff]  ;;  %vm18883_vm14 = vmmov %vm18868_vm1 }
 0x675   : > { %v16009_v9 = vpop.permute.xlu0 %6114  ;;  %v7061_v31 = vsel %vm18860_vm12, %v7059_v1, %v7060_v28  ;;  %vm18884_vm12 = vmmov %vm18809_vm0 }
 0x676   : > { %7098 = vrot.lane.b32.xlu1 %v7021_v3, %s10555_s11  ;;  %18857 = vst [vmem:[#allocation117_spill] sm:$0xff] %v16009_v9  ;;  %v16011_v20 = vpop.permute.xlu2 %6262  ;;  %v6616_v3 = vor.u32 %v6614_v36, %v6612_v0  ;;  %v6778_v9 = vshll.u32 %v6575_v55, 16 }
 0x677   : > { %18858 = vst [vmem:[#allocation118_spill] sm:$0xff] %v16011_v20 }
 0x678   : > { %v16007_v22 = vpop.permute.xlu1 %6246  ;;  %v6621_v1 = vsel %vm18862_vm8, %v6616_v3, %v6620_v15  ;;  %v6780_v36 = vrot.slane %v6778_v9, 1  ;;  %v7062_v3 = vrot.slane %v6575_v55, 1  ;;  %v9959_v55 = vld [vmem:[#allocation2 + $0xf0] sm:$0xff]   ;;  %vm18888_vm8 = vmmov %vm18868_vm1 }
 0x679   : > { %v6785_v18 = vshll.u32 %v9959_v55, 16 }
 0x67b   : > { %6938 = vrot.lane.b32.xlu2 %v6773_v37, %s10554_s9  ;;  %6506 = vrot.lane.b32.xlu0 %v4619_v40, %s10556_s12  ;;  %v7023_v37 = vsel %vm18863_vm9, %v7020_v10, %v7022_v8  ;;  %v6774_v40 = vshrl.u32 %v9833_v34, 16  ;;  %v10013_v8 = vld [vmem:[#allocation2 + $0x50] sm:$0xf0]  ;;  %vm18889_vm9 = vmmov %vm18809_vm0 }
 0x67d   : > { %v16021_v23 = vpop.permute.xlu0 %6248  ;;  %v6776_v19 = vor.u32 %v6774_v40, %v6772_v16 }
 0x67e   : > { %7130 = vrot.lane.b32.xlu1 %v7061_v31, %s10555_s11  ;;  %v16023_v26 = vpop.permute.xlu2 %6268  ;;  %v9955_v31 = vld [vmem:[#allocation2 + $0x50] sm:$0xff]  }
 0x67f   : > { %18861 = vst [vmem:[#allocation119_spill] sm:$0xff] %v16023_v26  ;;  %v6625_v10 = vshll.u32 %v9955_v31, 16  ;;  %v10014_v26 = vld [vmem:[#allocation2 + $0x50] sm:$0xe]  ;;  %v6623_v2 = vshrl.u32 %v9955_v31, 16 }
 0x680   : > { %v16019_v4 = vpop.permute.xlu1 %6252  ;;  %v10015_v9 = vor.u32 %v10014_v26, %v10013_v8 }
 0x681   : > { %v6627_v16 = vrot.slane %v6625_v10, 1  ;;  %v10026_v10 = vld [vmem:[#allocation2 + $0xf0] sm:$0xe] }
 0x682   : > { %v10027_v42 = vor.u32 %v10026_v10, %v10025_v56  ;;  %v16076_v10 = vld [vmem:[#allocation2 + $0x64] sm:$0xff]  }
 0x683   : > { %6908 = vrot.lane.b32.xlu2 %v6621_v1, %s10554_s9  ;;  %6476 = vrot.lane.b32.xlu0 %v15980_v46, %s10556_s12  ;;  %v6781_v1 = vsel %vm18865_vm15, %v6776_v19, %v6780_v36  ;;  %v7063_v46 = vsel %vm18809_vm0, %v7060_v28, %v7062_v3  ;;  %v16049_v19 = vld [vmem:[#allocation2 + $0xf8] sm:$0xff]  ;;  %v7025_v28 = vrot.slane %v16035_v33, 1  ;;  %vm18893_vm15 = vmmov %vm18868_vm1  ;;  %vm18895_vm0 = vcmask 130048  }
 0x685   : > { %v16033_v0 = vpop.permute.xlu0 %6254 }
 0x686   : > { %7100 = vrot.lane.b32.xlu1 %v7023_v37, %s10555_s11  ;;  %v16037_v15 = vpop.permute.xlu2 %6274  ;;  %v6630_v37 = vshll.u32 %v16035_v33, 16 }
 0x687   : > { %18864 = vst [vmem:[#allocation120_spill] sm:$0xff] %v16037_v15 }
 0x688   : > { %v16031_v41 = vpop.permute.xlu1 %6258  ;;  %v6632_v36 = vrot.slane %v6630_v37, 1  ;;  %v6787_v37 = vrot.slane %v6785_v18, 1  ;;  %v6634_v18 = vshrl.u32 %v16035_v33, 16 }
 0x68b   : > { %6940 = vrot.lane.b32.xlu2 %v6781_v1, %s10554_s9  ;;  %6508 = vrot.lane.b32.xlu0 %v9833_v34, %s10556_s12  ;;  %v4648_v1 = vld [vmem:[#allocation2 + $0x60] sm:$0x1]  ;;  %v7024_v34 = vrot.slane %v10015_v9, 1  ;;  %v6783_v9 = vshrl.u32 %v9959_v55, 16 }
 0x68c   : > { %v6552_v8 = vunpack.c.l.b16 %v4648_v1  ;;  %v7065_v1 = vrot.slane %v16049_v19, 1 }
 0x68d   : > { %v16047_v15 = vpop.permute.xlu0 %6260  ;;  %v7026_v59 = vsel %vm18869_vm5, %v7024_v34, %v7025_v28  ;;  %v4656_v34 = vld [vmem:[#allocation2 + $0x100] sm:$0x1]  ;;  %v6788_v39 = vor.u32 %v6787_v37, %v6783_v9  ;;  %vm18897_vm5 = vcmask 195584  }
 0x68e   : > { %7132 = vrot.lane.b32.xlu1 %v7063_v46, %s10555_s11  ;;  %18867 = vst [vmem:[#allocation122_spill] sm:$0xff] %v16047_v15  ;;  %v16052_v3 = vpop.permute.xlu2 %6280  ;;  %v6628_v46 = vor.u32 %v6627_v16, %v6623_v2  ;;  %v6568_v20 = vpack.c.b16 %v6552_v8, %v6552_v8  ;;  %v6560_v38 = vunpack.c.l.b16 %v4656_v34  ;;  %v6636_v34 = vor.u32 %v6634_v18, %v6632_v36 }
 0x690   : > { %v16045_v40 = vpop.permute.xlu1 %6264  ;;  %v6633_v26 = vsel %vm18868_vm1, %v6628_v46, %v6632_v36  ;;  %v6576_v9 = vpack.c.b16 %v6560_v38, %v6560_v38  ;;  %v6794_v38 = vshrl.u32 %v16049_v19, 16  ;;  %v10489_v36 = vld [vmem:[#allocation2 + $0x104] sm:$0xf0]  ;;  %vm18896_vm1 = vmmov %vm18882_vm2 }
 0x691   : > { %18866 = vst [vmem:[#allocation121_spill] sm:$0xff] %v16045_v40  ;;  %v6790_v40 = vshll.u32 %v16049_v19, 16 }
 0x692   : > { %v6798_v15 = vshll.u32 %v6576_v9, 16 }
 0x693   : > { %6910 = vrot.lane.b32.xlu2 %v6633_v26, %s10554_s9  ;;  %6478 = vrot.lane.b32.xlu0 %v9955_v31, %s10556_s12  ;;  %v6792_v46 = vrot.slane %v6790_v40, 1  ;;  %v7064_v26 = vrot.slane %v10027_v42, 1  ;;  %v6638_v31 = vshll.u32 %v6568_v20, 16  ;;  %v7682_v40 = vld [vmem:[%s18181_s2 + $0x20] sm:$0xf] }
 0x694   : > { %v10486_v42 = vld [vmem:[#allocation2 + $0x64] sm:$0xf0] }
 0x695   : > { %v16062_v16 = vpop.permute.xlu0 %6266  ;;  %v7066_v56 = vsel %vm18873_vm11, %v7064_v26, %v7065_v1  ;;  %v6640_v26 = vrot.slane %v6638_v31, 1  ;;  %vm18898_vm11 = vcmask 261120  }
 0x696   : > { %7102 = vrot.lane.b32.xlu1 %v7026_v59, %s10555_s11  ;;  %18871 = vst [vmem:[#allocation124_spill] sm:$0xff] %v16062_v16  ;;  %v16065_v61 = vpop.permute.xlu2 %6286  ;;  %v6793_v59 = vsel %vm18872_vm6, %v6788_v39, %v6792_v46  ;;  %v7704_v39 = vunpack.c.l.b16 %v7682_v40  ;;  %v9843_v40 = vld [vmem:[%s18181_s2 + $0x18] sm:$0xff]  ;;  %vm7479_vm6 = vcmask 392192  }
 0x697   : > { %v6641_v16 = vsel %vm18877_vm3, %v6636_v34, %v6640_v26  ;;  %v10487_v34 = vld [vmem:[#allocation2 + $0x64] sm:$0xe]  ;;  %v6645_v26 = vshll.u32 %v16076_v10, 16  ;;  %vm7544_vm3 = vcmask 457728  }
 0x698   : > { %v16060_v2 = vpop.permute.xlu1 %6270 }
 0x699   : > { %18870 = vst [vmem:[#allocation123_spill] sm:$0xff] %v16060_v2 }
 0x69b   : > { %6942 = vrot.lane.b32.xlu2 %v6793_v59, %s10554_s9  ;;  %6510 = vrot.lane.b32.xlu0 %v9959_v55, %s10556_s12  ;;  %v7027_v59 = vrot.slane %v6568_v20, 1  ;;  %v16094_v20 = vld [vmem:[#allocation2 + $0x104] sm:$0xff]  }
 0x69d   : > { %v16080_v37 = vpop.permute.xlu0 %6272 }
 0x69e   : > { %7134 = vrot.lane.b32.xlu1 %v7066_v56, %s10555_s11  ;;  %18875 = vst [vmem:[#allocation126_spill] sm:$0xff] %v16080_v37  ;;  %v16082_v55 = vpop.permute.xlu2 %6292  ;;  %v7709_v56 = vpack.c.b16 %v7704_v39, %v7704_v39  ;;  %v16100_v39 = vld [vmem:[#allocation2 + $0x6c] sm:$0xff] }
 0x69f   : > { %18876 = vst [vmem:[#allocation127_spill] sm:$0xff] %v16082_v55 }
 0x6a0   : > { %v16078_v8 = vpop.permute.xlu1 %6276  ;;  %v7781_v2 = vsel %vm7779_vm7, %v7709_v56, 0  ;;  %v6650_v56 = vshll.u32 %v16100_v39, 16  ;;  %vm7414_vm7 = vcmask 326656  }
 0x6a1   : > { %18874 = vst [vmem:[#allocation125_spill] sm:$0xff] %v16078_v8  ;;  %7786 = vmatpush.bf16.msra.mxu1 %v7781_v2  ;;  %10040 = vmatpush.bf16.msrb.mxu3 %v7781_v2  ;;  %v7028_v8 = vsel %vm18878_vm13, %v7025_v28, %v7027_v59  ;;  %v6796_v2 = vor.u32 %v6794_v38, %v6792_v46  ;;  %v6800_v28 = vrot.slane %v6798_v15, 1  ;;  %v9841_v15 = vld [vmem:[%s18181_s2 + $0x8] sm:$0xff]  ;;  %vm7609_vm13 = vcmask 523264  }
 0x6a2   : > { %v6652_v37 = vrot.slane %v6650_v56, 1 }
 0x6a3   : > { %6912 = vrot.lane.b32.xlu2 %v6641_v16, %s10554_s9  ;;  %6480 = vrot.lane.b32.xlu0 %v16035_v33, %s10556_s12  ;;  %v9842_v16 = vld [vmem:[%s18181_s2 + $0x10] sm:$0xff]  ;;  %v7067_v33 = vrot.slane %v6576_v9, 1  ;;  %v6801_v59 = vsel %vm18881_vm10, %v6796_v2, %v6800_v28  ;;  %v6647_v9 = vrot.slane %v6645_v26, 1  ;;  %v6805_v26 = vshll.u32 %v16094_v20, 16 }
 0x6a4   : > { %v16122_v28 = vld [vmem:[#allocation2 + $0x10c] sm:$0xff]  ;;  %vm7714_vm10 = vcmask 588800  }
 0x6a5   : > { %v16098_v18 = vpop.permute.xlu0 %6278  ;;  %7787 = vmatpush.bf16.msra.mxu1 %v9843_v40  ;;  %10041 = vmatpush.bf16.msrb.mxu3 %v9843_v40  ;;  %v7068_v46 = vsel %vm18882_vm2, %v7065_v1, %v7067_v33  ;;  %v10488_v40 = vor.u32 %v10487_v34, %v10486_v42  ;;  %v9840_v1 = vld [vmem:[%s18181_s2] sm:$0xff]  ;;  %v4649_v42 = vld [vmem:[#allocation2 + $0x74] sm:$0x1]  ;;  %v6810_v56 = vshll.u32 %v16122_v28, 16  ;;  %vm18899_vm2 = vmmov %vm18888_vm8 }
 0x6a6   : > { %7104 = vrot.lane.b32.xlu1 %v7028_v8, %s10555_s11  ;;  %18879 = vst [vmem:[#allocation128_spill] sm:$0xff] %v16098_v18  ;;  %v16105_v8 = vpop.permute.xlu2 %6298  ;;  %v10490_v18 = vld [vmem:[#allocation2 + $0x104] sm:$0xe] }
 0x6a7   : > { %18880 = vst [vmem:[#allocation129_spill] sm:$0xff] %v16105_v8  ;;  %v6553_v8 = vunpack.c.l.b16 %v4649_v42  ;;  %v6812_v13 = vrot.slane %v6810_v56, 1 }
 0x6a8   : > { %v16096_v31 = vpop.permute.xlu1 %6282 }
 0x6a9   : > { %7788 = vmatpush.bf16.msra.mxu1 %v9842_v16  ;;  %10042 = vmatpush.bf16.msrb.mxu3 %v9842_v16  ;;  %v6643_v16 = vshrl.u32 %v16076_v10, 16  ;;  %v6569_v42 = vpack.c.b16 %v6553_v8, %v6553_v8 }
 0x6ab   : > { %6944 = vrot.lane.b32.xlu2 %v6801_v59, %s10554_s9  ;;  %6512 = vrot.lane.b32.xlu0 %v16049_v19, %s10556_s12  ;;  %v7030_v19 = vrot.slane %v16100_v39, 1  ;;  %v6648_v34 = vor.u32 %v6647_v9, %v6643_v16  ;;  %v7029_v59 = vrot.slane %v10488_v40, 1  ;;  %v10491_v9 = vor.u32 %v10490_v18, %v10489_v36 }
 0x6ac   : > { %v6654_v18 = vshrl.u32 %v16100_v39, 16 }
 0x6ad   : > { %v16120_v2 = vpop.permute.xlu0 %6284  ;;  %7789 = vmatpush.bf16.msra.mxu1 %v9841_v15  ;;  %10043 = vmatpush.bf16.msrb.mxu3 %v9841_v15  ;;  %v7031_v55 = vsel %vm18884_vm12, %v7029_v59, %v7030_v19  ;;  %v6807_v15 = vrot.slane %v6805_v26, 1  ;;  %v6658_v26 = vshll.u32 %v6569_v42, 16  ;;  %vm18904_vm12 = vmmov %vm18895_vm0 }
 0x6ae   : > { %7136 = vrot.lane.b32.xlu1 %v7068_v46, %s10555_s11  ;;  %v16129_v33 = vpop.permute.xlu2 %6902  ;;  %v6653_v46 = vsel %vm18883_vm14, %v6648_v34, %v6652_v37  ;;  %v6803_v34 = vshrl.u32 %v16094_v20, 16  ;;  %vm18900_vm14 = vmmov %vm18896_vm1 }
 0x6b0   : > { %v16118_v38 = vpop.permute.xlu1 %6288  ;;  %v6808_v17 = vor.u32 %v6807_v15, %v6803_v34  ;;  %v7032_v34 = vrot.slane %v6569_v42, 1  ;;  %v6814_v42 = vshrl.u32 %v16122_v28, 16 }
 0x6b1   : > { %7790 = vmatpush.bf16.msra.mxu1 %v9840_v1  ;;  %10044 = vmatpush.bf16.msrb.mxu3 %v9840_v1  ;;  %v7070_v1 = vrot.slane %v16122_v28, 1 }
 0x6b2   : > { %v6813_v47 = vsel %vm18888_vm8, %v6808_v17, %v6812_v13  ;;  %v6660_v17 = vrot.slane %v6658_v26, 1  ;;  %vm18905_vm8 = vmmov %vm18899_vm2 }
 0x6b3   : > { %6914 = vrot.lane.b32.xlu2 %v6653_v46, %s10554_s9  ;;  %6482 = vrot.lane.b32.xlu0 %v16076_v10, %s10556_s12  ;;  %v4657_v46 = vld [vmem:[#allocation2 + $0x114] sm:$0x1] }
 0x6b4   : > { %v6561_v10 = vunpack.c.l.b16 %v4657_v46 }
 0x6b5   : > { %v16141_v40 = vpop.permute.xlu0 %6290 }
 0x6b6   : > { %7106 = vrot.lane.b32.xlu1 %v7031_v55, %s10555_s11  ;;  %18886 = vst [vmem:[#allocation131_spill] sm:$0xff] %v16141_v40  ;;  %v16145_v59 = vpop.permute.xlu2 %6304  ;;  %v7069_v55 = vrot.slane %v10491_v9, 1  ;;  %v6577_v15 = vpack.c.b16 %v6561_v10, %v6561_v10  ;;  %v6656_v9 = vor.u32 %v6654_v18, %v6652_v37  ;;  %v9956_v10 = vld [vmem:[#allocation2 + $0x78] sm:$0xff]  }
 0x6b7   : > { %18887 = vst [vmem:[#allocation132_spill] sm:$0xff] %v16145_v59  ;;  %v18892_v59 = vld [vmem:[#allocation68_spill] sm:$0xff] }
 0x6b8   : > { %v16139_v16 = vpop.permute.xlu1 %6294  ;;  %v7071_v36 = vsel %vm18889_vm9, %v7069_v55, %v7070_v1  ;;  %v10406_v55 = vld [vmem:[#allocation2] sm:$0xff]   ;;  %vm18906_vm9 = vmmov %vm18897_vm5 }
 0x6b9   : > { %18885 = vst [vmem:[#allocation130_spill] sm:$0xff] %v16139_v16  ;;  %v6818_v16 = vshll.u32 %v6577_v15, 16 }
 0x6bb   : > { %6946 = vrot.lane.b32.xlu2 %v6813_v47, %s10554_s9  ;;  %6514 = vrot.lane.b32.xlu0 %v16094_v20, %s10556_s12  ;;  %v7159_v47 = vsel %vm1024_vm4, %v10406_v55, %v18892_v59  ;;  %v18894_v20 = vld [vmem:[#allocation51_spill] sm:$0xff] }
 0x6bc   : > { %v7223_v40 = vsel %vm18895_vm0, %v7159_v47, %v18894_v20  ;;  %vm18909_vm0 = vmmov %vm18898_vm11 }
 0x6bd   : > { %v16156_v56 = vpop.permute.xlu0 %6296  ;;  %v7287_v37 = vsel %vm18897_vm5, %v7223_v40, %v15589_v12  ;;  %v16177_v12 = vld [vmem:[#allocation2 + $0x80] sm:$0xff]  ;;  %v6816_v40 = vor.u32 %v6814_v42, %v6812_v13  ;;  %vm18913_vm5 = vmmov %vm18904_vm12 }
 0x6be   : > { %7138 = vrot.lane.b32.xlu1 %v7071_v36, %s10555_s11  ;;  %18891 = vst [vmem:[#allocation134_spill] sm:$0xff] %v16156_v56  ;;  %v16158_v46 = vpop.permute.xlu2 %7096  ;;  %v6661_v36 = vsel %vm18893_vm15, %v6656_v9, %v6660_v17  ;;  %v7351_v59 = vsel %vm18898_vm11, %v7287_v37, %v15849_v30  ;;  %v6670_v13 = vshll.u32 %v16177_v12, 16  ;;  %v18907_v54 = vrot.slane %v16177_v12, 1  ;;  %vm18908_vm15 = vmmov %vm18896_vm1 }
 0x6bf   : > { %vm18914_vm11 = vmmov %vm18900_vm14 }
 0x6c0   : > { %v16154_v8 = vpop.permute.xlu1 %6300 }
 0x6c1   : > { %18890 = vst [vmem:[#allocation133_spill] sm:$0xff] %v16154_v8  ;;  %v7033_v8 = vsel %vm18896_vm1, %v7030_v19, %v7032_v34  ;;  %v7416_v19 = vsel %vm7414_vm7, %v7351_v59, %v16007_v22  ;;  %v6665_v34 = vshll.u32 %v9956_v10, 16  ;;  %v10016_v22 = vld [vmem:[#allocation2 + $0x78] sm:$0xf0]  ;;  %v6663_v59 = vshrl.u32 %v9956_v10, 16  ;;  %vm18911_vm1 = vmmov %vm18899_vm2 }
 0x6c3   : > { %6916 = vrot.lane.b32.xlu2 %v6661_v36, %s10554_s9  ;;  %6484 = vrot.lane.b32.xlu0 %v16100_v39, %s10556_s12  ;;  %v7072_v39 = vrot.slane %v6577_v15, 1  ;;  %v9960_v15 = vld [vmem:[#allocation2 + $0x118] sm:$0xff]   ;;  %v6667_v36 = vrot.slane %v6665_v34, 1 }
 0x6c4   : > { %v10028_v34 = vld [vmem:[#allocation2 + $0x118] sm:$0xf0] }
 0x6c5   : > { %v6471_v18 = vpop.permute.xlu0 %6470 }
 0x6c6   : > { %7108 = vrot.lane.b32.xlu1 %v7033_v8, %s10555_s11  ;;  %v6820_v8 = vrot.slane %v6818_v16, 1  ;;  %v7481_v9 = vsel %vm7479_vm6, %v7416_v19, %v6471_v18  ;;  %v16180_v17 = vpop.permute.xlu2 %6936  ;;  %v7073_v16 = vsel %vm18900_vm14, %v7070_v1, %v7072_v39  ;;  %v16195_v19 = vld [vmem:[#allocation2 + $0x120] sm:$0xff]  ;;  %v6825_v18 = vshll.u32 %v9960_v15, 16  ;;  %v10407_v39 = vld [vmem:[#allocation2 + $0x8] sm:$0xff]  ;;  %vm18916_vm14 = vmmov %vm18909_vm0 }
 0x6c7   : > { %v7546_v30 = vsel %vm7544_vm3, %v7481_v9, %v16129_v33  ;;  %v10017_v33 = vld [vmem:[#allocation2 + $0x78] sm:$0xe]  ;;  %v18902_v9 = vld [vmem:[#allocation10_spill] sm:$0xff]  ;;  %v6830_v1 = vshll.u32 %v16195_v19, 16 }
 0x6c8   : > { %v7095_v26 = vpop.permute.xlu1 %7094  ;;  %v6821_v47 = vsel %vm18899_vm2, %v6816_v40, %v6820_v8  ;;  %v10018_v20 = vor.u32 %v10017_v33, %v10016_v22  ;;  %v4650_v8 = vld [vmem:[#allocation2 + $0x88] sm:$0x1]  ;;  %vm18915_vm2 = vmmov %vm18906_vm9 }
 0x6c9   : > { %v7611_v55 = vsel %vm7609_vm13, %v7546_v30, %v7095_v26  ;;  %v6672_v26 = vrot.slane %v6670_v13, 1  ;;  %v6668_v30 = vor.u32 %v6667_v36, %v6663_v59  ;;  %v6827_v13 = vrot.slane %v6825_v18, 1 }
 0x6ca   : > { %9735 = vmatmul.msk.bf16.vlgmr.msra.gmra.mxu1 %vm7714_vm10, %v7611_v55  ;;  %v18903_v55 = vld [vmem:[#allocation25_spill] sm:$0xff]  ;;  %v6823_v59 = vshrl.u32 %v9960_v15, 16 }
 0x6cb   : > { %6948 = vrot.lane.b32.xlu2 %v6821_v47, %s10554_s9  ;;  %6516 = vrot.lane.b32.xlu0 %v16122_v28, %s10556_s12  ;;  %v7161_v28 = vsel %vm1024_vm4, %v10407_v39, %v18902_v9  ;;  %v7034_v47 = vrot.slane %v10018_v20, 1  ;;  %v6673_v33 = vsel %vm18905_vm8, %v6668_v30, %v6672_v26  ;;  %v6832_v30 = vrot.slane %v6830_v1, 1  ;;  %vm18921_vm8 = vmmov %vm18913_vm5 }
 0x6cc   : > { %v7225_v22 = vsel %vm18904_vm12, %v7161_v28, %v18903_v55  ;;  %v7075_v55 = vrot.slane %v16195_v19, 1  ;;  %vm18919_vm12 = vmmov %vm18911_vm1 }
 0x6cd   : > { %v16193_v42 = vpop.permute.xlu0 %6302  ;;  %v7289_v56 = vsel %vm18906_vm9, %v7225_v22, %v15643_v58  ;;  %v7036_v39 = vsel %vm18908_vm15, %v7034_v47, %v18907_v54  ;;  %v6828_v54 = vor.u32 %v6827_v13, %v6823_v59  ;;  %v18910_v47 = vld [vmem:[#allocation40_spill] sm:$0xff]  ;;  %vm18923_vm9 = vmmov %vm18914_vm11 }
 0x6ce   : > { %7140 = vrot.lane.b32.xlu1 %v7073_v16, %s10555_s11  ;;  %18901 = vst [vmem:[#allocation68_spill] sm:$0xff] %v16193_v42  ;;  %v16198_v40 = vpop.permute.xlu2 %6906  ;;  %v10029_v16 = vld [vmem:[#allocation2 + $0x118] sm:$0xe]  ;;  %v6554_v42 = vunpack.c.l.b16 %v4650_v8  ;;  %v7353_v20 = vsel %vm18909_vm0, %v7289_v56, %v15808_v11  ;;  %v16244_v59 = vld [vmem:[#allocation2 + $0x8c] sm:$0xff]   ;;  %vm18924_vm15 = vmmov %vm18915_vm2 }
 0x6cf   : > { %v10030_v36 = vor.u32 %v10029_v16, %v10028_v34  ;;  %v7418_v18 = vsel %vm7414_vm7, %v7353_v20, %v16021_v23  ;;  %v10408_v23 = vld [vmem:[#allocation2 + $0xa8] sm:$0xff] }
 0x6d0   : > { %v6473_v37 = vpop.permute.xlu1 %6472  ;;  %v6570_v28 = vpack.c.b16 %v6554_v42, %v6554_v42  ;;  %v6833_v42 = vsel %vm18911_vm1, %v6828_v54, %v6832_v30 }
 0x6d1   : > { %v7483_v58 = vsel %vm7479_vm6, %v7418_v18, %v6473_v37  ;;  %v7074_v34 = vrot.slane %v10030_v36, 1  ;;  %v7193_v37 = vsel %vm1024_vm4, %v10408_v23, %v18910_v47  ;;  %v6674_v36 = vshrl.u32 %v16177_v12, 16  ;;  %v16246_v18 = vld [vmem:[#allocation2 + $0x8c] sm:$0xf0]  ;;  %v18917_v47 = vld [vmem:[#allocation74_spill] sm:$0xff] }
 0x6d2   : > { %v6678_v16 = vshll.u32 %v6570_v28, 16 }
 0x6d3   : > { %6918 = vrot.lane.b32.xlu2 %v6673_v33, %s10554_s9  ;;  %6486 = vrot.lane.b32.xlu0 %v9956_v10, %s10556_s12  ;;  %v4658_v10 = vld [vmem:[#allocation2 + $0x128] sm:$0x1]  ;;  %v18912_v33 = vld [vmem:[#allocation50_spill] sm:$0xff] }
 0x6d4   : > { %v6562_v1 = vunpack.c.l.b16 %v4658_v10  ;;  %v7257_v13 = vsel %vm18913_vm5, %v7193_v37, %v18912_v33  ;;  %v7037_v10 = vrot.slane %v6570_v28, 1  ;;  %v18918_v37 = vld [vmem:[#allocation53_spill] sm:$0xff] }
 0x6d5   : > { %v6905_v9 = vpop.permute.xlu0 %6904 }
 0x6d6   : > { %7110 = vrot.lane.b32.xlu1 %v7036_v39, %s10555_s11  ;;  %v7548_v11 = vsel %vm7544_vm3, %v7483_v58, %v6905_v9  ;;  %v16223_v56 = vpop.permute.xlu2 %6938  ;;  %v7076_v39 = vsel %vm18914_vm11, %v7074_v34, %v7075_v55  ;;  %v6578_v34 = vpack.c.b16 %v6562_v1, %v6562_v1  ;;  %v18920_v1 = vld [vmem:[#allocation71_spill] sm:$0xff]  ;;  %vm18928_vm11 = vmmov %vm18923_vm9 }
 0x6d7   : > { %v7613_v22 = vsel %vm7609_vm13, %v7548_v11, %v16158_v46  ;;  %v7321_v46 = vsel %vm18915_vm2, %v7257_v13, %v15777_v43  ;;  %v6676_v43 = vor.u32 %v6674_v36, %v6672_v26  ;;  %v6680_v11 = vrot.slane %v6678_v16, 1  ;;  %v16277_v36 = vld [vmem:[#allocation2 + $0x12c] sm:$0xf0] }
 0x6d8   : > { %v16219_v8 = vpop.permute.xlu1 %6306  ;;  %v7385_v20 = vsel %vm18916_vm14, %v7321_v46, %v15927_v14  ;;  %v6838_v26 = vshll.u32 %v6578_v34, 16  ;;  %v18922_v16 = vrot.slane %v16177_v12, 1  ;;  %v6834_v13 = vshrl.u32 %v16195_v19, 16  ;;  %v16275_v46 = vld [vmem:[#allocation2 + $0x12c] sm:$0xff]   ;;  %vm18929_vm14 = vmmov %vm18909_vm0 }
 0x6d9   : > { %v7450_v58 = vsel %vm7414_vm7, %v7385_v20, %v16052_v3  ;;  %v6681_v3 = vsel %vm18919_vm12, %v6676_v43, %v6680_v11  ;;  %v7077_v11 = vrot.slane %v6578_v34, 1  ;;  %vm18931_vm12 = vmmov %vm18911_vm1 }
 0x6da   : > { %9736 = vmatmul.msk.bf16.gmra.mxu1 %vm7714_vm10, %v7613_v22  ;;  %v7038_v33 = vsel %vm18923_vm9, %v18922_v16, %v7037_v10  ;;  %v6840_v43 = vrot.slane %v6838_v26, 1 }
 0x6db   : > { %6950 = vrot.lane.b32.xlu2 %v6833_v42, %s10554_s9  ;;  %6518 = vrot.lane.b32.xlu0 %v9960_v15, %s10556_s12  ;;  %v7163_v42 = vsel %vm1024_vm4, %v18918_v37, %v18917_v47  ;;  %v18926_v47 = vld [vmem:[#allocation47_spill] sm:$0xff] }
 0x6dc   : > { %v7227_v28 = vsel %vm18921_vm8, %v7163_v42, %v18920_v1  ;;  %v18927_v42 = vld [vmem:[#allocation21_spill] sm:$0xff]  ;;  %vm18933_vm8 = vmmov %vm18913_vm5 }
 0x6dd   : > { %v6505_v54 = vpop.permute.xlu0 %6504 }
 0x6de   : > { %7142 = vrot.lane.b32.xlu1 %v7076_v39, %s10555_s11  ;;  %v7515_v15 = vsel %vm7479_vm6, %v7450_v58, %v6505_v54  ;;  %v16251_v22 = vpop.permute.xlu2 %6908  ;;  %v6836_v54 = vor.u32 %v6834_v13, %v6832_v30  ;;  %v16312_v13 = vld [vmem:[#allocation2 + $0x134] sm:$0xff] }
 0x6df   : > { %v7580_v14 = vsel %vm7544_vm3, %v7515_v15, %v16180_v17  ;;  %v7291_v17 = vsel %vm18924_vm15, %v7227_v28, %v15670_v50  ;;  %v16281_v50 = vld [vmem:[#allocation2 + $0x94] sm:$0xff]  ;;  %v10493_v15 = vld [vmem:[#allocation2 + $0x8c] sm:$0xe]  ;;  %vm18934_vm15 = vmmov %vm18915_vm2 }
 0x6e0   : > { %v7129_v9 = vpop.permute.xlu1 %7128  ;;  %v7355_v39 = vsel %vm18909_vm0, %v7291_v17, %v15846_v25  ;;  %v6841_v30 = vsel %vm18911_vm1, %v6836_v54, %v6840_v43  ;;  %v6690_v34 = vshll.u32 %v16281_v50, 16  ;;  %v10494_v16 = vor.u32 %v10493_v15, %v16246_v18 }
 0x6e1   : > { %v7645_v23 = vsel %vm7609_vm13, %v7580_v14, %v7129_v9  ;;  %v7420_v20 = vsel %vm7414_vm7, %v7355_v39, %v15983_v57  ;;  %v6685_v14 = vshll.u32 %v16244_v59, 16  ;;  %v18925_v57 = vld [vmem:[#allocation3_spill] sm:$0xff] }
 0x6e2   : > { %9752 = vmatmul.msk.bf16.vlgmr.msrb.gmra.mxu3 %vm7714_vm10, %v7645_v23  ;;  %v7195_v37 = vsel %vm1024_vm4, %v18926_v47, %v18925_v57  ;;  %v10496_v39 = vld [vmem:[#allocation2 + $0x12c] sm:$0xe]  ;;  %v7039_v43 = vrot.slane %v10494_v16, 1  ;;  %v6850_v57 = vshll.u32 %v16312_v13, 16  ;;  %v18932_v47 = vld [vmem:[#allocation30_spill] sm:$0xff]  ;;  %v6843_v16 = vshrl.u32 %v16275_v46, 16 }
 0x6e3   : > { %6920 = vrot.lane.b32.xlu2 %v6681_v3, %s10554_s9  ;;  %6488 = vrot.lane.b32.xlu0 %v16177_v12, %s10556_s12  ;;  %v7259_v3 = vsel %vm18913_vm5, %v7195_v37, %v18927_v42  ;;  %v6687_v1 = vrot.slane %v6685_v14, 1 }
 0x6e4   : > { %v7323_v26 = vsel %vm18915_vm2, %v7259_v3, %v15718_v44  ;;  %v6683_v44 = vshrl.u32 %v16244_v59, 16  ;;  %v10497_v3 = vor.u32 %v10496_v39, %v16277_v36 }
 0x6e5   : > { %v6475_v9 = vpop.permute.xlu0 %6474  ;;  %v7387_v28 = vsel %vm18929_vm14, %v7323_v26, %v15942_v62  ;;  %v4651_v62 = vld [vmem:[#allocation2 + $0x9c] sm:$0x1]  ;;  %vm18937_vm14 = vmmov %vm18909_vm0 }
 0x6e6   : > { %7112 = vrot.lane.b32.xlu1 %v7038_v33, %s10555_s11  ;;  %v7485_v12 = vsel %vm7479_vm6, %v7420_v20, %v6475_v9  ;;  %v16284_v10 = vpop.permute.xlu2 %6940  ;;  %v7452_v33 = vsel %vm7414_vm7, %v7387_v28, %v16096_v31  ;;  %v6692_v20 = vrot.slane %v6690_v34, 1  ;;  %v6688_v54 = vor.u32 %v6687_v1, %v6683_v44  ;;  %v10410_v44 = vld [vmem:[#allocation2 + $0xbc] sm:$0xff] }
 0x6e7   : > { %v7550_v25 = vsel %vm7544_vm3, %v7485_v12, %v16198_v40  ;;  %v7078_v40 = vsel %vm18928_vm11, %v7075_v55, %v7077_v11  ;;  %v6845_v31 = vshll.u32 %v16275_v46, 16  ;;  %v10409_v12 = vld [vmem:[#allocation2 + $0x1c] sm:$0xff]  ;;  %v7079_v39 = vrot.slane %v10497_v3, 1  ;;  %vm18936_vm11 = vmmov %vm18923_vm9 }
 0x6e8   : > { %v7099_v58 = vpop.permute.xlu1 %7098  ;;  %v6693_v14 = vsel %vm18931_vm12, %v6688_v54, %v6692_v20  ;;  %vm18939_vm12 = vmmov %vm18911_vm1  ;;  %v18940_v3 = vld [vmem:[#allocation5_spill] sm:$0xff] }
 0x6e9   : > { %v7615_v23 = vsel %vm7609_vm13, %v7550_v25, %v7099_v58  ;;  %v7040_v58 = vrot.slane %v16281_v50, 1  ;;  %v18930_v25 = vld [vmem:[#allocation72_spill] sm:$0xff]  ;;  %v6847_v34 = vrot.slane %v6845_v31, 1 }
 0x6ea   : > { %9737 = vmatmul.msk.bf16.gmra.mxu1 %vm7714_vm10, %v7615_v23  ;;  %v7165_v15 = vsel %vm1024_vm4, %v10409_v12, %v18930_v25  ;;  %v6555_v23 = vunpack.c.l.b16 %v4651_v62  ;;  %v6694_v12 = vshrl.u32 %v16281_v50, 16 }
 0x6eb   : > { %6952 = vrot.lane.b32.xlu2 %v6841_v30, %s10554_s9  ;;  %6520 = vrot.lane.b32.xlu0 %v16195_v19, %s10556_s12  ;;  %v7041_v37 = vsel %vm18923_vm9, %v7039_v43, %v7040_v58  ;;  %v6848_v36 = vor.u32 %v6847_v34, %v6843_v16  ;;  %v10411_v34 = vld [vmem:[#allocation2 + $0x28] sm:$0xff]  }
 0x6ec   : > { %v6571_v28 = vpack.c.b16 %v6555_v23, %v6555_v23 }
 0x6ed   : > { %v6507_v17 = vpop.permute.xlu0 %6506 }
 0x6ee   : > { %7144 = vrot.lane.b32.xlu1 %v7078_v40, %s10555_s11  ;;  %v7517_v19 = vsel %vm7479_vm6, %v7452_v33, %v6507_v17  ;;  %v16317_v9 = vpop.permute.xlu2 %6910  ;;  %v7080_v33 = vrot.slane %v16312_v13, 1  ;;  %v4659_v17 = vld [vmem:[#allocation2 + $0x13c] sm:$0x1]  ;;  %v6698_v31 = vshll.u32 %v6571_v28, 16 }
 0x6ef   : > { %v7582_v18 = vsel %vm7544_vm3, %v7517_v19, %v16223_v56  ;;  %v7229_v56 = vsel %vm18933_vm8, %v7165_v15, %v18932_v47  ;;  %v18935_v19 = vld [vmem:[#allocation73_spill] sm:$0xff]  ;;  %v6563_v54 = vunpack.c.l.b16 %v4659_v17  ;;  %vm18941_vm8 = vmmov %vm18913_vm5 }
 0x6f0   : > { %v7131_v55 = vpop.permute.xlu1 %7130  ;;  %v7293_v30 = vsel %vm18934_vm15, %v7229_v56, %v15604_v35  ;;  %v6852_v35 = vrot.slane %v6850_v57, 1  ;;  %v7197_v62 = vsel %vm1024_vm4, %v10410_v44, %v18935_v19  ;;  %v6696_v57 = vor.u32 %v6694_v12, %v6692_v20  ;;  %vm18942_vm15 = vmmov %vm18915_vm2 }
 0x6f1   : > { %v7647_v11 = vsel %vm7609_vm13, %v7582_v18, %v7131_v55  ;;  %v7357_v42 = vsel %vm18909_vm0, %v7293_v30, %v15864_v53  ;;  %v7261_v43 = vsel %vm18913_vm5, %v7197_v62, %v15566_v52  ;;  %v6579_v23 = vpack.c.b16 %v6563_v54, %v6563_v54  ;;  %v10019_v62 = vld [vmem:[#allocation2 + $0xa0] sm:$0xf0] }
 0x6f2   : > { %9753 = vmatmul.msk.bf16.gmra.mxu3 %vm7714_vm10, %v7647_v11  ;;  %v7422_v40 = vsel %vm7414_vm7, %v7357_v42, %v16019_v4  ;;  %v6853_v18 = vsel %vm18911_vm1, %v6848_v36, %v6852_v35  ;;  %v7325_v11 = vsel %vm18915_vm2, %v7261_v43, %v15775_v29  ;;  %v6700_v47 = vrot.slane %v6698_v31, 1 }
 0x6f3   : > { %6922 = vrot.lane.b32.xlu2 %v6693_v14, %s10554_s9  ;;  %6490 = vrot.lane.b32.xlu0 %v16244_v59, %s10556_s12  ;;  %v7389_v25 = vsel %vm18937_vm14, %v7325_v11, %v15900_v27  ;;  %v7042_v56 = vrot.slane %v6571_v28, 1  ;;  %v18938_v27 = vld [vmem:[#allocation15_spill] sm:$0xff]  ;;  %v6858_v20 = vshll.u32 %v6579_v23, 16  ;;  %v6854_v28 = vshrl.u32 %v16312_v13, 16  ;;  %v18944_v11 = vld [vmem:[#allocation17_spill] sm:$0xff]  ;;  %vm18946_vm14 = vmmov %vm18909_vm0 }
 0x6f4   : > { %v7454_v52 = vsel %vm7414_vm7, %v7389_v25, %v16120_v2  ;;  %v7167_v42 = vsel %vm1024_vm4, %v10411_v34, %v18938_v27  ;;  %v6701_v2 = vsel %vm18939_vm12, %v6696_v57, %v6700_v47  ;;  %vm18948_vm12 = vmmov %vm18911_vm1 }
 0x6f5   : > { %v6477_v1 = vpop.permute.xlu0 %6476  ;;  %v6856_v36 = vor.u32 %v6854_v28, %v6852_v35  ;;  %v10020_v35 = vld [vmem:[#allocation2 + $0xa0] sm:$0xe] }
 0x6f6   : > { %7114 = vrot.lane.b32.xlu1 %v7041_v37, %s10555_s11  ;;  %v7487_v55 = vsel %vm7479_vm6, %v7422_v40, %v6477_v1  ;;  %v16347_v59 = vpop.permute.xlu2 %6942  ;;  %v7231_v40 = vsel %vm18941_vm8, %v7167_v42, %v18940_v3  ;;  %v10021_v25 = vor.u32 %v10020_v35, %v10019_v62  ;;  %vm18950_vm8 = vmmov %vm18913_vm5 }
 0x6f7   : > { %v7552_v53 = vsel %vm7544_vm3, %v7487_v55, %v16251_v22  ;;  %v7081_v22 = vsel %vm18936_vm11, %v7079_v39, %v7080_v33  ;;  %v7295_v1 = vsel %vm18942_vm15, %v7231_v40, %v15668_v60  ;;  %v6860_v39 = vrot.slane %v6858_v20, 1  ;;  %vm18945_vm11 = vmmov %vm18923_vm9  ;;  %v18947_v20 = vld [vmem:[#allocation28_spill] sm:$0xff]  ;;  %v10031_v40 = vld [vmem:[#allocation2 + $0x140] sm:$0xf0] }
 0x6f8   : > { %v7101_v26 = vpop.permute.xlu1 %7100  ;;  %v7359_v16 = vsel %vm18909_vm0, %v7295_v1, %v15822_v45  ;;  %vm18951_vm15 = vmmov %vm18915_vm2 }
 0x6f9   : > { %v7617_v4 = vsel %vm7609_vm13, %v7552_v53, %v7101_v26  ;;  %v7043_v26 = vsel %vm18923_vm9, %v7040_v58, %v7042_v56  ;;  %v7424_v55 = vsel %vm7414_vm7, %v7359_v16, %v16033_v0  ;;  %v16398_v53 = vld [vmem:[#allocation2 + $0xa8] sm:$0xff]  ;;  %v18943_v0 = vld [vmem:[#allocation78_spill] sm:$0xff]  ;;  %v6861_v31 = vsel %vm18911_vm1, %v6856_v36, %v6860_v39  ;;  %v18949_v16 = vld [vmem:[#allocation13_spill] sm:$0xff] }
 0x6fa   : > { %9738 = vmatmul.msk.bf16.gmra.mxu1 %vm7714_vm10, %v7617_v4  ;;  %v7082_v4 = vrot.slane %v6579_v23, 1  ;;  %v9961_v23 = vld [vmem:[#allocation2 + $0x140] sm:$0xff]  }
 0x6fb   : > { %6954 = vrot.lane.b32.xlu2 %v6853_v18, %s10554_s9  ;;  %6522 = vrot.lane.b32.xlu0 %v16275_v46, %s10556_s12  ;;  %v10412_v18 = vld [vmem:[#allocation2 + $0xc8] sm:$0xff]   ;;  %v6865_v27 = vshll.u32 %v9961_v23, 16  ;;  %v6863_v62 = vshrl.u32 %v9961_v23, 16 }
 0x6fc   : > { %v7199_v54 = vsel %vm1024_vm4, %v10412_v18, %v18943_v0 }
 0x6fd   : > { %v6509_v14 = vpop.permute.xlu0 %6508  ;;  %v7263_v12 = vsel %vm18913_vm5, %v7199_v54, %v18944_v11 }
 0x6fe   : > { %7146 = vrot.lane.b32.xlu1 %v7081_v22, %s10555_s11  ;;  %v7519_v29 = vsel %vm7479_vm6, %v7454_v52, %v6509_v14  ;;  %v16373_v37 = vpop.permute.xlu2 %6912  ;;  %v6710_v22 = vshll.u32 %v16398_v53, 16  ;;  %v7327_v52 = vsel %vm18915_vm2, %v7263_v12, %v15792_v63  ;;  %v7044_v63 = vrot.slane %v10021_v25, 1  ;;  %v16465_v25 = vld [vmem:[#allocation2 + $0xb4] sm:$0xff]  }
 0x6ff   : > { %v7584_v46 = vsel %vm7544_vm3, %v7519_v29, %v16284_v10  ;;  %v9957_v10 = vld [vmem:[#allocation2 + $0xa0] sm:$0xff]   ;;  %v7391_v14 = vsel %vm18946_vm14, %v7327_v52, %v15940_v32  ;;  %v16426_v29 = vld [vmem:[#allocation2 + $0x148] sm:$0xff]  ;;  %v16467_v52 = vld [vmem:[#allocation2 + $0xb4] sm:$0xf0] }
 0x700   : > { %v7133_v15 = vpop.permute.xlu1 %7132  ;;  %v6705_v60 = vshll.u32 %v9957_v10, 16  ;;  %v7456_v57 = vsel %vm7414_vm7, %v7391_v14, %v16065_v61  ;;  %v4652_v61 = vld [vmem:[#allocation2 + $0xb0] sm:$0x1]  ;;  %v6870_v28 = vshll.u32 %v16426_v29, 16  ;;  %v7085_v18 = vrot.slane %v16426_v29, 1  ;;  %vm18955_vm14 = vmmov %vm18909_vm0 }
 0x701   : > { %v7649_v30 = vsel %vm7609_vm13, %v7584_v46, %v7133_v15  ;;  %v6703_v15 = vshrl.u32 %v9957_v10, 16  ;;  %v6712_v46 = vrot.slane %v6710_v22, 1  ;;  %v6556_v36 = vunpack.c.l.b16 %v4652_v61  ;;  %v18952_v22 = vld [vmem:[#allocation56_spill] sm:$0xff] }
 0x702   : > { %9754 = vmatmul.msk.bf16.gmra.mxu3 %vm7714_vm10, %v7649_v30  ;;  %v6707_v43 = vrot.slane %v6705_v60, 1  ;;  %v7045_v30 = vrot.slane %v16398_v53, 1 }
 0x703   : > { %6924 = vrot.lane.b32.xlu2 %v6701_v2, %s10554_s9  ;;  %6492 = vrot.lane.b32.xlu0 %v16281_v50, %s10556_s12  ;;  %v10413_v2 = vld [vmem:[#allocation2 + $0x30] sm:$0xff] }
 0x704   : > { %v6708_v56 = vor.u32 %v6707_v43, %v6703_v15  ;;  %v7169_v3 = vsel %vm1024_vm4, %v10413_v2, %v18947_v20  ;;  %v18953_v15 = vld [vmem:[#allocation75_spill] sm:$0xff] }
 0x705   : > { %v6479_v17 = vpop.permute.xlu0 %6478 }
 0x706   : > { %7116 = vrot.lane.b32.xlu1 %v7043_v26, %s10555_s11  ;;  %v7489_v44 = vsel %vm7479_vm6, %v7424_v55, %v6479_v17  ;;  %v16401_v19 = vpop.permute.xlu2 %6944  ;;  %v10032_v26 = vld [vmem:[#allocation2 + $0x140] sm:$0xe]  ;;  %v6713_v1 = vsel %vm18948_vm12, %v6708_v56, %v6712_v46  ;;  %v7233_v55 = vsel %vm18950_vm8, %v7169_v3, %v18949_v16  ;;  %v6867_v17 = vrot.slane %v6865_v27, 1  ;;  %vm18958_vm12 = vmmov %vm18911_vm1 }
 0x707   : > { %v7554_v50 = vsel %vm7544_vm3, %v7489_v44, %v16317_v9  ;;  %v7083_v9 = vsel %vm18945_vm11, %v7080_v33, %v7082_v4  ;;  %v10033_v60 = vor.u32 %v10032_v26, %v10031_v40  ;;  %vm18954_vm11 = vmmov %vm18923_vm9  ;;  %v18956_v40 = vld [vmem:[#allocation32_spill] sm:$0xff]  ;;  %v6874_v16 = vshrl.u32 %v16426_v29, 16 }
 0x708   : > { %v7103_v58 = vpop.permute.xlu1 %7102  ;;  %v6868_v35 = vor.u32 %v6867_v17, %v6863_v62  ;;  %vm18960_vm8 = vmmov %vm18913_vm5 }
 0x709   : > { %v7619_v45 = vsel %vm7609_vm13, %v7554_v50, %v7103_v58  ;;  %v7297_v58 = vsel %vm18951_vm15, %v7233_v55, %v15691_v48  ;;  %v16502_v55 = vld [vmem:[#allocation2 + $0x154] sm:$0xff]   ;;  %vm18961_vm15 = vmmov %vm18915_vm2 }
 0x70a   : > { %9739 = vmatmul.msk.bf16.gmra.mxu1 %vm7714_vm10, %v7619_v45  ;;  %v7361_v39 = vsel %vm18909_vm0, %v7297_v58, %v15862_v51  ;;  %v6872_v45 = vrot.slane %v6870_v28, 1  ;;  %v6572_v51 = vpack.c.b16 %v6556_v36, %v6556_v36  ;;  %v6725_v36 = vshll.u32 %v16465_v25, 16 }
 0x70b   : > { %6956 = vrot.lane.b32.xlu2 %v6861_v31, %s10554_s9  ;;  %6524 = vrot.lane.b32.xlu0 %v16312_v13, %s10556_s12  ;;  %v7426_v4 = vsel %vm7414_vm7, %v7361_v39, %v16000_v6  ;;  %v7084_v31 = vrot.slane %v10033_v60, 1  ;;  %v10414_v6 = vld [vmem:[#allocation2 + $0xd0] sm:$0xff] }
 0x70c   : > { %v7201_v11 = vsel %vm1024_vm4, %v10414_v6, %v18952_v22  ;;  %v6873_v12 = vsel %vm18911_vm1, %v6868_v35, %v6872_v45  ;;  %v7047_v20 = vrot.slane %v6572_v51, 1  ;;  %v18965_v6 = vld [vmem:[#allocation97_spill] sm:$0xff] }
 0x70d   : > { %v6511_v47 = vpop.permute.xlu0 %6510  ;;  %v7086_v14 = vsel %vm18954_vm11, %v7084_v31, %v7085_v18  ;;  %vm18964_vm11 = vmmov %vm18923_vm9 }
 0x70e   : > { %7148 = vrot.lane.b32.xlu1 %v7083_v9, %s10555_s11  ;;  %v7521_v34 = vsel %vm7479_vm6, %v7456_v57, %v6511_v47  ;;  %v16430_v13 = vpop.permute.xlu2 %6914  ;;  %v6718_v47 = vshll.u32 %v6572_v51, 16  ;;  %v6727_v51 = vrot.slane %v6725_v36, 1 }
 0x70f   : > { %v7586_v32 = vsel %vm7544_vm3, %v7521_v34, %v16347_v59  ;;  %v7046_v59 = vsel %vm18923_vm9, %v7044_v63, %v7045_v30 }
 0x710   : > { %v7135_v33 = vpop.permute.xlu1 %7134  ;;  %v6720_v2 = vrot.slane %v6718_v47, 1 }
 0x711   : > { %v7651_v42 = vsel %vm7609_vm13, %v7586_v32, %v7135_v33  ;;  %v6714_v33 = vshrl.u32 %v16398_v53, 16 }
 0x712   : > { %9755 = vmatmul.msk.bf16.gmra.mxu3 %vm7714_vm10, %v7651_v42 }
 0x713   : > { %6926 = vrot.lane.b32.xlu2 %v6713_v1, %s10554_s9  ;;  %6494 = vrot.lane.b32.xlu0 %v9957_v10, %s10556_s12  ;;  %v4660_v10 = vld [vmem:[#allocation2 + $0x150] sm:$0x1]  ;;  %v6716_v42 = vor.u32 %v6714_v33, %v6712_v46  ;;  %v18959_v1 = vld [vmem:[#allocation38_spill] sm:$0xff]  ;;  %v6885_v33 = vshll.u32 %v16502_v55, 16 }
 0x714   : > { %v6564_v9 = vunpack.c.l.b16 %v4660_v10  ;;  %v16521_v10 = vld [vmem:[#allocation2 + $0xbc] sm:$0xff] }
 0x715   : > { %v6481_v50 = vpop.permute.xlu0 %6480 }
 0x716   : > { %7118 = vrot.lane.b32.xlu1 %v7046_v59, %s10555_s11  ;;  %v7491_v48 = vsel %vm7479_vm6, %v7426_v4, %v6481_v50  ;;  %v16456_v0 = vpop.permute.xlu2 %6946  ;;  %v6580_v27 = vpack.c.b16 %v6564_v9, %v6564_v9  ;;  %v16504_v59 = vld [vmem:[#allocation2 + $0x154] sm:$0xf0] }
 0x717   : > { %v7556_v54 = vsel %vm7544_vm3, %v7491_v48, %v16373_v37  ;;  %v7265_v37 = vsel %vm18913_vm5, %v7201_v11, %v18953_v15  ;;  %v6723_v11 = vshrl.u32 %v16465_v25, 16 }
 0x718   : > { %v7105_v44 = vpop.permute.xlu1 %7104  ;;  %v7329_v57 = vsel %vm18915_vm2, %v7265_v37, %v15735_v5  ;;  %v6878_v46 = vshll.u32 %v6580_v27, 16  ;;  %v7087_v62 = vrot.slane %v6580_v27, 1  ;;  %v16553_v27 = vld [vmem:[#allocation2 + $0x15c] sm:$0xff] }
 0x719   : > { %v7621_v43 = vsel %vm7609_vm13, %v7556_v54, %v7105_v44  ;;  %v7393_v56 = vsel %vm18955_vm14, %v7329_v57, %v15959_v7  ;;  %v18957_v7 = vld [vmem:[#allocation61_spill] sm:$0xff]  ;;  %v10499_v44 = vld [vmem:[#allocation2 + $0xb4] sm:$0xe]  ;;  %v18963_v54 = vld [vmem:[#allocation62_spill] sm:$0xff] }
 0x71a   : > { %9740 = vmatmul.msk.bf16.gmra.mxu1 %vm7714_vm10, %v7621_v43  ;;  %v7458_v63 = vsel %vm7414_vm7, %v7393_v56, %v16118_v38  ;;  %v7171_v26 = vsel %vm1024_vm4, %v18957_v7, %v18956_v40  ;;  %v6721_v38 = vsel %vm18958_vm12, %v6716_v42, %v6720_v2  ;;  %v6880_v50 = vrot.slane %v6878_v46, 1  ;;  %vm18967_vm14 = vmmov %vm18909_vm0  ;;  %v10502_v57 = vld [vmem:[#allocation2 + $0x154] sm:$0xe]  ;;  %v18969_v2 = vld [vmem:[#allocation33_spill] sm:$0xff] }
 0x71b   : > { %6958 = vrot.lane.b32.xlu2 %v6873_v12, %s10554_s9  ;;  %6526 = vrot.lane.b32.xlu0 %v9961_v23, %s10556_s12  ;;  %v7235_v28 = vsel %vm18960_vm8, %v7171_v26, %v18959_v1  ;;  %v10500_v43 = vor.u32 %v10499_v44, %v16467_v52  ;;  %v18966_v12 = vld [vmem:[#allocation106_spill] sm:$0xff]  ;;  %v7050_v42 = vrot.slane %v16521_v10, 1  ;;  %vm18970_vm12 = vmmov %vm18911_vm1  ;;  %v6887_v7 = vrot.slane %v6885_v33, 1 }
 0x71c   : > { %v7299_v58 = vsel %vm18961_vm15, %v7235_v28, %v15630_v24  ;;  %v18971_v26 = vld [vmem:[#allocation26_spill] sm:$0xff]  ;;  %vm18972_vm8 = vmmov %vm18913_vm5  ;;  %v10503_v46 = vor.u32 %v10502_v57, %v16504_v59 }
 0x71d   : > { %v6513_v32 = vpop.permute.xlu0 %6512  ;;  %v7363_v17 = vsel %vm18909_vm0, %v7299_v58, %v15880_v49  ;;  %v7049_v47 = vrot.slane %v10500_v43, 1  ;;  %v18973_v1 = vld [vmem:[#allocation86_spill] sm:$0xff]  ;;  %vm18974_vm15 = vmmov %vm18915_vm2 }
 0x71e   : > { %7150 = vrot.lane.b32.xlu1 %v7086_v14, %s10555_s11  ;;  %v7523_v61 = vsel %vm7479_vm6, %v7458_v63, %v6513_v32  ;;  %v16485_v5 = vpop.permute.xlu2 %6916  ;;  %v7428_v39 = vsel %vm7414_vm7, %v7363_v17, %v16031_v41  ;;  %v6728_v14 = vor.u32 %v6727_v51, %v6723_v11  ;;  %v4653_v63 = vld [vmem:[#allocation2 + $0xc4] sm:$0x1]  ;;  %v7089_v44 = vrot.slane %v10503_v46, 1 }
 0x71f   : > { %v7588_v23 = vsel %vm7544_vm3, %v7523_v61, %v16401_v19  ;;  %v7048_v19 = vsel %vm18923_vm9, %v7045_v30, %v7047_v20  ;;  %v6876_v30 = vor.u32 %v6874_v16, %v6872_v45  ;;  %v18962_v45 = vld [vmem:[#allocation41_spill] sm:$0xff]  ;;  %v6557_v40 = vunpack.c.l.b16 %v4653_v63  ;;  %v18975_v58 = vld [vmem:[#allocation70_spill] sm:$0xff] }
 0x720   : > { %v7137_v34 = vpop.permute.xlu1 %7136  ;;  %v7203_v41 = vsel %vm1024_vm4, %v18963_v54, %v18962_v45  ;;  %v6890_v16 = vshll.u32 %v16553_v27, 16  ;;  %v10416_v54 = vld [vmem:[#allocation2 + $0xe4] sm:$0xff]  ;;  %v6894_v46 = vshrl.u32 %v16553_v27, 16 }
 0x721   : > { %v7653_v3 = vsel %vm7609_vm13, %v7588_v23, %v7137_v34  ;;  %v6881_v35 = vsel %vm18911_vm1, %v6876_v30, %v6880_v50  ;;  %v7267_v31 = vsel %vm18913_vm5, %v7203_v41, %v15586_v21  ;;  %v6730_v21 = vshll.u32 %v16521_v10, 16  ;;  %v10415_v23 = vld [vmem:[#allocation2 + $0x44] sm:$0xff]  ;;  %v18977_v41 = vld [vmem:[#allocation64_spill] sm:$0xff] }
 0x722   : > { %9756 = vmatmul.msk.bf16.gmra.mxu3 %vm7714_vm10, %v7653_v3  ;;  %v7331_v22 = vsel %vm18915_vm2, %v7267_v31, %v18965_v6  ;;  %v7173_v20 = vsel %vm1024_vm4, %v10415_v23, %v18969_v2  ;;  %v18976_v30 = vld [vmem:[#allocation122_spill] sm:$0xff] }
 0x723   : > { %6928 = vrot.lane.b32.xlu2 %v6721_v38, %s10554_s9  ;;  %6496 = vrot.lane.b32.xlu0 %v16398_v53, %s10556_s12  ;;  %v7395_v9 = vsel %vm18967_vm14, %v7331_v22, %v18966_v12  ;;  %v6732_v32 = vrot.slane %v6730_v21, 1  ;;  %v7051_v38 = vsel %vm18923_vm9, %v7049_v47, %v7050_v42  ;;  %v18980_v22 = vld [vmem:[#allocation100_spill] sm:$0xff]  ;;  %v6734_v21 = vshrl.u32 %v16521_v10, 16  ;;  %v18981_v12 = vld [vmem:[#allocation110_spill] sm:$0xff]  ;;  %vm18982_vm14 = vmmov %vm18909_vm0 }
 0x724   : > { %v18984_v23 = vld [vmem:[#allocation14_spill] sm:$0xff] }
 0x725   : > { %v6483_v4 = vpop.permute.xlu0 %6482  ;;  %v6733_v3 = vsel %vm18970_vm12, %v6728_v14, %v6732_v32  ;;  %v6736_v14 = vor.u32 %v6734_v21, %v6732_v32  ;;  %vm18985_vm12 = vmmov %vm18911_vm1 }
 0x726   : > { %7120 = vrot.lane.b32.xlu1 %v7048_v19, %s10555_s11  ;;  %v7493_v24 = vsel %vm7479_vm6, %v7428_v39, %v6483_v4  ;;  %v16517_v48 = vpop.permute.xlu2 %6948  ;;  %v6883_v19 = vshrl.u32 %v16502_v55, 16 }
 0x727   : > { %v7558_v53 = vsel %vm7544_vm3, %v7493_v24, %v16430_v13  ;;  %v7088_v13 = vsel %vm18964_vm11, %v7085_v18, %v7087_v62  ;;  %v18968_v18 = vld [vmem:[#allocation131_spill] sm:$0xff]  ;;  %v6892_v24 = vrot.slane %v6890_v16, 1  ;;  %vm18979_vm11 = vmmov %vm18923_vm9 }
 0x728   : > { %v7107_v60 = vpop.permute.xlu1 %7106  ;;  %v7460_v52 = vsel %vm7414_vm7, %v7395_v9, %v18968_v18  ;;  %v6888_v4 = vor.u32 %v6887_v7, %v6883_v19  ;;  %v18983_v18 = vld [vmem:[#allocation127_spill] sm:$0xff] }
 0x729   : > { %v7623_v49 = vsel %vm7609_vm13, %v7558_v53, %v7107_v60  ;;  %v6573_v60 = vpack.c.b16 %v6557_v40, %v6557_v40  ;;  %v4661_v53 = vld [vmem:[#allocation2 + $0x164] sm:$0x1]  ;;  %v9958_v16 = vld [vmem:[#allocation2 + $0xc8] sm:$0xff]  }
 0x72a   : > { %9741 = vmatmul.msk.bf16.gmra.mxu1 %vm7714_vm10, %v7623_v49  ;;  %v7090_v49 = vrot.slane %v16553_v27, 1  ;;  %v6893_v51 = vsel %vm18911_vm1, %v6888_v4, %v6892_v24  ;;  %v6565_v6 = vunpack.c.l.b16 %v4661_v53  ;;  %vm18995_vm1 = vmmov %vm18913_vm5 }
 0x72b   : > { %6960 = vrot.lane.b32.xlu2 %v6881_v35, %s10554_s9  ;;  %6528 = vrot.lane.b32.xlu0 %v16426_v29, %s10556_s12  ;;  %v7205_v35 = vsel %vm1024_vm4, %v10416_v54, %v18977_v41  ;;  %v6738_v31 = vshll.u32 %v6573_v60, 16  ;;  %v7052_v33 = vrot.slane %v6573_v60, 1  ;;  %v18997_v41 = vld [vmem:[#allocation67_spill] sm:$0xff] }
 0x72c   : > { %v6581_v63 = vpack.c.b16 %v6565_v6, %v6565_v6  ;;  %v19003_v6 = vld [vmem:[#allocation130_spill] sm:$0xff] }
 0x72d   : > { %v6515_v37 = vpop.permute.xlu0 %6514  ;;  %v6740_v57 = vrot.slane %v6738_v31, 1  ;;  %v7053_v40 = vsel %vm18923_vm9, %v7050_v42, %v7052_v33  ;;  %v10419_v33 = vld [vmem:[#allocation2 + $0x58] sm:$0xff] }
 0x72e   : > { %7152 = vrot.lane.b32.xlu1 %v7088_v13, %s10555_s11  ;;  %v7525_v56 = vsel %vm7479_vm6, %v7460_v52, %v6515_v37  ;;  %v16549_v29 = vpop.permute.xlu2 %6918  ;;  %v18978_v13 = vld [vmem:[#allocation7_spill] sm:$0xff]  ;;  %v6898_v7 = vshll.u32 %v6581_v63, 16 }
 0x72f   : > { %v7590_v34 = vsel %vm7544_vm3, %v7525_v56, %v16456_v0  ;;  %v7237_v0 = vsel %vm18972_vm8, %v7173_v20, %v18971_v26  ;;  %v7269_v43 = vsel %vm18913_vm5, %v7205_v35, %v18978_v13  ;;  %v6741_v32 = vsel %vm18985_vm12, %v6736_v14, %v6740_v57  ;;  %v18986_v20 = vld [vmem:[#allocation16_spill] sm:$0xff]  ;;  %vm18987_vm8 = vmmov %vm18913_vm5  ;;  %v18988_v26 = vld [vmem:[#allocation89_spill] sm:$0xff] }
 0x730   : > { %v7139_v15 = vpop.permute.xlu1 %7138  ;;  %v7301_v28 = vsel %vm18974_vm15, %v7237_v0, %v18973_v1  ;;  %v7333_v11 = vsel %vm18915_vm2, %v7269_v43, %v18980_v22  ;;  %vm18989_vm15 = vmmov %vm18915_vm2  ;;  %v18990_v0 = vld [vmem:[#allocation35_spill] sm:$0xff]  ;;  %v18991_v1 = vld [vmem:[#allocation118_spill] sm:$0xff]  ;;  %v18998_v35 = vrot.slane %v18997_v41, 1 }
 0x731   : > { %v7655_v61 = vsel %vm7609_vm13, %v7590_v34, %v7139_v15  ;;  %v7365_v17 = vsel %vm18909_vm0, %v7301_v28, %v18975_v58  ;;  %v7397_v9 = vsel %vm18982_vm14, %v7333_v11, %v18981_v12  ;;  %v6896_v58 = vor.u32 %v6894_v46, %v6892_v24  ;;  %v18994_v24 = vld [vmem:[#allocation76_spill] sm:$0xff]  ;;  %vm18996_vm5 = vmmov %vm18985_vm12  ;;  %v19001_v13 = vld [vmem:[#allocation114_spill] sm:$0xff] }
 0x732   : > { %9757 = vmatmul.msk.bf16.gmra.mxu3 %vm7714_vm10, %v7655_v61  ;;  %v7430_v36 = vsel %vm7414_vm7, %v7365_v17, %v18976_v30  ;;  %v7462_v52 = vsel %vm7414_vm7, %v7397_v9, %v18983_v18  ;;  %v10417_v61 = vld [vmem:[#allocation2 + $0x50] sm:$0xff]   ;;  %v6900_v17 = vrot.slane %v6898_v7, 1  ;;  %vm19002_vm14 = vmmov %vm18909_vm0  ;;  %v6743_v12 = vshrl.u32 %v9958_v16, 16 }
 0x733   : > { %6930 = vrot.lane.b32.xlu2 %v6733_v3, %s10554_s9  ;;  %6498 = vrot.lane.b32.xlu0 %v16465_v25, %s10556_s12  ;;  %v7175_v2 = vsel %vm1024_vm4, %v10417_v61, %v18984_v23  ;;  %v10023_v61 = vld [vmem:[#allocation2 + $0xc8] sm:$0xe]  ;;  %vm19006_vm12 = vmmov %vm18995_vm1 }
 0x734   : > { %v7239_v3 = vsel %vm18987_vm8, %v7175_v2, %v18986_v20  ;;  %v6901_v54 = vsel %vm18996_vm5, %v6896_v58, %v6900_v17  ;;  %v19005_v23 = vld [vmem:[#allocation31_spill] sm:$0xff]  ;;  %vm19008_vm8 = vmmov %vm18996_vm5  ;;  %v19009_v20 = vld [vmem:[#allocation48_spill] sm:$0xff] }
 0x735   : > { %v6485_v59 = vpop.permute.xlu0 %6484  ;;  %v19014_v17 = vld [vmem:[#allocation43_spill] sm:$0xff]  ;;  %vm19017_vm5 = vmmov %vm18923_vm9 }
 0x736   : > { %7122 = vrot.lane.b32.xlu1 %v7051_v38, %s10555_s11  ;;  %v7495_v50 = vsel %vm7479_vm6, %v7430_v36, %v6485_v59  ;;  %v16578_v62 = vpop.permute.xlu2 %6950 }
 0x737   : > { %v7560_v25 = vsel %vm7544_vm3, %v7495_v50, %v16485_v5  ;;  %v7091_v5 = vsel %vm18979_vm11, %v7089_v44, %v7090_v49  ;;  %v6745_v44 = vshll.u32 %v9958_v16, 16  ;;  %v10418_v50 = vld [vmem:[#allocation2 + $0xf0] sm:$0xff]   ;;  %vm18999_vm11 = vmmov %vm18923_vm9 }
 0x738   : > { %v7109_v39 = vpop.permute.xlu1 %7108 }
 0x739   : > { %v7625_v45 = vsel %vm7609_vm13, %v7560_v25, %v7109_v39  ;;  %v18993_v25 = vld [vmem:[#allocation58_spill] sm:$0xff] }
 0x73a   : > { %9742 = vmatmul.msk.bf16.gmra.mxu1 %vm7714_vm10, %v7625_v45  ;;  %v7207_v53 = vsel %vm1024_vm4, %v10418_v50, %v18993_v25  ;;  %v19020_v50 = vld [vmem:[#allocation108_spill] sm:$0xff] }
 0x73b   : > { %6962 = vrot.lane.b32.xlu2 %v6893_v51, %s10554_s9  ;;  %6530 = vrot.lane.b32.xlu0 %v16502_v55, %s10556_s12  ;;  %v7271_v45 = vsel %vm18995_vm1, %v7207_v53, %v18994_v24  ;;  %v19022_v53 = vld [vmem:[#allocation134_spill] sm:$0xff] }
 0x73d   : > { %v6517_v37 = vpop.permute.xlu0 %6516 }
 0x73e   : > { %7154 = vrot.lane.b32.xlu1 %v7091_v5, %s10555_s11  ;;  %v7527_v47 = vsel %vm7479_vm6, %v7462_v52, %v6517_v37  ;;  %v16605_v56 = vpop.permute.xlu2 %6920  ;;  %v6747_v5 = vrot.slane %v6745_v44, 1  ;;  %v7092_v52 = vrot.slane %v6581_v63, 1  ;;  %v19018_v44 = vld [vmem:[#allocation99_spill] sm:$0xff] }
 0x73f   : > { %v7592_v55 = vsel %vm7544_vm3, %v7527_v47, %v16517_v48  ;;  %v7303_v48 = vsel %vm18989_vm15, %v7239_v3, %v18988_v26  ;;  %v19004_v47 = vld [vmem:[#allocation24_spill] sm:$0xff]  ;;  %vm19010_vm15 = vmmov %vm18915_vm2 }
 0x740   : > { %v7141_v15 = vpop.permute.xlu1 %7140  ;;  %v7367_v38 = vsel %vm18909_vm0, %v7303_v48, %v18990_v0  ;;  %v6748_v37 = vor.u32 %v6747_v5, %v6743_v12  ;;  %v19012_v48 = vld [vmem:[#allocation121_spill] sm:$0xff]  ;;  %v19025_v5 = vld [vmem:[#allocation34_spill] sm:$0xff] }
 0x741   : > { %v7657_v34 = vsel %vm7609_vm13, %v7592_v55, %v7141_v15  ;;  %v7432_v28 = vsel %vm7414_vm7, %v7367_v38, %v18991_v1  ;;  %v7177_v55 = vsel %vm1024_vm4, %v10419_v33, %v19004_v47  ;;  %v16722_v47 = vld [vmem:[%s18183_s4] ss:$0 sm:$0xff] }
 0x742   : > { %9758 = vmatmul.msk.bf16.gmra.mxu3 %vm7714_vm10, %v7657_v34  ;;  %v10022_v34 = vld [vmem:[#allocation2 + $0xc8] sm:$0xf0]  ;;  %v7241_v2 = vsel %vm19006_vm12, %v7177_v55, %v19005_v23 }
 0x743   : > { %6932 = vrot.lane.b32.xlu2 %v6741_v32, %s10554_s9  ;;  %6500 = vrot.lane.b32.xlu0 %v16521_v10, %s10556_s12  ;;  %v18992_v10 = vld [vmem:[#allocation94_spill] sm:$0xff]  ;;  %v19007_v32 = vld [vmem:[#allocation112_spill] sm:$0xff]  ;;  %v7305_v3 = vsel %vm19010_vm15, %v7241_v2, %v19009_v20  ;;  %v10024_v26 = vor.u32 %v10023_v61, %v10022_v34  ;;  %v19032_v61 = vld [vmem:[#allocation63_spill] sm:$0xff] }
 0x744   : > { %v6244_v59 = vrot.slane %v18992_v10, 1  ;;  %v6753_v63 = vsel %vm19008_vm8, %v6748_v37, %v19007_v32  ;;  %vm19030_vm8 = vmmov %vm18909_vm0  ;;  %v19033_v23 = vld [vmem:[#allocation55_spill] sm:$0xff] }
 0x745   : > { %v6487_v19 = vpop.permute.xlu0 %6486  ;;  %v7211_v2 = vsel %vm1024_vm4, %v19033_v23, %v19032_v61  ;;  %v19034_v32 = vld [vmem:[#allocation83_spill] sm:$0xff] }
 0x746   : > { %7124 = vrot.lane.b32.xlu1 %v7053_v40, %s10555_s11  ;;  %v7497_v30 = vsel %vm7479_vm6, %v7432_v28, %v6487_v19  ;;  %v16631_v39 = vpop.permute.xlu2 %6952  ;;  %v6245_v51 = vsel %vm18999_vm11, %v18998_v35, %v6244_v59  ;;  %v19011_v40 = vld [vmem:[#allocation103_spill] sm:$0xff]  ;;  %v10420_v19 = vld [vmem:[#allocation2 + $0xf8] sm:$0xff]  ;;  %vm19019_vm11 = vmmov %vm18915_vm2 }
 0x747   : > { %v16629_v36 = vpop.f32.mrf.mxu1  ;;  %v7562_v60 = vsel %vm7544_vm3, %v7497_v30, %v16549_v29  ;;  %v19000_v29 = vld [vmem:[#allocation95_spill] sm:$0xff]  ;;  %v7369_v7 = vsel %vm18909_vm0, %v7305_v3, %v19011_v40  ;;  %v19015_v59 = vld [vmem:[#allocation109_spill] sm:$0xff]  ;;  %vm19028_vm12 = vmmov %vm19019_vm11 }
 0x748   : > { %v7111_v42 = vpop.permute.xlu1 %7110  ;;  %v7335_v31 = vsel %vm18915_vm2, %v7271_v45, %v19000_v29  ;;  %v7434_v0 = vsel %vm7414_vm7, %v7369_v7, %v19012_v48  ;;  %vm19021_vm2 = vmmov %vm18909_vm0  ;;  %v7793_v3 = vadd.f32 %v16722_v47, %v16629_v36  ;;  %v19038_v40 = vld [vmem:[#allocation113_spill] sm:$0xff] }
 0x749   : > { %v7627_v4 = vsel %vm7609_vm13, %v7562_v60, %v7111_v42  ;;  %v7399_v43 = vsel %vm19002_vm14, %v7335_v31, %v19001_v13  ;;  %v7054_v42 = vrot.slane %v10024_v26, 1  ;;  %v19016_v60 = vrot.slane %v19015_v59, 1  ;;  %v19023_v31 = vld [vmem:[#allocation80_spill] sm:$0xff]  ;;  %v19024_v13 = vld [vmem:[#allocation69_spill] sm:$0xff]  ;;  %vm19026_vm14 = vmmov %vm18995_vm1 }
 0x74a   : > { %9743 = vmatmul.msk.bf16.gmra.mxu1 %vm7714_vm10, %v7627_v4  ;;  %v7464_v22 = vsel %vm7414_vm7, %v7399_v43, %v19003_v6  ;;  %v7179_v43 = vsel %vm1024_vm4, %v19024_v13, %v19023_v31  ;;  %vm19037_vm15 = vmmov %vm19019_vm11  ;;  %v19039_v7 = vld [vmem:[#allocation129_spill] sm:$0xff]  ;;  %v19043_v59 = vld [vmem:[#allocation91_spill] sm:$0xff] }
 0x74b   : > { %6532 = vrot.lane.b32.xlu2 %v16553_v27, %s10556_s12  ;;  %6308 = vrot.lane.b32.xlu0 %v6245_v51, %s10553_s7  ;;  %v7056_v4 = vsel %vm19017_vm5, %v7054_v42, %v19016_v60  ;;  %v7243_v6 = vsel %vm19026_vm14, %v7179_v43, %v19025_v5  ;;  %vm19046_vm14 = vmmov %vm18909_vm0  ;;  %s17092_s7 = sadd.s32 %s9396_s10, %s9395_s8 }
 0x74c   : > { %s9397_s19 = sshll.u32 %s17092_s7, 3 }
 0x74d   : > { %v6519_v21 = vpop.permute.xlu0 %6518 }
 0x74e   : > { %6964 = vrot.lane.b32.xlu1 %v6901_v54, %s10554_s9  ;;  %v7529_v9 = vsel %vm7479_vm6, %v7464_v22, %v6519_v21  ;;  %v6923_v14 = vpop.permute.xlu2 %6922  ;;  %v19027_v22 = vld [vmem:[#allocation88_spill] sm:$0xff] }
 0x74f   : > { %v16657_v18 = vpop.f32.mrf.mxu1  ;;  %v7594_v15 = vsel %vm7544_vm3, %v7529_v9, %v16578_v62  ;;  %v7093_v62 = vsel %vm18923_vm9, %v7090_v49, %v7092_v52  ;;  %v19029_v21 = vld [vmem:[#allocation36_spill] sm:$0xff]  ;;  %vm19035_vm9 = vmmov %vm18995_vm1 }
 0x750   : > { %v7143_v11 = vpop.permute.xlu1 %7142  ;;  %v19031_v52 = vld [vmem:[#allocation124_spill] sm:$0xff]  ;;  %v7795_v48 = vadd.f32 %v16722_v47, %v16657_v18  ;;  %vm19042_vm5 = vmmov %vm19035_vm9 }
 0x751   : > { %v7659_v57 = vsel %vm7609_vm13, %v7594_v15, %v7143_v11  ;;  %v7307_v11 = vsel %vm19028_vm12, %v7243_v6, %v19027_v22  ;;  %v19041_v18 = vld [vmem:[#allocation52_spill] sm:$0xff] }
 0x752   : > { %9759 = vmatmul.msk.bf16.gmra.mxu3 %vm7714_vm10, %v7659_v57  ;;  %v7371_v12 = vsel %vm19030_vm8, %v7307_v11, %v19029_v21  ;;  %v10422_v22 = vld [vmem:[#allocation2 + $0x10c] sm:$0xff]  ;;  %v19048_v11 = vld [vmem:[#allocation77_spill] sm:$0xff]  ;;  %vm19050_vm8 = vmmov %vm19042_vm5 }
 0x753   : > { %6502 = vrot.lane.b32.xlu2 %v9958_v16, %s10556_s12  ;;  %7156 = vrot.lane.b32.xlu0 %v7093_v62, %s10555_s11  ;;  %v19013_v16 = vld [vmem:[#allocation54_spill] sm:$0xff]  ;;  %v7213_v21 = vsel %vm1024_vm4, %v10422_v22, %v19048_v11 }
 0x754   : > { %v7209_v58 = vsel %vm1024_vm4, %v10420_v19, %v19013_v16  ;;  %v19036_v62 = vld [vmem:[#allocation102_spill] sm:$0xff]  ;;  %v10421_v19 = vld [vmem:[#allocation2 + $0x6c] sm:$0xff]  ;;  %v19040_v16 = vld [vmem:[#allocation81_spill] sm:$0xff] }
 0x755   : > { %v6489_v27 = vpop.permute.xlu0 %6488  ;;  %v7273_v30 = vsel %vm18995_vm1, %v7209_v58, %v19014_v17  ;;  %vm7952_vm1 = vcmp.ge.f32.partialorder %v7793_v3, 0.0  ;;  %v7181_v58 = vsel %vm1024_vm4, %v10421_v19, %v19040_v16  ;;  %v8017_v17 = vmul.f32 0.2, %v7795_v48 }
 0x756   : > { %6934 = vrot.lane.b32.xlu1 %v6753_v63, %s10554_s9  ;;  %v7499_v49 = vsel %vm7479_vm6, %v7434_v0, %v6489_v27  ;;  %v6955_v10 = vpop.permute.xlu2 %6954  ;;  %v7275_v63 = vsel %vm19035_vm9, %v7211_v2, %v19034_v32  ;;  %v19055_v2 = vld [vmem:[#allocation133_spill] sm:$0xff] }
 0x757   : > { %v16682_v46 = vpop.f32.mrf.mxu1  ;;  %v7564_v1 = vsel %vm7544_vm3, %v7499_v49, %v16605_v56  ;;  %v7337_v56 = vsel %vm19019_vm11, %v7273_v30, %v19018_v44  ;;  %v7339_v20 = vsel %vm19037_vm15, %v7275_v63, %v19036_v62  ;;  %v7245_v30 = vsel %vm19042_vm5, %v7181_v58, %v19041_v18  ;;  %v19045_v44 = vld [vmem:[#allocation49_spill] sm:$0xff] }
 0x758   : > { %v7113_v38 = vpop.permute.xlu1 %7112  ;;  %v7401_v25 = vsel %vm19021_vm2, %v7337_v56, %v19020_v50  ;;  %vm7953_vm11 = vcmp.ge.f32.partialorder %v7795_v48, 0.0  ;;  %vm19044_vm2 = vmmov %vm19028_vm12  ;;  %v19047_v50 = vld [vmem:[#allocation119_spill] sm:$0xff] }
 0x759   : > { %v7629_v28 = vsel %vm7609_vm13, %v7564_v1, %v7113_v38  ;;  %v7466_v24 = vsel %vm7414_vm7, %v7401_v25, %v19022_v53  ;;  %v7309_v60 = vsel %vm19044_vm2, %v7245_v30, %v19043_v59  ;;  %v7798_v53 = vadd.f32 %v16722_v47, %v16682_v46 }
 0x75a   : > { %9744 = vmatmul.msk.bf16.gmra.mxu1 %vm7714_vm10, %v7629_v28  ;;  %v8016_v28 = vmul.f32 0.2, %v7793_v3  ;;  %v7373_v56 = vsel %vm19046_vm14, %v7309_v60, %v19045_v44  ;;  %v19059_v60 = vld [vmem:[#allocation85_spill] sm:$0xff] }
 0x75b   : > { %7126 = vrot.lane.b32.xlu0 %v7056_v4, %s10555_s11  ;;  %v7438_v25 = vsel %vm7414_vm7, %v7373_v56, %v19047_v50  ;;  %vm7954_vm9 = vcmp.ge.f32.partialorder %v7798_v53, 0.0  ;;  %v19061_v50 = vld [vmem:[#allocation105_spill] sm:$0xff]  ;;  %s17125_s11 = scalar_lea.vmem %s18184_s5, %s9397_s19 }
 0x75d   : > { %v6521_v54 = vpop.permute.xlu0 %6520 }
 0x75e   : > { %v7531_v41 = vsel %vm7479_vm6, %v7466_v24, %v6521_v54  ;;  %v6925_v9 = vpop.permute.xlu2 %6924 }
 0x75f   : > { %v7799_v35 = vpop.f32.mrf.mxu1  ;;  %v7596_v51 = vsel %vm7544_vm3, %v7531_v41, %v16631_v39  ;;  %v7436_v39 = vsel %vm7414_vm7, %v7371_v12, %v19031_v52  ;;  %v16762_v41 = vsel %vm7953_vm11, %v7795_v48, %v8017_v17  ;;  %v8018_v12 = vmul.f32 0.2, %v7798_v53  ;;  %v19057_v17 = vld [vmem:[#allocation45_spill] sm:$0xff] }
 0x760   : > { %v7145_v45 = vpop.permute.xlu1 %7144  ;;  %v7800_v4 = vadd.f32 %v16722_v47, %v7799_v35  ;;  %v8145_v46 = vmul.f32 %v16762_v41, %v16762_v41 }
 0x761   : > { %v7661_v29 = vsel %vm7609_vm13, %v7596_v51, %v7145_v45 }
 0x762   : > { %9760 = vmatmul.msk.bf16.gmra.mxu3 %vm7714_vm10, %v7661_v29  ;;  %v8019_v31 = vmul.f32 0.2, %v7800_v4  ;;  %vm7955_vm12 = vcmp.ge.f32.partialorder %v7800_v4, 0.0  ;;  %v8211_v23 = vsel %vm1024_vm4, %v8145_v46, 0.0 }
 0x765   : > { %v6491_v37 = vpop.permute.xlu0 %6490  ;;  %v16768_v43 = vpop.f32.mrf.mxu3 }
 0x766   : > { %v7501_v57 = vsel %vm7479_vm6, %v7436_v39, %v6491_v37  ;;  %v6957_v27 = vpop.permute.xlu2 %6956  ;;  %v19049_v39 = vld [vmem:[#allocation9_spill] sm:$0xff]  ;;  %v19051_v37 = vld [vmem:[#allocation96_spill] sm:$0xff] }
 0x767   : > { %v7802_v33 = vpop.f32.mrf.mxu1  ;;  %v7566_v55 = vsel %vm7544_vm3, %v7501_v57, %v6923_v14  ;;  %v7403_v14 = vsel %vm18909_vm0, %v7339_v20, %v19038_v40  ;;  %vm19052_vm0 = vmmov %vm19044_vm2  ;;  %v16795_v40 = vsel %vm7954_vm9, %v7798_v53, %v8018_v12 }
 0x768   : > { %v7115_v15 = vpop.permute.xlu1 %7114  ;;  %v7468_v26 = vsel %vm7414_vm7, %v7403_v14, %v19039_v7  ;;  %v7803_v24 = vadd.f32 %v16722_v47, %v7802_v33  ;;  %vm19058_vm2 = vmmov %vm19050_vm8 }
 0x769   : > { %v7631_v34 = vsel %vm7609_vm13, %v7566_v55, %v7115_v15  ;;  %v16785_v55 = vsel %vm7955_vm12, %v7800_v4, %v8019_v31  ;;  %vm19060_vm12 = vmmov %vm19052_vm0 }
 0x76a   : > { %9745 = vmatmul.msk.bf16.gmra.mxu1 %vm7714_vm10, %v7631_v34  ;;  %v8020_v52 = vmul.f32 0.2, %v7803_v24  ;;  %vm7956_vm15 = vcmp.ge.f32.partialorder %v7803_v24, 0.0  ;;  %v19053_v34 = vld [vmem:[#allocation116_spill] sm:$0xff]  ;;  %vm19066_vm9 = vmmov %vm19058_vm2 }
 0x76d   : > { %v6523_v38 = vpop.permute.xlu0 %6522  ;;  %v16812_v18 = vpop.f32.mrf.mxu3 }
 0x76e   : > { %v7533_v49 = vsel %vm7479_vm6, %v7468_v26, %v6523_v38  ;;  %v16770_v5 = vpop.permute.xlu2 %6926  ;;  %v8147_v26 = vmul.f32 %v16785_v55, %v16785_v55 }
 0x76f   : > { %v7804_v1 = vpop.f32.mrf.mxu1  ;;  %v7598_v42 = vsel %vm7544_vm3, %v7533_v49, %v6955_v10  ;;  %v16753_v10 = vsel %vm7952_vm1, %v7793_v3, %v8016_v28  ;;  %vm19054_vm1 = vmmov %vm19046_vm14  ;;  %v16793_v3 = vsel %vm7956_vm15, %v7803_v24, %v8020_v52  ;;  %v8146_v28 = vmul.f32 %v16795_v40, %v16795_v40  ;;  %v10424_v52 = vld [vmem:[#allocation2 + $0x118] sm:$0xff]  }
 0x770   : > { %v7147_v0 = vpop.permute.xlu1 %7146  ;;  %v8144_v29 = vmul.f32 %v16753_v10, %v16753_v10  ;;  %v7805_v63 = vadd.f32 %v16722_v47, %v7804_v1  ;;  %v8148_v49 = vmul.f32 %v16793_v3, %v16793_v3  ;;  %v8217_v59 = vsel %vm1024_vm4, %v8147_v26, 0.0 }
 0x771   : > { %v7663_v36 = vsel %vm7609_vm13, %v7598_v42, %v7147_v0  ;;  %v10423_v42 = vld [vmem:[#allocation2 + $0x78] sm:$0xff]   ;;  %v8214_v24 = vsel %vm1024_vm4, %v8146_v28, 0.0 }
 0x772   : > { %9761 = vmatmul.msk.bf16.gmra.mxu3 %vm7714_vm10, %v7663_v36  ;;  %v8208_v15 = vsel %vm1024_vm4, %v8144_v29, 0.0  ;;  %v19056_v36 = vld [vmem:[#allocation84_spill] sm:$0xff]  ;;  %v8021_v16 = vmul.f32 0.2, %v7805_v63  ;;  %vm7957_vm14 = vcmp.ge.f32.partialorder %v7805_v63, 0.0  ;;  %v8220_v53 = vsel %vm1024_vm4, %v8148_v49, 0.0 }
 0x773   : > { %v7183_v19 = vsel %vm1024_vm4, %v10423_v42, %v19056_v36  ;;  %v10425_v36 = vld [vmem:[#allocation2 + $0x80] sm:$0xff] }
 0x774   : > { %v16828_v29 = vsel %vm7957_vm14, %v7805_v63, %v8021_v16  ;;  %vm19076_vm14 = vmmov %vm19054_vm1 }
 0x775   : > { %v6493_v54 = vpop.permute.xlu0 %6492  ;;  %v8149_v12 = vmul.f32 %v16828_v29, %v16828_v29 }
 0x776   : > { %v7503_v51 = vsel %vm7479_vm6, %v7438_v25, %v6493_v54  ;;  %v6959_v30 = vpop.permute.xlu2 %6958 }
 0x777   : > { %v7807_v35 = vpop.f32.mrf.mxu1  ;;  %v7568_v13 = vsel %vm7544_vm3, %v7503_v51, %v6925_v9  ;;  %v7277_v9 = vsel %vm19050_vm8, %v7213_v21, %v19049_v39  ;;  %vm19062_vm8 = vmmov %vm19054_vm1  ;;  %v19064_v39 = vld [vmem:[#allocation23_spill] sm:$0xff] }
 0x778   : > { %v7117_v45 = vpop.permute.xlu1 %7116  ;;  %v7341_v57 = vsel %vm19052_vm0, %v7277_v9, %v19051_v37  ;;  %v7808_v33 = vadd.f32 %v16722_v47, %v7807_v35  ;;  %v7215_v9 = vsel %vm1024_vm4, %v10424_v52, %v19064_v39  ;;  %v19065_v37 = vld [vmem:[#allocation18_spill] sm:$0xff]  ;;  %v19078_v52 = vld [vmem:[#allocation27_spill] sm:$0xff] }
 0x779   : > { %v7633_v6 = vsel %vm7609_vm13, %v7568_v13, %v7117_v45  ;;  %v7405_v61 = vsel %vm19054_vm1, %v7341_v57, %v19053_v34  ;;  %v19063_v45 = vld [vmem:[#allocation123_spill] sm:$0xff]  ;;  %v7279_v57 = vsel %vm19066_vm9, %v7215_v9, %v19065_v37  ;;  %v19067_v34 = vld [vmem:[#allocation101_spill] sm:$0xff] }
 0x77a   : > { %9746 = vmatmul.msk.bf16.gmra.mxu1 %vm7714_vm10, %v7633_v6  ;;  %v7470_v32 = vsel %vm7414_vm7, %v7405_v61, %v19055_v2  ;;  %v8022_v48 = vmul.f32 0.2, %v7808_v33  ;;  %vm7958_vm5 = vcmp.ge.f32.partialorder %v7808_v33, 0.0  ;;  %v7343_v61 = vsel %vm19052_vm0, %v7279_v57, %v19067_v34  ;;  %v19081_v57 = vld [vmem:[#allocation22_spill] sm:$0xff]  ;;  %v19083_v34 = vld [vmem:[#allocation115_spill] sm:$0xff] }
 0x77c   : > { %8209 = vadd.xlane.f32.xlu2 %v8208_v15  ;;  %v16820_v56 = vsel %vm7958_vm5, %v7808_v33, %v8022_v48 }
 0x77d   : > { %v6525_v20 = vpop.permute.xlu0 %6524  ;;  %v8150_v6 = vmul.f32 %v16820_v56, %v16820_v56 }
 0x77e   : > { %v7535_v14 = vsel %vm7479_vm6, %v7470_v32, %v6525_v20  ;;  %v16852_v32 = vpop.f32.mrf.mxu3  ;;  %v6929_v63 = vpop.permute.xlu2 %6928  ;;  %v19069_v20 = vld [vmem:[#allocation68_spill] sm:$0xff] }
 0x77f   : > { %v7809_v7 = vpop.f32.mrf.mxu1  ;;  %v7600_v38 = vsel %vm7544_vm3, %v7535_v14, %v6957_v27  ;;  %v7247_v27 = vsel %vm19058_vm2, %v7183_v19, %v19057_v17  ;;  %v8226_v33 = vsel %vm1024_vm4, %v8150_v6, 0.0  ;;  %v19070_v19 = vld [vmem:[#allocation79_spill] sm:$0xff]  ;;  %v19071_v17 = vld [vmem:[#allocation44_spill] sm:$0xff] }
 0x780   : > { %v7149_v62 = vpop.permute.xlu1 %7148  ;;  %8212 = vadd.xlane.f32.xlu1 %v8211_v23  ;;  %v7810_v0 = vadd.f32 %v16722_v47, %v7809_v7  ;;  %v7311_v4 = vsel %vm19060_vm12, %v7247_v27, %v19059_v60  ;;  %v19068_v23 = vld [vmem:[#allocation8_spill] sm:$0xff]  ;;  %v7185_v16 = vsel %vm1024_vm4, %v10425_v36, %v19070_v19 }
 0x781   : > { %v7665_v1 = vsel %vm7609_vm13, %v7600_v38, %v7149_v62  ;;  %v7375_v25 = vsel %vm19062_vm8, %v7311_v4, %v19061_v50  ;;  %v7407_v2 = vsel %vm19054_vm1, %v7343_v61, %v19068_v23  ;;  %v8223_v62 = vsel %vm1024_vm4, %v8149_v12, 0.0  ;;  %v19075_v4 = vld [vmem:[#allocation82_spill] sm:$0xff]  ;;  %vm19080_vm8 = vmmov %vm19066_vm9 }
 0x782   : > { %vm7959_vm11 = vcmp.ge.f32.partialorder %v7810_v0, 0.0  ;;  %v8023_v58 = vmul.f32 0.2, %v7810_v0  ;;  %9762 = vmatmul.msk.bf16.gmra.mxu3 %vm7714_vm10, %v7665_v1  ;;  %v7440_v54 = vsel %vm7414_vm7, %v7375_v25, %v19063_v45  ;;  %v7472_v14 = vsel %vm7414_vm7, %v7407_v2, %v19069_v20  ;;  %v10426_v12 = vld [vmem:[#allocation2 + $0x120] sm:$0xff]  ;;  %vm19082_vm9 = vmmov %vm19052_vm0  ;;  %v19085_v2 = vld [vmem:[#allocation132_spill] sm:$0xff] }
 0x783   : > { %v7217_v39 = vsel %vm1024_vm4, %v10426_v12, %v19078_v52 }
 0x784   : > { %8218 = vadd.xlane.f32.xlu2 %v8217_v59  ;;  %v16817_v44 = vsel %vm7959_vm11, %v7810_v0, %v8023_v58  ;;  %vm19072_vm11 = vmmov %vm19058_vm2  ;;  %v19073_v59 = vld [vmem:[#allocation90_spill] sm:$0xff] }
 0x785   : > { %8215 = vadd.xlane.f32.xlu0 %v8214_v24  ;;  %v6495_v35 = vpop.permute.xlu0 %6494  ;;  %v8151_v46 = vmul.f32 %v16817_v44, %v16817_v44  ;;  %v7249_v27 = vsel %vm19072_vm11, %v7185_v16, %v19071_v17  ;;  %vm19074_vm2 = vmmov %vm19052_vm0  ;;  %v19077_v24 = vld [vmem:[#allocation126_spill] sm:$0xff] }
 0x786   : > { %v7505_v31 = vsel %vm7479_vm6, %v7440_v54, %v6495_v35  ;;  %v16881_v35 = vpop.f32.mrf.mxu3  ;;  %v6961_v6 = vpop.permute.xlu2 %6960  ;;  %vm19093_vm11 = vmmov %vm19076_vm14 }
 0x787   : > { %v7812_v13 = vpop.f32.mrf.mxu1  ;;  %v7570_v22 = vsel %vm7544_vm3, %v7505_v31, %v16770_v5  ;;  %v8229_v5 = vsel %vm1024_vm4, %v8151_v46, 0.0 }
 0x788   : > { %v7119_v51 = vpop.permute.xlu1 %7118  ;;  %8221 = vadd.xlane.f32.xlu1 %v8220_v53  ;;  %v7813_v11 = vadd.f32 %v16722_v47, %v7812_v13 }
 0x789   : > { %v7635_v21 = vsel %vm7609_vm13, %v7570_v22, %v7119_v51 }
 0x78a   : > { %v8024_v15 = vmul.f32 0.2, %v7813_v11  ;;  %9747 = vmatmul.msk.bf16.gmra.mxu1 %vm7714_vm10, %v7635_v21  ;;  %vm7960_vm15 = vcmp.ge.f32.partialorder %v7813_v11, 0.0 }
 0x78c   : > { %8227 = vadd.xlane.f32.xlu2 %v8226_v33  ;;  %v16857_v48 = vsel %vm7960_vm15, %v7813_v11, %v8024_v15  ;;  %v19079_v15 = vld [vmem:[#allocation37_spill] sm:$0xff]  ;;  %vm19084_vm15 = vmmov %vm19054_vm1 }
 0x78d   : > { %8224 = vadd.xlane.f32.xlu0 %v8223_v62  ;;  %v6527_v26 = vpop.permute.xlu0 %6526  ;;  %v8152_v42 = vmul.f32 %v16857_v48, %v16857_v48  ;;  %v7281_v37 = vsel %vm19080_vm8, %v7217_v39, %v19079_v15  ;;  %vm19089_vm1 = vmmov %vm19080_vm8  ;;  %v19097_v39 = vld [vmem:[#allocation6_spill] sm:$0xff] }
 0x78e   : > { %v7537_v0 = vsel %vm7479_vm6, %v7472_v14, %v6527_v26  ;;  %v6931_v19 = vpop.permute.xlu2 %6930  ;;  %vm19102_vm8 = vmmov %vm19093_vm11 }
 0x78f   : > { %v7814_v38 = vpop.f32.mrf.mxu1  ;;  %v7602_v49 = vsel %vm7544_vm3, %v7537_v0, %v6959_v30  ;;  %v7313_v30 = vsel %vm19074_vm2, %v7249_v27, %v19073_v59  ;;  %v8232_v25 = vsel %vm1024_vm4, %v8152_v42, 0.0  ;;  %v19087_v42 = vld [vmem:[#allocation60_spill] sm:$0xff]  ;;  %v19090_v27 = vld [vmem:[#allocation93_spill] sm:$0xff] }
 0x790   : > { %v7151_v7 = vpop.permute.xlu1 %7150  ;;  %8230 = vadd.xlane.f32.xlu1 %v8229_v5  ;;  %v7815_v1 = vadd.f32 %v16722_v47, %v7814_v38  ;;  %v7377_v50 = vsel %vm19076_vm14, %v7313_v30, %v19075_v4  ;;  %v7345_v5 = vsel %vm19082_vm9, %v7281_v37, %v19081_v57  ;;  %v19092_v4 = vld [vmem:[#allocation104_spill] sm:$0xff]  ;;  %vm19098_vm14 = vmmov %vm19089_vm1  ;;  %v19099_v37 = vld [vmem:[#allocation98_spill] sm:$0xff] }
 0x791   : > { %v7667_v28 = vsel %vm7609_vm13, %v7602_v49, %v7151_v7  ;;  %v7442_v45 = vsel %vm7414_vm7, %v7377_v50, %v19077_v24  ;;  %v7409_v61 = vsel %vm19084_vm15, %v7345_v5, %v19083_v34  ;;  %v16907_v49 = vpop.f32.mrf.mxu3  ;;  %vm19105_vm15 = vmmov %vm19089_vm1 }
 0x792   : > { %vm7961_vm5 = vcmp.ge.f32.partialorder %v7815_v1, 0.0  ;;  %v8025_v58 = vmul.f32 0.2, %v7815_v1  ;;  %9763 = vmatmul.msk.bf16.gmra.mxu3 %vm7714_vm10, %v7667_v28  ;;  %v19086_v28 = vld [vmem:[#allocation59_spill] sm:$0xff] }
 0x793   : > { %v7187_v36 = vsel %vm1024_vm4, %v19087_v42, %v19086_v28  ;;  %v10427_v28 = vld [vmem:[#allocation2 + $0x94] sm:$0xff] }
 0x794   : > { %v16872_v60 = vsel %vm7961_vm5, %v7815_v1, %v8025_v58  ;;  %v19088_v58 = vld [vmem:[#allocation42_spill] sm:$0xff]  ;;  %vm19091_vm5 = vmmov %vm19074_vm2  ;;  %v19103_v42 = vld [vmem:[#allocation65_spill] sm:$0xff] }
 0x795   : > { %v8153_v53 = vmul.f32 %v16872_v60, %v16872_v60  ;;  %8233 = vadd.xlane.f32.xlu0 %v8232_v25  ;;  %v6497_v51 = vpop.permute.xlu0 %6496  ;;  %v7251_v17 = vsel %vm19089_vm1, %v7187_v36, %v19088_v58  ;;  %v7189_v36 = vsel %vm1024_vm4, %v10427_v28, %v19103_v42  ;;  %v19106_v58 = vld [vmem:[#allocation87_spill] sm:$0xff]  ;;  %vm19109_vm1 = vmmov %vm19102_vm8 }
 0x796   : > { %v7507_v31 = vsel %vm7479_vm6, %v7442_v45, %v6497_v51  ;;  %v7315_v59 = vsel %vm19091_vm5, %v7251_v17, %v19090_v27  ;;  %v6963_v5 = vpop.permute.xlu2 %6962 }
 0x797   : > { %v7817_v13 = vpop.f32.mrf.mxu1  ;;  %v8235_v46 = vsel %vm1024_vm4, %v8153_v53, 0.0  ;;  %v7572_v22 = vsel %vm7544_vm3, %v7507_v31, %v6929_v63  ;;  %v7474_v63 = vsel %vm7414_vm7, %v7409_v61, %v19085_v2  ;;  %v7379_v50 = vsel %vm19093_vm11, %v7315_v59, %v19092_v4  ;;  %v19094_v53 = vld [vmem:[#allocation120_spill] sm:$0xff]  ;;  %v19101_v61 = vld [vmem:[#allocation117_spill] sm:$0xff]  ;;  %v19108_v59 = vld [vmem:[#allocation107_spill] sm:$0xff] }
 0x798   : > { %v7121_v54 = vpop.permute.xlu1 %7120  ;;  %v7818_v11 = vadd.f32 %v16722_v47, %v7817_v13  ;;  %8236 = vadd.xlane.f32.xlu2 %v8235_v46  ;;  %v7444_v24 = vsel %vm7414_vm7, %v7379_v50, %v19094_v53  ;;  %v19110_v53 = vld [vmem:[#allocation125_spill] sm:$0xff]  ;;  %vm19113_vm11 = vmmov %vm19098_vm14 }
 0x799   : > { %v7637_v21 = vsel %vm7609_vm13, %v7572_v22, %v7121_v54  ;;  %v16937_v15 = vpop.f32.mrf.mxu3 }
 0x79a   : > { %vm7962_vm12 = vcmp.ge.f32.partialorder %v7818_v11, 0.0  ;;  %v8026_v9 = vmul.f32 0.2, %v7818_v11  ;;  %9748 = vmatmul.msk.bf16.gmra.mxu1 %vm7714_vm10, %v7637_v21  ;;  %v19096_v21 = vld [vmem:[#allocation57_spill] sm:$0xff] }
 0x79c   : > { %v16895_v33 = vsel %vm7962_vm12, %v7818_v11, %v8026_v9  ;;  %v19095_v11 = vld [vmem:[#allocation4_spill] sm:$0xff]  ;;  %vm19100_vm12 = vmmov %vm19091_vm5 }
 0x79d   : > { %v8154_v23 = vmul.f32 %v16895_v33, %v16895_v33  ;;  %v6529_v20 = vpop.permute.xlu0 %6528  ;;  %v7219_v12 = vsel %vm1024_vm4, %v19096_v21, %v19095_v11 }
 0x79e   : > { %v7539_v14 = vsel %vm7479_vm6, %v7474_v63, %v6529_v20  ;;  %v7283_v9 = vsel %vm19098_vm14, %v7219_v12, %v19097_v39  ;;  %v10428_v12 = vld [vmem:[#allocation2 + $0x134] sm:$0xff]  ;;  %vm19117_vm14 = vmmov %vm19109_vm1 }
 0x79f   : > { %v7819_v7 = vpop.f32.mrf.mxu1  ;;  %v8238_v26 = vsel %vm1024_vm4, %v8154_v23, 0.0  ;;  %v7604_v0 = vsel %vm7544_vm3, %v7539_v14, %v6961_v6  ;;  %v7347_v57 = vsel %vm19100_vm12, %v7283_v9, %v19099_v37  ;;  %v19112_v37 = vld [vmem:[#allocation66_spill] sm:$0xff] }
 0x7a0   : > { %v7153_v62 = vpop.permute.xlu1 %7152  ;;  %v7820_v38 = vadd.f32 %v16722_v47, %v7819_v7  ;;  %8239 = vadd.xlane.f32.xlu1 %v8238_v26  ;;  %v7411_v23 = vsel %vm19102_vm8, %v7347_v57, %v19101_v61  ;;  %v19114_v61 = vld [vmem:[#allocation29_spill] sm:$0xff]  ;;  %vm19120_vm8 = vmmov %vm19113_vm11 }
 0x7a1   : > { %v7669_v1 = vsel %vm7609_vm13, %v7604_v0, %v7153_v62  ;;  %v7476_v63 = vsel %vm7414_vm7, %v7411_v23, %v16219_v8  ;;  %v16965_v50 = vpop.f32.mrf.mxu3 }
 0x7a2   : > { %vm7963_vm0 = vcmp.ge.f32.partialorder %v7820_v38, 0.0  ;;  %v8027_v16 = vmul.f32 0.2, %v7820_v38  ;;  %9764 = vmatmul.msk.bf16.gmra.mxu3 %vm7714_vm10, %v7669_v1 }
 0x7a4   : > { %v16918_v30 = vsel %vm7963_vm0, %v7820_v38, %v8027_v16  ;;  %vm19107_vm0 = vmmov %vm19091_vm5 }
 0x7a5   : > { %v8155_v25 = vmul.f32 %v16918_v30, %v16918_v30  ;;  %v6499_v54 = vpop.permute.xlu0 %6498 }
 0x7a6   : > { %v7509_v51 = vsel %vm7479_vm6, %v7444_v24, %v6499_v54 }
 0x7a7   : > { %v7822_v31 = vpop.f32.mrf.mxu1  ;;  %v8241_v13 = vsel %vm1024_vm4, %v8155_v25, 0.0  ;;  %v7574_v46 = vsel %vm7544_vm3, %v7509_v51, %v6931_v19  ;;  %v19104_v19 = vld [vmem:[#allocation11_spill] sm:$0xff] }
 0x7a8   : > { %v7123_v45 = vpop.permute.xlu1 %7122  ;;  %v7823_v6 = vadd.f32 %v16722_v47, %v7822_v31  ;;  %8242 = vadd.xlane.f32.xlu0 %v8241_v13  ;;  %v7253_v16 = vsel %vm19105_vm15, %v7189_v36, %v19104_v19 }
 0x7a9   : > { %v7639_v22 = vsel %vm7609_vm13, %v7574_v46, %v7123_v45  ;;  %v7317_v17 = vsel %vm19107_vm0, %v7253_v16, %v19106_v58  ;;  %v6933_v45 = vpop.permute.xlu2 %6932 }
 0x7aa   : > { %vm7964_vm2 = vcmp.ge.f32.partialorder %v7823_v6, 0.0  ;;  %v8028_v52 = vmul.f32 0.2, %v7823_v6  ;;  %9749 = vmatmul.msk.bf16.gmra.mxu1 %vm7714_vm10, %v7639_v22  ;;  %v7381_v4 = vsel %vm19109_vm1, %v7317_v17, %v19108_v59 }
 0x7ab   : > { %v7446_v24 = vsel %vm7414_vm7, %v7381_v4, %v19110_v53  ;;  %v10429_v4 = vld [vmem:[#allocation2 + $0xa0] sm:$0xff]  }
 0x7ac   : > { %v16941_v34 = vsel %vm7964_vm2, %v7823_v6, %v8028_v52  ;;  %v19111_v52 = vld [vmem:[#allocation46_spill] sm:$0xff]  ;;  %vm19115_vm2 = vmmov %vm19107_vm0 }
 0x7ad   : > { %v8156_v2 = vmul.f32 %v16941_v34, %v16941_v34  ;;  %v6531_v20 = vpop.permute.xlu0 %6530  ;;  %v7221_v39 = vsel %vm1024_vm4, %v10428_v12, %v19111_v52  ;;  %v19125_v12 = vld [vmem:[#allocation128_spill] sm:$0xff] }
 0x7ae   : > { %v7541_v14 = vsel %vm7479_vm6, %v7476_v63, %v6531_v20  ;;  %v7285_v57 = vsel %vm19113_vm11, %v7221_v39, %v19112_v37  ;;  %v19116_v63 = vld [vmem:[#allocation111_spill] sm:$0xff] }
 0x7af   : > { %v7824_v7 = vpop.f32.mrf.mxu1  ;;  %v8244_v26 = vsel %vm1024_vm4, %v8156_v2, 0.0  ;;  %v7606_v0 = vsel %vm7544_vm3, %v7541_v14, %v6963_v5  ;;  %v7349_v23 = vsel %vm19115_vm2, %v7285_v57, %v19114_v61 }
 0x7b0   : > { %v7155_v62 = vpop.permute.xlu1 %7154  ;;  %v7825_v38 = vadd.f32 %v16722_v47, %v7824_v7  ;;  %8245 = vadd.xlane.f32.xlu2 %v8244_v26 }
 0x7b1   : > { %v7671_v1 = vsel %vm7609_vm13, %v7606_v0, %v7155_v62  ;;  %v7413_v62 = vsel %vm19117_vm14, %v7349_v23, %v19116_v63  ;;  %v6533_v7 = vpop.permute.xlu2 %6532 }
 0x7b2   : > { %vm7965_vm9 = vcmp.ge.f32.partialorder %v7825_v38, 0.0  ;;  %v8029_v8 = vmul.f32 0.2, %v7825_v38  ;;  %9765 = vmatmul.msk.bf16.gmra.mxu3 %vm7714_vm10, %v7671_v1 }
 0x7b4   : > { %v16961_v27 = vsel %vm7965_vm9, %v7825_v38, %v8029_v8  ;;  %v16992_v38 = vpop.f32.mrf.mxu3  ;;  %vm19122_vm9 = vmmov %vm19107_vm0 }
 0x7b5   : > { %v8157_v25 = vmul.f32 %v16961_v27, %v16961_v27  ;;  %v6501_v54 = vpop.permute.xlu0 %6500  ;;  %vm19124_vm0 = vmmov %vm19109_vm1 }
 0x7b6   : > { %v7511_v31 = vsel %vm7479_vm6, %v7446_v24, %v6501_v54 }
 0x7b7   : > { %v7827_v13 = vpop.f32.mrf.mxu1  ;;  %v8247_v46 = vsel %vm1024_vm4, %v8157_v25, 0.0  ;;  %v7576_v6 = vsel %vm7544_vm3, %v7511_v31, %v6933_v45  ;;  %v19118_v25 = vld [vmem:[#allocation39_spill] sm:$0xff] }
 0x7b8   : > { %v7125_v51 = vpop.permute.xlu1 %7124  ;;  %v7828_v22 = vadd.f32 %v16722_v47, %v7827_v13  ;;  %8248 = vadd.xlane.f32.xlu1 %v8247_v46  ;;  %v7191_v53 = vsel %vm1024_vm4, %v10429_v4, %v19118_v25  ;;  %v19119_v45 = vld [vmem:[#allocation19_spill] sm:$0xff] }
 0x7b9   : > { %v7641_v11 = vsel %vm7609_vm13, %v7576_v6, %v7125_v51  ;;  %v7255_v54 = vsel %vm19120_vm8, %v7191_v53, %v19119_v45  ;;  %v19121_v51 = vld [vmem:[#allocation92_spill] sm:$0xff]  ;;  %v6503_v13 = vpop.permute.xlu2 %6502 }
 0x7ba   : > { %vm7966_vm5 = vcmp.ge.f32.partialorder %v7828_v22, 0.0  ;;  %v8030_v21 = vmul.f32 0.2, %v7828_v22  ;;  %9750 = vmatmul.msk.bf16.gmra.mxu1 %vm7714_vm10, %v7641_v11  ;;  %v7319_v31 = vsel %vm19122_vm9, %v7255_v54, %v19121_v51  ;;  %v19123_v6 = vld [vmem:[#allocation20_spill] sm:$0xff] }
 0x7bc   : > { %v16979_v9 = vsel %vm7966_vm5, %v7828_v22, %v8030_v21  ;;  %v7383_v22 = vsel %vm19124_vm0, %v7319_v31, %v19123_v6  ;;  %v17012_v11 = vpop.f32.mrf.mxu3 }
 0x7bd   : > { %v8158_v5 = vmul.f32 %v16979_v9, %v16979_v9  ;;  %v6309_v2 = vpop.permute.xlu0 %6308  ;;  %v7448_v52 = vsel %vm7414_vm7, %v7383_v22, %v19125_v12 }
 0x7be   : > { %v7478_v26 = vsel %vm7414_vm7, %v7413_v62, %v6309_v2  ;;  %v7513_v37 = vsel %vm7479_vm6, %v7448_v52, %v6503_v13  ;;  %v19126_v52 = vld [vmem:[#allocation12_spill] sm:$0xff] }
 0x7bf   : > { %v7829_v20 = vpop.f32.mrf.mxu1  ;;  %v8250_v14 = vsel %vm1024_vm4, %v8158_v5, 0.0  ;;  %v7543_v42 = vsel %vm7479_vm6, %v7478_v26, %v6533_v7 }
 0x7c0   : > { %v7830_v0 = vadd.f32 %v16722_v47, %v7829_v20  ;;  %8251 = vadd.xlane.f32.xlu0 %v8250_v14  ;;  %v6965_v1 = vpop.permute.xlu1 %6964 }
 0x7c1   : > { %v7608_v19 = vsel %vm7544_vm3, %v7543_v42, %v6965_v1 }
 0x7c2   : > { %vm7967_vm12 = vcmp.ge.f32.partialorder %v7830_v0, 0.0  ;;  %v8031_v28 = vmul.f32 0.2, %v7830_v0 }
 0x7c4   : > { %v16995_v36 = vsel %vm7967_vm12, %v7830_v0, %v8031_v28  ;;  %v17028_v7 = vpop.f32.mrf.mxu3 }
 0x7c5   : > { %v8159_v8 = vmul.f32 %v16995_v36, %v16995_v36  ;;  %v7157_v16 = vpop.permute.xlu0 %7156 }
 0x7c6   : > { %v7673_v58 = vsel %vm7609_vm13, %v7608_v19, %v7157_v16 }
 0x7c7   : > { %v7832_v17 = vpop.f32.mrf.mxu1  ;;  %v8253_v59 = vsel %vm1024_vm4, %v8159_v8, 0.0  ;;  %9766 = vmatmul.msk.bf16.gmra.mxu3 %vm7714_vm10, %v7673_v58 }
 0x7c8   : > { %v7833_v24 = vadd.f32 %v16722_v47, %v7832_v17  ;;  %8254 = vadd.xlane.f32.xlu2 %v8253_v59  ;;  %v6935_v21 = vpop.permute.xlu1 %6934 }
 0x7c9   : > { %v7578_v5 = vsel %vm7544_vm3, %v7513_v37, %v6935_v21 }
 0x7ca   : > { %vm7968_vm15 = vcmp.ge.f32.partialorder %v7833_v24, 0.0  ;;  %v8032_v46 = vmul.f32 0.2, %v7833_v24 }
 0x7cc   : > { %v17016_v39 = vsel %vm7968_vm15, %v7833_v24, %v8032_v46  ;;  %v17038_v16 = vpop.f32.mrf.mxu3 }
 0x7cd   : > { %v8160_v57 = vmul.f32 %v17016_v39, %v17016_v39  ;;  %v7127_v61 = vpop.permute.xlu0 %7126 }
 0x7ce   : > { %v7643_v23 = vsel %vm7609_vm13, %v7578_v5, %v7127_v61 }
 0x7cf   : > { %v7834_v2 = vpop.f32.mrf.mxu1  ;;  %v8256_v63 = vsel %vm1024_vm4, %v8160_v57, 0.0  ;;  %9751 = vmatmul.msk.bf16.gmra.mxu1 %vm7714_vm10, %v7643_v23 }
 0x7d0   : > { %v7835_v62 = vadd.f32 %v16722_v47, %v7834_v2  ;;  %8257 = vadd.xlane.f32.xlu1 %v8256_v63 }
 0x7d2   : > { %vm7969_vm7 = vcmp.ge.f32.partialorder %v7835_v62, 0.0  ;;  %v8033_v20 = vmul.f32 0.2, %v7835_v62 }
 0x7d4   : > { %v17026_v14 = vsel %vm7969_vm7, %v7835_v62, %v8033_v20  ;;  %v17048_v51 = vpop.f32.mrf.mxu3 }
 0x7d5   : > { %v8161_v26 = vmul.f32 %v17026_v14, %v17026_v14 }
 0x7d7   : > { %v7837_v0 = vpop.f32.mrf.mxu1  ;;  %v8259_v1 = vsel %vm1024_vm4, %v8161_v26, 0.0 }
 0x7d8   : > { %v7838_v28 = vadd.f32 %v16722_v47, %v7837_v0  ;;  %8260 = vadd.xlane.f32.xlu0 %v8259_v1 }
 0x7da   : > { %vm7970_vm6 = vcmp.ge.f32.partialorder %v7838_v28, 0.0  ;;  %v8034_v42 = vmul.f32 0.2, %v7838_v28 }
 0x7dc   : > { %v17034_v8 = vsel %vm7970_vm6, %v7838_v28, %v8034_v42  ;;  %v17058_v2 = vpop.f32.mrf.mxu3 }
 0x7dd   : > { %v8162_v19 = vmul.f32 %v17034_v8, %v17034_v8 }
 0x7df   : > { %v7839_v58 = vpop.f32.mrf.mxu1  ;;  %v8262_v17 = vsel %vm1024_vm4, %v8162_v19, 0.0 }
 0x7e0   : > { %v7840_v59 = vadd.f32 %v16722_v47, %v7839_v58  ;;  %8263 = vadd.xlane.f32.xlu2 %v8262_v17 }
 0x7e2   : > { %vm7971_vm3 = vcmp.ge.f32.partialorder %v7840_v59, 0.0  ;;  %v8035_v4 = vmul.f32 0.2, %v7840_v59 }
 0x7e4   : > { %v17042_v25 = vsel %vm7971_vm3, %v7840_v59, %v8035_v4 }
 0x7e5   : > { %v8163_v53 = vmul.f32 %v17042_v25, %v17042_v25 }
 0x7e7   : > { %v7842_v24 = vpop.f32.mrf.mxu1  ;;  %v8265_v45 = vsel %vm1024_vm4, %v8163_v53, 0.0 }
 0x7e8   : > { %v7843_v54 = vadd.f32 %v16722_v47, %v7842_v24  ;;  %8266 = vadd.xlane.f32.xlu1 %v8265_v45 }
 0x7ea   : > { %vm7972_vm13 = vcmp.ge.f32.partialorder %v7843_v54, 0.0  ;;  %v8036_v31 = vmul.f32 0.2, %v7843_v54 }
 0x7ec   : > { %v17050_v13 = vsel %vm7972_vm13, %v7843_v54, %v8036_v31 }
 0x7ed   : > { %v8164_v46 = vmul.f32 %v17050_v13, %v17050_v13 }
 0x7ef   : > { %v7844_v6 = vpop.f32.mrf.mxu1  ;;  %v8268_v22 = vsel %vm1024_vm4, %v8164_v46, 0.0  ;;  %v8210_v21 = vpop.xlane.xlu2 %8209 }
 0x7f0   : > { %v7845_v12 = vadd.f32 %v16722_v47, %v7844_v6  ;;  %8269 = vadd.xlane.f32.xlu0 %v8268_v22  ;;  %v8400_v37 = vmul.f32 %v8210_v21, %v19126_v52  ;;  %v17080_v6 = vpop.f32.mrf.mxu3 }
 0x7f2   : > { %vm7973_vm10 = vcmp.ge.f32.partialorder %v7845_v12, 0.0  ;;  %v8037_v61 = vmul.f32 0.2, %v7845_v12  ;;  %v8464_v23 = vadd.f32 1e-08, %v8400_v37 }
 0x7f3   : > { %v8213_v57 = vpop.xlane.xlu1 %8212 }
 0x7f4   : > { %v8401_v5 = vmul.f32 %v8213_v57, %v19126_v52  ;;  %10247 = vrsqrt.f32 %v8464_v23  ;;  %v17062_v62 = vsel %vm7973_vm10, %v7845_v12, %v8037_v61  ;;  %vm8534_vm11 = vweird.f32 %v8464_v23 }
 0x7f5   : > { %v8165_v20 = vmul.f32 %v17062_v62, %v17062_v62 }
 0x7f6   : > { %v17060_v63 = vadd.f32 1e-08, %v8401_v5 }
 0x7f7   : > { %v7847_v26 = vpop.f32.mrf.mxu1  ;;  %v8271_v0 = vsel %vm1024_vm4, %v8165_v20, 0.0  ;;  %v8219_v1 = vpop.xlane.xlu2 %8218 }
 0x7f8   : > { %10249 = vrsqrt.f32 %v17060_v63  ;;  %v7848_v28 = vadd.f32 %v16722_v47, %v7847_v26  ;;  %8272 = vadd.xlane.f32.xlu2 %v8271_v0  ;;  %v8403_v42 = vmul.f32 %v8219_v1, %v19126_v52  ;;  %v8216_v58 = vpop.xlane.xlu0 %8215  ;;  %vm8544_vm2 = vweird.f32 %v17060_v63 }
 0x7f9   : > { %v8402_v53 = vmul.f32 %v8216_v58, %v19126_v52 }
 0x7fa   : > { %v10248_v17 = vpop.eup %10247  ;;  %vm7974_vm1 = vcmp.ge.f32.partialorder %v7848_v28, 0.0  ;;  %v8038_v4 = vmul.f32 0.2, %v7848_v28  ;;  %v17074_v45 = vadd.f32 1e-08, %v8403_v42 }
 0x7fb   : > { %v8222_v19 = vpop.xlane.xlu1 %8221  ;;  %v8529_v24 = vmul.f32 %v10248_v17, %v8464_v23  ;;  %v17078_v46 = vadd.f32 1e-08, %v8402_v53  ;;  %vm8535_vm5 = vweird.f32 %v10248_v17 }
 0x7fc   : > { %v8404_v59 = vmul.f32 %v8222_v19, %v19126_v52  ;;  %10251 = vrsqrt.f32 %v17074_v45  ;;  %v17084_v12 = vsel %vm7974_vm1, %v7848_v28, %v8038_v4  ;;  %vm8536_vm12 = vmor %vm8534_vm11, %vm8535_vm5  ;;  %vm8564_vm15 = vweird.f32 %v17074_v45 }
 0x7fd   : > { %v8530_v21 = vmul.f32 %v10248_v17, %v8529_v24  ;;  %19127 = vst [vmem:[#allocation51_spill] sm:$0xff] %v17084_v12  ;;  %v8166_v26 = vmul.f32 %v17084_v12, %v17084_v12  ;;  %vm8554_vm13 = vweird.f32 %v17078_v46 }
 0x7fe   : > { %v10250_v54 = vpop.eup %10249  ;;  %v17076_v31 = vadd.f32 1e-08, %v8404_v59 }
 0x7ff   : > { %v8539_v22 = vmul.f32 %v10250_v54, %v17060_v63  ;;  %v8531_v57 = vmul.f32 0.5, %v8530_v21  ;;  %v7849_v5 = vpop.f32.mrf.mxu1  ;;  %v8228_v61 = vpop.xlane.xlu2 %8227  ;;  %v8274_v59 = vsel %vm1024_vm4, %v8166_v26, 0.0  ;;  %vm8545_vm14 = vweird.f32 %v10250_v54 }
 0x800   : > { %10253 = vrsqrt.f32 %v17076_v31  ;;  %v7850_v20 = vadd.f32 %v16722_v47, %v7849_v5  ;;  %v8225_v42 = vpop.xlane.xlu0 %8224  ;;  %v8406_v19 = vmul.f32 %v8228_v61, %v19126_v52  ;;  %8275 = vadd.xlane.f32.xlu1 %v8274_v59  ;;  %vm8546_vm8 = vmor %vm8544_vm2, %vm8545_vm14  ;;  %vm8574_vm3 = vweird.f32 %v17076_v31 }
 0x801   : > { %v8540_v37 = vmul.f32 %v10250_v54, %v8539_v22  ;;  %10255 = vrsqrt.f32 %v17078_v46  ;;  %v8532_v1 = vsub.f32 1.5, %v8531_v57  ;;  %v8405_v57 = vmul.f32 %v8225_v42, %v19126_v52 }
 0x802   : > { %v17097_v4 = vpop.eup %10251  ;;  %vm7975_vm9 = vcmp.ge.f32.partialorder %v7850_v20, 0.0 }
 0x803   : > { %v8541_v0 = vmul.f32 0.5, %v8540_v37  ;;  %v8231_v28 = vpop.xlane.xlu1 %8230  ;;  %v8533_v24 = vmul.f32 %v10248_v17, %v8532_v1  ;;  %v8559_v23 = vmul.f32 %v17097_v4, %v17074_v45  ;;  %v8039_v37 = vmul.f32 0.2, %v7850_v20 }
 0x804   : > { %v8407_v58 = vmul.f32 %v8231_v28, %v19126_v52  ;;  %v17113_v1 = vadd.f32 1e-08, %v8406_v19  ;;  %vm8565_vm0 = vweird.f32 %v17097_v4 }
 0x805   : > { %v8542_v53 = vsub.f32 1.5, %v8541_v0  ;;  %v8537_v26 = vsel %vm8536_vm12, %v10248_v17, %v8533_v24  ;;  %v8560_v42 = vmul.f32 %v17097_v4, %v8559_v23  ;;  %v17127_v17 = vpop.f32.mrf.mxu3  ;;  %v17135_v23 = vadd.f32 1e-08, %v8405_v57  ;;  %vm8566_vm10 = vmor %vm8564_vm15, %vm8565_vm0 }
 0x806   : > { %v17100_v22 = vpop.eup %10253  ;;  %v17106_v21 = vadd.f32 1e-08, %v8407_v58  ;;  %v9168_v28 = vmul.f32 %v8537_v26, %v16753_v10  ;;  %vm8594_vm12 = vweird.f32 %v17113_v1 }
 0x807   : > { %v17109_v5 = vpop.eup %10255  ;;  %v8543_v61 = vmul.f32 %v10250_v54, %v8542_v53  ;;  %v8569_v0 = vmul.f32 %v17100_v22, %v17076_v31  ;;  %v7852_v10 = vpop.f32.mrf.mxu1  ;;  %v8561_v24 = vmul.f32 0.5, %v8560_v42  ;;  %vm8575_vm7 = vweird.f32 %v17100_v22 }
 0x808   : > { %v8549_v58 = vmul.f32 %v17109_v5, %v17078_v46  ;;  %10257 = vrsqrt.f32 %v17106_v21  ;;  %9232 = vst.msk [vmem:[%s17125_s11] sm:$0xff] %vm1024_vm4, %v9168_v28  ;;  %vm8555_vm6 = vweird.f32 %v17109_v5  ;;  %v7853_v57 = vadd.f32 %v16722_v47, %v7852_v10  ;;  %vm8576_vm1 = vmor %vm8574_vm3, %vm8575_vm7 }
 0x809   : > { %v8547_v19 = vsel %vm8546_vm8, %v10250_v54, %v8543_v61  ;;  %v8570_v63 = vmul.f32 %v17100_v22, %v8569_v0  ;;  %10259 = vrsqrt.f32 %v17113_v1  ;;  %v17139_v54 = vsel %vm7975_vm9, %v7850_v20, %v8039_v37  ;;  %v8234_v61 = vpop.xlane.xlu0 %8233  ;;  %vm8556_vm5 = vmor %vm8554_vm13, %vm8555_vm6 }
 0x80a   : > { %v9169_v59 = vmul.f32 %v8547_v19, %v16762_v41  ;;  %v8550_v53 = vmul.f32 %v17109_v5, %v8549_v58  ;;  %v8562_v12 = vsub.f32 1.5, %v8561_v24  ;;  %10261 = vrsqrt.f32 %v17135_v23 }
 0x80b   : > { %v8571_v26 = vmul.f32 0.5, %v8570_v63  ;;  %v8237_v28 = vpop.xlane.xlu2 %8236  ;;  %v8167_v37 = vmul.f32 %v17139_v54, %v17139_v54  ;;  %v8408_v42 = vmul.f32 %v8234_v61, %v19126_v52  ;;  %v8040_v10 = vmul.f32 0.2, %v7853_v57 }
 0x80c   : > { %9233 = vst.msk [vmem:[%s17125_s11 + $0x8] sm:$0xff] %vm1024_vm4, %v9169_v59  ;;  %v8551_v0 = vmul.f32 0.5, %v8550_v53  ;;  %v8563_v20 = vmul.f32 %v17097_v4, %v8562_v12  ;;  %v8409_v24 = vmul.f32 %v8237_v28, %v19126_v52  ;;  %vm7976_vm11 = vcmp.ge.f32.partialorder %v7853_v57, 0.0 }
 0x80d   : > { %v8572_v41 = vsub.f32 1.5, %v8571_v26  ;;  %v8277_v46 = vsel %vm1024_vm4, %v8167_v37, 0.0  ;;  %v17170_v61 = vadd.f32 1e-08, %v8408_v42  ;;  %vm8604_vm14 = vweird.f32 %v17106_v21 }
 0x80e   : > { %v8552_v58 = vsub.f32 1.5, %v8551_v0  ;;  %v10258_v19 = vpop.eup %10257  ;;  %v8567_v59 = vsel %vm8566_vm10, %v17097_v4, %v8563_v20  ;;  %8278 = vadd.xlane.f32.xlu0 %v8277_v46  ;;  %v17176_v20 = vpop.f32.mrf.mxu3  ;;  %vm8584_vm0 = vweird.f32 %v17135_v23 }
 0x80f   : > { %v8573_v63 = vmul.f32 %v17100_v22, %v8572_v41  ;;  %v8599_v53 = vmul.f32 %v10258_v19, %v17106_v21  ;;  %v17163_v26 = vpop.eup %10259  ;;  %v9171_v45 = vmul.f32 %v8567_v59, %v16785_v55  ;;  %v7854_v4 = vpop.f32.mrf.mxu1  ;;  %10263 = vrsqrt.f32 %v17170_v61 }
 0x810   : > { %v8553_v12 = vmul.f32 %v17109_v5, %v8552_v58  ;;  %v10262_v0 = vpop.eup %10261  ;;  %vm8605_vm2 = vweird.f32 %v10258_v19  ;;  %vm8595_vm8 = vweird.f32 %v17163_v26 }
 0x811   : > { %v8577_v31 = vsel %vm8576_vm1, %v17100_v22, %v8573_v63  ;;  %v8600_v58 = vmul.f32 %v10258_v19, %v8599_v53  ;;  %v8589_v22 = vmul.f32 %v17163_v26, %v17113_v1  ;;  %9235 = vst.msk [vmem:[%s17125_s11 + $0x18] sm:$0xff] %vm1024_vm4, %v9171_v45  ;;  %v8579_v37 = vmul.f32 %v10262_v0, %v17135_v23  ;;  %vm8606_vm9 = vmor %vm8604_vm14, %vm8605_vm2 }
 0x812   : > { %v9172_v41 = vmul.f32 %v8577_v31, %v16793_v3  ;;  %v8557_v28 = vsel %vm8556_vm5, %v17109_v5, %v8553_v12  ;;  %v17188_v63 = vadd.f32 1e-08, %v8409_v24  ;;  %v17191_v31 = vsel %vm7976_vm11, %v7853_v57, %v8040_v10  ;;  %vm8596_vm7 = vmor %vm8594_vm12, %vm8595_vm8 }
 0x813   : > { %v9170_v55 = vmul.f32 %v8557_v28, %v16795_v40  ;;  %v8601_v42 = vmul.f32 0.5, %v8600_v58  ;;  %v8590_v3 = vmul.f32 %v17163_v26, %v8589_v22  ;;  %v8580_v5 = vmul.f32 %v10262_v0, %v8579_v37  ;;  %v8240_v12 = vpop.xlane.xlu1 %8239 }
 0x814   : > { %9236 = vst.msk [vmem:[%s17125_s11 + $0x20] sm:$0xff] %vm1024_vm4, %v9172_v41  ;;  %v7855_v40 = vadd.f32 %v16722_v47, %v7854_v4  ;;  %v8410_v45 = vmul.f32 %v8240_v12, %v19126_v52  ;;  %10265 = vrsqrt.f32 %v17188_v63  ;;  %vm8585_vm15 = vweird.f32 %v10262_v0 }
 0x815   : > { %9234 = vst.msk [vmem:[%s17125_s11 + $0x10] sm:$0xff] %vm1024_vm4, %v9170_v55  ;;  %v8602_v59 = vsub.f32 1.5, %v8601_v42  ;;  %v8591_v53 = vmul.f32 0.5, %v8590_v3  ;;  %v8581_v46 = vmul.f32 0.5, %v8580_v5  ;;  %v8168_v57 = vmul.f32 %v17191_v31, %v17191_v31  ;;  %v10264_v21 = vpop.eup %10263  ;;  %vm8586_vm6 = vmor %vm8584_vm0, %vm8585_vm15 }
 0x816   : > { %v17201_v10 = vadd.f32 1e-08, %v8410_v45  ;;  %v8041_v55 = vmul.f32 0.2, %v7855_v40  ;;  %v8609_v3 = vmul.f32 %v10264_v21, %v17170_v61  ;;  %vm7977_vm3 = vcmp.ge.f32.partialorder %v7855_v40, 0.0 }
 0x817   : > { %v8603_v41 = vmul.f32 %v10258_v19, %v8602_v59  ;;  %v8592_v28 = vsub.f32 1.5, %v8591_v53  ;;  %v8582_v24 = vsub.f32 1.5, %v8581_v46  ;;  %v7857_v4 = vpop.f32.mrf.mxu1  ;;  %v8280_v23 = vsel %vm1024_vm4, %v8168_v57, 0.0 }
 0x818   : > { %v7858_v5 = vadd.f32 %v16722_v47, %v7857_v4  ;;  %10267 = vrsqrt.f32 %v17201_v10  ;;  %v8610_v53 = vmul.f32 %v10264_v21, %v8609_v3  ;;  %8281 = vadd.xlane.f32.xlu2 %v8280_v23  ;;  %vm8615_vm10 = vweird.f32 %v10264_v21 }
 0x819   : > { %v8607_v58 = vsel %vm8606_vm9, %v10258_v19, %v8603_v41  ;;  %v8593_v22 = vmul.f32 %v17163_v26, %v8592_v28  ;;  %v8583_v42 = vmul.f32 %v10262_v0, %v8582_v24  ;;  %v17223_v28 = vsel %vm7977_vm3, %v7855_v40, %v8041_v55 }
 0x81a   : > { %v9175_v37 = vmul.f32 %v8607_v58, %v16817_v44  ;;  %v10266_v12 = vpop.eup %10265  ;;  %v17213_v44 = vpop.f32.mrf.mxu3  ;;  %v8611_v46 = vmul.f32 0.5, %v8610_v53  ;;  %vm7978_vm13 = vcmp.ge.f32.partialorder %v7858_v5, 0.0  ;;  %v8042_v41 = vmul.f32 0.2, %v7858_v5 }
 0x81b   : > { %v8597_v19 = vsel %vm8596_vm7, %v17163_v26, %v8593_v22  ;;  %v8587_v1 = vsel %vm8586_vm6, %v10262_v0, %v8583_v42  ;;  %v8243_v47 = vpop.xlane.xlu0 %8242  ;;  %v8619_v26 = vmul.f32 %v10266_v12, %v17188_v63  ;;  %vm8614_vm1 = vweird.f32 %v17170_v61 }
 0x81c   : > { %9239 = vst.msk [vmem:[%s17125_s11 + $0x38] sm:$0xff] %vm1024_vm4, %v9175_v37  ;;  %v9174_v59 = vmul.f32 %v8597_v19, %v16820_v56  ;;  %v9173_v45 = vmul.f32 %v8587_v1, %v16828_v29  ;;  %v8169_v56 = vmul.f32 %v17223_v28, %v17223_v28  ;;  %v8411_v24 = vmul.f32 %v8243_v47, %v19126_v52  ;;  %vm8616_vm5 = vmor %vm8614_vm1, %vm8615_vm10  ;;  %v17241_v19 = vld [vmem:[%s18183_s4] ss:$0 sm:$0xff] }
 0x81d   : > { %v8620_v0 = vmul.f32 %v10266_v12, %v8619_v26  ;;  %v8612_v57 = vsub.f32 1.5, %v8611_v46  ;;  %v17233_v42 = vsel %vm7978_vm13, %v7858_v5, %v8042_v41  ;;  %vm8625_vm11 = vweird.f32 %v10266_v12 }
 0x81e   : > { %9238 = vst.msk [vmem:[%s17125_s11 + $0x30] sm:$0xff] %vm1024_vm4, %v9174_v59  ;;  %v10268_v4 = vpop.eup %10267  ;;  %v8283_v22 = vsel %vm1024_vm4, %v8169_v56, 0.0  ;;  %v17231_v37 = vadd.f32 1e-08, %v8411_v24  ;;  %vm8624_vm2 = vweird.f32 %v17188_v63  ;;  %v8170_v1 = vmul.f32 %v17233_v42, %v17233_v42 }
 0x81f   : > { %9237 = vst.msk [vmem:[%s17125_s11 + $0x28] sm:$0xff] %vm1024_vm4, %v9173_v45  ;;  %v7859_v29 = vpop.f32.mrf.mxu1  ;;  %v8621_v58 = vmul.f32 0.5, %v8620_v0  ;;  %v8613_v40 = vmul.f32 %v10264_v21, %v8612_v57  ;;  %v8629_v55 = vmul.f32 %v10268_v4, %v17201_v10  ;;  %8284 = vadd.xlane.f32.xlu1 %v8283_v22  ;;  %vm8626_vm12 = vmor %vm8624_vm2, %vm8625_vm11  ;;  %vm8635_vm8 = vweird.f32 %v10268_v4 }
 0x820   : > { %10269 = vrsqrt.f32 %v17231_v37  ;;  %v7860_v5 = vadd.f32 %v17241_v19, %v7859_v29  ;;  %v8286_v41 = vsel %vm1024_vm4, %v8170_v1, 0.0  ;;  %vm8634_vm9 = vweird.f32 %v17201_v10 }
 0x821   : > { %v8622_v3 = vsub.f32 1.5, %v8621_v58  ;;  %v8617_v23 = vsel %vm8616_vm5, %v10264_v21, %v8613_v40  ;;  %v8630_v61 = vmul.f32 %v10268_v4, %v8629_v55  ;;  %8287 = vadd.xlane.f32.xlu0 %v8286_v41  ;;  %vm8636_vm15 = vmor %vm8634_vm9, %vm8635_vm8  ;;  %vm8644_vm6 = vweird.f32 %v17231_v37 }
 0x822   : > { %v9176_v53 = vmul.f32 %v8617_v23, %v16857_v48  ;;  %vm7979_vm14 = vcmp.ge.f32.partialorder %v7860_v5, 0.0  ;;  %v8043_v45 = vmul.f32 0.2, %v7860_v5  ;;  %v17248_v26 = vpop.f32.mrf.mxu3 }
 0x823   : > { %v8246_v59 = vpop.xlane.xlu2 %8245  ;;  %v8623_v47 = vmul.f32 %v10266_v12, %v8622_v3  ;;  %v8631_v46 = vmul.f32 0.5, %v8630_v61 }
 0x824   : > { %v8412_v21 = vmul.f32 %v8246_v59, %v19126_v52  ;;  %9240 = vst.msk [vmem:[%s17125_s11 + $0x40] sm:$0xff] %vm1024_vm4, %v9176_v53  ;;  %v17254_v0 = vsel %vm7979_vm14, %v7860_v5, %v8043_v45 }
 0x825   : > { %v8627_v63 = vsel %vm8626_vm12, %v10266_v12, %v8623_v47  ;;  %v8632_v56 = vsub.f32 1.5, %v8631_v46  ;;  %v8171_v29 = vmul.f32 %v17254_v0, %v17254_v0 }
 0x826   : > { %v9177_v48 = vmul.f32 %v8627_v63, %v16872_v60  ;;  %v8476_v24 = vadd.f32 1e-08, %v8412_v21  ;;  %v10270_v58 = vpop.eup %10269 }
 0x827   : > { %v7862_v57 = vpop.f32.mrf.mxu1  ;;  %v8633_v40 = vmul.f32 %v10268_v4, %v8632_v56  ;;  %v8639_v12 = vmul.f32 %v10270_v58, %v17231_v37  ;;  %v8289_v55 = vsel %vm1024_vm4, %v8171_v29, 0.0  ;;  %vm8645_vm7 = vweird.f32 %v10270_v58 }
 0x828   : > { %v7863_v22 = vadd.f32 %v17241_v19, %v7862_v57  ;;  %9241 = vst.msk [vmem:[%s17125_s11 + $0x48] sm:$0xff] %vm1024_vm4, %v9177_v48  ;;  %10271 = vrsqrt.f32 %v8476_v24  ;;  %8290 = vadd.xlane.f32.xlu2 %v8289_v55  ;;  %vm8646_vm3 = vmor %vm8644_vm6, %vm8645_vm7  ;;  %vm8654_vm1 = vweird.f32 %v8476_v24 }
 0x829   : > { %v8637_v3 = vsel %vm8636_vm15, %v10268_v4, %v8633_v40  ;;  %v8640_v5 = vmul.f32 %v10270_v58, %v8639_v12 }
 0x82a   : > { %vm7980_vm0 = vcmp.ge.f32.partialorder %v7863_v22, 0.0  ;;  %v8044_v60 = vmul.f32 0.2, %v7863_v22  ;;  %v9178_v61 = vmul.f32 %v8637_v3, %v16895_v33  ;;  %v17274_v46 = vpop.f32.mrf.mxu3 }
 0x82b   : > { %v8249_v23 = vpop.xlane.xlu1 %8248  ;;  %v8641_v10 = vmul.f32 0.5, %v8640_v5 }
 0x82c   : > { %v8413_v1 = vmul.f32 %v8249_v23, %v19126_v52  ;;  %v17268_v59 = vsel %vm7980_vm0, %v7863_v22, %v8044_v60  ;;  %9242 = vst.msk [vmem:[%s17125_s11 + $0x50] sm:$0xff] %vm1024_vm4, %v9178_v61 }
 0x82d   : > { %v8172_v53 = vmul.f32 %v17268_v59, %v17268_v59  ;;  %v8642_v4 = vsub.f32 1.5, %v8641_v10 }
 0x82e   : > { %v8477_v47 = vadd.f32 1e-08, %v8413_v1  ;;  %v10272_v45 = vpop.eup %10271 }
 0x82f   : > { %v7864_v41 = vpop.f32.mrf.mxu1  ;;  %v8292_v21 = vsel %vm1024_vm4, %v8172_v53, 0.0  ;;  %v8649_v33 = vmul.f32 %v10272_v45, %v8476_v24  ;;  %v8643_v63 = vmul.f32 %v10270_v58, %v8642_v4  ;;  %vm8655_vm10 = vweird.f32 %v10272_v45 }
 0x830   : > { %10273 = vrsqrt.f32 %v8477_v47  ;;  %8293 = vadd.xlane.f32.xlu1 %v8292_v21  ;;  %v7865_v48 = vadd.f32 %v17241_v19, %v7864_v41  ;;  %vm8656_vm5 = vmor %vm8654_vm1, %vm8655_vm10  ;;  %vm8664_vm14 = vweird.f32 %v8477_v47 }
 0x831   : > { %v8650_v56 = vmul.f32 %v10272_v45, %v8649_v33  ;;  %v8647_v57 = vsel %vm8646_vm3, %v10270_v58, %v8643_v63 }
 0x832   : > { %vm7981_vm13 = vcmp.ge.f32.partialorder %v7865_v48, 0.0  ;;  %v8045_v29 = vmul.f32 0.2, %v7865_v48  ;;  %v9179_v40 = vmul.f32 %v8647_v57, %v16918_v30  ;;  %v17287_v30 = vpop.f32.mrf.mxu3 }
 0x833   : > { %v8252_v22 = vpop.xlane.xlu0 %8251  ;;  %v8651_v12 = vmul.f32 0.5, %v8650_v56 }
 0x834   : > { %v8414_v60 = vmul.f32 %v8252_v22, %v19126_v52  ;;  %v17281_v55 = vsel %vm7981_vm13, %v7865_v48, %v8045_v29  ;;  %9243 = vst.msk [vmem:[%s17125_s11 + $0x58] sm:$0xff] %vm1024_vm4, %v9179_v40 }
 0x835   : > { %v8652_v5 = vsub.f32 1.5, %v8651_v12  ;;  %v8173_v23 = vmul.f32 %v17281_v55, %v17281_v55 }
 0x836   : > { %v10274_v3 = vpop.eup %10273  ;;  %v8478_v37 = vadd.f32 1e-08, %v8414_v60  ;;  %v7878_v60 = vadd.f32 %v17241_v19, %v16768_v43 }
 0x837   : > { %v8659_v58 = vmul.f32 %v10274_v3, %v8477_v47  ;;  %v7867_v61 = vpop.f32.mrf.mxu1  ;;  %v8653_v1 = vmul.f32 %v10272_v45, %v8652_v5  ;;  %v8295_v4 = vsel %vm1024_vm4, %v8173_v23, 0.0  ;;  %vm8665_vm2 = vweird.f32 %v10274_v3 }
 0x838   : > { %10275 = vrsqrt.f32 %v8478_v37  ;;  %v7868_v53 = vadd.f32 %v17241_v19, %v7867_v61  ;;  %8296 = vadd.xlane.f32.xlu0 %v8295_v4  ;;  %vm8666_vm12 = vmor %vm8664_vm14, %vm8665_vm2  ;;  %vm7986_vm15 = vcmp.ge.f32.partialorder %v7878_v60, 0.0  ;;  %vm8674_vm0 = vweird.f32 %v8478_v37 }
 0x839   : > { %v8660_v10 = vmul.f32 %v10274_v3, %v8659_v58  ;;  %v8657_v41 = vsel %vm8656_vm5, %v10272_v45, %v8653_v1 }
 0x83a   : > { %v9180_v21 = vmul.f32 %v8657_v41, %v16941_v34  ;;  %vm7982_vm11 = vcmp.ge.f32.partialorder %v7868_v53, 0.0  ;;  %v8046_v63 = vmul.f32 0.2, %v7868_v53  ;;  %v8050_v41 = vmul.f32 0.2, %v7878_v60 }
 0x83b   : > { %v8661_v33 = vmul.f32 0.5, %v8660_v10  ;;  %v8255_v48 = vpop.xlane.xlu2 %8254  ;;  %v17304_v10 = vpop.f32.mrf.mxu3 }
 0x83c   : > { %v8415_v56 = vmul.f32 %v8255_v48, %v19126_v52  ;;  %9244 = vst.msk [vmem:[%s17125_s11 + $0x60] sm:$0xff] %vm1024_vm4, %v9180_v21  ;;  %v17295_v57 = vsel %vm7982_vm11, %v7868_v53, %v8046_v63 }
 0x83d   : > { %v8662_v24 = vsub.f32 1.5, %v8661_v33  ;;  %v8174_v45 = vmul.f32 %v17295_v57, %v17295_v57 }
 0x83e   : > { %v10276_v29 = vpop.eup %10275  ;;  %v8479_v22 = vadd.f32 1e-08, %v8415_v56 }
 0x83f   : > { %v8663_v40 = vmul.f32 %v10274_v3, %v8662_v24  ;;  %v8669_v34 = vmul.f32 %v10276_v29, %v8478_v37  ;;  %v7869_v12 = vpop.f32.mrf.mxu1  ;;  %v8298_v61 = vsel %vm1024_vm4, %v8174_v45, 0.0  ;;  %vm8675_vm9 = vweird.f32 %v10276_v29 }
 0x840   : > { %10277 = vrsqrt.f32 %v8479_v22  ;;  %v7870_v58 = vadd.f32 %v17241_v19, %v7869_v12  ;;  %8299 = vadd.xlane.f32.xlu2 %v8298_v61  ;;  %vm8676_vm7 = vmor %vm8674_vm0, %vm8675_vm9  ;;  %v7885_v45 = vadd.f32 %v17241_v19, %v16881_v35  ;;  %v17319_v12 = vsel %vm7986_vm15, %v7878_v60, %v8050_v41 }
 0x841   : > { %v8667_v5 = vsel %vm8666_vm12, %v10274_v3, %v8663_v40  ;;  %v8670_v23 = vmul.f32 %v10276_v29, %v8669_v34  ;;  %v8178_v61 = vmul.f32 %v17319_v12, %v17319_v12  ;;  %v7880_v60 = vadd.f32 %v17241_v19, %v16812_v18 }
 0x842   : > { %v9181_v1 = vmul.f32 %v8667_v5, %v16961_v27  ;;  %vm7983_vm8 = vcmp.ge.f32.partialorder %v7870_v58, 0.0  ;;  %v8047_v53 = vmul.f32 0.2, %v7870_v58  ;;  %vm7989_vm3 = vcmp.ge.f32.partialorder %v7885_v45, 0.0 }
 0x843   : > { %v8671_v47 = vmul.f32 0.5, %v8670_v23  ;;  %v8258_v4 = vpop.xlane.xlu1 %8257  ;;  %vm8684_vm13 = vweird.f32 %v8479_v22  ;;  %v8310_v18 = vsel %vm1024_vm4, %v8178_v61, 0.0  ;;  %vm7987_vm5 = vcmp.ge.f32.partialorder %v7880_v60, 0.0 }
 0x844   : > { %9245 = vst.msk [vmem:[%s17125_s11 + $0x68] sm:$0xff] %vm1024_vm4, %v9181_v1  ;;  %v8416_v43 = vmul.f32 %v8258_v4, %v19126_v52  ;;  %v17309_v21 = vsel %vm7983_vm8, %v7870_v58, %v8047_v53  ;;  %v8053_v1 = vmul.f32 0.2, %v7885_v45 }
 0x845   : > { %v8672_v3 = vsub.f32 1.5, %v8671_v47  ;;  %v8175_v27 = vmul.f32 %v17309_v21, %v17309_v21  ;;  %v17327_v47 = vpop.f32.mrf.mxu3 }
 0x846   : > { %v10278_v33 = vpop.eup %10277  ;;  %v17311_v63 = vadd.f32 1e-08, %v8416_v43  ;;  %v17336_v43 = vadd.f32 %v17241_v19, %v16852_v32  ;;  %v17344_v32 = vsel %vm7989_vm3, %v7885_v45, %v8053_v1 }
 0x847   : > { %v8673_v48 = vmul.f32 %v10276_v29, %v8672_v3  ;;  %v8679_v56 = vmul.f32 %v10278_v33, %v8479_v22  ;;  %v8301_v24 = vsel %vm1024_vm4, %v8175_v27, 0.0  ;;  %vm8685_vm6 = vweird.f32 %v10278_v33 }
 0x848   : > { %10279 = vrsqrt.f32 %v17311_v63  ;;  %8302 = vadd.xlane.f32.xlu1 %v8301_v24  ;;  %vm8686_vm10 = vmor %vm8684_vm13, %vm8685_vm6  ;;  %v8051_v22 = vmul.f32 0.2, %v7880_v60  ;;  %vm7988_vm11 = vcmp.ge.f32.partialorder %v17336_v43, 0.0  ;;  %vm8694_vm12 = vweird.f32 %v17311_v63 }
 0x849   : > { %v8677_v40 = vsel %vm8676_vm7, %v10276_v29, %v8673_v48  ;;  %v8680_v34 = vmul.f32 %v10278_v33, %v8679_v56  ;;  %v7893_v48 = vadd.f32 %v17241_v19, %v16965_v50  ;;  %v7888_v50 = vadd.f32 %v17241_v19, %v16907_v49 }
 0x84a   : > { %v9182_v5 = vmul.f32 %v8677_v40, %v16979_v9 }
 0x84b   : > { %v8681_v23 = vmul.f32 0.5, %v8680_v34  ;;  %v8261_v58 = vpop.xlane.xlu0 %8260  ;;  %v8056_v45 = vmul.f32 0.2, %v7893_v48  ;;  %vm7992_vm14 = vcmp.ge.f32.partialorder %v7893_v48, 0.0  ;;  %vm7990_vm15 = vcmp.ge.f32.partialorder %v7888_v50, 0.0 }
 0x84c   : > { %9246 = vst.msk [vmem:[%s17125_s11 + $0x70] sm:$0xff] %vm1024_vm4, %v9182_v5  ;;  %v8417_v37 = vmul.f32 %v8261_v58, %v19126_v52  ;;  %v7872_v29 = vpop.f32.mrf.mxu1 }
 0x84d   : > { %v8682_v35 = vsub.f32 1.5, %v8681_v23  ;;  %v7873_v4 = vadd.f32 %v17241_v19, %v7872_v29 }
 0x84e   : > { %v10280_v53 = vpop.eup %10279  ;;  %v17331_v9 = vadd.f32 1e-08, %v8417_v37 }
 0x84f   : > { %v8683_v41 = vmul.f32 %v10278_v33, %v8682_v35  ;;  %v8689_v3 = vmul.f32 %v10280_v53, %v17311_v63  ;;  %vm7984_vm1 = vcmp.ge.f32.partialorder %v7873_v4, 0.0  ;;  %v8048_v27 = vmul.f32 0.2, %v7873_v4 }
 0x850   : > { %10281 = vrsqrt.f32 %v17331_v9  ;;  %8311 = vadd.xlane.f32.xlu1 %v8310_v18  ;;  %vm8695_vm2 = vweird.f32 %v10280_v53  ;;  %v17381_v63 = vsel %vm7992_vm14, %v7893_v48, %v8056_v45  ;;  %vm8704_vm6 = vweird.f32 %v17331_v9 }
 0x851   : > { %v8687_v56 = vsel %vm8686_vm10, %v10278_v33, %v8683_v41  ;;  %v8690_v24 = vmul.f32 %v10280_v53, %v8689_v3  ;;  %v17347_v34 = vsel %vm7984_vm1, %v7873_v4, %v8048_v27  ;;  %v17366_v4 = vsel %vm7987_vm5, %v7880_v60, %v8051_v22  ;;  %v17370_v3 = vpop.f32.mrf.mxu3  ;;  %vm8696_vm8 = vmor %vm8694_vm12, %vm8695_vm2 }
 0x852   : > { %v9183_v40 = vmul.f32 %v8687_v56, %v16995_v36  ;;  %v8176_v58 = vmul.f32 %v17347_v34, %v17347_v34  ;;  %v8181_v36 = vmul.f32 %v17344_v32, %v17344_v32  ;;  %v7900_v41 = vadd.f32 %v17241_v19, %v17028_v7 }
 0x853   : > { %v8691_v5 = vmul.f32 0.5, %v8690_v24  ;;  %v8264_v23 = vpop.xlane.xlu2 %8263  ;;  %v8179_v7 = vmul.f32 %v17366_v4, %v17366_v4 }
 0x854   : > { %9247 = vst.msk [vmem:[%s17125_s11 + $0x78] sm:$0xff] %vm1024_vm4, %v9183_v40  ;;  %v8418_v33 = vmul.f32 %v8264_v23, %v19126_v52  ;;  %v7874_v61 = vpop.f32.mrf.mxu1  ;;  %v8304_v1 = vsel %vm1024_vm4, %v8176_v58, 0.0  ;;  %v8319_v24 = vsel %vm1024_vm4, %v8181_v36, 0.0  ;;  %v8052_v40 = vmul.f32 0.2, %v17336_v43 }
 0x855   : > { %v8692_v37 = vsub.f32 1.5, %v8691_v5  ;;  %v7875_v49 = vadd.f32 %v17241_v19, %v7874_v61  ;;  %8305 = vadd.xlane.f32.xlu0 %v8304_v1  ;;  %v8054_v5 = vmul.f32 0.2, %v7888_v50  ;;  %vm7995_vm0 = vcmp.ge.f32.partialorder %v7900_v41, 0.0 }
 0x856   : > { %v17360_v35 = vpop.eup %10281  ;;  %v17362_v29 = vadd.f32 1e-08, %v8418_v33  ;;  %v8059_v61 = vmul.f32 0.2, %v7900_v41 }
 0x857   : > { %v8693_v27 = vmul.f32 %v10280_v53, %v8692_v37  ;;  %v8699_v18 = vmul.f32 %v17360_v35, %v17331_v9  ;;  %vm7985_vm9 = vcmp.ge.f32.partialorder %v7875_v49, 0.0  ;;  %v8049_v56 = vmul.f32 0.2, %v7875_v49 }
 0x858   : > { %10283 = vrsqrt.f32 %v17362_v29  ;;  %8320 = vadd.xlane.f32.xlu1 %v8319_v24  ;;  %vm8705_vm7 = vweird.f32 %v17360_v35  ;;  %v17409_v24 = vsel %vm7990_vm15, %v7888_v50, %v8054_v5 }
 0x859   : > { %v8697_v60 = vsel %vm8696_vm8, %v10280_v53, %v8693_v27  ;;  %v8700_v22 = vmul.f32 %v17360_v35, %v8699_v18  ;;  %v17385_v58 = vsel %vm7985_vm9, %v7875_v49, %v8049_v56  ;;  %v7890_v53 = vadd.f32 %v17241_v19, %v16937_v15  ;;  %vm8706_vm3 = vmor %vm8704_vm6, %vm8705_vm7  ;;  %v17421_v50 = vpop.f32.mrf.mxu3 }
 0x85a   : > { %v9184_v23 = vmul.f32 %v8697_v60, %v17016_v39  ;;  %v8177_v37 = vmul.f32 %v17385_v58, %v17385_v58  ;;  %v8184_v39 = vmul.f32 %v17381_v63, %v17381_v63  ;;  %v8313_v15 = vsel %vm1024_vm4, %v8179_v7, 0.0 }
 0x85b   : > { %v8701_v33 = vmul.f32 0.5, %v8700_v22  ;;  %v8267_v36 = vpop.xlane.xlu1 %8266  ;;  %v7895_v27 = vadd.f32 %v17241_v19, %v16992_v38  ;;  %v17406_v56 = vsel %vm7988_vm11, %v17336_v43, %v8052_v40  ;;  %v7908_v38 = vadd.f32 %v17241_v19, %v17058_v2 }
 0x85c   : > { %9248 = vst.msk [vmem:[%s17125_s11 + $0x80] sm:$0xff] %vm1024_vm4, %v9184_v23  ;;  %v8419_v48 = vmul.f32 %v8267_v36, %v19126_v52  ;;  %v8307_v1 = vsel %vm1024_vm4, %v8177_v37, 0.0  ;;  %v8328_v7 = vsel %vm1024_vm4, %v8184_v39, 0.0  ;;  %v17419_v43 = vsel %vm7995_vm0, %v7900_v41, %v8059_v61 }
 0x85d   : > { %v8702_v45 = vsub.f32 1.5, %v8701_v33  ;;  %8308 = vadd.xlane.f32.xlu2 %v8307_v1  ;;  %8314 = vadd.xlane.f32.xlu0 %v8313_v15  ;;  %v8180_v9 = vmul.f32 %v17406_v56, %v17406_v56  ;;  %v8182_v2 = vmul.f32 %v17409_v24, %v17409_v24  ;;  %v8055_v23 = vmul.f32 0.2, %v7890_v53 }
 0x85e   : > { %v10284_v49 = vpop.eup %10283  ;;  %v17401_v18 = vadd.f32 1e-08, %v8419_v48  ;;  %v8057_v33 = vmul.f32 0.2, %v7895_v27  ;;  %vm7991_vm13 = vcmp.ge.f32.partialorder %v7890_v53, 0.0  ;;  %vm7993_vm10 = vcmp.ge.f32.partialorder %v7895_v27, 0.0 }
 0x85f   : > { %v8703_v60 = vmul.f32 %v17360_v35, %v8702_v45  ;;  %v8709_v22 = vmul.f32 %v10284_v49, %v17362_v29  ;;  %vm7998_vm1 = vcmp.ge.f32.partialorder %v7908_v38, 0.0  ;;  %v8062_v61 = vmul.f32 0.2, %v7908_v38 }
 0x860   : > { %10285 = vrsqrt.f32 %v17401_v18  ;;  %8329 = vadd.xlane.f32.xlu1 %v8328_v7  ;;  %v8187_v48 = vmul.f32 %v17419_v43, %v17419_v43  ;;  %vm8715_vm5 = vweird.f32 %v10284_v49  ;;  %v8316_v45 = vsel %vm1024_vm4, %v8180_v9, 0.0 }
 0x861   : > { %v8707_v40 = vsel %vm8706_vm3, %v17360_v35, %v8703_v60  ;;  %v8710_v5 = vmul.f32 %v10284_v49, %v8709_v22  ;;  %v8322_v1 = vsel %vm1024_vm4, %v8182_v2, 0.0  ;;  %v7898_v15 = vadd.f32 %v17241_v19, %v17012_v11 }
 0x862   : > { %v9185_v36 = vmul.f32 %v8707_v40, %v17026_v14  ;;  %v17441_v22 = vsel %vm7991_vm13, %v7890_v53, %v8055_v23  ;;  %v17444_v7 = vsel %vm7993_vm10, %v7895_v27, %v8057_v33  ;;  %v7903_v40 = vadd.f32 %v17241_v19, %v17038_v16 }
 0x863   : > { %v8711_v41 = vmul.f32 0.5, %v8710_v5  ;;  %v8270_v37 = vpop.xlane.xlu0 %8269  ;;  %vm8714_vm11 = vweird.f32 %v17362_v29  ;;  %v7915_v11 = vadd.f32 %v17241_v19, %v17176_v20  ;;  %v8337_v53 = vsel %vm1024_vm4, %v8187_v48, 0.0 }
 0x864   : > { %9249 = vst.msk [vmem:[%s17125_s11 + $0x88] sm:$0xff] %vm1024_vm4, %v9185_v36  ;;  %v8420_v35 = vmul.f32 %v8270_v37, %v19126_v52  ;;  %vm8716_vm2 = vmor %vm8714_vm11, %vm8715_vm5  ;;  %v17456_v27 = vsel %vm7998_vm1, %v7908_v38, %v8062_v61  ;;  %v8183_v29 = vmul.f32 %v17441_v22, %v17441_v22  ;;  %v8185_v23 = vmul.f32 %v17444_v7, %v17444_v7  ;;  %v17463_v36 = vpop.f32.mrf.mxu3 }
 0x865   : > { %v8712_v39 = vsub.f32 1.5, %v8711_v41  ;;  %8317 = vadd.xlane.f32.xlu2 %v8316_v45  ;;  %8323 = vadd.xlane.f32.xlu0 %v8322_v1  ;;  %vm7994_vm14 = vcmp.ge.f32.partialorder %v7898_v15, 0.0  ;;  %v8058_v33 = vmul.f32 0.2, %v7898_v15  ;;  %vm7996_vm12 = vcmp.ge.f32.partialorder %v7903_v40, 0.0 }
 0x866   : > { %v10286_v14 = vpop.eup %10285  ;;  %v17438_v60 = vadd.f32 1e-08, %v8420_v35  ;;  %v8060_v38 = vmul.f32 0.2, %v7903_v40  ;;  %v8065_v61 = vmul.f32 0.2, %v7915_v11  ;;  %v8190_v35 = vmul.f32 %v17456_v27, %v17456_v27 }
 0x867   : > { %v8713_v5 = vmul.f32 %v10284_v49, %v8712_v39  ;;  %v8719_v9 = vmul.f32 %v10286_v14, %v17401_v18  ;;  %vm8725_vm8 = vweird.f32 %v10286_v14  ;;  %v8331_v39 = vsel %vm1024_vm4, %v8185_v23, 0.0 }
 0x868   : > { %10287 = vrsqrt.f32 %v17438_v60  ;;  %8338 = vadd.xlane.f32.xlu1 %v8337_v53  ;;  %vm8001_vm9 = vcmp.ge.f32.partialorder %v7915_v11, 0.0  ;;  %vm8724_vm15 = vweird.f32 %v17401_v18  ;;  %v17477_v53 = vsel %vm7994_vm14, %v7898_v15, %v8058_v33 }
 0x869   : > { %v8717_v2 = vsel %vm8716_vm2, %v10284_v49, %v8713_v5  ;;  %v8720_v16 = vmul.f32 %v10286_v14, %v8719_v9  ;;  %vm8726_vm0 = vmor %vm8724_vm15, %vm8725_vm8  ;;  %v17489_v15 = vsel %vm8001_vm9, %v7915_v11, %v8065_v61  ;;  %v7905_v33 = vadd.f32 %v17241_v19, %v17048_v51 }
 0x86a   : > { %v9186_v20 = vmul.f32 %v8717_v2, %v17034_v8  ;;  %v8325_v8 = vsel %vm1024_vm4, %v8183_v29, 0.0  ;;  %v8346_v2 = vsel %vm1024_vm4, %v8190_v35, 0.0  ;;  %v17484_v29 = vsel %vm7996_vm12, %v7903_v40, %v8060_v38 }
 0x86b   : > { %v8721_v41 = vmul.f32 0.5, %v8720_v16  ;;  %v8273_v37 = vpop.xlane.xlu2 %8272  ;;  %v8186_v16 = vmul.f32 %v17477_v53, %v17477_v53  ;;  %v8188_v18 = vmul.f32 %v17484_v29, %v17484_v29  ;;  %v8193_v40 = vmul.f32 %v17489_v15, %v17489_v15 }
 0x86c   : > { %9250 = vst.msk [vmem:[%s17125_s11 + $0x90] sm:$0xff] %vm1024_vm4, %v9186_v20  ;;  %v8421_v49 = vmul.f32 %v8273_v37, %v19126_v52  ;;  %v17502_v38 = vpop.f32.mrf.mxu3  ;;  %vm7997_vm6 = vcmp.ge.f32.partialorder %v7905_v33, 0.0  ;;  %v8061_v35 = vmul.f32 0.2, %v7905_v33  ;;  %vm8734_vm3 = vweird.f32 %v17438_v60 }
 0x86d   : > { %v8722_v48 = vsub.f32 1.5, %v8721_v41  ;;  %8326 = vadd.xlane.f32.xlu2 %v8325_v8  ;;  %8332 = vadd.xlane.f32.xlu0 %v8331_v39  ;;  %v8334_v51 = vsel %vm1024_vm4, %v8186_v16, 0.0 }
 0x86e   : > { %v10288_v45 = vpop.eup %10287  ;;  %v17472_v1 = vadd.f32 1e-08, %v8421_v49  ;;  %v7910_v49 = vadd.f32 %v17241_v19, %v17080_v6 }
 0x86f   : > { %v8723_v5 = vmul.f32 %v10286_v14, %v8722_v48  ;;  %v8729_v9 = vmul.f32 %v10288_v45, %v17438_v60  ;;  %vm8735_vm7 = vweird.f32 %v10288_v45 }
 0x870   : > { %10289 = vrsqrt.f32 %v17472_v1  ;;  %8347 = vadd.xlane.f32.xlu1 %v8346_v2  ;;  %vm7999_vm13 = vcmp.ge.f32.partialorder %v7910_v49, 0.0  ;;  %v8063_v39 = vmul.f32 0.2, %v7910_v49  ;;  %vm8736_vm10 = vmor %vm8734_vm3, %vm8735_vm7  ;;  %vm8744_vm11 = vweird.f32 %v17472_v1 }
 0x871   : > { %v8727_v23 = vsel %vm8726_vm0, %v10286_v14, %v8723_v5  ;;  %v8730_v20 = vmul.f32 %v10288_v45, %v8729_v9  ;;  %v7923_v14 = vadd.f32 %v17241_v19, %v17274_v46  ;;  %v8355_v9 = vsel %vm1024_vm4, %v8193_v40, 0.0 }
 0x872   : > { %v9187_v41 = vmul.f32 %v8727_v23, %v17042_v25  ;;  %v8340_v25 = vsel %vm1024_vm4, %v8188_v18, 0.0  ;;  %v17518_v18 = vsel %vm7997_vm6, %v7905_v33, %v8061_v35  ;;  %v7918_v33 = vadd.f32 %v17241_v19, %v17213_v44 }
 0x873   : > { %v8731_v37 = vmul.f32 0.5, %v8730_v20  ;;  %v8276_v6 = vpop.xlane.xlu1 %8275  ;;  %v8068_v5 = vmul.f32 0.2, %v7923_v14  ;;  %vm8004_vm1 = vcmp.ge.f32.partialorder %v7923_v14, 0.0  ;;  %v8189_v40 = vmul.f32 %v17518_v18, %v17518_v18 }
 0x874   : > { %9251 = vst.msk [vmem:[%s17125_s11 + $0x98] sm:$0xff] %vm1024_vm4, %v9187_v41  ;;  %v8422_v8 = vmul.f32 %v8276_v6, %v19126_v52  ;;  %v17521_v41 = vsel %vm7999_vm13, %v7910_v49, %v8063_v39  ;;  %v7930_v49 = vadd.f32 %v17241_v19, %v17327_v47  ;;  %v7920_v47 = vadd.f32 %v17241_v19, %v17248_v26 }
 0x875   : > { %v8732_v11 = vsub.f32 1.5, %v8731_v37  ;;  %8335 = vadd.xlane.f32.xlu2 %v8334_v51  ;;  %8341 = vadd.xlane.f32.xlu0 %v8340_v25  ;;  %v17523_v37 = vsel %vm8004_vm1, %v7923_v14, %v8068_v5  ;;  %v7913_v51 = vadd.f32 %v17241_v19, %v17127_v17  ;;  %v17537_v14 = vpop.f32.mrf.mxu3  ;;  %v8343_v35 = vsel %vm1024_vm4, %v8189_v40, 0.0 }
 0x876   : > { %v10290_v61 = vpop.eup %10289  ;;  %v17511_v23 = vadd.f32 1e-08, %v8422_v8  ;;  %v8066_v39 = vmul.f32 0.2, %v7918_v33  ;;  %v7925_v5 = vadd.f32 %v17241_v19, %v17287_v30  ;;  %vm8002_vm12 = vcmp.ge.f32.partialorder %v7918_v33, 0.0 }
 0x877   : > { %v8733_v46 = vmul.f32 %v10288_v45, %v8732_v11  ;;  %v8739_v48 = vmul.f32 %v10290_v61, %v17472_v1  ;;  %vm8745_vm5 = vweird.f32 %v10290_v61  ;;  %v8196_v11 = vmul.f32 %v17523_v37, %v17523_v37 }
 0x878   : > { %8356 = vadd.xlane.f32.xlu1 %v8355_v9  ;;  %10291 = vrsqrt.f32 %v17511_v23  ;;  %vm8746_vm2 = vmor %vm8744_vm11, %vm8745_vm5  ;;  %vm8000_vm14 = vcmp.ge.f32.partialorder %v7913_v51, 0.0  ;;  %v8064_v8 = vmul.f32 0.2, %v7913_v51  ;;  %v8071_v9 = vmul.f32 0.2, %v7930_v49 }
 0x879   : > { %v8737_v2 = vsel %vm8736_vm10, %v10288_v45, %v8733_v46  ;;  %v8740_v16 = vmul.f32 %v10290_v61, %v8739_v48  ;;  %v8364_v17 = vsel %vm1024_vm4, %v8196_v11, 0.0  ;;  %vm8007_vm8 = vcmp.ge.f32.partialorder %v7930_v49, 0.0 }
 0x87a   : > { %v9188_v60 = vmul.f32 %v8737_v2, %v17050_v13  ;;  %v8191_v13 = vmul.f32 %v17521_v41, %v17521_v41  ;;  %v7938_v26 = vadd.f32 %v17241_v19, %v17463_v36  ;;  %vm8003_vm9 = vcmp.ge.f32.partialorder %v7920_v47, 0.0 }
 0x87b   : > { %v8741_v20 = vmul.f32 0.5, %v8740_v16  ;;  %vm8005_vm15 = vcmp.ge.f32.partialorder %v7925_v5, 0.0  ;;  %v17558_v30 = vsel %vm8000_vm14, %v7913_v51, %v8064_v8  ;;  %v17562_v40 = vsel %vm8007_vm8, %v7930_v49, %v8071_v9 }
 0x87c   : > { %9252 = vst.msk [vmem:[%s17125_s11 + $0xa0] sm:$0xff] %vm1024_vm4, %v9188_v60  ;;  %v8349_v6 = vsel %vm1024_vm4, %v8191_v13, 0.0  ;;  %v8192_v36 = vmul.f32 %v17558_v30, %v17558_v30  ;;  %v8069_v11 = vmul.f32 0.2, %v7925_v5  ;;  %v8199_v51 = vmul.f32 %v17562_v40, %v17562_v40 }
 0x87d   : > { %v8742_v45 = vsub.f32 1.5, %v8741_v20  ;;  %8344 = vadd.xlane.f32.xlu2 %v8343_v35  ;;  %8350 = vadd.xlane.f32.xlu0 %v8349_v6  ;;  %v7944_v35 = vpop.f32.mrf.mxu3  ;;  %vm8010_vm7 = vcmp.ge.f32.partialorder %v7938_v26, 0.0  ;;  %vm8754_vm6 = vweird.f32 %v17511_v23 }
 0x87e   : > { %v10292_v44 = vpop.eup %10291  ;;  %v8352_v49 = vsel %vm1024_vm4, %v8192_v36, 0.0  ;;  %v7945_v8 = vadd.f32 %v17241_v19, %v7944_v35  ;;  %v7935_v35 = vadd.f32 %v17241_v19, %v17421_v50 }
 0x87f   : > { %v8743_v25 = vmul.f32 %v10290_v61, %v8742_v45  ;;  %v8749_v48 = vmul.f32 %v10292_v44, %v17511_v23  ;;  %v17560_v45 = vsel %vm8002_vm12, %v7918_v33, %v8066_v39  ;;  %vm8755_vm0 = vweird.f32 %v10292_v44  ;;  %v19128_v23 = vld [vmem:[#allocation51_spill] sm:$0xff] }
 0x880   : > { %8365 = vadd.xlane.f32.xlu1 %v8364_v17  ;;  %v8194_v6 = vmul.f32 %v17560_v45, %v17560_v45  ;;  %v7928_v17 = vadd.f32 %v17241_v19, %v17304_v10  ;;  %vm8756_vm3 = vmor %vm8754_vm6, %vm8755_vm0  ;;  %v17585_v10 = vsel %vm8005_vm15, %v7925_v5, %v8069_v11  ;;  %v8077_v36 = vmul.f32 0.2, %v7945_v8 }
 0x881   : > { %v8747_v46 = vsel %vm8746_vm2, %v10290_v61, %v8743_v25  ;;  %v8279_v2 = vpop.xlane.xlu0 %8278  ;;  %v8750_v61 = vmul.f32 %v10292_v44, %v8749_v48  ;;  %v8074_v25 = vmul.f32 0.2, %v7938_v26  ;;  %v7933_v48 = vadd.f32 %v17241_v19, %v17370_v3 }
 0x882   : > { %v9189_v1 = vmul.f32 %v8747_v46, %v17062_v62  ;;  %v8423_v16 = vmul.f32 %v8279_v2, %v19126_v52  ;;  %v8067_v62 = vmul.f32 0.2, %v7920_v47  ;;  %v8358_v46 = vsel %vm1024_vm4, %v8194_v6, 0.0 }
 0x883   : > { %v8751_v60 = vmul.f32 0.5, %v8750_v61  ;;  %v17588_v61 = vsel %vm8010_vm7, %v7938_v26, %v8074_v25  ;;  %vm8006_vm13 = vcmp.ge.f32.partialorder %v7928_v17, 0.0  ;;  %v8072_v26 = vmul.f32 0.2, %v7933_v48 }
 0x884   : > { %9253 = vst.msk [vmem:[%s17125_s11 + $0xa8] sm:$0xff] %vm1024_vm4, %v9189_v1  ;;  %v17555_v20 = vadd.f32 1e-08, %v8423_v16  ;;  %v8373_v1 = vsel %vm1024_vm4, %v8199_v51, 0.0  ;;  %v17582_v2 = vsel %vm8003_vm9, %v7920_v47, %v8067_v62  ;;  %v8202_v5 = vmul.f32 %v17588_v61, %v17588_v61 }
 0x885   : > { %v8752_v13 = vsub.f32 1.5, %v8751_v60  ;;  %8353 = vadd.xlane.f32.xlu2 %v8352_v49  ;;  %8359 = vadd.xlane.f32.xlu0 %v8358_v46  ;;  %v8195_v3 = vmul.f32 %v17582_v2, %v17582_v2  ;;  %vm8008_vm10 = vcmp.ge.f32.partialorder %v7933_v48, 0.0  ;;  %vm8013_vm1 = vcmp.ge.f32.partialorder %v7945_v8, 0.0 }
 0x886   : > { %10293 = vrsqrt.f32 %v17555_v20  ;;  %v8382_v49 = vsel %vm1024_vm4, %v8202_v5, 0.0  ;;  %v17613_v50 = vsel %vm8008_vm10, %v7933_v48, %v8072_v26  ;;  %vm8764_vm11 = vweird.f32 %v17555_v20 }
 0x887   : > { %v8753_v33 = vmul.f32 %v10292_v44, %v8752_v13  ;;  %v8070_v13 = vmul.f32 0.2, %v7928_v17  ;;  %v8361_v6 = vsel %vm1024_vm4, %v8195_v3, 0.0  ;;  %v8073_v3 = vmul.f32 0.2, %v7935_v35 }
 0x888   : > { %8374 = vadd.xlane.f32.xlu1 %v8373_v1  ;;  %v7940_v1 = vadd.f32 %v17241_v19, %v17502_v38  ;;  %v8200_v48 = vmul.f32 %v17613_v50, %v17613_v50  ;;  %vm8009_vm2 = vcmp.ge.f32.partialorder %v7935_v35, 0.0 }
 0x889   : > { %v8757_v39 = vsel %vm8756_vm3, %v10292_v44, %v8753_v33  ;;  %v8197_v44 = vmul.f32 %v17585_v10, %v17585_v10  ;;  %v17608_v46 = vsel %vm8006_vm13, %v7928_v17, %v8070_v13 }
 0x88a   : > { %v9190_v9 = vmul.f32 %v8757_v39, %v19128_v23  ;;  %v17616_v23 = vsel %vm8013_vm1, %v7945_v8, %v8077_v36  ;;  %v8198_v38 = vmul.f32 %v17608_v46, %v17608_v46  ;;  %vm8011_vm12 = vcmp.ge.f32.partialorder %v7940_v1, 0.0 }
 0x88b   : > { %v8282_v60 = vpop.xlane.xlu2 %8281  ;;  %v8367_v51 = vsel %vm1024_vm4, %v8197_v44, 0.0  ;;  %v7947_v44 = vpop.f32.mrf.mxu3  ;;  %v8205_v8 = vmul.f32 %v17616_v23, %v17616_v23 }
 0x88c   : > { %v10294_v16 = vpop.eup %10293  ;;  %9254 = vst.msk [vmem:[%s17125_s11 + $0xb0] sm:$0xff] %vm1024_vm4, %v9190_v9  ;;  %v8424_v62 = vmul.f32 %v8282_v60, %v19126_v52 }
 0x88d   : > { %v8759_v47 = vmul.f32 %v10294_v16, %v17555_v20  ;;  %8362 = vadd.xlane.f32.xlu2 %v8361_v6  ;;  %8368 = vadd.xlane.f32.xlu0 %v8367_v51  ;;  %vm8765_vm5 = vweird.f32 %v10294_v16  ;;  %v7943_v20 = vadd.f32 %v17241_v19, %v17537_v14  ;;  %v8370_v51 = vsel %vm1024_vm4, %v8198_v38, 0.0 }
 0x88e   : > { %v17600_v25 = vadd.f32 1e-08, %v8424_v62  ;;  %vm8766_vm14 = vmor %vm8764_vm11, %vm8765_vm5  ;;  %v17639_v14 = vsel %vm8009_vm2, %v7935_v35, %v8073_v3 }
 0x88f   : > { %v8760_v11 = vmul.f32 %v10294_v16, %v8759_v47  ;;  %v8075_v47 = vmul.f32 0.2, %v7940_v1  ;;  %v8201_v38 = vmul.f32 %v17639_v14, %v17639_v14  ;;  %vm8012_vm8 = vcmp.ge.f32.partialorder %v7943_v20, 0.0 }
 0x890   : > { %10295 = vrsqrt.f32 %v17600_v25  ;;  %8383 = vadd.xlane.f32.xlu1 %v8382_v49  ;;  %v8376_v49 = vsel %vm1024_vm4, %v8200_v48, 0.0  ;;  %vm8774_vm0 = vweird.f32 %v17600_v25 }
 0x891   : > { %v8761_v33 = vmul.f32 0.5, %v8760_v11 }
 0x892   : > { %v8285_v39 = vpop.xlane.xlu1 %8284 }
 0x893   : > { %v8762_v9 = vsub.f32 1.5, %v8761_v33  ;;  %v8425_v60 = vmul.f32 %v8285_v39, %v19126_v52  ;;  %v7948_v33 = vadd.f32 %v17241_v19, %v7947_v44  ;;  %v8391_v39 = vsel %vm1024_vm4, %v8205_v8, 0.0  ;;  %v7949_v8 = vpop.f32.mrf.mxu3 }
 0x894   : > { %v8288_v26 = vpop.xlane.xlu0 %8287 }
 0x895   : > { %v8763_v17 = vmul.f32 %v10294_v16, %v8762_v9  ;;  %v17622_v13 = vadd.f32 1e-08, %v8425_v60  ;;  %v8426_v6 = vmul.f32 %v8288_v26, %v19126_v52  ;;  %8371 = vadd.xlane.f32.xlu2 %v8370_v51  ;;  %8377 = vadd.xlane.f32.xlu0 %v8376_v49  ;;  %v17646_v9 = vsel %vm8011_vm12, %v7940_v1, %v8075_v47  ;;  %v10431_v51 = vld [vmem:[%s18183_s4] ss:$0 sm:$0xff] }
 0x896   : > { %v10296_v62 = vpop.eup %10295  ;;  %v8076_v60 = vmul.f32 0.2, %v7943_v20  ;;  %v8078_v3 = vmul.f32 0.2, %v7948_v33  ;;  %v8203_v48 = vmul.f32 %v17646_v9, %v17646_v9  ;;  %vm8014_vm9 = vcmp.ge.f32.partialorder %v7948_v33, 0.0 }
 0x897   : > { %v8767_v5 = vsel %vm8766_vm14, %v10294_v16, %v8763_v17  ;;  %10297 = vrsqrt.f32 %v17622_v13  ;;  %v8769_v11 = vmul.f32 %v10296_v62, %v17600_v25  ;;  %vm8775_vm15 = vweird.f32 %v10296_v62 }
 0x898   : > { %v9191_v36 = vmul.f32 %v8767_v5, %v17139_v54  ;;  %v17643_v54 = vadd.f32 1e-08, %v8426_v6  ;;  %8392 = vadd.xlane.f32.xlu1 %v8391_v39  ;;  %v17659_v6 = vsel %vm8012_vm8, %v7943_v20, %v8076_v60  ;;  %v7950_v49 = vadd.f32 %v10431_v51, %v7949_v8  ;;  %vm8776_vm7 = vmor %vm8774_vm0, %vm8775_vm15 }
 0x899   : > { %v8770_v16 = vmul.f32 %v10296_v62, %v8769_v11  ;;  %v8379_v11 = vsel %vm1024_vm4, %v8201_v38, 0.0  ;;  %v8385_v39 = vsel %vm1024_vm4, %v8203_v48, 0.0  ;;  %v8204_v8 = vmul.f32 %v17659_v6, %v17659_v6 }
 0x89a   : > { %9255 = vst.msk [vmem:[%s17125_s11 + $0xb8] sm:$0xff] %vm1024_vm4, %v9191_v36  ;;  %10299 = vrsqrt.f32 %v17643_v54  ;;  %vm8015_vm3 = vcmp.ge.f32.partialorder %v7950_v49, 0.0  ;;  %vm8784_vm13 = vweird.f32 %v17622_v13  ;;  %vm8794_vm5 = vweird.f32 %v17643_v54 }
 0x89b   : > { %v8771_v19 = vmul.f32 0.5, %v8770_v16  ;;  %v8291_v44 = vpop.xlane.xlu2 %8290  ;;  %v17667_v16 = vsel %vm8014_vm9, %v7948_v33, %v8078_v3  ;;  %v8079_v3 = vmul.f32 0.2, %v7950_v49  ;;  %v8388_v51 = vsel %vm1024_vm4, %v8204_v8, 0.0 }
 0x89c   : > { %v8427_v17 = vmul.f32 %v8291_v44, %v19126_v52  ;;  %v8206_v33 = vmul.f32 %v17667_v16, %v17667_v16 }
 0x89d   : > { %v10298_v35 = vpop.eup %10297  ;;  %v8772_v1 = vsub.f32 1.5, %v8771_v19  ;;  %8380 = vadd.xlane.f32.xlu2 %v8379_v11  ;;  %8386 = vadd.xlane.f32.xlu0 %v8385_v39 }
 0x89e   : > { %v8779_v47 = vmul.f32 %v10298_v35, %v17622_v13  ;;  %v17656_v5 = vadd.f32 1e-08, %v8427_v17  ;;  %vm8785_vm6 = vweird.f32 %v10298_v35  ;;  %v8394_v39 = vsel %vm1024_vm4, %v8206_v33, 0.0 }
 0x89f   : > { %v8773_v26 = vmul.f32 %v10296_v62, %v8772_v1  ;;  %vm8786_vm10 = vmor %vm8784_vm13, %vm8785_vm6 }
 0x8a0   : > { %v8780_v36 = vmul.f32 %v10298_v35, %v8779_v47  ;;  %10301 = vrsqrt.f32 %v17656_v5  ;;  %v10300_v19 = vpop.eup %10299  ;;  %vm8804_vm14 = vweird.f32 %v17656_v5 }
 0x8a1   : > { %v8777_v44 = vsel %vm8776_vm7, %v10296_v62, %v8773_v26  ;;  %v8789_v17 = vmul.f32 %v10300_v19, %v17643_v54  ;;  %vm8795_vm1 = vweird.f32 %v10300_v19 }
 0x8a2   : > { %v8781_v20 = vmul.f32 0.5, %v8780_v36  ;;  %v9192_v38 = vmul.f32 %v8777_v44, %v17191_v31  ;;  %vm8796_vm11 = vmor %vm8794_vm5, %vm8795_vm1 }
 0x8a3   : > { %v8294_v25 = vpop.xlane.xlu1 %8293  ;;  %v8790_v62 = vmul.f32 %v10300_v19, %v8789_v17 }
 0x8a4   : > { %v8428_v60 = vmul.f32 %v8294_v25, %v19126_v52  ;;  %v8782_v1 = vsub.f32 1.5, %v8781_v20  ;;  %9256 = vst.msk [vmem:[%s17125_s11 + $0xc0] sm:$0xff] %vm1024_vm4, %v9192_v38  ;;  %v17683_v20 = vsel %vm8015_vm3, %v7950_v49, %v8079_v3 }
 0x8a5   : > { %v8791_v26 = vmul.f32 0.5, %v8790_v62  ;;  %8389 = vadd.xlane.f32.xlu2 %v8388_v51  ;;  %8395 = vadd.xlane.f32.xlu0 %v8394_v39 }
 0x8a6   : > { %v8492_v48 = vadd.f32 1e-08, %v8428_v60  ;;  %v8783_v47 = vmul.f32 %v10298_v35, %v8782_v1  ;;  %v10302_v31 = vpop.eup %10301 }
 0x8a7   : > { %v8799_v11 = vmul.f32 %v10302_v31, %v17656_v5  ;;  %v8792_v44 = vsub.f32 1.5, %v8791_v26  ;;  %vm8805_vm2 = vweird.f32 %v10302_v31 }
 0x8a8   : > { %10303 = vrsqrt.f32 %v8492_v48  ;;  %v8787_v36 = vsel %vm8786_vm10, %v10298_v35, %v8783_v47  ;;  %vm8806_vm12 = vmor %vm8804_vm14, %vm8805_vm2  ;;  %vm8814_vm9 = vweird.f32 %v8492_v48 }
 0x8a9   : > { %v9193_v25 = vmul.f32 %v8787_v36, %v17223_v28  ;;  %v8800_v13 = vmul.f32 %v10302_v31, %v8799_v11  ;;  %v8793_v60 = vmul.f32 %v10300_v19, %v8792_v44  ;;  %v8207_v28 = vmul.f32 %v17683_v20, %v17683_v20 }
 0x8ab   : > { %9257 = vst.msk [vmem:[%s17125_s11 + $0xc8] sm:$0xff] %vm1024_vm4, %v9193_v25  ;;  %v8297_v35 = vpop.xlane.xlu0 %8296  ;;  %v8801_v17 = vmul.f32 0.5, %v8800_v13  ;;  %v8797_v1 = vsel %vm8796_vm11, %v10300_v19, %v8793_v60  ;;  %v8397_v26 = vsel %vm1024_vm4, %v8207_v28, 0.0 }
 0x8ac   : > { %v8429_v8 = vmul.f32 %v8297_v35, %v19126_v52  ;;  %v9194_v33 = vmul.f32 %v8797_v1, %v17233_v42 }
 0x8ad   : > { %v8802_v3 = vsub.f32 1.5, %v8801_v17  ;;  %8398 = vadd.xlane.f32.xlu2 %v8397_v26 }
 0x8ae   : > { %v10304_v38 = vpop.eup %10303  ;;  %v8493_v62 = vadd.f32 1e-08, %v8429_v8  ;;  %9258 = vst.msk [vmem:[%s17125_s11 + $0xd0] sm:$0xff] %vm1024_vm4, %v9194_v33 }
 0x8af   : > { %v8809_v49 = vmul.f32 %v10304_v38, %v8492_v48  ;;  %v8803_v54 = vmul.f32 %v10302_v31, %v8802_v3  ;;  %vm8815_vm8 = vweird.f32 %v10304_v38 }
 0x8b0   : > { %10305 = vrsqrt.f32 %v8493_v62  ;;  %vm8816_vm15 = vmor %vm8814_vm9, %vm8815_vm8  ;;  %vm8824_vm7 = vweird.f32 %v8493_v62 }
 0x8b1   : > { %v8810_v47 = vmul.f32 %v10304_v38, %v8809_v49  ;;  %v8807_v19 = vsel %vm8806_vm12, %v10302_v31, %v8803_v54 }
 0x8b2   : > { %v9195_v11 = vmul.f32 %v8807_v19, %v17254_v0 }
 0x8b3   : > { %v8811_v36 = vmul.f32 0.5, %v8810_v47  ;;  %v8300_v51 = vpop.xlane.xlu2 %8299 }
 0x8b4   : > { %v8430_v39 = vmul.f32 %v8300_v51, %v19126_v52  ;;  %9259 = vst.msk [vmem:[%s17125_s11 + $0xd8] sm:$0xff] %vm1024_vm4, %v9195_v11 }
 0x8b5   : > { %v8812_v42 = vsub.f32 1.5, %v8811_v36 }
 0x8b6   : > { %v10306_v5 = vpop.eup %10305  ;;  %v8494_v44 = vadd.f32 1e-08, %v8430_v39 }
 0x8b7   : > { %v8813_v25 = vmul.f32 %v10304_v38, %v8812_v42  ;;  %v8819_v60 = vmul.f32 %v10306_v5, %v8493_v62  ;;  %vm8825_vm0 = vweird.f32 %v10306_v5 }
 0x8b8   : > { %10307 = vrsqrt.f32 %v8494_v44  ;;  %vm8826_vm6 = vmor %vm8824_vm7, %vm8825_vm0  ;;  %vm8834_vm13 = vweird.f32 %v8494_v44 }
 0x8b9   : > { %v8817_v13 = vsel %vm8816_vm15, %v10304_v38, %v8813_v25  ;;  %v8820_v31 = vmul.f32 %v10306_v5, %v8819_v60 }
 0x8ba   : > { %v9196_v35 = vmul.f32 %v8817_v13, %v17268_v59 }
 0x8bb   : > { %v8303_v0 = vpop.xlane.xlu1 %8302  ;;  %v8821_v17 = vmul.f32 0.5, %v8820_v31 }
 0x8bc   : > { %9260 = vst.msk [vmem:[%s17125_s11 + $0xe0] sm:$0xff] %vm1024_vm4, %v9196_v35  ;;  %v8431_v8 = vmul.f32 %v8303_v0, %v19126_v52 }
 0x8bd   : > { %v8822_v28 = vsub.f32 1.5, %v8821_v17 }
 0x8be   : > { %v8495_v1 = vadd.f32 1e-08, %v8431_v8  ;;  %v10308_v48 = vpop.eup %10307 }
 0x8bf   : > { %v8823_v49 = vmul.f32 %v10306_v5, %v8822_v28  ;;  %v8829_v33 = vmul.f32 %v10308_v48, %v8494_v44  ;;  %vm8835_vm3 = vweird.f32 %v10308_v48 }
 0x8c0   : > { %10309 = vrsqrt.f32 %v8495_v1  ;;  %vm8836_vm10 = vmor %vm8834_vm13, %vm8835_vm3  ;;  %vm8844_vm5 = vweird.f32 %v8495_v1 }
 0x8c1   : > { %v8827_v38 = vsel %vm8826_vm6, %v10306_v5, %v8823_v49  ;;  %v8830_v59 = vmul.f32 %v10308_v48, %v8829_v33 }
 0x8c2   : > { %v9197_v3 = vmul.f32 %v8827_v38, %v17281_v55 }
 0x8c3   : > { %v8312_v47 = vpop.xlane.xlu1 %8311  ;;  %v8831_v54 = vmul.f32 0.5, %v8830_v59 }
 0x8c4   : > { %v8434_v26 = vmul.f32 %v8312_v47, %v19126_v52  ;;  %9261 = vst.msk [vmem:[%s17125_s11 + $0xe8] sm:$0xff] %vm1024_vm4, %v9197_v3 }
 0x8c5   : > { %v8832_v19 = vsub.f32 1.5, %v8831_v54 }
 0x8c6   : > { %v10310_v36 = vpop.eup %10309  ;;  %v8498_v11 = vadd.f32 1e-08, %v8434_v26 }
 0x8c7   : > { %v8839_v42 = vmul.f32 %v10310_v36, %v8495_v1  ;;  %v8833_v62 = vmul.f32 %v10308_v48, %v8832_v19  ;;  %vm8845_vm1 = vweird.f32 %v10310_v36 }
 0x8c8   : > { %10311 = vrsqrt.f32 %v8498_v11  ;;  %v8306_v51 = vpop.xlane.xlu0 %8305  ;;  %vm8846_vm11 = vmor %vm8844_vm5, %vm8845_vm1  ;;  %vm8874_vm14 = vweird.f32 %v8498_v11 }
 0x8c9   : > { %v8840_v39 = vmul.f32 %v10310_v36, %v8839_v42  ;;  %v8432_v55 = vmul.f32 %v8306_v51, %v19126_v52  ;;  %v8837_v25 = vsel %vm8836_vm10, %v10308_v48, %v8833_v62 }
 0x8ca   : > { %v9198_v5 = vmul.f32 %v8837_v25, %v17295_v57 }
 0x8cb   : > { %v8841_v13 = vmul.f32 0.5, %v8840_v39  ;;  %v17710_v60 = vadd.f32 1e-08, %v8432_v55  ;;  %v8321_v35 = vpop.xlane.xlu1 %8320 }
 0x8cc   : > { %v8437_v31 = vmul.f32 %v8321_v35, %v19126_v52  ;;  %9262 = vst.msk [vmem:[%s17125_s11 + $0xf0] sm:$0xff] %vm1024_vm4, %v9198_v5 }
 0x8cd   : > { %v8842_v0 = vsub.f32 1.5, %v8841_v13  ;;  %10313 = vrsqrt.f32 %v17710_v60  ;;  %vm8854_vm9 = vweird.f32 %v17710_v60 }
 0x8ce   : > { %v10312_v44 = vpop.eup %10311  ;;  %v17716_v17 = vadd.f32 1e-08, %v8437_v31 }
 0x8cf   : > { %v8843_v8 = vmul.f32 %v10310_v36, %v8842_v0  ;;  %v8869_v28 = vmul.f32 %v10312_v44, %v8498_v11  ;;  %vm8875_vm2 = vweird.f32 %v10312_v44 }
 0x8d0   : > { %10315 = vrsqrt.f32 %v17716_v17  ;;  %v8309_v57 = vpop.xlane.xlu2 %8308  ;;  %v8315_v48 = vpop.xlane.xlu0 %8314  ;;  %vm8876_vm12 = vmor %vm8874_vm14, %vm8875_vm2  ;;  %vm8904_vm15 = vweird.f32 %v17716_v17 }
 0x8d1   : > { %v8847_v49 = vsel %vm8846_vm11, %v10310_v36, %v8843_v8  ;;  %v8870_v33 = vmul.f32 %v10312_v44, %v8869_v28  ;;  %v8433_v38 = vmul.f32 %v8309_v57, %v19126_v52  ;;  %v8435_v59 = vmul.f32 %v8315_v48, %v19126_v52 }
 0x8d2   : > { %v9199_v3 = vmul.f32 %v8847_v49, %v17309_v21 }
 0x8d3   : > { %v10314_v47 = vpop.eup %10313  ;;  %v8871_v54 = vmul.f32 0.5, %v8870_v33  ;;  %v17722_v26 = vadd.f32 1e-08, %v8433_v38  ;;  %v17724_v1 = vadd.f32 1e-08, %v8435_v59  ;;  %v8330_v19 = vpop.xlane.xlu1 %8329 }
 0x8d4   : > { %9263 = vst.msk [vmem:[%s17125_s11 + $0xf8] sm:$0xff] %vm1024_vm4, %v9199_v3  ;;  %v8849_v42 = vmul.f32 %v10314_v47, %v17710_v60  ;;  %v8440_v36 = vmul.f32 %v8330_v19, %v19126_v52  ;;  %vm8855_vm8 = vweird.f32 %v10314_v47 }
 0x8d5   : > { %v8872_v62 = vsub.f32 1.5, %v8871_v54  ;;  %10317 = vrsqrt.f32 %v17722_v26  ;;  %vm8856_vm0 = vmor %vm8854_vm9, %vm8855_vm8  ;;  %vm8864_vm6 = vweird.f32 %v17722_v26  ;;  %vm8884_vm13 = vweird.f32 %v17724_v1 }
 0x8d6   : > { %v10316_v51 = vpop.eup %10315  ;;  %v8850_v39 = vmul.f32 %v10314_v47, %v8849_v42  ;;  %10319 = vrsqrt.f32 %v17724_v1  ;;  %v17732_v21 = vadd.f32 1e-08, %v8440_v36 }
 0x8d7   : > { %v8873_v55 = vmul.f32 %v10312_v44, %v8872_v62  ;;  %v8899_v25 = vmul.f32 %v10316_v51, %v17716_v17  ;;  %vm8905_vm7 = vweird.f32 %v10316_v51 }
 0x8d8   : > { %v8851_v5 = vmul.f32 0.5, %v8850_v39  ;;  %10321 = vrsqrt.f32 %v17732_v21  ;;  %v8318_v13 = vpop.xlane.xlu2 %8317  ;;  %v8324_v35 = vpop.xlane.xlu0 %8323  ;;  %vm8906_vm3 = vmor %vm8904_vm15, %vm8905_vm7  ;;  %vm8934_vm10 = vweird.f32 %v17732_v21 }
 0x8d9   : > { %v8877_v31 = vsel %vm8876_vm12, %v10312_v44, %v8873_v55  ;;  %v8900_v0 = vmul.f32 %v10316_v51, %v8899_v25  ;;  %v8436_v8 = vmul.f32 %v8318_v13, %v19126_v52  ;;  %v8438_v28 = vmul.f32 %v8324_v35, %v19126_v52 }
 0x8da   : > { %v9202_v57 = vmul.f32 %v8877_v31, %v17319_v12  ;;  %v8852_v48 = vsub.f32 1.5, %v8851_v5 }
 0x8db   : > { %v17739_v11 = vpop.eup %10317  ;;  %v8901_v49 = vmul.f32 0.5, %v8900_v0  ;;  %v17742_v33 = vadd.f32 1e-08, %v8436_v8  ;;  %v17744_v38 = vadd.f32 1e-08, %v8438_v28  ;;  %v8339_v59 = vpop.xlane.xlu1 %8338 }
 0x8dc   : > { %v17746_v44 = vpop.eup %10319  ;;  %9266 = vst.msk [vmem:[%s17125_s11 + $0x110] sm:$0xff] %vm1024_vm4, %v9202_v57  ;;  %v8853_v3 = vmul.f32 %v10314_v47, %v8852_v48  ;;  %v8859_v12 = vmul.f32 %v17739_v11, %v17722_v26  ;;  %v8443_v54 = vmul.f32 %v8339_v59, %v19126_v52  ;;  %vm8865_vm1 = vweird.f32 %v17739_v11 }
 0x8dd   : > { %v8902_v60 = vsub.f32 1.5, %v8901_v49  ;;  %v8879_v19 = vmul.f32 %v17746_v44, %v17724_v1  ;;  %10323 = vrsqrt.f32 %v17742_v33  ;;  %vm8885_vm5 = vweird.f32 %v17746_v44  ;;  %vm8866_vm11 = vmor %vm8864_vm6, %vm8865_vm1 }
 0x8de   : > { %v17757_v42 = vpop.eup %10321  ;;  %v8857_v36 = vsel %vm8856_vm0, %v10314_v47, %v8853_v3  ;;  %v8860_v62 = vmul.f32 %v17739_v11, %v8859_v12  ;;  %10325 = vrsqrt.f32 %v17744_v38  ;;  %v17770_v47 = vadd.f32 1e-08, %v8443_v54  ;;  %vm8886_vm14 = vmor %vm8884_vm13, %vm8885_vm5 }
 0x8df   : > { %v9200_v39 = vmul.f32 %v8857_v36, %v17347_v34  ;;  %v8903_v55 = vmul.f32 %v10316_v51, %v8902_v60  ;;  %v8880_v25 = vmul.f32 %v17746_v44, %v8879_v19  ;;  %v8929_v5 = vmul.f32 %v17757_v42, %v17732_v21 }
 0x8e0   : > { %v8861_v13 = vmul.f32 0.5, %v8860_v62  ;;  %v8327_v35 = vpop.xlane.xlu2 %8326  ;;  %v8333_v31 = vpop.xlane.xlu0 %8332  ;;  %10327 = vrsqrt.f32 %v17770_v47  ;;  %vm8935_vm2 = vweird.f32 %v17757_v42  ;;  %vm8894_vm12 = vweird.f32 %v17742_v33 }
 0x8e1   : > { %9264 = vst.msk [vmem:[%s17125_s11 + $0x100] sm:$0xff] %vm1024_vm4, %v9200_v39  ;;  %v8907_v34 = vsel %vm8906_vm3, %v10316_v51, %v8903_v55  ;;  %v8881_v0 = vmul.f32 0.5, %v8880_v25  ;;  %v8930_v8 = vmul.f32 %v17757_v42, %v8929_v5  ;;  %v8439_v28 = vmul.f32 %v8327_v35, %v19126_v52  ;;  %vm8936_vm8 = vmor %vm8934_vm10, %vm8935_vm2 }
 0x8e2   : > { %v9205_v17 = vmul.f32 %v8907_v34, %v17344_v32  ;;  %v8862_v57 = vsub.f32 1.5, %v8861_v13  ;;  %v8441_v60 = vmul.f32 %v8333_v31, %v19126_v52  ;;  %vm8914_vm9 = vweird.f32 %v17744_v38 }
 0x8e3   : > { %v17779_v48 = vpop.eup %10323  ;;  %v8882_v49 = vsub.f32 1.5, %v8881_v0  ;;  %v8931_v59 = vmul.f32 0.5, %v8930_v8  ;;  %v17782_v3 = vadd.f32 1e-08, %v8439_v28  ;;  %v8348_v51 = vpop.xlane.xlu1 %8347  ;;  %vm8964_vm13 = vweird.f32 %v17770_v47 }
 0x8e4   : > { %v17784_v12 = vpop.eup %10325  ;;  %9269 = vst.msk [vmem:[%s17125_s11 + $0x128] sm:$0xff] %vm1024_vm4, %v9205_v17  ;;  %v8863_v32 = vmul.f32 %v17739_v11, %v8862_v57  ;;  %v8889_v54 = vmul.f32 %v17779_v48, %v17742_v33  ;;  %v8446_v19 = vmul.f32 %v8348_v51, %v19126_v52  ;;  %v17816_v34 = vadd.f32 1e-08, %v8441_v60 }
 0x8e5   : > { %v8883_v36 = vmul.f32 %v17746_v44, %v8882_v49  ;;  %v8932_v62 = vsub.f32 1.5, %v8931_v59  ;;  %v8909_v39 = vmul.f32 %v17784_v12, %v17744_v38  ;;  %10329 = vrsqrt.f32 %v17782_v3 }
 0x8e6   : > { %v8867_v55 = vsel %vm8866_vm11, %v17739_v11, %v8863_v32  ;;  %v8890_v25 = vmul.f32 %v17779_v48, %v8889_v54  ;;  %v17811_v35 = vpop.eup %10327  ;;  %v17818_v0 = vadd.f32 1e-08, %v8446_v19  ;;  %vm8895_vm15 = vweird.f32 %v17779_v48 }
 0x8e7   : > { %v9201_v26 = vmul.f32 %v8867_v55, %v17385_v58  ;;  %v8887_v5 = vsel %vm8886_vm14, %v17746_v44, %v8883_v36  ;;  %v8933_v13 = vmul.f32 %v17757_v42, %v8932_v62  ;;  %v8910_v11 = vmul.f32 %v17784_v12, %v8909_v39  ;;  %vm8896_vm7 = vmor %vm8894_vm12, %vm8895_vm15 }
 0x8e8   : > { %v9203_v1 = vmul.f32 %v8887_v5, %v17366_v4  ;;  %v8891_v31 = vmul.f32 0.5, %v8890_v25  ;;  %v8336_v58 = vpop.xlane.xlu2 %8335  ;;  %v8342_v8 = vpop.xlane.xlu0 %8341  ;;  %v8959_v4 = vmul.f32 %v17811_v35, %v17770_v47  ;;  %10331 = vrsqrt.f32 %v17816_v34 }
 0x8e9   : > { %9265 = vst.msk [vmem:[%s17125_s11 + $0x108] sm:$0xff] %vm1024_vm4, %v9201_v26  ;;  %v8937_v44 = vsel %vm8936_vm8, %v17757_v42, %v8933_v13  ;;  %v8911_v28 = vmul.f32 0.5, %v8910_v11  ;;  %vm8915_vm0 = vweird.f32 %v17784_v12  ;;  %10333 = vrsqrt.f32 %v17818_v0 }
 0x8ea   : > { %9267 = vst.msk [vmem:[%s17125_s11 + $0x118] sm:$0xff] %vm1024_vm4, %v9203_v1  ;;  %v9208_v21 = vmul.f32 %v8937_v44, %v17381_v63  ;;  %v8892_v17 = vsub.f32 1.5, %v8891_v31  ;;  %v8960_v42 = vmul.f32 %v17811_v35, %v8959_v4  ;;  %v8442_v63 = vmul.f32 %v8336_v58, %v19126_v52  ;;  %vm8916_vm3 = vmor %vm8914_vm9, %vm8915_vm0 }
 0x8eb   : > { %v8912_v57 = vsub.f32 1.5, %v8911_v28  ;;  %v8357_v49 = vpop.xlane.xlu1 %8356  ;;  %v10330_v59 = vpop.eup %10329  ;;  %v8444_v32 = vmul.f32 %v8342_v8, %v19126_v52  ;;  %vm8965_vm6 = vweird.f32 %v17811_v35  ;;  %vm8924_vm5 = vweird.f32 %v17782_v3 }
 0x8ec   : > { %9272 = vst.msk [vmem:[%s17125_s11 + $0x140] sm:$0xff] %vm1024_vm4, %v9208_v21  ;;  %v8893_v51 = vmul.f32 %v17779_v48, %v8892_v17  ;;  %v8449_v54 = vmul.f32 %v8357_v49, %v19126_v52  ;;  %v8961_v19 = vmul.f32 0.5, %v8960_v42  ;;  %v8919_v36 = vmul.f32 %v10330_v59, %v17782_v3  ;;  %vm8966_vm10 = vmor %vm8964_vm13, %vm8965_vm6 }
 0x8ed   : > { %v8913_v60 = vmul.f32 %v17784_v12, %v8912_v57  ;;  %v17850_v39 = vadd.f32 1e-08, %v8442_v63  ;;  %v17852_v33 = vadd.f32 1e-08, %v8444_v32  ;;  %vm8925_vm1 = vweird.f32 %v10330_v59 }
 0x8ee   : > { %v8897_v62 = vsel %vm8896_vm7, %v17779_v48, %v8893_v51  ;;  %v17854_v55 = vadd.f32 1e-08, %v8449_v54  ;;  %v8962_v5 = vsub.f32 1.5, %v8961_v19  ;;  %v8920_v13 = vmul.f32 %v10330_v59, %v8919_v36  ;;  %v10332_v11 = vpop.eup %10331  ;;  %vm8926_vm2 = vmor %vm8924_vm5, %vm8925_vm1 }
 0x8ef   : > { %v9204_v25 = vmul.f32 %v8897_v62, %v17406_v56  ;;  %v8917_v26 = vsel %vm8916_vm3, %v17784_v12, %v8913_v60  ;;  %10335 = vrsqrt.f32 %v17850_v39  ;;  %v17860_v38 = vpop.eup %10333  ;;  %v8939_v56 = vmul.f32 %v10332_v11, %v17816_v34 }
 0x8f0   : > { %v9206_v48 = vmul.f32 %v8917_v26, %v17409_v24  ;;  %v8963_v1 = vmul.f32 %v17811_v35, %v8962_v5  ;;  %v8921_v31 = vmul.f32 0.5, %v8920_v13  ;;  %v8989_v24 = vmul.f32 %v17860_v38, %v17818_v0  ;;  %v8345_v12 = vpop.xlane.xlu2 %8344  ;;  %v8351_v58 = vpop.xlane.xlu0 %8350 }
 0x8f1   : > { %9268 = vst.msk [vmem:[%s17125_s11 + $0x120] sm:$0xff] %vm1024_vm4, %v9204_v25  ;;  %10337 = vrsqrt.f32 %v17852_v33  ;;  %v8940_v44 = vmul.f32 %v10332_v11, %v8939_v56  ;;  %v8445_v21 = vmul.f32 %v8345_v12, %v19126_v52  ;;  %v8447_v17 = vmul.f32 %v8351_v58, %v19126_v52 }
 0x8f2   : > { %9270 = vst.msk [vmem:[%s17125_s11 + $0x130] sm:$0xff] %vm1024_vm4, %v9206_v48  ;;  %v8967_v8 = vsel %vm8966_vm10, %v17811_v35, %v8963_v1  ;;  %v8922_v47 = vsub.f32 1.5, %v8921_v31  ;;  %10339 = vrsqrt.f32 %v17854_v55  ;;  %v8990_v4 = vmul.f32 %v17860_v38, %v8989_v24 }
 0x8f3   : > { %v9211_v28 = vmul.f32 %v8967_v8, %v17419_v43  ;;  %v8366_v57 = vpop.xlane.xlu1 %8365  ;;  %v8941_v49 = vmul.f32 0.5, %v8940_v44  ;;  %vm8944_vm11 = vweird.f32 %v17816_v34  ;;  %vm8945_vm14 = vweird.f32 %v10332_v11 }
 0x8f4   : > { %v8923_v42 = vmul.f32 %v10330_v59, %v8922_v47  ;;  %v8991_v43 = vmul.f32 0.5, %v8990_v4  ;;  %v17887_v51 = vadd.f32 1e-08, %v8445_v21  ;;  %v17889_v63 = vadd.f32 1e-08, %v8447_v17  ;;  %vm8946_vm9 = vmor %vm8944_vm11, %vm8945_vm14 }
 0x8f5   : > { %v17882_v35 = vpop.eup %10335  ;;  %9275 = vst.msk [vmem:[%s17125_s11 + $0x158] sm:$0xff] %vm1024_vm4, %v9211_v28  ;;  %v8942_v54 = vsub.f32 1.5, %v8941_v49  ;;  %vm8995_vm12 = vweird.f32 %v17860_v38  ;;  %v8452_v62 = vmul.f32 %v8366_v57, %v19126_v52  ;;  %vm8994_vm8 = vweird.f32 %v17818_v0 }
 0x8f6   : > { %v8927_v32 = vsel %vm8926_vm2, %v10330_v59, %v8923_v42  ;;  %v8949_v3 = vmul.f32 %v17882_v35, %v17850_v39  ;;  %v8992_v36 = vsub.f32 1.5, %v8991_v43  ;;  %10341 = vrsqrt.f32 %v17887_v51  ;;  %vm8996_vm0 = vmor %vm8994_vm8, %vm8995_vm12 }
 0x8f7   : > { %v17894_v60 = vpop.eup %10337  ;;  %v9207_v19 = vmul.f32 %v8927_v32, %v17441_v22  ;;  %v8943_v26 = vmul.f32 %v10332_v11, %v8942_v54  ;;  %vm8954_vm15 = vweird.f32 %v17850_v39  ;;  %10343 = vrsqrt.f32 %v17889_v63 }
 0x8f8   : > { %v17899_v25 = vpop.eup %10339  ;;  %v8950_v59 = vmul.f32 %v17882_v35, %v8949_v3  ;;  %v8969_v5 = vmul.f32 %v17894_v60, %v17852_v33  ;;  %v8993_v22 = vmul.f32 %v17860_v38, %v8992_v36  ;;  %vm8974_vm7 = vweird.f32 %v17852_v33  ;;  %v8354_v8 = vpop.xlane.xlu2 %8353 }
 0x8f9   : > { %9271 = vst.msk [vmem:[%s17125_s11 + $0x138] sm:$0xff] %vm1024_vm4, %v9207_v19  ;;  %v9019_v13 = vmul.f32 %v17899_v25, %v17854_v55  ;;  %v8947_v0 = vsel %vm8946_vm9, %v10332_v11, %v8943_v26  ;;  %v17922_v24 = vadd.f32 1e-08, %v8452_v62  ;;  %vm8955_vm6 = vweird.f32 %v17882_v35  ;;  %v8360_v44 = vpop.xlane.xlu0 %8359 }
 0x8fa   : > { %v8951_v48 = vmul.f32 0.5, %v8950_v59  ;;  %v8970_v1 = vmul.f32 %v17894_v60, %v8969_v5  ;;  %v9209_v34 = vmul.f32 %v8947_v0, %v17444_v7  ;;  %v8997_v31 = vsel %vm8996_vm0, %v17860_v38, %v8993_v22  ;;  %vm8956_vm10 = vmor %vm8954_vm15, %vm8955_vm6 }
 0x8fb   : > { %v9020_v56 = vmul.f32 %v17899_v25, %v9019_v13  ;;  %v9214_v12 = vmul.f32 %v8997_v31, %v17456_v27  ;;  %vm8975_vm3 = vweird.f32 %v17894_v60  ;;  %10345 = vrsqrt.f32 %v17922_v24  ;;  %v8375_v28 = vpop.xlane.xlu1 %8374 }
 0x8fc   : > { %v8952_v11 = vsub.f32 1.5, %v8951_v48  ;;  %v8971_v58 = vmul.f32 0.5, %v8970_v1  ;;  %v17926_v47 = vpop.eup %10341  ;;  %9273 = vst.msk [vmem:[%s17125_s11 + $0x148] sm:$0xff] %vm1024_vm4, %v9209_v34  ;;  %v8448_v38 = vmul.f32 %v8354_v8, %v19126_v52  ;;  %vm9025_vm13 = vweird.f32 %v17899_v25  ;;  %vm8976_vm1 = vmor %vm8974_vm7, %vm8975_vm3 }
 0x8fd   : > { %v9021_v7 = vmul.f32 0.5, %v9020_v56  ;;  %9278 = vst.msk [vmem:[%s17125_s11 + $0x170] sm:$0xff] %vm1024_vm4, %v9214_v12  ;;  %v8979_v21 = vmul.f32 %v17926_v47, %v17887_v51  ;;  %v17939_v17 = vpop.eup %10343  ;;  %v8450_v49 = vmul.f32 %v8360_v44, %v19126_v52  ;;  %v8455_v43 = vmul.f32 %v8375_v28, %v19126_v52 }
 0x8fe   : > { %v8953_v27 = vmul.f32 %v17882_v35, %v8952_v11  ;;  %v8972_v4 = vsub.f32 1.5, %v8971_v58  ;;  %v17945_v42 = vadd.f32 1e-08, %v8448_v38  ;;  %v8999_v19 = vmul.f32 %v17939_v17, %v17889_v63 }
 0x8ff   : > { %v9022_v57 = vsub.f32 1.5, %v9021_v7  ;;  %v8980_v3 = vmul.f32 %v17926_v47, %v8979_v21  ;;  %vm9024_vm5 = vweird.f32 %v17854_v55  ;;  %vm8985_vm2 = vweird.f32 %v17926_v47 }
 0x900   : > { %v8957_v32 = vsel %vm8956_vm10, %v17882_v35, %v8953_v27  ;;  %v8973_v54 = vmul.f32 %v17894_v60, %v8972_v4  ;;  %10347 = vrsqrt.f32 %v17945_v42  ;;  %vm9026_vm11 = vmor %vm9024_vm5, %vm9025_vm13  ;;  %v17971_v59 = vadd.f32 1e-08, %v8450_v49  ;;  %v8363_v48 = vpop.xlane.xlu2 %8362 }
 0x901   : > { %v9210_v39 = vmul.f32 %v8957_v32, %v17477_v53  ;;  %v9023_v36 = vmul.f32 %v17899_v25, %v9022_v57  ;;  %v8981_v62 = vmul.f32 0.5, %v8980_v3  ;;  %v9000_v53 = vmul.f32 %v17939_v17, %v8999_v19  ;;  %v10346_v26 = vpop.eup %10345 }
 0x902   : > { %v8977_v35 = vsel %vm8976_vm1, %v17894_v60, %v8973_v54  ;;  %v17973_v60 = vadd.f32 1e-08, %v8455_v43  ;;  %v9049_v0 = vmul.f32 %v10346_v26, %v17922_v24  ;;  %vm8984_vm14 = vweird.f32 %v17887_v51 }
 0x903   : > { %9274 = vst.msk [vmem:[%s17125_s11 + $0x150] sm:$0xff] %vm1024_vm4, %v9210_v39  ;;  %v9212_v33 = vmul.f32 %v8977_v35, %v17484_v29  ;;  %v9027_v55 = vsel %vm9026_vm11, %v17899_v25, %v9023_v36  ;;  %v8982_v22 = vsub.f32 1.5, %v8981_v62  ;;  %v9001_v13 = vmul.f32 0.5, %v9000_v53  ;;  %v8369_v29 = vpop.xlane.xlu0 %8368  ;;  %v8384_v25 = vpop.xlane.xlu1 %8383  ;;  %vm8986_vm8 = vmor %vm8984_vm14, %vm8985_vm2 }
 0x904   : > { %v9217_v5 = vmul.f32 %v9027_v55, %v17489_v15  ;;  %vm9005_vm12 = vweird.f32 %v17939_v17  ;;  %10349 = vrsqrt.f32 %v17971_v59  ;;  %v9050_v34 = vmul.f32 %v10346_v26, %v9049_v0 }
 0x905   : > { %9276 = vst.msk [vmem:[%s17125_s11 + $0x160] sm:$0xff] %vm1024_vm4, %v9212_v33  ;;  %v8983_v1 = vmul.f32 %v17926_v47, %v8982_v22  ;;  %v9002_v15 = vsub.f32 1.5, %v9001_v13  ;;  %10351 = vrsqrt.f32 %v17973_v60  ;;  %vm9004_vm9 = vweird.f32 %v17889_v63 }
 0x906   : > { %9281 = vst.msk [vmem:[%s17125_s11 + $0x188] sm:$0xff] %vm1024_vm4, %v9217_v5  ;;  %v10348_v31 = vpop.eup %10347  ;;  %v8451_v51 = vmul.f32 %v8363_v48, %v19126_v52  ;;  %v8453_v56 = vmul.f32 %v8369_v29, %v19126_v52  ;;  %v8458_v12 = vmul.f32 %v8384_v25, %v19126_v52  ;;  %v9051_v8 = vmul.f32 0.5, %v9050_v34  ;;  %vm9006_vm15 = vmor %vm9004_vm9, %vm9005_vm12 }
 0x907   : > { %v8987_v11 = vsel %vm8986_vm8, %v17926_v47, %v8983_v1  ;;  %v9003_v58 = vmul.f32 %v17939_v17, %v9002_v15  ;;  %v9009_v7 = vmul.f32 %v10348_v31, %v17945_v42  ;;  %vm9055_vm0 = vweird.f32 %v10346_v26 }
 0x908   : > { %v9213_v38 = vmul.f32 %v8987_v11, %v17518_v18  ;;  %v17998_v63 = vadd.f32 1e-08, %v8451_v51  ;;  %v18000_v44 = vadd.f32 1e-08, %v8453_v56  ;;  %v9052_v27 = vsub.f32 1.5, %v9051_v8  ;;  %v8372_v32 = vpop.xlane.xlu2 %8371 }
 0x909   : > { %v9007_v28 = vsel %vm9006_vm15, %v17939_v17, %v9003_v58  ;;  %v9010_v47 = vmul.f32 %v10348_v31, %v9009_v7  ;;  %v18003_v4 = vadd.f32 1e-08, %v8458_v12  ;;  %vm9054_vm7 = vweird.f32 %v17922_v24 }
 0x90a   : > { %v18005_v21 = vpop.eup %10349  ;;  %9277 = vst.msk [vmem:[%s17125_s11 + $0x168] sm:$0xff] %vm1024_vm4, %v9213_v38  ;;  %v9215_v18 = vmul.f32 %v9007_v28, %v17521_v41  ;;  %10353 = vrsqrt.f32 %v17998_v63  ;;  %v9053_v49 = vmul.f32 %v10346_v26, %v9052_v27  ;;  %vm9056_vm6 = vmor %vm9054_vm7, %vm9055_vm0  ;;  %vm9015_vm3 = vweird.f32 %v10348_v31 }
 0x90b   : > { %v18011_v57 = vpop.eup %10351  ;;  %v9011_v43 = vmul.f32 0.5, %v9010_v47  ;;  %v9029_v17 = vmul.f32 %v18005_v21, %v17971_v59  ;;  %10355 = vrsqrt.f32 %v18000_v44  ;;  %v8378_v54 = vpop.xlane.xlu0 %8377  ;;  %v8454_v35 = vmul.f32 %v8372_v32, %v19126_v52 }
 0x90c   : > { %9279 = vst.msk [vmem:[%s17125_s11 + $0x178] sm:$0xff] %vm1024_vm4, %v9215_v18  ;;  %v9079_v41 = vmul.f32 %v18011_v57, %v17973_v60  ;;  %v9057_v3 = vsel %vm9056_vm6, %v10346_v26, %v9053_v49  ;;  %10357 = vrsqrt.f32 %v18003_v4  ;;  %v8456_v62 = vmul.f32 %v8378_v54, %v19126_v52  ;;  %v8393_v26 = vpop.xlane.xlu1 %8392 }
 0x90d   : > { %v9012_v19 = vsub.f32 1.5, %v9011_v43  ;;  %v9030_v24 = vmul.f32 %v18005_v21, %v9029_v17  ;;  %v9220_v39 = vmul.f32 %v9057_v3, %v17523_v37  ;;  %vm9014_vm13 = vweird.f32 %v17945_v42 }
 0x90e   : > { %v9080_v36 = vmul.f32 %v18011_v57, %v9079_v41  ;;  %vm9034_vm10 = vweird.f32 %v17971_v59  ;;  %vm9016_vm1 = vmor %vm9014_vm13, %vm9015_vm3  ;;  %vm9035_vm5 = vweird.f32 %v18005_v21  ;;  %v18036_v5 = vadd.f32 1e-08, %v8454_v35 }
 0x90f   : > { %v9013_v53 = vmul.f32 %v10348_v31, %v9012_v19  ;;  %v9031_v33 = vmul.f32 0.5, %v9030_v24  ;;  %9284 = vst.msk [vmem:[%s17125_s11 + $0x1a0] sm:$0xff] %vm1024_vm4, %v9220_v39  ;;  %v18038_v22 = vadd.f32 1e-08, %v8456_v62  ;;  %vm9085_vm11 = vweird.f32 %v18011_v57  ;;  %vm9036_vm14 = vmor %vm9034_vm10, %vm9035_vm5 }
 0x910   : > { %v18030_v55 = vpop.eup %10353  ;;  %v9081_v37 = vmul.f32 0.5, %v9080_v36  ;;  %10359 = vrsqrt.f32 %v18036_v5  ;;  %v8461_v1 = vmul.f32 %v8393_v26, %v19126_v52  ;;  %vm9084_vm2 = vweird.f32 %v17973_v60  ;;  %v8381_v56 = vpop.xlane.xlu2 %8380 }
 0x911   : > { %v9017_v13 = vsel %vm9016_vm1, %v10348_v31, %v9013_v53  ;;  %v9032_v42 = vsub.f32 1.5, %v9031_v33  ;;  %v9039_v0 = vmul.f32 %v18030_v55, %v17998_v63  ;;  %v18043_v48 = vpop.eup %10355  ;;  %vm9044_vm12 = vweird.f32 %v17998_v63  ;;  %vm9086_vm8 = vmor %vm9084_vm2, %vm9085_vm11 }
 0x912   : > { %v9216_v29 = vmul.f32 %v9017_v13, %v17558_v30  ;;  %v9082_v25 = vsub.f32 1.5, %v9081_v37  ;;  %v18048_v15 = vpop.eup %10357  ;;  %v9059_v51 = vmul.f32 %v18043_v48, %v18000_v44  ;;  %10361 = vrsqrt.f32 %v18038_v22 }
 0x913   : > { %v9033_v34 = vmul.f32 %v18005_v21, %v9032_v42  ;;  %v9040_v31 = vmul.f32 %v18030_v55, %v9039_v0  ;;  %v9109_v60 = vmul.f32 %v18048_v15, %v18003_v4  ;;  %v8387_v12 = vpop.xlane.xlu0 %8386  ;;  %vm9045_vm9 = vweird.f32 %v18030_v55 }
 0x914   : > { %9280 = vst.msk [vmem:[%s17125_s11 + $0x180] sm:$0xff] %vm1024_vm4, %v9216_v29  ;;  %v9083_v30 = vmul.f32 %v18011_v57, %v9082_v25  ;;  %v9060_v59 = vmul.f32 %v18043_v48, %v9059_v51  ;;  %v18074_v28 = vadd.f32 1e-08, %v8461_v1  ;;  %v8457_v18 = vmul.f32 %v8381_v56, %v19126_v52  ;;  %vm9046_vm7 = vmor %vm9044_vm12, %vm9045_vm9 }
 0x915   : > { %v9037_v11 = vsel %vm9036_vm14, %v18005_v21, %v9033_v34  ;;  %v9041_v58 = vmul.f32 0.5, %v9040_v31  ;;  %v9110_v38 = vmul.f32 %v18048_v15, %v9109_v60  ;;  %vm9064_vm15 = vweird.f32 %v18000_v44 }
 0x916   : > { %v9218_v8 = vmul.f32 %v9037_v11, %v17560_v45  ;;  %v9087_v7 = vsel %vm9086_vm8, %v18011_v57, %v9083_v30  ;;  %v9061_v21 = vmul.f32 0.5, %v9060_v59  ;;  %v10360_v49 = vpop.eup %10359  ;;  %10363 = vrsqrt.f32 %v18074_v28 }
 0x917   : > { %v9223_v27 = vmul.f32 %v9087_v7, %v17562_v40  ;;  %v9042_v47 = vsub.f32 1.5, %v9041_v58  ;;  %v9111_v43 = vmul.f32 0.5, %v9110_v38  ;;  %v8459_v45 = vmul.f32 %v8387_v12, %v19126_v52 }
 0x918   : > { %9282 = vst.msk [vmem:[%s17125_s11 + $0x190] sm:$0xff] %vm1024_vm4, %v9218_v8  ;;  %v9062_v17 = vsub.f32 1.5, %v9061_v21  ;;  %vm9065_vm0 = vweird.f32 %v18043_v48  ;;  %v9069_v40 = vmul.f32 %v10360_v49, %v18036_v5  ;;  %v10362_v32 = vpop.eup %10361  ;;  %vm9115_vm6 = vweird.f32 %v18048_v15  ;;  %v8390_v35 = vpop.xlane.xlu2 %8389 }
 0x919   : > { %9287 = vst.msk [vmem:[%s17125_s11 + $0x1b8] sm:$0xff] %vm1024_vm4, %v9223_v27  ;;  %v9043_v57 = vmul.f32 %v18030_v55, %v9042_v47  ;;  %v9112_v41 = vsub.f32 1.5, %v9111_v43  ;;  %v18093_v54 = vadd.f32 1e-08, %v8457_v18  ;;  %v18095_v3 = vadd.f32 1e-08, %v8459_v45  ;;  %vm9066_vm3 = vmor %vm9064_vm15, %vm9065_vm0 }
 0x91a   : > { %v9063_v24 = vmul.f32 %v18043_v48, %v9062_v17  ;;  %v9070_v39 = vmul.f32 %v10360_v49, %v9069_v40  ;;  %v9089_v36 = vmul.f32 %v10362_v32, %v18038_v22  ;;  %vm9114_vm13 = vweird.f32 %v18003_v4 }
 0x91b   : > { %v9047_v19 = vsel %vm9046_vm7, %v18030_v55, %v9043_v57  ;;  %v9113_v63 = vmul.f32 %v18048_v15, %v9112_v41  ;;  %10365 = vrsqrt.f32 %v18093_v54  ;;  %vm9116_vm10 = vmor %vm9114_vm13, %vm9115_vm6  ;;  %v8396_v55 = vpop.xlane.xlu0 %8395  ;;  %vm9075_vm1 = vweird.f32 %v10360_v49 }
 0x91c   : > { %v9219_v62 = vmul.f32 %v9047_v19, %v17582_v2  ;;  %v9067_v53 = vsel %vm9066_vm3, %v18043_v48, %v9063_v24  ;;  %v9071_v33 = vmul.f32 0.5, %v9070_v39  ;;  %v9090_v26 = vmul.f32 %v10362_v32, %v9089_v36  ;;  %v10364_v37 = vpop.eup %10363 }
 0x91d   : > { %v9221_v2 = vmul.f32 %v9067_v53, %v17585_v10  ;;  %v9117_v44 = vsel %vm9116_vm10, %v18048_v15, %v9113_v63  ;;  %10367 = vrsqrt.f32 %v18095_v3  ;;  %v9139_v0 = vmul.f32 %v10364_v37, %v18074_v28 }
 0x91e   : > { %9283 = vst.msk [vmem:[%s17125_s11 + $0x198] sm:$0xff] %vm1024_vm4, %v9219_v62  ;;  %v9226_v4 = vmul.f32 %v9117_v44, %v17588_v61  ;;  %v9072_v13 = vsub.f32 1.5, %v9071_v33  ;;  %v9091_v42 = vmul.f32 0.5, %v9090_v26  ;;  %vm9074_vm5 = vweird.f32 %v18036_v5 }
 0x91f   : > { %9285 = vst.msk [vmem:[%s17125_s11 + $0x1a8] sm:$0xff] %vm1024_vm4, %v9221_v2  ;;  %v8460_v48 = vmul.f32 %v8390_v35, %v19126_v52  ;;  %v8462_v29 = vmul.f32 %v8396_v55, %v19126_v52  ;;  %vm9095_vm11 = vweird.f32 %v10362_v32  ;;  %v9140_v1 = vmul.f32 %v10364_v37, %v9139_v0  ;;  %vm9076_vm2 = vmor %vm9074_vm5, %vm9075_vm1 }
 0x920   : > { %9290 = vst.msk [vmem:[%s17125_s11 + $0x1d0] sm:$0xff] %vm1024_vm4, %v9226_v4  ;;  %v9073_v10 = vmul.f32 %v10360_v49, %v9072_v13  ;;  %v9092_v25 = vsub.f32 1.5, %v9091_v42  ;;  %vm9094_vm14 = vweird.f32 %v18038_v22  ;;  %vm9145_vm8 = vweird.f32 %v10364_v37  ;;  %v8399_v12 = vpop.xlane.xlu2 %8398 }
 0x921   : > { %v10366_v15 = vpop.eup %10365  ;;  %v18123_v61 = vadd.f32 1e-08, %v8460_v48  ;;  %v18125_v34 = vadd.f32 1e-08, %v8462_v29  ;;  %v9141_v51 = vmul.f32 0.5, %v9140_v1  ;;  %vm9096_vm12 = vmor %vm9094_vm14, %vm9095_vm11  ;;  %vm9144_vm9 = vweird.f32 %v18074_v28 }
 0x922   : > { %v9077_v5 = vsel %vm9076_vm2, %v10360_v49, %v9073_v10  ;;  %v9093_v31 = vmul.f32 %v10362_v32, %v9092_v25  ;;  %v9099_v56 = vmul.f32 %v10366_v15, %v18093_v54  ;;  %v8463_v27 = vmul.f32 %v8399_v12, %v19126_v52  ;;  %vm9146_vm15 = vmor %vm9144_vm9, %vm9145_vm8 }
 0x923   : > { %v10368_v30 = vpop.eup %10367  ;;  %v9222_v60 = vmul.f32 %v9077_v5, %v17608_v46  ;;  %10369 = vrsqrt.f32 %v18123_v61  ;;  %v9142_v11 = vsub.f32 1.5, %v9141_v51  ;;  %vm9105_vm0 = vweird.f32 %v10366_v15 }
 0x924   : > { %v9097_v22 = vsel %vm9096_vm12, %v10362_v32, %v9093_v31  ;;  %v9100_v58 = vmul.f32 %v10366_v15, %v9099_v56  ;;  %v9119_v59 = vmul.f32 %v10368_v30, %v18095_v3  ;;  %10371 = vrsqrt.f32 %v18125_v34 }
 0x925   : > { %9286 = vst.msk [vmem:[%s17125_s11 + $0x1b0] sm:$0xff] %vm1024_vm4, %v9222_v60  ;;  %v9224_v8 = vmul.f32 %v9097_v22, %v17613_v50  ;;  %v9143_v46 = vmul.f32 %v10364_v37, %v9142_v11  ;;  %v8527_v49 = vadd.f32 1e-08, %v8463_v27  ;;  %vm9104_vm7 = vweird.f32 %v18093_v54 }
 0x926   : > { %v9101_v7 = vmul.f32 0.5, %v9100_v58  ;;  %v9120_v38 = vmul.f32 %v10368_v30, %v9119_v59  ;;  %vm9125_vm6 = vweird.f32 %v10368_v30  ;;  %vm9106_vm3 = vmor %vm9104_vm7, %vm9105_vm0  ;;  %vm9124_vm13 = vweird.f32 %v18095_v3 }
 0x927   : > { %9288 = vst.msk [vmem:[%s17125_s11 + $0x1c0] sm:$0xff] %vm1024_vm4, %v9224_v8  ;;  %v9147_v47 = vsel %vm9146_vm15, %v10364_v37, %v9143_v46  ;;  %10373 = vrsqrt.f32 %v8527_v49  ;;  %vm9126_vm10 = vmor %vm9124_vm13, %vm9125_vm6  ;;  %vm9134_vm5 = vweird.f32 %v18123_v61  ;;  %vm9154_vm14 = vweird.f32 %v18125_v34 }
 0x928   : > { %v9102_v21 = vsub.f32 1.5, %v9101_v7  ;;  %v9121_v18 = vmul.f32 0.5, %v9120_v38  ;;  %v9229_v28 = vmul.f32 %v9147_v47, %v17616_v23  ;;  %vm9164_vm9 = vweird.f32 %v8527_v49 }
 0x929   : > { %v10370_v50 = vpop.eup %10369 }
 0x92a   : > { %v9103_v43 = vmul.f32 %v10366_v15, %v9102_v21  ;;  %v9122_v45 = vsub.f32 1.5, %v9121_v18  ;;  %v9129_v52 = vmul.f32 %v10370_v50, %v18123_v61  ;;  %v10372_v57 = vpop.eup %10371  ;;  %9293 = vst.msk [vmem:[%s17125_s11 + $0x1e8] sm:$0xff] %vm1024_vm4, %v9229_v28  ;;  %vm9135_vm1 = vweird.f32 %v10370_v50 }
 0x92b   : > { %v9149_v23 = vmul.f32 %v10372_v57, %v18125_v34  ;;  %vm9155_vm11 = vweird.f32 %v10372_v57  ;;  %vm9136_vm2 = vmor %vm9134_vm5, %vm9135_vm1 }
 0x92c   : > { %v9107_v17 = vsel %vm9106_vm3, %v10366_v15, %v9103_v43  ;;  %v9123_v40 = vmul.f32 %v10368_v30, %v9122_v45  ;;  %v9130_v32 = vmul.f32 %v10370_v50, %v9129_v52  ;;  %vm9156_vm12 = vmor %vm9154_vm14, %vm9155_vm11 }
 0x92d   : > { %v9225_v41 = vmul.f32 %v9107_v17, %v17639_v14  ;;  %v9150_v24 = vmul.f32 %v10372_v57, %v9149_v23  ;;  %v10374_v35 = vpop.eup %10373 }
 0x92e   : > { %v9127_v54 = vsel %vm9126_vm10, %v10368_v30, %v9123_v40  ;;  %v9131_v19 = vmul.f32 0.5, %v9130_v32  ;;  %v9159_v14 = vmul.f32 %v10374_v35, %v8527_v49  ;;  %vm9165_vm8 = vweird.f32 %v10374_v35 }
 0x92f   : > { %9289 = vst.msk [vmem:[%s17125_s11 + $0x1c8] sm:$0xff] %vm1024_vm4, %v9225_v41  ;;  %v9227_v39 = vmul.f32 %v9127_v54, %v17646_v9  ;;  %v9151_v3 = vmul.f32 0.5, %v9150_v24  ;;  %vm9166_vm15 = vmor %vm9164_vm9, %vm9165_vm8 }
 0x930   : > { %v9132_v36 = vsub.f32 1.5, %v9131_v19  ;;  %v9160_v9 = vmul.f32 %v10374_v35, %v9159_v14 }
 0x931   : > { %9291 = vst.msk [vmem:[%s17125_s11 + $0x1d8] sm:$0xff] %vm1024_vm4, %v9227_v39  ;;  %v9152_v63 = vsub.f32 1.5, %v9151_v3 }
 0x932   : > { %v9133_v62 = vmul.f32 %v10370_v50, %v9132_v36  ;;  %v9161_v37 = vmul.f32 0.5, %v9160_v9 }
 0x933   : > { %v9153_v33 = vmul.f32 %v10372_v57, %v9152_v63 }
 0x934   : > { %v9137_v53 = vsel %vm9136_vm2, %v10370_v50, %v9133_v62  ;;  %v9162_v44 = vsub.f32 1.5, %v9161_v37 }
 0x935   : > { %v9228_v26 = vmul.f32 %v9137_v53, %v17659_v6  ;;  %v9157_v55 = vsel %vm9156_vm12, %v10372_v57, %v9153_v33 }
 0x936   : > { %v9230_v2 = vmul.f32 %v9157_v55, %v17667_v16  ;;  %v9163_v4 = vmul.f32 %v10374_v35, %v9162_v44 }
 0x937   : > { %9292 = vst.msk [vmem:[%s17125_s11 + $0x1e0] sm:$0xff] %vm1024_vm4, %v9228_v26 }
 0x938   : > { %9294 = vst.msk [vmem:[%s17125_s11 + $0x1f0] sm:$0xff] %vm1024_vm4, %v9230_v2  ;;  %v9167_v13 = vsel %vm9166_vm15, %v10374_v35, %v9163_v4 }
 0x939   : > { %v9231_v42 = vmul.f32 %v9167_v13, %v17683_v20 }
 0x93b   : > { %9295 = vst.msk [vmem:[%s17125_s11 + $0x1f8] sm:$0xff] %vm1024_vm4, %v9231_v42 }
 0x93c PF: > { %s15_s22 = sadd.s32 1, %s10542_s22   ;;  %s19129_s18 = smov %s10534_s20 }
 0x93d   : > { %p12_p7 = scmp.ge.s32.totalorder %s15_s22, 6   ;;  %s19130_s19 = smov %s10538_s21 }
 0x93e   : > { %s19131_s20 = smov %s19134_s23  ;;  %s19132_s21 = smov %s19138_s24 }
 0x93f   :  { %14 = sbr.rel (!%p12_p7) target bundleno = 3 (0x3), region = 73 }

</bundles_post_ra>
